<compile_context>
chip_gen: v7x
topology: tpu7x:2x2x1
jax: 0.10.0
libtpu: 0.0.40
codegen_flags: <defaults>
</compile_context>

<pallas_src>
import jax
import jax.numpy as jnp
from jax.experimental import pallas as pl
from jax.experimental.pallas import tpu as pltpu

_C0 = 16  # layer-1 folded channel count: 3 (cin) * 3 (kw) = 9 real taps, zero-padded to 16


def _make_fused_kernel(H, W, B, ths):
    f32 = jnp.float32
    bf16 = jnp.bfloat16
    TH1, TH2, TH3, TH4 = ths
    inv_hw = 1.0 / float(H * W)

    def kernel(x0_ref, w1_ref, b1_ref, w2_ref, b2_ref, w3_ref, b3_ref,
               w4_ref, b4_ref, o_ref, buf1, buf2, buf3):

        def zero_border_rows(dst):
            # Padded rows 0 and H+1 must be zero every grid step (scratch persists per core).
            c3 = dst.shape[-1]
            z = jnp.zeros((B, 1, W, c3), bf16)
            dst[:, 0:1, :, :] = z
            dst[:, H + 1:H + 2, :, :] = z

        def store_folded(dst, r0, th, y, cout):
            # y: (B*th*W, cout) f32 -> cast once to bf16 and store kw-folded (taps ordered
            # (kw, c)) into padded rows [1+r0, 1+r0+th).  Stores are full-row, lane-sliced.
            yb = y.astype(bf16).reshape(B, th, W, cout)
            zc = jnp.zeros((B, th, 1, cout), bf16)
            left = jnp.concatenate([zc, yb[:, :, :W - 1, :]], axis=2)   # value at column c-1
            right = jnp.concatenate([yb[:, :, 1:, :], zc], axis=2)      # value at column c+1
            rows = slice(1 + r0, 1 + r0 + th)
            dst[:, rows, :, 0 * cout:1 * cout] = left
            dst[:, rows, :, 1 * cout:2 * cout] = yb
            dst[:, rows, :, 2 * cout:3 * cout] = right

        def conv_rows(src, get_w, bias, r0, th):
            # 3x3 conv for output rows [r0, r0+th): one (B*th*W, 3*cin) x (3*cin, cout)
            # MXU matmul per kh over the kw-folded slab; f32 acc, bias + ReLU epilogue.
            kf = src.shape[-1]
            acc = None
            for kh in range(3):
                patch = src[:, r0 + kh:r0 + kh + th, :, :].reshape(B * th * W, kf)
                d = jnp.dot(patch, get_w(kh), preferred_element_type=f32)
                acc = d if acc is None else acc + d
            return jnp.maximum(acc + bias, 0.0)

        # ----- layer 1: folded input (16-wide, 9 real taps) -> 64 -----
        zero_border_rows(buf1)
        b1 = b1_ref[...]
        for r0 in range(0, H, TH1):
            y = conv_rows(x0_ref, lambda kh: w1_ref[kh], b1, r0, TH1)
            store_folded(buf1, r0, TH1, y, 64)

        # ----- layer 2: 64 -> 128 -----
        zero_border_rows(buf2)
        b2 = b2_ref[...]
        for r0 in range(0, H, TH2):
            y = conv_rows(buf1, lambda kh: w2_ref[kh], b2, r0, TH2)
            store_folded(buf2, r0, TH2, y, 128)

        # ----- layer 3: 128 -> 256 -----
        zero_border_rows(buf3)
        b3 = b3_ref[...]
        for r0 in range(0, H, TH3):
            y = conv_rows(buf2, lambda kh: w3_ref[kh], b3, r0, TH3)
            store_folded(buf3, r0, TH3, y, 256)

        # ----- layer 4: 256 -> 512 as two 256-wide halves + fused global average pool -----
        halves = []
        for co in range(2):
            b4 = b4_ref[co]                       # (1, 256)
            pooled = jnp.zeros((B, 256), f32)
            for r0 in range(0, H, TH4):
                y = conv_rows(buf3, lambda kh, _co=co: w4_ref[_co, kh], b4, r0, TH4)
                pooled = pooled + jnp.sum(y.reshape(B, TH4 * W, 256), axis=1)
            halves.append(pooled)
        out = jnp.concatenate(halves, axis=-1) * inv_hw       # (B, 512)
        o_ref[...] = out.reshape(B, 1, 512)

    return kernel


def _fused_cnn_call(x0, w1, b1, w2, b2, w3, b3, w4, b4, *, H, W, B_BLK):
    N = x0.shape[0]
    C0 = x0.shape[-1]
    n_steps = N // B_BLK

    # Row-tile sizes keeping the f32 accumulator (B*th*W, cout) at <= 32 vregs (32K f32).
    def row_tile(cout):
        t = max(1, (32 * 1024) // (B_BLK * W * cout))
        t = min(t, H, 8)
        while H % t:
            t -= 1
        return t

    ths = (row_tile(64), row_tile(128), row_tile(256), row_tile(256))
    kernel = _make_fused_kernel(H, W, B_BLK, ths)

    def full(a):
        nd = a.ndim
        return pl.BlockSpec(a.shape, lambda n, _nd=nd: (0,) * _nd)

    grid_spec = pltpu.PrefetchScalarGridSpec(
        num_scalar_prefetch=0,
        grid=(n_steps,),
        in_specs=[
            pl.BlockSpec((B_BLK, H + 2, W, C0), lambda n: (n, 0, 0, 0)),
            full(w1), full(b1), full(w2), full(b2),
            full(w3), full(b3), full(w4), full(b4),
        ],
        out_specs=pl.BlockSpec((B_BLK, 1, 512), lambda n: (n, 0, 0)),
        scratch_shapes=[
            pltpu.VMEM((B_BLK, H + 2, W, 3 * 64), jnp.bfloat16),
            pltpu.VMEM((B_BLK, H + 2, W, 3 * 128), jnp.bfloat16),
            pltpu.VMEM((B_BLK, H + 2, W, 3 * 256), jnp.bfloat16),
        ],
    )
    # TODO(synk): weights/biases have constant index_maps; single-buffering them
    # (pipeline_mode=pl.Buffered(1)) would reclaim ~3 MB VMEM at large H,W on v7x.
    return pl.pallas_call(
        kernel,
        out_shape=jax.ShapeDtypeStruct((N, 1, 512), jnp.float32),
        grid_spec=grid_spec,
        compiler_params=pltpu.CompilerParams(
            dimension_semantics=("parallel",),
            vmem_limit_bytes=48 * 1024 * 1024,   # headroom-safe on v7x's 64 MiB VMEM
        ),
    )(x0, w1, b1, w2, b2, w3, b3, w4, b4)


def _fold_input(x_nhwc, c0):
    """(N,H,W,3) -> kw-folded, row-padded (N, H+2, W, c0) bf16; taps ordered (kw, cin)."""
    N, H, W, C = x_nhwc.shape
    xp = jnp.pad(x_nhwc, ((0, 0), (1, 1), (1, 1), (0, 0)))
    x0 = jnp.concatenate([xp[:, :, kw:kw + W, :] for kw in range(3)], axis=-1)  # (N,H+2,W,9)
    x0 = jnp.pad(x0, ((0, 0), (0, 0), (0, 0), (0, c0 - 3 * C)))
    return x0.astype(jnp.bfloat16)


def _prep_layer(p):
    """Fold BN scale into the conv weights (exact); -> ((3, 3*cin, cout) f32, (1,cout) f32)."""
    w = p["w"] * p["scale"].reshape(1, 1, 1, -1)          # (kh, kw, cin, cout)
    kh, kw, cin, cout = w.shape
    return w.reshape(kh, kw * cin, cout), p["bias"]


def init_params(key):
    """Deterministic synthetic parameters for the 4 conv+BN layers (inference-mode folding)."""
    layer_dims = [(3, 64), (64, 128), (128, 256), (256, 512)]
    eps = 1e-5
    params = []
    for (cin, cout) in layer_dims:
        key, kw, kb, kg, kbe, km, kv = jax.random.split(key, 7)
        fan_in = 3 * 3 * cin
        w = jax.random.normal(kw, (3, 3, cin, cout), jnp.float32) / jnp.sqrt(fan_in)
        b_conv = 0.1 * jax.random.normal(kb, (cout,), jnp.float32)
        gamma = jax.random.uniform(kg, (cout,), jnp.float32, 0.5, 1.5)
        beta = 0.1 * jax.random.normal(kbe, (cout,), jnp.float32)
        run_mean = 0.1 * jax.random.normal(km, (cout,), jnp.float32)
        run_var = jax.random.uniform(kv, (cout,), jnp.float32, 0.5, 1.5)
        scale = gamma / jnp.sqrt(run_var + eps)               # (cout,)
        bias = (b_conv - run_mean) * scale + beta             # (cout,)
        params.append(dict(w=w, scale=scale.reshape(1, cout), bias=bias.reshape(1, cout)))
    return params


@jax.jit
def cnn_img_forward(x_nchw, params):
    # NCHW (PyTorch) -> NHWC (kernel layout)
    x = jnp.transpose(x_nchw, (0, 2, 3, 1)).astype(jnp.float32)
    N, H, W, C = x.shape
    assert C == 3 and H % 8 == 0 and W % 8 == 0

    x0 = _fold_input(x, _C0)                                  # (N, H+2, W, 16) bf16

    (w1, b1), (w2, b2), (w3, b3), (w4f, b4f) = [_prep_layer(p) for p in params]
    w1 = jnp.pad(w1, ((0, 0), (0, _C0 - w1.shape[1]), (0, 0))).astype(jnp.bfloat16)  # (3,16,64)
    w2 = w2.astype(jnp.bfloat16)                              # (3, 192, 128)
    w3 = w3.astype(jnp.bfloat16)                              # (3, 384, 256)
    # layer 4 split into two 256-wide output halves
    w4 = jnp.stack([w4f[..., :256], w4f[..., 256:]], axis=0).astype(jnp.bfloat16)  # (2,3,768,256)
    b4 = b4f.reshape(2, 1, 256)

    # Batch blocking: fold B_BLK images into the matmul M dim once N is big enough; keep the
    # grid at (N,) for tiny N so both v7x TensorCores get work.
    B_BLK = 2 if (N % 2 == 0 and N >= 4) else 1

    out = _fused_cnn_call(x0, w1, b1, w2, b2, w3, b3, w4, b4, H=H, W=W, B_BLK=B_BLK)
    return out.reshape(N, 512)


def reference_forward(x_nchw, params):
    """Pure-JAX f32 reference (eval-mode BN), for validation."""
    x = jnp.transpose(x_nchw, (0, 2, 3, 1)).astype(jnp.float32)
    for p in params:
        x = jax.lax.conv_general_dilated(
            x, p["w"], window_strides=(1, 1), padding="SAME",
            dimension_numbers=("NHWC", "HWIO", "NHWC"))
        x = jnp.maximum(x * p["scale"].reshape(1, 1, 1, -1)
                        + p["bias"].reshape(1, 1, 1, -1), 0.0)
    return jnp.mean(x, axis=(1, 2))                            # (N, 512)


if __name__ == "__main__":
    key = jax.random.PRNGKey(0)
    key, kx = jax.random.split(key)
    # PyTorch-style NCHW input: batch=2, channels=3 (required by conv1), 16x16 spatial.
    x = jax.random.normal(kx, (2, 3, 16, 16), jnp.float32)
    params = init_params(key)

    out = jax.block_until_ready(cnn_img_forward(x, params))
    assert out.shape == (2, 512), out.shape
    assert out.dtype == jnp.float32
    assert bool(jnp.all(jnp.isfinite(out)))

    ref = jax.block_until_ready(reference_forward(x, params))
    rel = float(jnp.max(jnp.abs(out - ref)) / (jnp.max(jnp.abs(ref)) + 1e-6))
    assert rel < 5e-2, f"kernel/reference mismatch: rel_err={rel}"
    print("KERNEL_OK")
</pallas_src>

<mosaic_0001>
module attributes {stable_mosaic.version = 11 : i64} {
  func.func @kernel(%arg0: i32, %arg1: memref<1x18x16x16xbf16, #tpu.memory_space<vmem>>, %arg2: memref<3x16x64xbf16, #tpu.memory_space<vmem>>, %arg3: memref<1x64xf32, #tpu.memory_space<vmem>>, %arg4: memref<3x192x128xbf16, #tpu.memory_space<vmem>>, %arg5: memref<1x128xf32, #tpu.memory_space<vmem>>, %arg6: memref<3x384x256xbf16, #tpu.memory_space<vmem>>, %arg7: memref<1x256xf32, #tpu.memory_space<vmem>>, %arg8: memref<2x3x768x256xbf16, #tpu.memory_space<vmem>>, %arg9: memref<2x1x256xf32, #tpu.memory_space<vmem>>, %arg10: memref<1x1x512xf32, #tpu.memory_space<vmem>>, %arg11: memref<1x18x16x192xbf16, #tpu.memory_space<vmem>>, %arg12: memref<1x18x16x384xbf16, #tpu.memory_space<vmem>>, %arg13: memref<1x18x16x768xbf16, #tpu.memory_space<vmem>>) attributes {dimension_semantics = [#tpu.dimension_semantics<parallel>], iteration_bounds = array<i64: 2>, scalar_prefetch = 0 : i64, scratch_operands = 3 : i64, tpu.core_type = #tpu.core_type<tc>, window_params = [{transform_indices = @transform_0, window_bounds = array<i64: 1, 18, 16, 16>}, {pipeline_mode = #tpu.pipeline_mode<synchronous>, transform_indices = @transform_1, window_bounds = array<i64: 3, 16, 64>}, {pipeline_mode = #tpu.pipeline_mode<synchronous>, transform_indices = @transform_2, window_bounds = array<i64: 1, 64>}, {pipeline_mode = #tpu.pipeline_mode<synchronous>, transform_indices = @transform_3, window_bounds = array<i64: 3, 192, 128>}, {pipeline_mode = #tpu.pipeline_mode<synchronous>, transform_indices = @transform_4, window_bounds = array<i64: 1, 128>}, {pipeline_mode = #tpu.pipeline_mode<synchronous>, transform_indices = @transform_5, window_bounds = array<i64: 3, 384, 256>}, {pipeline_mode = #tpu.pipeline_mode<synchronous>, transform_indices = @transform_6, window_bounds = array<i64: 1, 256>}, {pipeline_mode = #tpu.pipeline_mode<synchronous>, transform_indices = @transform_7, window_bounds = array<i64: 2, 3, 768, 256>}, {pipeline_mode = #tpu.pipeline_mode<synchronous>, transform_indices = @transform_8, window_bounds = array<i64: 2, 1, 256>}, {transform_indices = @transform_9, window_bounds = array<i64: 1, 1, 512>}]} {
    %cst = arith.constant 0.000000e+00 : bf16
    %0 = vector.broadcast %cst : bf16 to vector<1x1x16x192xbf16>
    %c0 = arith.constant 0 : index
    %c0_0 = arith.constant 0 : index
    %c0_1 = arith.constant 0 : index
    %c0_2 = arith.constant 0 : index
    %1 = vector.load %arg11[%c0, %c0_0, %c0_1, %c0_2] : memref<1x18x16x192xbf16, #tpu.memory_space<vmem>>, vector<1x1x16x192xbf16>
    tpu.vector_store %arg11[%c0, %c0_0, %c0_1, %c0_2], %0 {strides = array<i32>} : memref<1x18x16x192xbf16, #tpu.memory_space<vmem>>, vector<1x1x16x192xbf16>,
    %c0_3 = arith.constant 0 : index
    %c17 = arith.constant 17 : index
    %c0_4 = arith.constant 0 : index
    %c0_5 = arith.constant 0 : index
    %2 = vector.load %arg11[%c0_3, %c17, %c0_4, %c0_5] : memref<1x18x16x192xbf16, #tpu.memory_space<vmem>>, vector<1x1x16x192xbf16>
    tpu.vector_store %arg11[%c0_3, %c17, %c0_4, %c0_5], %0 {strides = array<i32>} : memref<1x18x16x192xbf16, #tpu.memory_space<vmem>>, vector<1x1x16x192xbf16>,
    %c0_6 = arith.constant 0 : index
    %c0_7 = arith.constant 0 : index
    %3 = vector.load %arg3[%c0_6, %c0_7] : memref<1x64xf32, #tpu.memory_space<vmem>>, vector<1x64xf32>
    %c0_8 = arith.constant 0 : index
    %c0_9 = arith.constant 0 : index
    %c0_10 = arith.constant 0 : index
    %c0_11 = arith.constant 0 : index
    %4 = vector.load %arg1[%c0_8, %c0_9, %c0_10, %c0_11] : memref<1x18x16x16xbf16, #tpu.memory_space<vmem>>, vector<1x8x16x16xbf16>
    %5 = vector.shape_cast %4 : vector<1x8x16x16xbf16> to vector<128x16xbf16>
    %c0_12 = arith.constant 0 : index
    %c0_13 = arith.constant 0 : index
    %c0_14 = arith.constant 0 : index
    %6 = vector.load %arg2[%c0_12, %c0_13, %c0_14] : memref<3x16x64xbf16, #tpu.memory_space<vmem>>, vector<1x16x64xbf16>
    %7 = vector.shape_cast %6 : vector<1x16x64xbf16> to vector<16x64xbf16>
    %cst_15 = arith.constant dense<0.000000e+00> : vector<128x64xf32>
    %8 = tpu.matmul %5, %7, %cst_15 {dimension_numbers = #tpu.dot_dimension_numbers<[1], [0], [0], [1], [0, 0, 1, 1], [], []>} : vector<128x16xbf16>, vector<16x64xbf16>, vector<128x64xf32> -> vector<128x64xf32>
    %c0_16 = arith.constant 0 : index
    %c1 = arith.constant 1 : index
    %c0_17 = arith.constant 0 : index
    %c0_18 = arith.constant 0 : index
    %9 = vector.load %arg1[%c0_16, %c1, %c0_17, %c0_18] : memref<1x18x16x16xbf16, #tpu.memory_space<vmem>>, vector<1x8x16x16xbf16>
    %10 = vector.shape_cast %9 : vector<1x8x16x16xbf16> to vector<128x16xbf16>
    %c1_19 = arith.constant 1 : index
    %c0_20 = arith.constant 0 : index
    %c0_21 = arith.constant 0 : index
    %11 = vector.load %arg2[%c1_19, %c0_20, %c0_21] : memref<3x16x64xbf16, #tpu.memory_space<vmem>>, vector<1x16x64xbf16>
    %12 = vector.shape_cast %11 : vector<1x16x64xbf16> to vector<16x64xbf16>
    %cst_22 = arith.constant dense<0.000000e+00> : vector<128x64xf32>
    %13 = tpu.matmul %10, %12, %cst_22 {dimension_numbers = #tpu.dot_dimension_numbers<[1], [0], [0], [1], [0, 0, 1, 1], [], []>} : vector<128x16xbf16>, vector<16x64xbf16>, vector<128x64xf32> -> vector<128x64xf32>
    %14 = arith.addf %8, %13 : vector<128x64xf32>
    %c0_23 = arith.constant 0 : index
    %c2 = arith.constant 2 : index
    %c0_24 = arith.constant 0 : index
    %c0_25 = arith.constant 0 : index
    %15 = vector.load %arg1[%c0_23, %c2, %c0_24, %c0_25] : memref<1x18x16x16xbf16, #tpu.memory_space<vmem>>, vector<1x8x16x16xbf16>
    %16 = vector.shape_cast %15 : vector<1x8x16x16xbf16> to vector<128x16xbf16>
    %c2_26 = arith.constant 2 : index
    %c0_27 = arith.constant 0 : index
    %c0_28 = arith.constant 0 : index
    %17 = vector.load %arg2[%c2_26, %c0_27, %c0_28] : memref<3x16x64xbf16, #tpu.memory_space<vmem>>, vector<1x16x64xbf16>
    %18 = vector.shape_cast %17 : vector<1x16x64xbf16> to vector<16x64xbf16>
    %cst_29 = arith.constant dense<0.000000e+00> : vector<128x64xf32>
    %19 = tpu.matmul %16, %18, %cst_29 {dimension_numbers = #tpu.dot_dimension_numbers<[1], [0], [0], [1], [0, 0, 1, 1], [], []>} : vector<128x16xbf16>, vector<16x64xbf16>, vector<128x64xf32> -> vector<128x64xf32>
    %20 = arith.addf %14, %19 : vector<128x64xf32>
    %21 = vector.broadcast %3 : vector<1x64xf32> to vector<128x64xf32>
    %22 = arith.addf %20, %21 : vector<128x64xf32>
    %cst_30 = arith.constant 0.000000e+00 : f32
    %23 = vector.broadcast %cst_30 : f32 to vector<128x64xf32>
    %24 = arith.maximumf %22, %23 : vector<128x64xf32>
    %25 = arith.truncf %24 : vector<128x64xf32> to vector<128x64xbf16>
    %26 = vector.shape_cast %25 : vector<128x64xbf16> to vector<1x8x16x64xbf16>
    %cst_31 = arith.constant 0.000000e+00 : bf16
    %27 = vector.broadcast %cst_31 : bf16 to vector<1x8x1x64xbf16>
    %28 = vector.extract_strided_slice %26 {offsets = [0, 0, 0, 0], sizes = [1, 8, 15, 64], strides = [1, 1, 1, 1]} : vector<1x8x16x64xbf16> to vector<1x8x15x64xbf16>
    %29 = tpu.concatenate %27, %28 in 2 : vector<1x8x1x64xbf16>, vector<1x8x15x64xbf16> -> vector<1x8x16x64xbf16>
    %30 = vector.extract_strided_slice %26 {offsets = [0, 0, 1, 0], sizes = [1, 8, 15, 64], strides = [1, 1, 1, 1]} : vector<1x8x16x64xbf16> to vector<1x8x15x64xbf16>
    %31 = tpu.concatenate %30, %27 in 2 : vector<1x8x15x64xbf16>, vector<1x8x1x64xbf16> -> vector<1x8x16x64xbf16>
    %c0_32 = arith.constant 0 : index
    %c1_33 = arith.constant 1 : index
    %c0_34 = arith.constant 0 : index
    %c0_35 = arith.constant 0 : index
    %32 = vector.load %arg11[%c0_32, %c1_33, %c0_34, %c0_35] : memref<1x18x16x192xbf16, #tpu.memory_space<vmem>>, vector<1x8x16x64xbf16>
    tpu.vector_store %arg11[%c0_32, %c1_33, %c0_34, %c0_35], %29 {strides = array<i32>} : memref<1x18x16x192xbf16, #tpu.memory_space<vmem>>, vector<1x8x16x64xbf16>,
    %c0_36 = arith.constant 0 : index
    %c1_37 = arith.constant 1 : index
    %c0_38 = arith.constant 0 : index
    %c64 = arith.constant 64 : index
    %33 = vector.load %arg11[%c0_36, %c1_37, %c0_38, %c64] : memref<1x18x16x192xbf16, #tpu.memory_space<vmem>>, vector<1x8x16x64xbf16>
    tpu.vector_store %arg11[%c0_36, %c1_37, %c0_38, %c64], %26 {strides = array<i32>} : memref<1x18x16x192xbf16, #tpu.memory_space<vmem>>, vector<1x8x16x64xbf16>,
    %c0_39 = arith.constant 0 : index
    %c1_40 = arith.constant 1 : index
    %c0_41 = arith.constant 0 : index
    %c128 = arith.constant 128 : index
    %34 = vector.load %arg11[%c0_39, %c1_40, %c0_41, %c128] : memref<1x18x16x192xbf16, #tpu.memory_space<vmem>>, vector<1x8x16x64xbf16>
    tpu.vector_store %arg11[%c0_39, %c1_40, %c0_41, %c128], %31 {strides = array<i32>} : memref<1x18x16x192xbf16, #tpu.memory_space<vmem>>, vector<1x8x16x64xbf16>,
    %c0_42 = arith.constant 0 : index
    %c8 = arith.constant 8 : index
    %c0_43 = arith.constant 0 : index
    %c0_44 = arith.constant 0 : index
    %35 = vector.load %arg1[%c0_42, %c8, %c0_43, %c0_44] : memref<1x18x16x16xbf16, #tpu.memory_space<vmem>>, vector<1x8x16x16xbf16>
    %36 = vector.shape_cast %35 : vector<1x8x16x16xbf16> to vector<128x16xbf16>
    %c0_45 = arith.constant 0 : index
    %c0_46 = arith.constant 0 : index
    %c0_47 = arith.constant 0 : index
    %37 = vector.load %arg2[%c0_45, %c0_46, %c0_47] : memref<3x16x64xbf16, #tpu.memory_space<vmem>>, vector<1x16x64xbf16>
    %38 = vector.shape_cast %37 : vector<1x16x64xbf16> to vector<16x64xbf16>
    %cst_48 = arith.constant dense<0.000000e+00> : vector<128x64xf32>
    %39 = tpu.matmul %36, %38, %cst_48 {dimension_numbers = #tpu.dot_dimension_numbers<[1], [0], [0], [1], [0, 0, 1, 1], [], []>} : vector<128x16xbf16>, vector<16x64xbf16>, vector<128x64xf32> -> vector<128x64xf32>
    %c0_49 = arith.constant 0 : index
    %c9 = arith.constant 9 : index
    %c0_50 = arith.constant 0 : index
    %c0_51 = arith.constant 0 : index
    %40 = vector.load %arg1[%c0_49, %c9, %c0_50, %c0_51] : memref<1x18x16x16xbf16, #tpu.memory_space<vmem>>, vector<1x8x16x16xbf16>
    %41 = vector.shape_cast %40 : vector<1x8x16x16xbf16> to vector<128x16xbf16>
    %c1_52 = arith.constant 1 : index
    %c0_53 = arith.constant 0 : index
    %c0_54 = arith.constant 0 : index
    %42 = vector.load %arg2[%c1_52, %c0_53, %c0_54] : memref<3x16x64xbf16, #tpu.memory_space<vmem>>, vector<1x16x64xbf16>
    %43 = vector.shape_cast %42 : vector<1x16x64xbf16> to vector<16x64xbf16>
    %cst_55 = arith.constant dense<0.000000e+00> : vector<128x64xf32>
    %44 = tpu.matmul %41, %43, %cst_55 {dimension_numbers = #tpu.dot_dimension_numbers<[1], [0], [0], [1], [0, 0, 1, 1], [], []>} : vector<128x16xbf16>, vector<16x64xbf16>, vector<128x64xf32> -> vector<128x64xf32>
    %45 = arith.addf %39, %44 : vector<128x64xf32>
    %c0_56 = arith.constant 0 : index
    %c10 = arith.constant 10 : index
    %c0_57 = arith.constant 0 : index
    %c0_58 = arith.constant 0 : index
    %46 = vector.load %arg1[%c0_56, %c10, %c0_57, %c0_58] : memref<1x18x16x16xbf16, #tpu.memory_space<vmem>>, vector<1x8x16x16xbf16>
    %47 = vector.shape_cast %46 : vector<1x8x16x16xbf16> to vector<128x16xbf16>
    %c2_59 = arith.constant 2 : index
    %c0_60 = arith.constant 0 : index
    %c0_61 = arith.constant 0 : index
    %48 = vector.load %arg2[%c2_59, %c0_60, %c0_61] : memref<3x16x64xbf16, #tpu.memory_space<vmem>>, vector<1x16x64xbf16>
    %49 = vector.shape_cast %48 : vector<1x16x64xbf16> to vector<16x64xbf16>
    %cst_62 = arith.constant dense<0.000000e+00> : vector<128x64xf32>
    %50 = tpu.matmul %47, %49, %cst_62 {dimension_numbers = #tpu.dot_dimension_numbers<[1], [0], [0], [1], [0, 0, 1, 1], [], []>} : vector<128x16xbf16>, vector<16x64xbf16>, vector<128x64xf32> -> vector<128x64xf32>
    %51 = arith.addf %45, %50 : vector<128x64xf32>
    %52 = vector.broadcast %3 : vector<1x64xf32> to vector<128x64xf32>
    %53 = arith.addf %51, %52 : vector<128x64xf32>
    %cst_63 = arith.constant 0.000000e+00 : f32
    %54 = vector.broadcast %cst_63 : f32 to vector<128x64xf32>
    %55 = arith.maximumf %53, %54 : vector<128x64xf32>
    %56 = arith.truncf %55 : vector<128x64xf32> to vector<128x64xbf16>
    %57 = vector.shape_cast %56 : vector<128x64xbf16> to vector<1x8x16x64xbf16>
    %cst_64 = arith.constant 0.000000e+00 : bf16
    %58 = vector.broadcast %cst_64 : bf16 to vector<1x8x1x64xbf16>
    %59 = vector.extract_strided_slice %57 {offsets = [0, 0, 0, 0], sizes = [1, 8, 15, 64], strides = [1, 1, 1, 1]} : vector<1x8x16x64xbf16> to vector<1x8x15x64xbf16>
    %60 = tpu.concatenate %58, %59 in 2 : vector<1x8x1x64xbf16>, vector<1x8x15x64xbf16> -> vector<1x8x16x64xbf16>
    %61 = vector.extract_strided_slice %57 {offsets = [0, 0, 1, 0], sizes = [1, 8, 15, 64], strides = [1, 1, 1, 1]} : vector<1x8x16x64xbf16> to vector<1x8x15x64xbf16>
    %62 = tpu.concatenate %61, %58 in 2 : vector<1x8x15x64xbf16>, vector<1x8x1x64xbf16> -> vector<1x8x16x64xbf16>
    %c0_65 = arith.constant 0 : index
    %c9_66 = arith.constant 9 : index
    %c0_67 = arith.constant 0 : index
    %c0_68 = arith.constant 0 : index
    %63 = vector.load %arg11[%c0_65, %c9_66, %c0_67, %c0_68] : memref<1x18x16x192xbf16, #tpu.memory_space<vmem>>, vector<1x8x16x64xbf16>
    tpu.vector_store %arg11[%c0_65, %c9_66, %c0_67, %c0_68], %60 {strides = array<i32>} : memref<1x18x16x192xbf16, #tpu.memory_space<vmem>>, vector<1x8x16x64xbf16>,
    %c0_69 = arith.constant 0 : index
    %c9_70 = arith.constant 9 : index
    %c0_71 = arith.constant 0 : index
    %c64_72 = arith.constant 64 : index
    %64 = vector.load %arg11[%c0_69, %c9_70, %c0_71, %c64_72] : memref<1x18x16x192xbf16, #tpu.memory_space<vmem>>, vector<1x8x16x64xbf16>
    tpu.vector_store %arg11[%c0_69, %c9_70, %c0_71, %c64_72], %57 {strides = array<i32>} : memref<1x18x16x192xbf16, #tpu.memory_space<vmem>>, vector<1x8x16x64xbf16>,
    %c0_73 = arith.constant 0 : index
    %c9_74 = arith.constant 9 : index
    %c0_75 = arith.constant 0 : index
    %c128_76 = arith.constant 128 : index
    %65 = vector.load %arg11[%c0_73, %c9_74, %c0_75, %c128_76] : memref<1x18x16x192xbf16, #tpu.memory_space<vmem>>, vector<1x8x16x64xbf16>
    tpu.vector_store %arg11[%c0_73, %c9_74, %c0_75, %c128_76], %62 {strides = array<i32>} : memref<1x18x16x192xbf16, #tpu.memory_space<vmem>>, vector<1x8x16x64xbf16>,
    %cst_77 = arith.constant 0.000000e+00 : bf16
    %66 = vector.broadcast %cst_77 : bf16 to vector<1x1x16x384xbf16>
    %c0_78 = arith.constant 0 : index
    %c0_79 = arith.constant 0 : index
    %c0_80 = arith.constant 0 : index
    %c0_81 = arith.constant 0 : index
    %67 = vector.load %arg12[%c0_78, %c0_79, %c0_80, %c0_81] : memref<1x18x16x384xbf16, #tpu.memory_space<vmem>>, vector<1x1x16x384xbf16>
    tpu.vector_store %arg12[%c0_78, %c0_79, %c0_80, %c0_81], %66 {strides = array<i32>} : memref<1x18x16x384xbf16, #tpu.memory_space<vmem>>, vector<1x1x16x384xbf16>,
    %c0_82 = arith.constant 0 : index
    %c17_83 = arith.constant 17 : index
    %c0_84 = arith.constant 0 : index
    %c0_85 = arith.constant 0 : index
    %68 = vector.load %arg12[%c0_82, %c17_83, %c0_84, %c0_85] : memref<1x18x16x384xbf16, #tpu.memory_space<vmem>>, vector<1x1x16x384xbf16>
    tpu.vector_store %arg12[%c0_82, %c17_83, %c0_84, %c0_85], %66 {strides = array<i32>} : memref<1x18x16x384xbf16, #tpu.memory_space<vmem>>, vector<1x1x16x384xbf16>,
    %c0_86 = arith.constant 0 : index
    %c0_87 = arith.constant 0 : index
    %69 = vector.load %arg5[%c0_86, %c0_87] : memref<1x128xf32, #tpu.memory_space<vmem>>, vector<1x128xf32>
    %c0_88 = arith.constant 0 : index
    %c0_89 = arith.constant 0 : index
    %c0_90 = arith.constant 0 : index
    %c0_91 = arith.constant 0 : index
    %70 = vector.load %arg11[%c0_88, %c0_89, %c0_90, %c0_91] : memref<1x18x16x192xbf16, #tpu.memory_space<vmem>>, vector<1x8x16x192xbf16>
    %71 = vector.shape_cast %70 : vector<1x8x16x192xbf16> to vector<128x192xbf16>
    %c0_92 = arith.constant 0 : index
    %c0_93 = arith.constant 0 : index
    %c0_94 = arith.constant 0 : index
    %72 = vector.load %arg4[%c0_92, %c0_93, %c0_94] : memref<3x192x128xbf16, #tpu.memory_space<vmem>>, vector<1x192x128xbf16>
    %73 = vector.shape_cast %72 : vector<1x192x128xbf16> to vector<192x128xbf16>
    %cst_95 = arith.constant dense<0.000000e+00> : vector<128x128xf32>
    %74 = tpu.matmul %71, %73, %cst_95 {dimension_numbers = #tpu.dot_dimension_numbers<[1], [0], [0], [1], [0, 0, 1, 1], [], []>} : vector<128x192xbf16>, vector<192x128xbf16>, vector<128x128xf32> -> vector<128x128xf32>
    %c0_96 = arith.constant 0 : index
    %c1_97 = arith.constant 1 : index
    %c0_98 = arith.constant 0 : index
    %c0_99 = arith.constant 0 : index
    %75 = vector.load %arg11[%c0_96, %c1_97, %c0_98, %c0_99] : memref<1x18x16x192xbf16, #tpu.memory_space<vmem>>, vector<1x8x16x192xbf16>
    %76 = vector.shape_cast %75 : vector<1x8x16x192xbf16> to vector<128x192xbf16>
    %c1_100 = arith.constant 1 : index
    %c0_101 = arith.constant 0 : index
    %c0_102 = arith.constant 0 : index
    %77 = vector.load %arg4[%c1_100, %c0_101, %c0_102] : memref<3x192x128xbf16, #tpu.memory_space<vmem>>, vector<1x192x128xbf16>
    %78 = vector.shape_cast %77 : vector<1x192x128xbf16> to vector<192x128xbf16>
    %cst_103 = arith.constant dense<0.000000e+00> : vector<128x128xf32>
    %79 = tpu.matmul %76, %78, %cst_103 {dimension_numbers = #tpu.dot_dimension_numbers<[1], [0], [0], [1], [0, 0, 1, 1], [], []>} : vector<128x192xbf16>, vector<192x128xbf16>, vector<128x128xf32> -> vector<128x128xf32>
    %80 = arith.addf %74, %79 : vector<128x128xf32>
    %c0_104 = arith.constant 0 : index
    %c2_105 = arith.constant 2 : index
    %c0_106 = arith.constant 0 : index
    %c0_107 = arith.constant 0 : index
    %81 = vector.load %arg11[%c0_104, %c2_105, %c0_106, %c0_107] : memref<1x18x16x192xbf16, #tpu.memory_space<vmem>>, vector<1x8x16x192xbf16>
    %82 = vector.shape_cast %81 : vector<1x8x16x192xbf16> to vector<128x192xbf16>
    %c2_108 = arith.constant 2 : index
    %c0_109 = arith.constant 0 : index
    %c0_110 = arith.constant 0 : index
    %83 = vector.load %arg4[%c2_108, %c0_109, %c0_110] : memref<3x192x128xbf16, #tpu.memory_space<vmem>>, vector<1x192x128xbf16>
    %84 = vector.shape_cast %83 : vector<1x192x128xbf16> to vector<192x128xbf16>
    %cst_111 = arith.constant dense<0.000000e+00> : vector<128x128xf32>
    %85 = tpu.matmul %82, %84, %cst_111 {dimension_numbers = #tpu.dot_dimension_numbers<[1], [0], [0], [1], [0, 0, 1, 1], [], []>} : vector<128x192xbf16>, vector<192x128xbf16>, vector<128x128xf32> -> vector<128x128xf32>
    %86 = arith.addf %80, %85 : vector<128x128xf32>
    %87 = vector.broadcast %69 : vector<1x128xf32> to vector<128x128xf32>
    %88 = arith.addf %86, %87 : vector<128x128xf32>
    %cst_112 = arith.constant 0.000000e+00 : f32
    %89 = vector.broadcast %cst_112 : f32 to vector<128x128xf32>
    %90 = arith.maximumf %88, %89 : vector<128x128xf32>
    %91 = arith.truncf %90 : vector<128x128xf32> to vector<128x128xbf16>
    %92 = vector.shape_cast %91 : vector<128x128xbf16> to vector<1x8x16x128xbf16>
    %cst_113 = arith.constant 0.000000e+00 : bf16
    %93 = vector.broadcast %cst_113 : bf16 to vector<1x8x1x128xbf16>
    %94 = vector.extract_strided_slice %92 {offsets = [0, 0, 0, 0], sizes = [1, 8, 15, 128], strides = [1, 1, 1, 1]} : vector<1x8x16x128xbf16> to vector<1x8x15x128xbf16>
    %95 = tpu.concatenate %93, %94 in 2 : vector<1x8x1x128xbf16>, vector<1x8x15x128xbf16> -> vector<1x8x16x128xbf16>
    %96 = vector.extract_strided_slice %92 {offsets = [0, 0, 1, 0], sizes = [1, 8, 15, 128], strides = [1, 1, 1, 1]} : vector<1x8x16x128xbf16> to vector<1x8x15x128xbf16>
    %97 = tpu.concatenate %96, %93 in 2 : vector<1x8x15x128xbf16>, vector<1x8x1x128xbf16> -> vector<1x8x16x128xbf16>
    %c0_114 = arith.constant 0 : index
    %c1_115 = arith.constant 1 : index
    %c0_116 = arith.constant 0 : index
    %c0_117 = arith.constant 0 : index
    %98 = vector.load %arg12[%c0_114, %c1_115, %c0_116, %c0_117] : memref<1x18x16x384xbf16, #tpu.memory_space<vmem>>, vector<1x8x16x128xbf16>
    tpu.vector_store %arg12[%c0_114, %c1_115, %c0_116, %c0_117], %95 {strides = array<i32>} : memref<1x18x16x384xbf16, #tpu.memory_space<vmem>>, vector<1x8x16x128xbf16>,
    %c0_118 = arith.constant 0 : index
    %c1_119 = arith.constant 1 : index
    %c0_120 = arith.constant 0 : index
    %c128_121 = arith.constant 128 : index
    %99 = vector.load %arg12[%c0_118, %c1_119, %c0_120, %c128_121] : memref<1x18x16x384xbf16, #tpu.memory_space<vmem>>, vector<1x8x16x128xbf16>
    tpu.vector_store %arg12[%c0_118, %c1_119, %c0_120, %c128_121], %92 {strides = array<i32>} : memref<1x18x16x384xbf16, #tpu.memory_space<vmem>>, vector<1x8x16x128xbf16>,
    %c0_122 = arith.constant 0 : index
    %c1_123 = arith.constant 1 : index
    %c0_124 = arith.constant 0 : index
    %c256 = arith.constant 256 : index
    %100 = vector.load %arg12[%c0_122, %c1_123, %c0_124, %c256] : memref<1x18x16x384xbf16, #tpu.memory_space<vmem>>, vector<1x8x16x128xbf16>
    tpu.vector_store %arg12[%c0_122, %c1_123, %c0_124, %c256], %97 {strides = array<i32>} : memref<1x18x16x384xbf16, #tpu.memory_space<vmem>>, vector<1x8x16x128xbf16>,
    %c0_125 = arith.constant 0 : index
    %c8_126 = arith.constant 8 : index
    %c0_127 = arith.constant 0 : index
    %c0_128 = arith.constant 0 : index
    %101 = vector.load %arg11[%c0_125, %c8_126, %c0_127, %c0_128] : memref<1x18x16x192xbf16, #tpu.memory_space<vmem>>, vector<1x8x16x192xbf16>
    %102 = vector.shape_cast %101 : vector<1x8x16x192xbf16> to vector<128x192xbf16>
    %c0_129 = arith.constant 0 : index
    %c0_130 = arith.constant 0 : index
    %c0_131 = arith.constant 0 : index
    %103 = vector.load %arg4[%c0_129, %c0_130, %c0_131] : memref<3x192x128xbf16, #tpu.memory_space<vmem>>, vector<1x192x128xbf16>
    %104 = vector.shape_cast %103 : vector<1x192x128xbf16> to vector<192x128xbf16>
    %cst_132 = arith.constant dense<0.000000e+00> : vector<128x128xf32>
    %105 = tpu.matmul %102, %104, %cst_132 {dimension_numbers = #tpu.dot_dimension_numbers<[1], [0], [0], [1], [0, 0, 1, 1], [], []>} : vector<128x192xbf16>, vector<192x128xbf16>, vector<128x128xf32> -> vector<128x128xf32>
    %c0_133 = arith.constant 0 : index
    %c9_134 = arith.constant 9 : index
    %c0_135 = arith.constant 0 : index
    %c0_136 = arith.constant 0 : index
    %106 = vector.load %arg11[%c0_133, %c9_134, %c0_135, %c0_136] : memref<1x18x16x192xbf16, #tpu.memory_space<vmem>>, vector<1x8x16x192xbf16>
    %107 = vector.shape_cast %106 : vector<1x8x16x192xbf16> to vector<128x192xbf16>
    %c1_137 = arith.constant 1 : index
    %c0_138 = arith.constant 0 : index
    %c0_139 = arith.constant 0 : index
    %108 = vector.load %arg4[%c1_137, %c0_138, %c0_139] : memref<3x192x128xbf16, #tpu.memory_space<vmem>>, vector<1x192x128xbf16>
    %109 = vector.shape_cast %108 : vector<1x192x128xbf16> to vector<192x128xbf16>
    %cst_140 = arith.constant dense<0.000000e+00> : vector<128x128xf32>
    %110 = tpu.matmul %107, %109, %cst_140 {dimension_numbers = #tpu.dot_dimension_numbers<[1], [0], [0], [1], [0, 0, 1, 1], [], []>} : vector<128x192xbf16>, vector<192x128xbf16>, vector<128x128xf32> -> vector<128x128xf32>
    %111 = arith.addf %105, %110 : vector<128x128xf32>
    %c0_141 = arith.constant 0 : index
    %c10_142 = arith.constant 10 : index
    %c0_143 = arith.constant 0 : index
    %c0_144 = arith.constant 0 : index
    %112 = vector.load %arg11[%c0_141, %c10_142, %c0_143, %c0_144] : memref<1x18x16x192xbf16, #tpu.memory_space<vmem>>, vector<1x8x16x192xbf16>
    %113 = vector.shape_cast %112 : vector<1x8x16x192xbf16> to vector<128x192xbf16>
    %c2_145 = arith.constant 2 : index
    %c0_146 = arith.constant 0 : index
    %c0_147 = arith.constant 0 : index
    %114 = vector.load %arg4[%c2_145, %c0_146, %c0_147] : memref<3x192x128xbf16, #tpu.memory_space<vmem>>, vector<1x192x128xbf16>
    %115 = vector.shape_cast %114 : vector<1x192x128xbf16> to vector<192x128xbf16>
    %cst_148 = arith.constant dense<0.000000e+00> : vector<128x128xf32>
    %116 = tpu.matmul %113, %115, %cst_148 {dimension_numbers = #tpu.dot_dimension_numbers<[1], [0], [0], [1], [0, 0, 1, 1], [], []>} : vector<128x192xbf16>, vector<192x128xbf16>, vector<128x128xf32> -> vector<128x128xf32>
    %117 = arith.addf %111, %116 : vector<128x128xf32>
    %118 = vector.broadcast %69 : vector<1x128xf32> to vector<128x128xf32>
    %119 = arith.addf %117, %118 : vector<128x128xf32>
    %cst_149 = arith.constant 0.000000e+00 : f32
    %120 = vector.broadcast %cst_149 : f32 to vector<128x128xf32>
    %121 = arith.maximumf %119, %120 : vector<128x128xf32>
    %122 = arith.truncf %121 : vector<128x128xf32> to vector<128x128xbf16>
    %123 = vector.shape_cast %122 : vector<128x128xbf16> to vector<1x8x16x128xbf16>
    %cst_150 = arith.constant 0.000000e+00 : bf16
    %124 = vector.broadcast %cst_150 : bf16 to vector<1x8x1x128xbf16>
    %125 = vector.extract_strided_slice %123 {offsets = [0, 0, 0, 0], sizes = [1, 8, 15, 128], strides = [1, 1, 1, 1]} : vector<1x8x16x128xbf16> to vector<1x8x15x128xbf16>
    %126 = tpu.concatenate %124, %125 in 2 : vector<1x8x1x128xbf16>, vector<1x8x15x128xbf16> -> vector<1x8x16x128xbf16>
    %127 = vector.extract_strided_slice %123 {offsets = [0, 0, 1, 0], sizes = [1, 8, 15, 128], strides = [1, 1, 1, 1]} : vector<1x8x16x128xbf16> to vector<1x8x15x128xbf16>
    %128 = tpu.concatenate %127, %124 in 2 : vector<1x8x15x128xbf16>, vector<1x8x1x128xbf16> -> vector<1x8x16x128xbf16>
    %c0_151 = arith.constant 0 : index
    %c9_152 = arith.constant 9 : index
    %c0_153 = arith.constant 0 : index
    %c0_154 = arith.constant 0 : index
    %129 = vector.load %arg12[%c0_151, %c9_152, %c0_153, %c0_154] : memref<1x18x16x384xbf16, #tpu.memory_space<vmem>>, vector<1x8x16x128xbf16>
    tpu.vector_store %arg12[%c0_151, %c9_152, %c0_153, %c0_154], %126 {strides = array<i32>} : memref<1x18x16x384xbf16, #tpu.memory_space<vmem>>, vector<1x8x16x128xbf16>,
    %c0_155 = arith.constant 0 : index
    %c9_156 = arith.constant 9 : index
    %c0_157 = arith.constant 0 : index
    %c128_158 = arith.constant 128 : index
    %130 = vector.load %arg12[%c0_155, %c9_156, %c0_157, %c128_158] : memref<1x18x16x384xbf16, #tpu.memory_space<vmem>>, vector<1x8x16x128xbf16>
    tpu.vector_store %arg12[%c0_155, %c9_156, %c0_157, %c128_158], %123 {strides = array<i32>} : memref<1x18x16x384xbf16, #tpu.memory_space<vmem>>, vector<1x8x16x128xbf16>,
    %c0_159 = arith.constant 0 : index
    %c9_160 = arith.constant 9 : index
    %c0_161 = arith.constant 0 : index
    %c256_162 = arith.constant 256 : index
    %131 = vector.load %arg12[%c0_159, %c9_160, %c0_161, %c256_162] : memref<1x18x16x384xbf16, #tpu.memory_space<vmem>>, vector<1x8x16x128xbf16>
    tpu.vector_store %arg12[%c0_159, %c9_160, %c0_161, %c256_162], %128 {strides = array<i32>} : memref<1x18x16x384xbf16, #tpu.memory_space<vmem>>, vector<1x8x16x128xbf16>,
    %cst_163 = arith.constant 0.000000e+00 : bf16
    %132 = vector.broadcast %cst_163 : bf16 to vector<1x1x16x768xbf16>
    %c0_164 = arith.constant 0 : index
    %c0_165 = arith.constant 0 : index
    %c0_166 = arith.constant 0 : index
    %c0_167 = arith.constant 0 : index
    %133 = vector.load %arg13[%c0_164, %c0_165, %c0_166, %c0_167] : memref<1x18x16x768xbf16, #tpu.memory_space<vmem>>, vector<1x1x16x768xbf16>
    tpu.vector_store %arg13[%c0_164, %c0_165, %c0_166, %c0_167], %132 {strides = array<i32>} : memref<1x18x16x768xbf16, #tpu.memory_space<vmem>>, vector<1x1x16x768xbf16>,
    %c0_168 = arith.constant 0 : index
    %c17_169 = arith.constant 17 : index
    %c0_170 = arith.constant 0 : index
    %c0_171 = arith.constant 0 : index
    %134 = vector.load %arg13[%c0_168, %c17_169, %c0_170, %c0_171] : memref<1x18x16x768xbf16, #tpu.memory_space<vmem>>, vector<1x1x16x768xbf16>
    tpu.vector_store %arg13[%c0_168, %c17_169, %c0_170, %c0_171], %132 {strides = array<i32>} : memref<1x18x16x768xbf16, #tpu.memory_space<vmem>>, vector<1x1x16x768xbf16>,
    %c0_172 = arith.constant 0 : index
    %c0_173 = arith.constant 0 : index
    %135 = vector.load %arg7[%c0_172, %c0_173] : memref<1x256xf32, #tpu.memory_space<vmem>>, vector<1x256xf32>
    %c0_174 = arith.constant 0 : index
    %c0_175 = arith.constant 0 : index
    %c0_176 = arith.constant 0 : index
    %c0_177 = arith.constant 0 : index
    %136 = vector.load %arg12[%c0_174, %c0_175, %c0_176, %c0_177] : memref<1x18x16x384xbf16, #tpu.memory_space<vmem>>, vector<1x8x16x384xbf16>
    %137 = vector.shape_cast %136 : vector<1x8x16x384xbf16> to vector<128x384xbf16>
    %c0_178 = arith.constant 0 : index
    %c0_179 = arith.constant 0 : index
    %c0_180 = arith.constant 0 : index
    %138 = vector.load %arg6[%c0_178, %c0_179, %c0_180] : memref<3x384x256xbf16, #tpu.memory_space<vmem>>, vector<1x384x256xbf16>
    %139 = vector.shape_cast %138 : vector<1x384x256xbf16> to vector<384x256xbf16>
    %cst_181 = arith.constant dense<0.000000e+00> : vector<128x256xf32>
    %140 = tpu.matmul %137, %139, %cst_181 {dimension_numbers = #tpu.dot_dimension_numbers<[1], [0], [0], [1], [0, 0, 1, 1], [], []>} : vector<128x384xbf16>, vector<384x256xbf16>, vector<128x256xf32> -> vector<128x256xf32>
    %c0_182 = arith.constant 0 : index
    %c1_183 = arith.constant 1 : index
    %c0_184 = arith.constant 0 : index
    %c0_185 = arith.constant 0 : index
    %141 = vector.load %arg12[%c0_182, %c1_183, %c0_184, %c0_185] : memref<1x18x16x384xbf16, #tpu.memory_space<vmem>>, vector<1x8x16x384xbf16>
    %142 = vector.shape_cast %141 : vector<1x8x16x384xbf16> to vector<128x384xbf16>
    %c1_186 = arith.constant 1 : index
    %c0_187 = arith.constant 0 : index
    %c0_188 = arith.constant 0 : index
    %143 = vector.load %arg6[%c1_186, %c0_187, %c0_188] : memref<3x384x256xbf16, #tpu.memory_space<vmem>>, vector<1x384x256xbf16>
    %144 = vector.shape_cast %143 : vector<1x384x256xbf16> to vector<384x256xbf16>
    %cst_189 = arith.constant dense<0.000000e+00> : vector<128x256xf32>
    %145 = tpu.matmul %142, %144, %cst_189 {dimension_numbers = #tpu.dot_dimension_numbers<[1], [0], [0], [1], [0, 0, 1, 1], [], []>} : vector<128x384xbf16>, vector<384x256xbf16>, vector<128x256xf32> -> vector<128x256xf32>
    %146 = arith.addf %140, %145 : vector<128x256xf32>
    %c0_190 = arith.constant 0 : index
    %c2_191 = arith.constant 2 : index
    %c0_192 = arith.constant 0 : index
    %c0_193 = arith.constant 0 : index
    %147 = vector.load %arg12[%c0_190, %c2_191, %c0_192, %c0_193] : memref<1x18x16x384xbf16, #tpu.memory_space<vmem>>, vector<1x8x16x384xbf16>
    %148 = vector.shape_cast %147 : vector<1x8x16x384xbf16> to vector<128x384xbf16>
    %c2_194 = arith.constant 2 : index
    %c0_195 = arith.constant 0 : index
    %c0_196 = arith.constant 0 : index
    %149 = vector.load %arg6[%c2_194, %c0_195, %c0_196] : memref<3x384x256xbf16, #tpu.memory_space<vmem>>, vector<1x384x256xbf16>
    %150 = vector.shape_cast %149 : vector<1x384x256xbf16> to vector<384x256xbf16>
    %cst_197 = arith.constant dense<0.000000e+00> : vector<128x256xf32>
    %151 = tpu.matmul %148, %150, %cst_197 {dimension_numbers = #tpu.dot_dimension_numbers<[1], [0], [0], [1], [0, 0, 1, 1], [], []>} : vector<128x384xbf16>, vector<384x256xbf16>, vector<128x256xf32> -> vector<128x256xf32>
    %152 = arith.addf %146, %151 : vector<128x256xf32>
    %153 = vector.broadcast %135 : vector<1x256xf32> to vector<128x256xf32>
    %154 = arith.addf %152, %153 : vector<128x256xf32>
    %cst_198 = arith.constant 0.000000e+00 : f32
    %155 = vector.broadcast %cst_198 : f32 to vector<128x256xf32>
    %156 = arith.maximumf %154, %155 : vector<128x256xf32>
    %157 = arith.truncf %156 : vector<128x256xf32> to vector<128x256xbf16>
    %158 = vector.shape_cast %157 : vector<128x256xbf16> to vector<1x8x16x256xbf16>
    %cst_199 = arith.constant 0.000000e+00 : bf16
    %159 = vector.broadcast %cst_199 : bf16 to vector<1x8x1x256xbf16>
    %160 = vector.extract_strided_slice %158 {offsets = [0, 0, 0, 0], sizes = [1, 8, 15, 256], strides = [1, 1, 1, 1]} : vector<1x8x16x256xbf16> to vector<1x8x15x256xbf16>
    %161 = tpu.concatenate %159, %160 in 2 : vector<1x8x1x256xbf16>, vector<1x8x15x256xbf16> -> vector<1x8x16x256xbf16>
    %162 = vector.extract_strided_slice %158 {offsets = [0, 0, 1, 0], sizes = [1, 8, 15, 256], strides = [1, 1, 1, 1]} : vector<1x8x16x256xbf16> to vector<1x8x15x256xbf16>
    %163 = tpu.concatenate %162, %159 in 2 : vector<1x8x15x256xbf16>, vector<1x8x1x256xbf16> -> vector<1x8x16x256xbf16>
    %c0_200 = arith.constant 0 : index
    %c1_201 = arith.constant 1 : index
    %c0_202 = arith.constant 0 : index
    %c0_203 = arith.constant 0 : index
    %164 = vector.load %arg13[%c0_200, %c1_201, %c0_202, %c0_203] : memref<1x18x16x768xbf16, #tpu.memory_space<vmem>>, vector<1x8x16x256xbf16>
    tpu.vector_store %arg13[%c0_200, %c1_201, %c0_202, %c0_203], %161 {strides = array<i32>} : memref<1x18x16x768xbf16, #tpu.memory_space<vmem>>, vector<1x8x16x256xbf16>,
    %c0_204 = arith.constant 0 : index
    %c1_205 = arith.constant 1 : index
    %c0_206 = arith.constant 0 : index
    %c256_207 = arith.constant 256 : index
    %165 = vector.load %arg13[%c0_204, %c1_205, %c0_206, %c256_207] : memref<1x18x16x768xbf16, #tpu.memory_space<vmem>>, vector<1x8x16x256xbf16>
    tpu.vector_store %arg13[%c0_204, %c1_205, %c0_206, %c256_207], %158 {strides = array<i32>} : memref<1x18x16x768xbf16, #tpu.memory_space<vmem>>, vector<1x8x16x256xbf16>,
    %c0_208 = arith.constant 0 : index
    %c1_209 = arith.constant 1 : index
    %c0_210 = arith.constant 0 : index
    %c512 = arith.constant 512 : index
    %166 = vector.load %arg13[%c0_208, %c1_209, %c0_210, %c512] : memref<1x18x16x768xbf16, #tpu.memory_space<vmem>>, vector<1x8x16x256xbf16>
    tpu.vector_store %arg13[%c0_208, %c1_209, %c0_210, %c512], %163 {strides = array<i32>} : memref<1x18x16x768xbf16, #tpu.memory_space<vmem>>, vector<1x8x16x256xbf16>,
    %c0_211 = arith.constant 0 : index
    %c8_212 = arith.constant 8 : index
    %c0_213 = arith.constant 0 : index
    %c0_214 = arith.constant 0 : index
    %167 = vector.load %arg12[%c0_211, %c8_212, %c0_213, %c0_214] : memref<1x18x16x384xbf16, #tpu.memory_space<vmem>>, vector<1x8x16x384xbf16>
    %168 = vector.shape_cast %167 : vector<1x8x16x384xbf16> to vector<128x384xbf16>
    %c0_215 = arith.constant 0 : index
    %c0_216 = arith.constant 0 : index
    %c0_217 = arith.constant 0 : index
    %169 = vector.load %arg6[%c0_215, %c0_216, %c0_217] : memref<3x384x256xbf16, #tpu.memory_space<vmem>>, vector<1x384x256xbf16>
    %170 = vector.shape_cast %169 : vector<1x384x256xbf16> to vector<384x256xbf16>
    %cst_218 = arith.constant dense<0.000000e+00> : vector<128x256xf32>
    %171 = tpu.matmul %168, %170, %cst_218 {dimension_numbers = #tpu.dot_dimension_numbers<[1], [0], [0], [1], [0, 0, 1, 1], [], []>} : vector<128x384xbf16>, vector<384x256xbf16>, vector<128x256xf32> -> vector<128x256xf32>
    %c0_219 = arith.constant 0 : index
    %c9_220 = arith.constant 9 : index
    %c0_221 = arith.constant 0 : index
    %c0_222 = arith.constant 0 : index
    %172 = vector.load %arg12[%c0_219, %c9_220, %c0_221, %c0_222] : memref<1x18x16x384xbf16, #tpu.memory_space<vmem>>, vector<1x8x16x384xbf16>
    %173 = vector.shape_cast %172 : vector<1x8x16x384xbf16> to vector<128x384xbf16>
    %c1_223 = arith.constant 1 : index
    %c0_224 = arith.constant 0 : index
    %c0_225 = arith.constant 0 : index
    %174 = vector.load %arg6[%c1_223, %c0_224, %c0_225] : memref<3x384x256xbf16, #tpu.memory_space<vmem>>, vector<1x384x256xbf16>
    %175 = vector.shape_cast %174 : vector<1x384x256xbf16> to vector<384x256xbf16>
    %cst_226 = arith.constant dense<0.000000e+00> : vector<128x256xf32>
    %176 = tpu.matmul %173, %175, %cst_226 {dimension_numbers = #tpu.dot_dimension_numbers<[1], [0], [0], [1], [0, 0, 1, 1], [], []>} : vector<128x384xbf16>, vector<384x256xbf16>, vector<128x256xf32> -> vector<128x256xf32>
    %177 = arith.addf %171, %176 : vector<128x256xf32>
    %c0_227 = arith.constant 0 : index
    %c10_228 = arith.constant 10 : index
    %c0_229 = arith.constant 0 : index
    %c0_230 = arith.constant 0 : index
    %178 = vector.load %arg12[%c0_227, %c10_228, %c0_229, %c0_230] : memref<1x18x16x384xbf16, #tpu.memory_space<vmem>>, vector<1x8x16x384xbf16>
    %179 = vector.shape_cast %178 : vector<1x8x16x384xbf16> to vector<128x384xbf16>
    %c2_231 = arith.constant 2 : index
    %c0_232 = arith.constant 0 : index
    %c0_233 = arith.constant 0 : index
    %180 = vector.load %arg6[%c2_231, %c0_232, %c0_233] : memref<3x384x256xbf16, #tpu.memory_space<vmem>>, vector<1x384x256xbf16>
    %181 = vector.shape_cast %180 : vector<1x384x256xbf16> to vector<384x256xbf16>
    %cst_234 = arith.constant dense<0.000000e+00> : vector<128x256xf32>
    %182 = tpu.matmul %179, %181, %cst_234 {dimension_numbers = #tpu.dot_dimension_numbers<[1], [0], [0], [1], [0, 0, 1, 1], [], []>} : vector<128x384xbf16>, vector<384x256xbf16>, vector<128x256xf32> -> vector<128x256xf32>
    %183 = arith.addf %177, %182 : vector<128x256xf32>
    %184 = vector.broadcast %135 : vector<1x256xf32> to vector<128x256xf32>
    %185 = arith.addf %183, %184 : vector<128x256xf32>
    %cst_235 = arith.constant 0.000000e+00 : f32
    %186 = vector.broadcast %cst_235 : f32 to vector<128x256xf32>
    %187 = arith.maximumf %185, %186 : vector<128x256xf32>
    %188 = arith.truncf %187 : vector<128x256xf32> to vector<128x256xbf16>
    %189 = vector.shape_cast %188 : vector<128x256xbf16> to vector<1x8x16x256xbf16>
    %cst_236 = arith.constant 0.000000e+00 : bf16
    %190 = vector.broadcast %cst_236 : bf16 to vector<1x8x1x256xbf16>
    %191 = vector.extract_strided_slice %189 {offsets = [0, 0, 0, 0], sizes = [1, 8, 15, 256], strides = [1, 1, 1, 1]} : vector<1x8x16x256xbf16> to vector<1x8x15x256xbf16>
    %192 = tpu.concatenate %190, %191 in 2 : vector<1x8x1x256xbf16>, vector<1x8x15x256xbf16> -> vector<1x8x16x256xbf16>
    %193 = vector.extract_strided_slice %189 {offsets = [0, 0, 1, 0], sizes = [1, 8, 15, 256], strides = [1, 1, 1, 1]} : vector<1x8x16x256xbf16> to vector<1x8x15x256xbf16>
    %194 = tpu.concatenate %193, %190 in 2 : vector<1x8x15x256xbf16>, vector<1x8x1x256xbf16> -> vector<1x8x16x256xbf16>
    %c0_237 = arith.constant 0 : index
    %c9_238 = arith.constant 9 : index
    %c0_239 = arith.constant 0 : index
    %c0_240 = arith.constant 0 : index
    %195 = vector.load %arg13[%c0_237, %c9_238, %c0_239, %c0_240] : memref<1x18x16x768xbf16, #tpu.memory_space<vmem>>, vector<1x8x16x256xbf16>
    tpu.vector_store %arg13[%c0_237, %c9_238, %c0_239, %c0_240], %192 {strides = array<i32>} : memref<1x18x16x768xbf16, #tpu.memory_space<vmem>>, vector<1x8x16x256xbf16>,
    %c0_241 = arith.constant 0 : index
    %c9_242 = arith.constant 9 : index
    %c0_243 = arith.constant 0 : index
    %c256_244 = arith.constant 256 : index
    %196 = vector.load %arg13[%c0_241, %c9_242, %c0_243, %c256_244] : memref<1x18x16x768xbf16, #tpu.memory_space<vmem>>, vector<1x8x16x256xbf16>
    tpu.vector_store %arg13[%c0_241, %c9_242, %c0_243, %c256_244], %189 {strides = array<i32>} : memref<1x18x16x768xbf16, #tpu.memory_space<vmem>>, vector<1x8x16x256xbf16>,
    %c0_245 = arith.constant 0 : index
    %c9_246 = arith.constant 9 : index
    %c0_247 = arith.constant 0 : index
    %c512_248 = arith.constant 512 : index
    %197 = vector.load %arg13[%c0_245, %c9_246, %c0_247, %c512_248] : memref<1x18x16x768xbf16, #tpu.memory_space<vmem>>, vector<1x8x16x256xbf16>
    tpu.vector_store %arg13[%c0_245, %c9_246, %c0_247, %c512_248], %194 {strides = array<i32>} : memref<1x18x16x768xbf16, #tpu.memory_space<vmem>>, vector<1x8x16x256xbf16>,
    %c0_249 = arith.constant 0 : index
    %c0_250 = arith.constant 0 : index
    %c0_251 = arith.constant 0 : index
    %198 = vector.load %arg9[%c0_249, %c0_250, %c0_251] : memref<2x1x256xf32, #tpu.memory_space<vmem>>, vector<1x1x256xf32>
    %199 = vector.shape_cast %198 : vector<1x1x256xf32> to vector<1x256xf32>
    %cst_252 = arith.constant 0.000000e+00 : f32
    %200 = vector.broadcast %cst_252 : f32 to vector<1x256xf32>
    %c0_253 = arith.constant 0 : index
    %c0_254 = arith.constant 0 : index
    %c0_255 = arith.constant 0 : index
    %c0_256 = arith.constant 0 : index
    %201 = vector.load %arg13[%c0_253, %c0_254, %c0_255, %c0_256] : memref<1x18x16x768xbf16, #tpu.memory_space<vmem>>, vector<1x8x16x768xbf16>
    %202 = vector.shape_cast %201 : vector<1x8x16x768xbf16> to vector<128x768xbf16>
    %c0_257 = arith.constant 0 : index
    %c0_258 = arith.constant 0 : index
    %c0_259 = arith.constant 0 : index
    %c0_260 = arith.constant 0 : index
    %203 = vector.load %arg8[%c0_257, %c0_258, %c0_259, %c0_260] : memref<2x3x768x256xbf16, #tpu.memory_space<vmem>>, vector<1x1x768x256xbf16>
    %204 = vector.shape_cast %203 : vector<1x1x768x256xbf16> to vector<768x256xbf16>
    %cst_261 = arith.constant dense<0.000000e+00> : vector<128x256xf32>
    %205 = tpu.matmul %202, %204, %cst_261 {dimension_numbers = #tpu.dot_dimension_numbers<[1], [0], [0], [1], [0, 0, 1, 1], [], []>} : vector<128x768xbf16>, vector<768x256xbf16>, vector<128x256xf32> -> vector<128x256xf32>
    %c0_262 = arith.constant 0 : index
    %c1_263 = arith.constant 1 : index
    %c0_264 = arith.constant 0 : index
    %c0_265 = arith.constant 0 : index
    %206 = vector.load %arg13[%c0_262, %c1_263, %c0_264, %c0_265] : memref<1x18x16x768xbf16, #tpu.memory_space<vmem>>, vector<1x8x16x768xbf16>
    %207 = vector.shape_cast %206 : vector<1x8x16x768xbf16> to vector<128x768xbf16>
    %c0_266 = arith.constant 0 : index
    %c1_267 = arith.constant 1 : index
    %c0_268 = arith.constant 0 : index
    %c0_269 = arith.constant 0 : index
    %208 = vector.load %arg8[%c0_266, %c1_267, %c0_268, %c0_269] : memref<2x3x768x256xbf16, #tpu.memory_space<vmem>>, vector<1x1x768x256xbf16>
    %209 = vector.shape_cast %208 : vector<1x1x768x256xbf16> to vector<768x256xbf16>
    %cst_270 = arith.constant dense<0.000000e+00> : vector<128x256xf32>
    %210 = tpu.matmul %207, %209, %cst_270 {dimension_numbers = #tpu.dot_dimension_numbers<[1], [0], [0], [1], [0, 0, 1, 1], [], []>} : vector<128x768xbf16>, vector<768x256xbf16>, vector<128x256xf32> -> vector<128x256xf32>
    %211 = arith.addf %205, %210 : vector<128x256xf32>
    %c0_271 = arith.constant 0 : index
    %c2_272 = arith.constant 2 : index
    %c0_273 = arith.constant 0 : index
    %c0_274 = arith.constant 0 : index
    %212 = vector.load %arg13[%c0_271, %c2_272, %c0_273, %c0_274] : memref<1x18x16x768xbf16, #tpu.memory_space<vmem>>, vector<1x8x16x768xbf16>
    %213 = vector.shape_cast %212 : vector<1x8x16x768xbf16> to vector<128x768xbf16>
    %c0_275 = arith.constant 0 : index
    %c2_276 = arith.constant 2 : index
    %c0_277 = arith.constant 0 : index
    %c0_278 = arith.constant 0 : index
    %214 = vector.load %arg8[%c0_275, %c2_276, %c0_277, %c0_278] : memref<2x3x768x256xbf16, #tpu.memory_space<vmem>>, vector<1x1x768x256xbf16>
    %215 = vector.shape_cast %214 : vector<1x1x768x256xbf16> to vector<768x256xbf16>
    %cst_279 = arith.constant dense<0.000000e+00> : vector<128x256xf32>
    %216 = tpu.matmul %213, %215, %cst_279 {dimension_numbers = #tpu.dot_dimension_numbers<[1], [0], [0], [1], [0, 0, 1, 1], [], []>} : vector<128x768xbf16>, vector<768x256xbf16>, vector<128x256xf32> -> vector<128x256xf32>
    %217 = arith.addf %211, %216 : vector<128x256xf32>
    %218 = vector.broadcast %199 : vector<1x256xf32> to vector<128x256xf32>
    %219 = arith.addf %217, %218 : vector<128x256xf32>
    %cst_280 = arith.constant 0.000000e+00 : f32
    %220 = vector.broadcast %cst_280 : f32 to vector<128x256xf32>
    %221 = arith.maximumf %219, %220 : vector<128x256xf32>
    %222 = vector.shape_cast %221 : vector<128x256xf32> to vector<1x128x256xf32>
    %cst_281 = arith.constant dense<0.000000e+00> : vector<1x256xf32>
    %223 = vector.multi_reduction <add>, %222, %cst_281 [1] : vector<1x128x256xf32> to vector<1x256xf32>
    %224 = arith.addf %200, %223 : vector<1x256xf32>
    %c0_282 = arith.constant 0 : index
    %c8_283 = arith.constant 8 : index
    %c0_284 = arith.constant 0 : index
    %c0_285 = arith.constant 0 : index
    %225 = vector.load %arg13[%c0_282, %c8_283, %c0_284, %c0_285] : memref<1x18x16x768xbf16, #tpu.memory_space<vmem>>, vector<1x8x16x768xbf16>
    %226 = vector.shape_cast %225 : vector<1x8x16x768xbf16> to vector<128x768xbf16>
    %c0_286 = arith.constant 0 : index
    %c0_287 = arith.constant 0 : index
    %c0_288 = arith.constant 0 : index
    %c0_289 = arith.constant 0 : index
    %227 = vector.load %arg8[%c0_286, %c0_287, %c0_288, %c0_289] : memref<2x3x768x256xbf16, #tpu.memory_space<vmem>>, vector<1x1x768x256xbf16>
    %228 = vector.shape_cast %227 : vector<1x1x768x256xbf16> to vector<768x256xbf16>
    %cst_290 = arith.constant dense<0.000000e+00> : vector<128x256xf32>
    %229 = tpu.matmul %226, %228, %cst_290 {dimension_numbers = #tpu.dot_dimension_numbers<[1], [0], [0], [1], [0, 0, 1, 1], [], []>} : vector<128x768xbf16>, vector<768x256xbf16>, vector<128x256xf32> -> vector<128x256xf32>
    %c0_291 = arith.constant 0 : index
    %c9_292 = arith.constant 9 : index
    %c0_293 = arith.constant 0 : index
    %c0_294 = arith.constant 0 : index
    %230 = vector.load %arg13[%c0_291, %c9_292, %c0_293, %c0_294] : memref<1x18x16x768xbf16, #tpu.memory_space<vmem>>, vector<1x8x16x768xbf16>
    %231 = vector.shape_cast %230 : vector<1x8x16x768xbf16> to vector<128x768xbf16>
    %c0_295 = arith.constant 0 : index
    %c1_296 = arith.constant 1 : index
    %c0_297 = arith.constant 0 : index
    %c0_298 = arith.constant 0 : index
    %232 = vector.load %arg8[%c0_295, %c1_296, %c0_297, %c0_298] : memref<2x3x768x256xbf16, #tpu.memory_space<vmem>>, vector<1x1x768x256xbf16>
    %233 = vector.shape_cast %232 : vector<1x1x768x256xbf16> to vector<768x256xbf16>
    %cst_299 = arith.constant dense<0.000000e+00> : vector<128x256xf32>
    %234 = tpu.matmul %231, %233, %cst_299 {dimension_numbers = #tpu.dot_dimension_numbers<[1], [0], [0], [1], [0, 0, 1, 1], [], []>} : vector<128x768xbf16>, vector<768x256xbf16>, vector<128x256xf32> -> vector<128x256xf32>
    %235 = arith.addf %229, %234 : vector<128x256xf32>
    %c0_300 = arith.constant 0 : index
    %c10_301 = arith.constant 10 : index
    %c0_302 = arith.constant 0 : index
    %c0_303 = arith.constant 0 : index
    %236 = vector.load %arg13[%c0_300, %c10_301, %c0_302, %c0_303] : memref<1x18x16x768xbf16, #tpu.memory_space<vmem>>, vector<1x8x16x768xbf16>
    %237 = vector.shape_cast %236 : vector<1x8x16x768xbf16> to vector<128x768xbf16>
    %c0_304 = arith.constant 0 : index
    %c2_305 = arith.constant 2 : index
    %c0_306 = arith.constant 0 : index
    %c0_307 = arith.constant 0 : index
    %238 = vector.load %arg8[%c0_304, %c2_305, %c0_306, %c0_307] : memref<2x3x768x256xbf16, #tpu.memory_space<vmem>>, vector<1x1x768x256xbf16>
    %239 = vector.shape_cast %238 : vector<1x1x768x256xbf16> to vector<768x256xbf16>
    %cst_308 = arith.constant dense<0.000000e+00> : vector<128x256xf32>
    %240 = tpu.matmul %237, %239, %cst_308 {dimension_numbers = #tpu.dot_dimension_numbers<[1], [0], [0], [1], [0, 0, 1, 1], [], []>} : vector<128x768xbf16>, vector<768x256xbf16>, vector<128x256xf32> -> vector<128x256xf32>
    %241 = arith.addf %235, %240 : vector<128x256xf32>
    %242 = vector.broadcast %199 : vector<1x256xf32> to vector<128x256xf32>
    %243 = arith.addf %241, %242 : vector<128x256xf32>
    %cst_309 = arith.constant 0.000000e+00 : f32
    %244 = vector.broadcast %cst_309 : f32 to vector<128x256xf32>
    %245 = arith.maximumf %243, %244 : vector<128x256xf32>
    %246 = vector.shape_cast %245 : vector<128x256xf32> to vector<1x128x256xf32>
    %cst_310 = arith.constant dense<0.000000e+00> : vector<1x256xf32>
    %247 = vector.multi_reduction <add>, %246, %cst_310 [1] : vector<1x128x256xf32> to vector<1x256xf32>
    %248 = arith.addf %224, %247 : vector<1x256xf32>
    %c1_311 = arith.constant 1 : index
    %c0_312 = arith.constant 0 : index
    %c0_313 = arith.constant 0 : index
    %249 = vector.load %arg9[%c1_311, %c0_312, %c0_313] : memref<2x1x256xf32, #tpu.memory_space<vmem>>, vector<1x1x256xf32>
    %250 = vector.shape_cast %249 : vector<1x1x256xf32> to vector<1x256xf32>
    %cst_314 = arith.constant 0.000000e+00 : f32
    %251 = vector.broadcast %cst_314 : f32 to vector<1x256xf32>
    %c0_315 = arith.constant 0 : index
    %c0_316 = arith.constant 0 : index
    %c0_317 = arith.constant 0 : index
    %c0_318 = arith.constant 0 : index
    %252 = vector.load %arg13[%c0_315, %c0_316, %c0_317, %c0_318] : memref<1x18x16x768xbf16, #tpu.memory_space<vmem>>, vector<1x8x16x768xbf16>
    %253 = vector.shape_cast %252 : vector<1x8x16x768xbf16> to vector<128x768xbf16>
    %c1_319 = arith.constant 1 : index
    %c0_320 = arith.constant 0 : index
    %c0_321 = arith.constant 0 : index
    %c0_322 = arith.constant 0 : index
    %254 = vector.load %arg8[%c1_319, %c0_320, %c0_321, %c0_322] : memref<2x3x768x256xbf16, #tpu.memory_space<vmem>>, vector<1x1x768x256xbf16>
    %255 = vector.shape_cast %254 : vector<1x1x768x256xbf16> to vector<768x256xbf16>
    %cst_323 = arith.constant dense<0.000000e+00> : vector<128x256xf32>
    %256 = tpu.matmul %253, %255, %cst_323 {dimension_numbers = #tpu.dot_dimension_numbers<[1], [0], [0], [1], [0, 0, 1, 1], [], []>} : vector<128x768xbf16>, vector<768x256xbf16>, vector<128x256xf32> -> vector<128x256xf32>
    %c0_324 = arith.constant 0 : index
    %c1_325 = arith.constant 1 : index
    %c0_326 = arith.constant 0 : index
    %c0_327 = arith.constant 0 : index
    %257 = vector.load %arg13[%c0_324, %c1_325, %c0_326, %c0_327] : memref<1x18x16x768xbf16, #tpu.memory_space<vmem>>, vector<1x8x16x768xbf16>
    %258 = vector.shape_cast %257 : vector<1x8x16x768xbf16> to vector<128x768xbf16>
    %c1_328 = arith.constant 1 : index
    %c1_329 = arith.constant 1 : index
    %c0_330 = arith.constant 0 : index
    %c0_331 = arith.constant 0 : index
    %259 = vector.load %arg8[%c1_328, %c1_329, %c0_330, %c0_331] : memref<2x3x768x256xbf16, #tpu.memory_space<vmem>>, vector<1x1x768x256xbf16>
    %260 = vector.shape_cast %259 : vector<1x1x768x256xbf16> to vector<768x256xbf16>
    %cst_332 = arith.constant dense<0.000000e+00> : vector<128x256xf32>
    %261 = tpu.matmul %258, %260, %cst_332 {dimension_numbers = #tpu.dot_dimension_numbers<[1], [0], [0], [1], [0, 0, 1, 1], [], []>} : vector<128x768xbf16>, vector<768x256xbf16>, vector<128x256xf32> -> vector<128x256xf32>
    %262 = arith.addf %256, %261 : vector<128x256xf32>
    %c0_333 = arith.constant 0 : index
    %c2_334 = arith.constant 2 : index
    %c0_335 = arith.constant 0 : index
    %c0_336 = arith.constant 0 : index
    %263 = vector.load %arg13[%c0_333, %c2_334, %c0_335, %c0_336] : memref<1x18x16x768xbf16, #tpu.memory_space<vmem>>, vector<1x8x16x768xbf16>
    %264 = vector.shape_cast %263 : vector<1x8x16x768xbf16> to vector<128x768xbf16>
    %c1_337 = arith.constant 1 : index
    %c2_338 = arith.constant 2 : index
    %c0_339 = arith.constant 0 : index
    %c0_340 = arith.constant 0 : index
    %265 = vector.load %arg8[%c1_337, %c2_338, %c0_339, %c0_340] : memref<2x3x768x256xbf16, #tpu.memory_space<vmem>>, vector<1x1x768x256xbf16>
    %266 = vector.shape_cast %265 : vector<1x1x768x256xbf16> to vector<768x256xbf16>
    %cst_341 = arith.constant dense<0.000000e+00> : vector<128x256xf32>
    %267 = tpu.matmul %264, %266, %cst_341 {dimension_numbers = #tpu.dot_dimension_numbers<[1], [0], [0], [1], [0, 0, 1, 1], [], []>} : vector<128x768xbf16>, vector<768x256xbf16>, vector<128x256xf32> -> vector<128x256xf32>
    %268 = arith.addf %262, %267 : vector<128x256xf32>
    %269 = vector.broadcast %250 : vector<1x256xf32> to vector<128x256xf32>
    %270 = arith.addf %268, %269 : vector<128x256xf32>
    %cst_342 = arith.constant 0.000000e+00 : f32
    %271 = vector.broadcast %cst_342 : f32 to vector<128x256xf32>
    %272 = arith.maximumf %270, %271 : vector<128x256xf32>
    %273 = vector.shape_cast %272 : vector<128x256xf32> to vector<1x128x256xf32>
    %cst_343 = arith.constant dense<0.000000e+00> : vector<1x256xf32>
    %274 = vector.multi_reduction <add>, %273, %cst_343 [1] : vector<1x128x256xf32> to vector<1x256xf32>
    %275 = arith.addf %251, %274 : vector<1x256xf32>
    %c0_344 = arith.constant 0 : index
    %c8_345 = arith.constant 8 : index
    %c0_346 = arith.constant 0 : index
    %c0_347 = arith.constant 0 : index
    %276 = vector.load %arg13[%c0_344, %c8_345, %c0_346, %c0_347] : memref<1x18x16x768xbf16, #tpu.memory_space<vmem>>, vector<1x8x16x768xbf16>
    %277 = vector.shape_cast %276 : vector<1x8x16x768xbf16> to vector<128x768xbf16>
    %c1_348 = arith.constant 1 : index
    %c0_349 = arith.constant 0 : index
    %c0_350 = arith.constant 0 : index
    %c0_351 = arith.constant 0 : index
    %278 = vector.load %arg8[%c1_348, %c0_349, %c0_350, %c0_351] : memref<2x3x768x256xbf16, #tpu.memory_space<vmem>>, vector<1x1x768x256xbf16>
    %279 = vector.shape_cast %278 : vector<1x1x768x256xbf16> to vector<768x256xbf16>
    %cst_352 = arith.constant dense<0.000000e+00> : vector<128x256xf32>
    %280 = tpu.matmul %277, %279, %cst_352 {dimension_numbers = #tpu.dot_dimension_numbers<[1], [0], [0], [1], [0, 0, 1, 1], [], []>} : vector<128x768xbf16>, vector<768x256xbf16>, vector<128x256xf32> -> vector<128x256xf32>
    %c0_353 = arith.constant 0 : index
    %c9_354 = arith.constant 9 : index
    %c0_355 = arith.constant 0 : index
    %c0_356 = arith.constant 0 : index
    %281 = vector.load %arg13[%c0_353, %c9_354, %c0_355, %c0_356] : memref<1x18x16x768xbf16, #tpu.memory_space<vmem>>, vector<1x8x16x768xbf16>
    %282 = vector.shape_cast %281 : vector<1x8x16x768xbf16> to vector<128x768xbf16>
    %c1_357 = arith.constant 1 : index
    %c1_358 = arith.constant 1 : index
    %c0_359 = arith.constant 0 : index
    %c0_360 = arith.constant 0 : index
    %283 = vector.load %arg8[%c1_357, %c1_358, %c0_359, %c0_360] : memref<2x3x768x256xbf16, #tpu.memory_space<vmem>>, vector<1x1x768x256xbf16>
    %284 = vector.shape_cast %283 : vector<1x1x768x256xbf16> to vector<768x256xbf16>
    %cst_361 = arith.constant dense<0.000000e+00> : vector<128x256xf32>
    %285 = tpu.matmul %282, %284, %cst_361 {dimension_numbers = #tpu.dot_dimension_numbers<[1], [0], [0], [1], [0, 0, 1, 1], [], []>} : vector<128x768xbf16>, vector<768x256xbf16>, vector<128x256xf32> -> vector<128x256xf32>
    %286 = arith.addf %280, %285 : vector<128x256xf32>
    %c0_362 = arith.constant 0 : index
    %c10_363 = arith.constant 10 : index
    %c0_364 = arith.constant 0 : index
    %c0_365 = arith.constant 0 : index
    %287 = vector.load %arg13[%c0_362, %c10_363, %c0_364, %c0_365] : memref<1x18x16x768xbf16, #tpu.memory_space<vmem>>, vector<1x8x16x768xbf16>
    %288 = vector.shape_cast %287 : vector<1x8x16x768xbf16> to vector<128x768xbf16>
    %c1_366 = arith.constant 1 : index
    %c2_367 = arith.constant 2 : index
    %c0_368 = arith.constant 0 : index
    %c0_369 = arith.constant 0 : index
    %289 = vector.load %arg8[%c1_366, %c2_367, %c0_368, %c0_369] : memref<2x3x768x256xbf16, #tpu.memory_space<vmem>>, vector<1x1x768x256xbf16>
    %290 = vector.shape_cast %289 : vector<1x1x768x256xbf16> to vector<768x256xbf16>
    %cst_370 = arith.constant dense<0.000000e+00> : vector<128x256xf32>
    %291 = tpu.matmul %288, %290, %cst_370 {dimension_numbers = #tpu.dot_dimension_numbers<[1], [0], [0], [1], [0, 0, 1, 1], [], []>} : vector<128x768xbf16>, vector<768x256xbf16>, vector<128x256xf32> -> vector<128x256xf32>
    %292 = arith.addf %286, %291 : vector<128x256xf32>
    %293 = vector.broadcast %250 : vector<1x256xf32> to vector<128x256xf32>
    %294 = arith.addf %292, %293 : vector<128x256xf32>
    %cst_371 = arith.constant 0.000000e+00 : f32
    %295 = vector.broadcast %cst_371 : f32 to vector<128x256xf32>
    %296 = arith.maximumf %294, %295 : vector<128x256xf32>
    %297 = vector.shape_cast %296 : vector<128x256xf32> to vector<1x128x256xf32>
    %cst_372 = arith.constant dense<0.000000e+00> : vector<1x256xf32>
    %298 = vector.multi_reduction <add>, %297, %cst_372 [1] : vector<1x128x256xf32> to vector<1x256xf32>
    %299 = arith.addf %275, %298 : vector<1x256xf32>
    %300 = tpu.concatenate %248, %299 in 1 : vector<1x256xf32>, vector<1x256xf32> -> vector<1x512xf32>
    %cst_373 = arith.constant 3.906250e-03 : f32
    %301 = vector.broadcast %cst_373 : f32 to vector<1x512xf32>
    %302 = arith.mulf %300, %301 : vector<1x512xf32>
    %303 = vector.shape_cast %302 : vector<1x512xf32> to vector<1x1x512xf32>
    %c0_374 = arith.constant 0 : index
    %c0_375 = arith.constant 0 : index
    %c0_376 = arith.constant 0 : index
    %304 = vector.load %arg10[%c0_374, %c0_375, %c0_376] : memref<1x1x512xf32, #tpu.memory_space<vmem>>, vector<1x1x512xf32>
    tpu.vector_store %arg10[%c0_374, %c0_375, %c0_376], %303 {strides = array<i32>} : memref<1x1x512xf32, #tpu.memory_space<vmem>>, vector<1x1x512xf32>,
    return
  }
  func.func @transform_0(%arg0: i32) -> (i32, i32, i32, i32) {
    %c0_i32 = arith.constant 0 : i32
    %c0_i32_0 = arith.constant 0 : i32
    %c0_i32_1 = arith.constant 0 : i32
    %c0_i32_2 = arith.constant 0 : i32
    return %arg0, %c0_i32, %c0_i32_0, %c0_i32_1 : i32, i32, i32, i32
  }
  func.func @transform_1(%arg0: i32) -> (i32, i32, i32) {
    %c0_i32 = arith.constant 0 : i32
    %c0_i32_0 = arith.constant 0 : i32
    %c0_i32_1 = arith.constant 0 : i32
    %c0_i32_2 = arith.constant 0 : i32
    return %c0_i32, %c0_i32_0, %c0_i32_1 : i32, i32, i32
  }
  func.func @transform_2(%arg0: i32) -> (i32, i32) {
    %c0_i32 = arith.constant 0 : i32
    %c0_i32_0 = arith.constant 0 : i32
    %c0_i32_1 = arith.constant 0 : i32
    return %c0_i32, %c0_i32_0 : i32, i32
  }
  func.func @transform_3(%arg0: i32) -> (i32, i32, i32) {
    %c0_i32 = arith.constant 0 : i32
    %c0_i32_0 = arith.constant 0 : i32
    %c0_i32_1 = arith.constant 0 : i32
    %c0_i32_2 = arith.constant 0 : i32
    return %c0_i32, %c0_i32_0, %c0_i32_1 : i32, i32, i32
  }
  func.func @transform_4(%arg0: i32) -> (i32, i32) {
    %c0_i32 = arith.constant 0 : i32
    %c0_i32_0 = arith.constant 0 : i32
    %c0_i32_1 = arith.constant 0 : i32
    return %c0_i32, %c0_i32_0 : i32, i32
  }
  func.func @transform_5(%arg0: i32) -> (i32, i32, i32) {
    %c0_i32 = arith.constant 0 : i32
    %c0_i32_0 = arith.constant 0 : i32
    %c0_i32_1 = arith.constant 0 : i32
    %c0_i32_2 = arith.constant 0 : i32
    return %c0_i32, %c0_i32_0, %c0_i32_1 : i32, i32, i32
  }
  func.func @transform_6(%arg0: i32) -> (i32, i32) {
    %c0_i32 = arith.constant 0 : i32
    %c0_i32_0 = arith.constant 0 : i32
    %c0_i32_1 = arith.constant 0 : i32
    return %c0_i32, %c0_i32_0 : i32, i32
  }
  func.func @transform_7(%arg0: i32) -> (i32, i32, i32, i32) {
    %c0_i32 = arith.constant 0 : i32
    %c0_i32_0 = arith.constant 0 : i32
    %c0_i32_1 = arith.constant 0 : i32
    %c0_i32_2 = arith.constant 0 : i32
    %c0_i32_3 = arith.constant 0 : i32
    return %c0_i32, %c0_i32_0, %c0_i32_1, %c0_i32_2 : i32, i32, i32, i32
  }
  func.func @transform_8(%arg0: i32) -> (i32, i32, i32) {
    %c0_i32 = arith.constant 0 : i32
    %c0_i32_0 = arith.constant 0 : i32
    %c0_i32_1 = arith.constant 0 : i32
    %c0_i32_2 = arith.constant 0 : i32
    return %c0_i32, %c0_i32_0, %c0_i32_1 : i32, i32, i32
  }
  func.func @transform_9(%arg0: i32) -> (i32, i32, i32) {
    %c0_i32 = arith.constant 0 : i32
    %c0_i32_0 = arith.constant 0 : i32
    %c0_i32_1 = arith.constant 0 : i32
    return %arg0, %c0_i32, %c0_i32_0 : i32, i32, i32
  }
}

</mosaic_0001>

<bundles_post_ra>
// kernel: cnn_img_forward.1
= control target key start
LH: loop header
LB: loop body
LE: loop exit
PB: predicated region body
PF: predicated region fallthrough
CT: control target
= control target key end

     0   :  { %s20995_s30 = smov 0   ;;  %s28850_s0 = inlined_call_operand.vmem [shape: bf16[2,18,16,16], index: 0, kind: input, shape index: {}]   ;;  %s28851_s1 = inlined_call_operand.vmem [shape: bf16[3,16,64], index: 1, kind: input, shape index: {}]   ;;  %s28852_s2 = inlined_call_operand.vmem [shape: f32[1,64], index: 2, kind: input, shape index: {}]   ;;  %s28853_s3 = inlined_call_operand.vmem [shape: bf16[3,192,128], index: 3, kind: input, shape index: {}]   ;;  %s28854_s4 = inlined_call_operand.vmem [shape: f32[1,128], index: 4, kind: input, shape index: {}]   ;;  %s28855_s5 = inlined_call_operand.vmem [shape: bf16[3,384,256], index: 5, kind: input, shape index: {}]   ;;  %s28856_s6 = inlined_call_operand.vmem [shape: f32[1,256], index: 6, kind: input, shape index: {}]   ;;  %s28857_s7 = inlined_call_operand.vmem [shape: bf16[2,3,768,256], index: 7, kind: input, shape index: {}]   ;;  %s28858_s8 = inlined_call_operand.vmem [shape: f32[2,1,256], index: 8, kind: input, shape index: {}]   ;;  %s28859_s9 = inlined_call_operand.vmem [shape: f32[2,1,512], index: 9, kind: output, shape index: {}]  }
   0x1 LB: > { %s16183_s10 = sadd.s32 4294967295, %s20940_s30   ;;  %p16187_p0 = scmp.ge.s32.totalorder %s20940_s30, 1  ;;  %s20940_s30 = sphi %s20995_s30, %s19_s30  }
   0x2   : > { %p287_p1 = scmp.lt.s32.totalorder %s20940_s30, 3 }
   0x4   : > { %p288_p2 = pnand %p16187_p0, %p287_p1 }
   0x6   : > { %291 = sbr.rel (%p288_p2) target bundleno = 2728 (0xaa8), region = 56 }
   0xd   : > { %v19719_v0 = vld [vmem:[%s28851_s1 + $0x8] sm:$0xff]   ;;  %p322_p3 = scmp.lt.s32.totalorder %s16183_s10, 1  ;;  %v19722_v2 = vld [vmem:[%s28851_s1] sm:$0xff]   ;;  %v20942_v4 = vmov 0   ;;  %vm423_vm0 = vcmask 130048   ;;  %v19740_v7 = vld [vmem:[%s28851_s1 + $0x10] sm:$0xff]  }
   0xe   : > { %v19720_v1 = vld [vmem:[%s28851_s1 + $0x8] sm:$0xff]   ;;  %18191 = vmatprep.subr.bf16.mxu0 %v19719_v0  ;;  %v19738_v3 = vld [vmem:[%s28851_s1] sm:$0xff]   ;;  %332 = vst [vmem:[#allocation2] sm:$0xff] %v20942_v4  ;;  %v19756_v9 = vld [vmem:[%s28851_s1 + $0x10] sm:$0xff]   ;;  %vm333_vm1 = vcmask 523264   ;;  %vm1060_vm2 = vcmask 1047552  }
   0xf   : > { %s29855_s10 = smov (!%p322_p3, %s16183_s10), 1  ;;  %18192 = vmatpush3.bf16.msra.mxu0 %v19719_v0  ;;  %18245 = vmatprep.subr.bf16.mxu1 %v19720_v1  ;;  %v19773_v45 = vld [vmem:[%s28853_s3] sm:$0xff]   ;;  %v19774_v46 = vld [vmem:[%s28853_s3 + $0x8] sm:$0xff]   ;;  %v19775_v51 = vld [vmem:[%s28853_s3 + $0x10] sm:$0xff]   ;;  %vm1061_vm3 = vsmask.f32 7424 }
  0x10   : > { %18246 = vmatpush3.bf16.msra.mxu1 %v19720_v1  ;;  %s19707_s19 = smul.u32 144, %s29855_s10  ;;  %18209 = vmatprep.subr.bf16.mxu0 %v19722_v2  ;;  %v19776_v52 = vld [vmem:[%s28853_s3 + $0x18] sm:$0xff]   ;;  %v19777_v57 = vld [vmem:[%s28853_s3 + $0x20] sm:$0xff]   ;;  %v19778_v58 = vld [vmem:[%s28853_s3 + $0x28] sm:$0xff]   ;;  %s20943_s23 = smov 64   ;;  %vm1025_vm5 = vcmask 1040384  }
  0x11   : > { %18263 = vmatprep.subr.bf16.mxu1 %v19738_v3  ;;  %v19779_v61 = vld [vmem:[%s28853_s3 + $0x30] sm:$0xff]   ;;  %v19780_v63 = vld [vmem:[%s28853_s3 + $0x38] sm:$0xff]   ;;  %v19781_v0 = vld [vmem:[%s28853_s3 + $0x40] sm:$0xff]   ;;  %vm1026_vm6 = vsmask.f32 256  ;;  %vm1112_vm8 = vcmask 1048064  }
  0x12   : > { %s21022_s22 = scalar_lea.vmem %s28850_s0, %s19707_s19  ;;  %v19782_v1 = vld [vmem:[%s28853_s3 + $0x48] sm:$0xff]   ;;  %vm21271_vm4 = vmand %vm1060_vm2, %vm1061_vm3 }
  0x13   : > { %v19721_v5 = vld [vmem:[%s21022_s22 + $0x8] sm:$0xff]   ;;  %v19724_v8 = vld [vmem:[%s21022_s22 + $0x10] sm:$0xff]   ;;  %v19726_v11 = vld [vmem:[%s21022_s22 + $0x18] sm:$0xff]  }
  0x14   : > { %v19723_v6 = vld [vmem:[%s21022_s22 + $0x48] sm:$0xff]   ;;  %18193 = vmatprep.mubr.msk.bf16.mxu0 %vm423_vm0, %v19721_v5  ;;  %v19725_v10 = vld [vmem:[%s21022_s22 + $0x50] sm:$0xff]   ;;  %v19727_v12 = vld [vmem:[%s21022_s22 + $0x58] sm:$0xff]  }
  0x15   : > { %18247 = vmatprep.mubr.msk.bf16.mxu1 %vm423_vm0, %v19723_v6  ;;  %18194 = vmatmul.mubr.msk.bf16.vlgmr.msra.gmra.mrb[0].mxu0 %vm423_vm0, %v19724_v8  ;;  %v19728_v13 = vld [vmem:[%s21022_s22 + $0x20] sm:$0xff]   ;;  %v19730_v15 = vld [vmem:[%s21022_s22 + $0x28] sm:$0xff]   ;;  %v19732_v17 = vld [vmem:[%s21022_s22 + $0x30] sm:$0xff]  }
  0x16   : > { %18210 = vmatpush3.bf16.msra.mxu0 %v19722_v2  ;;  %18248 = vmatmul.mubr.msk.bf16.vlgmr.msra.gmra.mrb[0].mxu1 %vm423_vm0, %v19725_v10  ;;  %v19729_v14 = vld [vmem:[%s21022_s22 + $0x60] sm:$0xff]   ;;  %v19731_v16 = vld [vmem:[%s21022_s22 + $0x68] sm:$0xff]   ;;  %v19733_v18 = vld [vmem:[%s21022_s22 + $0x70] sm:$0xff]  }
  0x17   : > { %18197 = vmatprep.mubr.msk.bf16.mxu0 %vm423_vm0, %v19726_v11  ;;  %18264 = vmatpush3.bf16.msra.mxu1 %v19738_v3  ;;  %v19734_v19 = vld [vmem:[%s21022_s22 + $0x38] sm:$0xff]   ;;  %v19736_v21 = vld [vmem:[%s21022_s22 + $0x40] sm:$0xff]   ;;  %v19742_v25 = vld [vmem:[%s21022_s22 + $0x8] sm:$0xff]  }
  0x18   : > { %18251 = vmatprep.mubr.msk.bf16.mxu1 %vm423_vm0, %v19727_v12  ;;  %18227 = vmatprep.subr.bf16.mxu0 %v19740_v7  ;;  %v19735_v20 = vld [vmem:[%s21022_s22 + $0x78] sm:$0xff]   ;;  %v19737_v22 = vld [vmem:[%s21022_s22 + $0x80] sm:$0xff]   ;;  %v19743_v26 = vld [vmem:[%s21022_s22 + $0x48] sm:$0xff]  }
  0x19   : > { %18281 = vmatprep.subr.bf16.mxu1 %v19756_v9  ;;  %v19739_v23 = vld [vmem:[%s21022_s22] sm:$0xff]   ;;  %v19744_v27 = vld [vmem:[%s21022_s22 + $0x10] sm:$0xff]   ;;  %v19746_v29 = vld [vmem:[%s21022_s22 + $0x18] sm:$0xff]  }
  0x1a   : > { %v19741_v24 = vld [vmem:[%s21022_s22 + $0x40] sm:$0xff]   ;;  %v19745_v28 = vld [vmem:[%s21022_s22 + $0x50] sm:$0xff]   ;;  %v19747_v30 = vld [vmem:[%s21022_s22 + $0x58] sm:$0xff]  }
  0x1b   : > { %v19748_v31 = vld [vmem:[%s21022_s22 + $0x20] sm:$0xff]   ;;  %v19750_v33 = vld [vmem:[%s21022_s22 + $0x28] sm:$0xff]   ;;  %v19752_v35 = vld [vmem:[%s21022_s22 + $0x30] sm:$0xff]  }
  0x1c   : > { %v19749_v32 = vld [vmem:[%s21022_s22 + $0x60] sm:$0xff]   ;;  %v19751_v34 = vld [vmem:[%s21022_s22 + $0x68] sm:$0xff]   ;;  %v19753_v36 = vld [vmem:[%s21022_s22 + $0x70] sm:$0xff]  }
  0x1d   : > { %18198 = vmatmul.mubr.msk.bf16.gmra.mrb[4].mxu0 %vm423_vm0, %v19728_v13  ;;  %v19754_v37 = vld [vmem:[%s21022_s22 + $0x38] sm:$0xff]   ;;  %v19757_v39 = vld [vmem:[%s21022_s22 + $0x10] sm:$0xff]   ;;  %v19761_v43 = vld [vmem:[%s21022_s22 + $0x20] sm:$0xff]  }
  0x1e   : > { %18252 = vmatmul.mubr.msk.bf16.gmra.mrb[4].mxu1 %vm423_vm0, %v19729_v14  ;;  %18201 = vmatprep.mubr.msk.bf16.mxu0 %vm423_vm0, %v19730_v15  ;;  %v19755_v38 = vld [vmem:[%s21022_s22 + $0x78] sm:$0xff]   ;;  %v19758_v40 = vld [vmem:[%s21022_s22 + $0x50] sm:$0xff]   ;;  %v19762_v44 = vld [vmem:[%s21022_s22 + $0x60] sm:$0xff]  }
  0x1f   : > { %18255 = vmatprep.mubr.msk.bf16.mxu1 %vm423_vm0, %v19731_v16  ;;  %v19759_v41 = vld [vmem:[%s21022_s22 + $0x18] sm:$0xff]   ;;  %v19763_v47 = vld [vmem:[%s21022_s22 + $0x28] sm:$0xff]   ;;  %v19765_v49 = vld [vmem:[%s21022_s22 + $0x30] sm:$0xff]  }
  0x20   : > { %v19760_v42 = vld [vmem:[%s21022_s22 + $0x58] sm:$0xff]   ;;  %v19764_v48 = vld [vmem:[%s21022_s22 + $0x68] sm:$0xff]   ;;  %v19766_v50 = vld [vmem:[%s21022_s22 + $0x70] sm:$0xff]  }
  0x21   : > { %v19767_v53 = vld [vmem:[%s21022_s22 + $0x38] sm:$0xff]   ;;  %v19769_v55 = vld [vmem:[%s21022_s22 + $0x40] sm:$0xff]   ;;  %v19771_v59 = vld [vmem:[%s21022_s22 + $0x48] sm:$0xff]  }
  0x22   : > { %v19768_v54 = vld [vmem:[%s21022_s22 + $0x78] sm:$0xff]   ;;  %v19770_v56 = vld [vmem:[%s21022_s22 + $0x80] sm:$0xff]   ;;  %v19772_v60 = vld [vmem:[%s21022_s22 + $0x88] sm:$0xff]  }
  0x23   : > { %v21155_v62 = vld [vmem:[#allocation2] sm:$0xff]  ;;  %v19783_v2 = vld [vmem:[%s28853_s3 + $0x50] sm:$0xff]   ;;  %v19784_v3 = vld [vmem:[%s28853_s3 + $0x58] sm:$0xff]  }
  0x24   : > { %334 = vst.msk [vmem:[#allocation2 + $0x8] sm:$0xff] %vm333_vm1, %v21155_v62  ;;  %337 = vst.msk [vmem:[#allocation2 + $0x118] sm:$0xff] %vm333_vm1, %v21155_v62  ;;  %v19785_v5 = vld [vmem:[%s28853_s3 + $0x60] sm:$0xff]   ;;  %v19786_v6 = vld [vmem:[%s28853_s3 + $0x68] sm:$0xff]  }
  0x25   : > { %18202 = vmatmul.mubr.msk.bf16.gmra.mrb[8].mxu0 %vm423_vm0, %v19732_v17  ;;  %v19788_v8 = vld [vmem:[%s28853_s3 + $0x78] sm:$0xff]   ;;  %v19790_v10 = vld [vmem:[%s28853_s3 + $0x88] sm:$0xff]   ;;  %v19791_v11 = vld [vmem:[%s28853_s3 + $0x90] sm:$0xff]  }
  0x26   : > { %18256 = vmatmul.mubr.msk.bf16.gmra.mrb[8].mxu1 %vm423_vm0, %v19733_v18  ;;  %18205 = vmatprep.mubr.msk.bf16.mxu0 %vm423_vm0, %v19734_v19  ;;  %v19792_v12 = vld [vmem:[%s28853_s3 + $0x98] sm:$0xff]   ;;  %v19793_v13 = vld [vmem:[%s28853_s3 + $0xa0] sm:$0xff]   ;;  %v19794_v14 = vld [vmem:[%s28853_s3 + $0xa8] sm:$0xff]  }
  0x27   : > { %18259 = vmatprep.mubr.msk.bf16.mxu1 %vm423_vm0, %v19735_v20  ;;  %v21227_v15 = vld [vmem:[%s28852_s2] ss:$0 sm:$0xff]  ;;  %v19795_v16 = vld [vmem:[%s28853_s3 + $0xb0] sm:$0xff]   ;;  %vm21450_vm7 = vmand %vm1025_vm5, %vm1026_vm6 }
  0x2d   : > { %18206 = vmatmul.mubr.msk.bf16.gmra.mrb[12].mxu0 %vm423_vm0, %v19736_v21  ;;  %v19796_v21 = vld [vmem:[%s28853_s3 + $0xb8] sm:$0xff]  }
  0x2e   : > { %18260 = vmatmul.mubr.msk.bf16.gmra.mrb[12].mxu1 %vm423_vm0, %v19737_v22  ;;  %18211 = vmatprep.mubr.msk.bf16.mxu0 %vm423_vm0, %v19739_v23 }
  0x2f   : > { %18265 = vmatprep.mubr.msk.bf16.mxu1 %vm423_vm0, %v19741_v24 }
  0x35   : > { %18212 = vmatmul.mubr.msk.bf16.vlgmr.msra.gmra.mrb[0].mxu0 %vm423_vm0, %v19742_v25 }
  0x36   : > { %18228 = vmatpush3.bf16.msra.mxu0 %v19740_v7  ;;  %18266 = vmatmul.mubr.msk.bf16.vlgmr.msra.gmra.mrb[0].mxu1 %vm423_vm0, %v19743_v26  ;;  %v19787_v7 = vld [vmem:[%s28853_s3 + $0x70] sm:$0xff]  }
  0x37   : > { %18215 = vmatprep.mubr.msk.bf16.mxu0 %vm423_vm0, %v19744_v27  ;;  %18269 = vmatprep.mubr.msk.bf16.mxu1 %vm423_vm0, %v19745_v28 }
  0x38   : > { %18282 = vmatpush3.bf16.msra.mxu1 %v19756_v9  ;;  %2089 = vmatprep.subr.bf16.mxu0 %v20942_v4  ;;  %v19789_v9 = vld [vmem:[%s28853_s3 + $0x80] sm:$0xff]  }
  0x39   : > { %2282 = vmatprep.subr.bf16.mxu1 %v20942_v4 }
  0x3d   : > { %18216 = vmatmul.mubr.msk.bf16.gmra.mrb[4].mxu0 %vm423_vm0, %v19746_v29 }
  0x3e   : > { %18270 = vmatmul.mubr.msk.bf16.gmra.mrb[4].mxu1 %vm423_vm0, %v19747_v30  ;;  %18219 = vmatprep.mubr.msk.bf16.mxu0 %vm423_vm0, %v19748_v31 }
  0x3f   : > { %18273 = vmatprep.mubr.msk.bf16.mxu1 %vm423_vm0, %v19749_v32 }
  0x45   : > { %18220 = vmatmul.mubr.msk.bf16.gmra.mrb[8].mxu0 %vm423_vm0, %v19750_v33 }
  0x46   : > { %18274 = vmatmul.mubr.msk.bf16.gmra.mrb[8].mxu1 %vm423_vm0, %v19751_v34  ;;  %18223 = vmatprep.mubr.msk.bf16.mxu0 %vm423_vm0, %v19752_v35 }
  0x47   : > { %18277 = vmatprep.mubr.msk.bf16.mxu1 %vm423_vm0, %v19753_v36 }
  0x4d   : > { %18224 = vmatmul.mubr.msk.bf16.gmra.mrb[12].mxu0 %vm423_vm0, %v19754_v37 }
  0x4e   : > { %18278 = vmatmul.mubr.msk.bf16.gmra.mrb[12].mxu1 %vm423_vm0, %v19755_v38  ;;  %18229 = vmatprep.mubr.msk.bf16.mxu0 %vm423_vm0, %v19757_v39 }
  0x4f   : > { %18283 = vmatprep.mubr.msk.bf16.mxu1 %vm423_vm0, %v19758_v40 }
  0x55   : > { %18230 = vmatmul.mubr.msk.bf16.vlgmr.msra.gmra.mrb[0].mxu0 %vm423_vm0, %v19759_v41 }
  0x56   : > { %18284 = vmatmul.mubr.msk.bf16.vlgmr.msra.gmra.mrb[0].mxu1 %vm423_vm0, %v19760_v42  ;;  %18233 = vmatprep.mubr.msk.bf16.mxu0 %vm423_vm0, %v19761_v43 }
  0x57   : > { %18287 = vmatprep.mubr.msk.bf16.mxu1 %vm423_vm0, %v19762_v44  ;;  %2283 = vmatpush1.bf16.msra.mxu1 %v19773_v45 }
  0x58   : > { %2284 = vmatprep.subr.bf16.mxu1 %v20942_v4  ;;  %2090 = vmatpush1.bf16.msra.mxu0 %v19785_v5 }
  0x59   : > { %2091 = vmatprep.subr.bf16.mxu0 %v21155_v62 }
  0x5b   : > { %2285 = vmatpush1.bf16.msra.mxu1 %v19774_v46 }
  0x5c   : > { %2286 = vmatprep.subr.bf16.mxu1 %v20942_v4  ;;  %2092 = vmatpush1.bf16.msra.mxu0 %v19786_v6 }
  0x5d   : > { %18234 = vmatmul.mubr.msk.bf16.gmra.mrb[4].mxu0 %vm423_vm0, %v19763_v47  ;;  %2093 = vmatprep.subr.bf16.mxu0 %v21155_v62 }
  0x5e   : > { %18288 = vmatmul.mubr.msk.bf16.gmra.mrb[4].mxu1 %vm423_vm0, %v19764_v48  ;;  %18237 = vmatprep.mubr.msk.bf16.mxu0 %vm423_vm0, %v19765_v49 }
  0x5f   : > { %18291 = vmatprep.mubr.msk.bf16.mxu1 %vm423_vm0, %v19766_v50  ;;  %2287 = vmatpush1.bf16.msra.mxu1 %v19775_v51 }
  0x60   : > { %2288 = vmatprep.subr.bf16.mxu1 %v20942_v4  ;;  %2094 = vmatpush1.bf16.msra.mxu0 %v19787_v7 }
  0x61   : > { %2095 = vmatprep.subr.bf16.mxu0 %v21155_v62 }
  0x63   : > { %2289 = vmatpush1.bf16.msra.mxu1 %v19776_v52  ;;  %v19798_v52 = vld [vmem:[%s28853_s3 + $0x60] sm:$0xff]  }
  0x64   : > { %2290 = vmatprep.subr.bf16.mxu1 %v20942_v4  ;;  %2096 = vmatpush1.bf16.msra.mxu0 %v19788_v8 }
  0x65   : > { %18238 = vmatmul.mubr.msk.bf16.gmra.mrb[8].mxu0 %vm423_vm0, %v19767_v53  ;;  %2097 = vmatprep.subr.bf16.mxu0 %v21155_v62 }
  0x66   : > { %18292 = vmatmul.mubr.msk.bf16.gmra.mrb[8].mxu1 %vm423_vm0, %v19768_v54  ;;  %18241 = vmatprep.mubr.msk.bf16.mxu0 %vm423_vm0, %v19769_v55 }
  0x67   : > { %18295 = vmatprep.mubr.msk.bf16.mxu1 %vm423_vm0, %v19770_v56  ;;  %2291 = vmatpush1.bf16.msra.mxu1 %v19777_v57 }
  0x68   : > { %2292 = vmatprep.subr.bf16.mxu1 %v20942_v4  ;;  %2098 = vmatpush1.bf16.msra.mxu0 %v19789_v9 }
  0x69   : > { %2099 = vmatprep.subr.bf16.mxu0 %v21155_v62 }
  0x6b   : > { %2293 = vmatpush1.bf16.msra.mxu1 %v19778_v58 }
  0x6c   : > { %2294 = vmatprep.subr.bf16.mxu1 %v20942_v4  ;;  %v1913_v4 = vld [vmem:[#allocation2 + $0x8] sm:$0xff]  ;;  %2100 = vmatpush1.bf16.msra.mxu0 %v19790_v10 }
  0x6d   : > { %18242 = vmatmul.mubr.msk.bf16.gmra.mrb[12].mxu0 %vm423_vm0, %v19771_v59  ;;  %2101 = vmatprep.subr.bf16.mxu0 %v21155_v62 }
  0x6e   : > { %18296 = vmatmul.mubr.msk.bf16.gmra.mrb[12].mxu1 %vm423_vm0, %v19772_v60  ;;  %v29207_v60 = vmov 0 }
  0x6f   : > { %2295 = vmatpush1.bf16.msra.mxu1 %v19779_v61  ;;  %16437 = vmatprep.mubr.msk.bf16.mxu1 %vm333_vm1, %v1913_v4  ;;  %v29208_v60 = vsel %vm21271_vm4, 4294967295, %v29207_v60 }
  0x70   : > { %2296 = vmatprep.subr.bf16.mxu1 %v21155_v62  ;;  %2102 = vmatpush1.bf16.msra.mxu0 %v19791_v11  ;;  %29209 = vst [vmem:[#allocation5_spill] sm:$0xff] %v29208_v60 }
  0x71   : > { %2103 = vmatprep.subr.bf16.mxu0 %v21155_v62 }
  0x73   : > { %2297 = vmatpush1.bf16.msra.mxu1 %v19780_v63 }
  0x74   : > { %2298 = vmatprep.subr.bf16.mxu1 %v21155_v62  ;;  %2104 = vmatpush1.bf16.msra.mxu0 %v19792_v12 }
  0x75   : > { %2105 = vmatprep.subr.bf16.mxu0 %v21155_v62 }
  0x77   : > { %2299 = vmatpush1.bf16.msra.mxu1 %v19781_v0 }
  0x78   : > { %2300 = vmatprep.subr.bf16.mxu1 %v21155_v62  ;;  %2106 = vmatpush1.bf16.msra.mxu0 %v19793_v13 }
  0x79   : > { %2107 = vmatprep.subr.bf16.mxu0 %v21155_v62 }
  0x7b   : > { %2301 = vmatpush1.bf16.msra.mxu1 %v19782_v1 }
  0x7c   : > { %2302 = vmatprep.subr.bf16.mxu1 %v21155_v62  ;;  %2108 = vmatpush1.bf16.msra.mxu0 %v19794_v14 }
  0x7d   : > { %2109 = vmatprep.subr.bf16.mxu0 %v21155_v62 }
  0x7f   : > { %2303 = vmatpush1.bf16.msra.mxu1 %v19783_v2 }
  0x80   : > { %2304 = vmatprep.subr.bf16.mxu1 %v21155_v62  ;;  %2110 = vmatpush1.bf16.msra.mxu0 %v19795_v16 }
  0x81   : > { %2111 = vmatprep.subr.bf16.mxu0 %v21155_v62 }
  0x83   : > { %2305 = vmatpush1.bf16.msra.mxu1 %v19784_v3 }
  0x84   : > { %2982 = vmatprep.subr.bf16.mxu1 %v21155_v62  ;;  %2112 = vmatpush1.bf16.msra.mxu0 %v19796_v21 }
  0x85   : > { %2517 = vmatprep.subr.bf16.mxu0 %v21155_v62 }
  0x86   : > { %2315 = vmatmul.mubr.bf16.vlgmr.msra.gmra.mrb[16].mxu1 %v21155_v62 }
  0x87   : > { %2983 = vmatpush1.bf16.msra.mxu1 %v19798_v52 }
  0x88   : > { %2984 = vmatprep.subr.bf16.mxu1 %v21155_v62 }
 0x128   : > { %v18231_v17 = vpop.f32.mrb[0].mxu0 }
 0x129   : > { %v923_v18 = vadd.f32 %v18231_v17, %v21227_v15  ;;  %v18285_v19 = vpop.f32.mrb[0].mxu1  ;;  %v836_v20 = vpop.f32.mrb[1].mxu0 }
 0x12a   : > { %v1705_v22 = vadd.f32 %v18285_v19, %v21227_v15  ;;  %v921_v23 = vadd.f32 %v21227_v15, %v836_v20  ;;  %v1624_v24 = vpop.f32.mrb[1].mxu1  ;;  %v18232_v25 = vpop.f32.mrb[2].mxu0 }
 0x12b   : > { %v1703_v26 = vadd.f32 %v21227_v15, %v1624_v24  ;;  %v924_v27 = vadd.f32 %v18232_v25, %v21227_v15  ;;  %v18286_v28 = vpop.f32.mrb[2].mxu1  ;;  %v839_v29 = vpop.f32.mrb[3].mxu0  ;;  %v939_v34 = vmax.f32 %v923_v18, 0.0 }
 0x12c   : > { %v1721_v30 = vmax.f32 %v1705_v22, 0.0  ;;  %v1706_v31 = vadd.f32 %v18286_v28, %v21227_v15  ;;  %v922_v32 = vadd.f32 %v21227_v15, %v839_v29  ;;  %v1627_v33 = vpop.f32.mrb[3].mxu1  ;;  %v937_v38 = vmax.f32 %v921_v23, 0.0 }
 0x12d   : > { %v1719_v35 = vmax.f32 %v1703_v26, 0.0  ;;  %v940_v36 = vmax.f32 %v924_v27, 0.0  ;;  %v1704_v37 = vadd.f32 %v21227_v15, %v1627_v33 }
 0x12e   : > { %v1722_v39 = vmax.f32 %v1706_v31, 0.0  ;;  %v938_v40 = vmax.f32 %v922_v32, 0.0 }
 0x12f   : > { %v21245_v41 = vpack.c.bf16 %v940_v36, %v939_v34  ;;  %v1720_v42 = vmax.f32 %v1704_v37, 0.0  ;;  %v19800_v37 = vld [vmem:[%s28853_s3 + $0x68] sm:$0xff]  }
 0x130   : > { %v21247_v43 = vpack.c.bf16 %v1722_v39, %v1721_v30  ;;  %v21249_v44 = vpack.c.bf16 %v938_v40, %v937_v38  ;;  %v18235_v45 = vpop.f32.mrb[4].mxu0  ;;  %2985 = vmatpush1.bf16.msra.mxu1 %v19800_v37 }
 0x131   : > { %v969_v46 = vshrl.u32 %v21245_v41, 16  ;;  %v972_v47 = vshll.u32 %v21245_v41, 16  ;;  %v21253_v48 = vpack.c.bf16 %v1720_v42, %v1719_v35  ;;  %v21256_v49 = vadd.f32 %v18235_v45, %v21227_v15  ;;  %v18289_v50 = vpop.f32.mrb[4].mxu1  ;;  %v852_v51 = vpop.f32.mrb[5].mxu0 }
 0x132   : > { %v1751_v53 = vshrl.u32 %v21247_v43, 16  ;;  %v1754_v54 = vshll.u32 %v21247_v43, 16  ;;  %v962_v55 = vshrl.u32 %v21249_v44, 16  ;;  %v965_v56 = vshll.u32 %v21249_v44, 16  ;;  %v1640_v57 = vpop.f32.mrb[5].mxu1  ;;  %1088 = vrot.lane.b32.xlu0 %v21249_v44, %s20943_s23  ;;  %v18236_v58 = vpop.f32.mrb[6].mxu0 }
 0x133   : > { %v1038_v59 = vrot.slane %v972_v47, 1  ;;  %v1744_v61 = vshrl.u32 %v21253_v48, 16  ;;  %v1747_v63 = vshll.u32 %v21253_v48, 16  ;;  %v943_v0 = vmax.f32 %v21256_v49, 0.0  ;;  %v18290_v1 = vpop.f32.mrb[6].mxu1  ;;  %v855_v2 = vpop.f32.mrb[7].mxu0 }
 0x134   : > { %v1817_v3 = vrot.slane %v1754_v54, 1  ;;  %v1036_v4 = vrot.slane %v965_v56, 1  ;;  %v1709_v5 = vadd.f32 %v18289_v50, %v21227_v15  ;;  %v925_v6 = vadd.f32 %v21227_v15, %v852_v51  ;;  %v1643_v7 = vpop.f32.mrb[7].mxu1  ;;  %v19808_v44 = vld [vmem:[%s28853_s3 + $0x88] sm:$0xff]  }
 0x135   : > { %v1039_v8 = vor.u32 %v1038_v59, %v969_v46  ;;  %v1815_v9 = vrot.slane %v1747_v63, 1  ;;  %v1707_v10 = vadd.f32 %v21227_v15, %v1640_v57  ;;  %v1710_v11 = vadd.f32 %v18290_v1, %v21227_v15  ;;  %v19802_v59 = vld [vmem:[%s28853_s3 + $0x70] sm:$0xff]  }
 0x136   : > { %v1818_v12 = vor.u32 %v1817_v3, %v1751_v53  ;;  %v1037_v13 = vor.u32 %v1036_v4, %v962_v55  ;;  %v1725_v14 = vmax.f32 %v1709_v5, 0.0  ;;  %v941_v16 = vmax.f32 %v925_v6, 0.0  ;;  %1090 = vrot.lane.b32.xlu0 %v21245_v41, %s20943_s23  ;;  %v21343_v4 = vld [vmem:[#allocation2] sm:$0xff] }
 0x137   : > { %v1064_v62 = vsel %vm21271_vm4, %v1039_v8, 0  ;;  %v1816_v17 = vor.u32 %v1815_v9, %v1744_v61  ;;  %v1723_v18 = vmax.f32 %v1707_v10, 0.0  ;;  %v1726_v19 = vmax.f32 %v1710_v11, 0.0  ;;  %2986 = vmatprep.subr.bf16.mxu1 %v21343_v4 }
 0x138   : > { %1122 = vst.msk [vmem:[#allocation2 + $0x28] sm:$0xff] %vm333_vm1, %v1064_v62  ;;  %v1840_v20 = vsel %vm21271_vm4, %v1818_v12, 0  ;;  %v1063_v21 = vsel %vm21271_vm4, %v1037_v13, 0  ;;  %v928_v22 = vadd.f32 %v18236_v58, %v21227_v15  ;;  %v926_v23 = vadd.f32 %v21227_v15, %v855_v2  ;;  %v18239_v24 = vpop.f32.mrb[8].mxu0  ;;  %2987 = vmatpush1.bf16.msra.mxu1 %v19802_v59 }
 0x139   : > { %1897 = vst.msk [vmem:[#allocation2 + $0xa8] sm:$0xff] %vm333_vm1, %v1840_v20  ;;  %1121 = vst.msk [vmem:[#allocation2 + $0x18] sm:$0xff] %vm333_vm1, %v1063_v21  ;;  %v1839_v25 = vsel %vm21271_vm4, %v1816_v17, 0  ;;  %v21312_v26 = vpack.c.bf16 %v1726_v19, %v1725_v14  ;;  %v1708_v27 = vadd.f32 %v21227_v15, %v1643_v7  ;;  %v21316_v28 = vadd.f32 %v18239_v24, %v21227_v15  ;;  %v18293_v29 = vpop.f32.mrb[8].mxu1  ;;  %v868_v30 = vpop.f32.mrb[9].mxu0 }
 0x13a   : > { %1896 = vst.msk [vmem:[#allocation2 + $0x98] sm:$0xff] %vm333_vm1, %v1839_v25  ;;  %v944_v31 = vmax.f32 %v928_v22, 0.0  ;;  %v942_v32 = vmax.f32 %v926_v23, 0.0  ;;  %v1713_v33 = vadd.f32 %v18293_v29, %v21227_v15  ;;  %v21321_v34 = vadd.f32 %v21227_v15, %v868_v30  ;;  %v1656_v35 = vpop.f32.mrb[9].mxu1  ;;  %v18240_v36 = vpop.f32.mrb[10].mxu0  ;;  %2988 = vmatprep.subr.bf16.mxu1 %v21343_v4 }
 0x13b   : > { %v1765_v38 = vshrl.u32 %v21312_v26, 16  ;;  %v1768_v39 = vshll.u32 %v21312_v26, 16  ;;  %v1724_v40 = vmax.f32 %v1708_v27, 0.0  ;;  %v947_v42 = vmax.f32 %v21316_v28, 0.0  ;;  %v18294_v45 = vpop.f32.mrb[10].mxu1  ;;  %v871_v49 = vpop.f32.mrb[11].mxu0 }
 0x13c   : > { %v21329_v50 = vpack.c.bf16 %v944_v31, %v943_v0  ;;  %v21331_v51 = vpack.c.bf16 %v942_v32, %v941_v16  ;;  %v1729_v52 = vmax.f32 %v1713_v33, 0.0  ;;  %v945_v57 = vmax.f32 %v21321_v34, 0.0  ;;  %v1659_v58 = vpop.f32.mrb[11].mxu1 }
 0x13d   : > { %v1821_v1 = vrot.slane %v1768_v39, 1  ;;  %v21339_v2 = vpack.c.bf16 %v1724_v40, %v1723_v18  ;;  %v1711_v3 = vadd.f32 %v21227_v15, %v1656_v35  ;;  %v1714_v0 = vadd.f32 %v18294_v45, %v21227_v15 }
 0x13e   : > { %v983_v5 = vshrl.u32 %v21329_v50, 16  ;;  %v986_v6 = vshll.u32 %v21329_v50, 16  ;;  %v976_v7 = vshrl.u32 %v21331_v51, 16  ;;  %v979_v8 = vshll.u32 %v21331_v51, 16  ;;  %1092 = vrot.lane.b32.xlu1 %v21331_v51, %s20943_s23  ;;  %v19810_v51 = vld [vmem:[%s28853_s3 + $0x90] sm:$0xff]  }
 0x13f   : > { %v1822_v9 = vor.u32 %v1821_v1, %v1765_v38  ;;  %v1758_v10 = vshrl.u32 %v21339_v2, 16  ;;  %v1761_v11 = vshll.u32 %v21339_v2, 16  ;;  %v1727_v12 = vmax.f32 %v1711_v3, 0.0 }
 0x140   : > { %v1042_v13 = vrot.slane %v986_v6, 1  ;;  %v1040_v14 = vrot.slane %v979_v8, 1  ;;  %v1730_v16 = vmax.f32 %v1714_v0, 0.0  ;;  %v932_v62 = vadd.f32 %v18240_v36, %v21227_v15  ;;  %v18243_v17 = vpop.f32.mrb[12].mxu0  ;;  %v1953_v18 = vld [vmem:[#allocation2 + $0x18] sm:$0xff] }
 0x141   : > { %v1842_v19 = vsel %vm21271_vm4, %v1822_v9, 0  ;;  %v1819_v20 = vrot.slane %v1761_v11, 1  ;;  %v930_v21 = vadd.f32 %v21227_v15, %v871_v49  ;;  %v1712_v22 = vadd.f32 %v21227_v15, %v1659_v58  ;;  %v18297_v23 = vpop.f32.mrb[12].mxu1  ;;  %v884_v24 = vpop.f32.mrb[13].mxu0  ;;  %16417 = vmatprep.mubr.msk.bf16.mxu0 %vm333_vm1, %v1953_v18  ;;  %16438 = vmatprep.mubr.msk.bf16.mxu1 %vm333_vm1, %v1953_v18 }
 0x142   : > { %1899 = vst.msk [vmem:[#allocation2 + $0xc8] sm:$0xff] %vm333_vm1, %v1842_v19  ;;  %v1043_v25 = vor.u32 %v1042_v13, %v983_v5  ;;  %v1041_v27 = vor.u32 %v1040_v14, %v976_v7  ;;  %v21374_v29 = vpack.c.bf16 %v1730_v16, %v1729_v52  ;;  %v948_v30 = vmax.f32 %v932_v62, 0.0  ;;  %1094 = vrot.lane.b32.xlu1 %v21329_v50, %s20943_s23  ;;  %v1672_v31 = vpop.f32.mrb[13].mxu1  ;;  %v18244_v32 = vpop.f32.mrb[14].mxu0  ;;  %v19804_v13 = vld [vmem:[%s28853_s3 + $0x78] sm:$0xff]  }
 0x143   : > { %v1820_v33 = vor.u32 %v1819_v20, %v1758_v10  ;;  %v946_v34 = vmax.f32 %v930_v21, 0.0  ;;  %v1728_v35 = vmax.f32 %v1712_v22, 0.0  ;;  %v935_v36 = vadd.f32 %v18243_v17, %v21227_v15  ;;  %v18298_v37 = vpop.f32.mrb[14].mxu1  ;;  %v887_v40 = vpop.f32.mrb[15].mxu0  ;;  %2989 = vmatpush1.bf16.msra.mxu1 %v19804_v13 }
 0x144   : > { %v1066_v45 = vsel %vm21271_vm4, %v1043_v25, 0  ;;  %v1065_v49 = vsel %vm21271_vm4, %v1041_v27, 0  ;;  %v1779_v52 = vshrl.u32 %v21374_v29, 16  ;;  %v1782_v58 = vshll.u32 %v21374_v29, 16  ;;  %v1675_v59 = vpop.f32.mrb[15].mxu1  ;;  %2990 = vmatprep.subr.bf16.mxu1 %v21343_v4 }
 0x145   : > { %1124 = vst.msk [vmem:[#allocation2 + $0x48] sm:$0xff] %vm333_vm1, %v1066_v45  ;;  %1123 = vst.msk [vmem:[#allocation2 + $0x38] sm:$0xff] %vm333_vm1, %v1065_v49  ;;  %v1841_v1 = vsel %vm21271_vm4, %v1820_v33, 0  ;;  %v21394_v3 = vpack.c.bf16 %v948_v30, %v947_v42  ;;  %v21396_v0 = vpack.c.bf16 %v946_v34, %v945_v57  ;;  %v21398_v9 = vpack.c.bf16 %v1728_v35, %v1727_v12 }
 0x146   : > { %1898 = vst.msk [vmem:[#allocation2 + $0xb8] sm:$0xff] %vm333_vm1, %v1841_v1  ;;  %v1825_v14 = vrot.slane %v1782_v58, 1  ;;  %v951_v16 = vmax.f32 %v935_v36, 0.0  ;;  %v1717_v62 = vadd.f32 %v18297_v23, %v21227_v15  ;;  %v933_v28 = vadd.f32 %v21227_v15, %v884_v24 }
 0x147   : > { %v997_v42 = vshrl.u32 %v21394_v3, 16  ;;  %v1000_v57 = vshll.u32 %v21394_v3, 16  ;;  %v990_v12 = vshrl.u32 %v21396_v0, 16  ;;  %v993_v17 = vshll.u32 %v21396_v0, 16  ;;  %1098 = vrot.lane.b32.xlu1 %v21394_v3, %s20943_s23  ;;  %1096 = vrot.lane.b32.xlu0 %v21396_v0, %s20943_s23  ;;  %v19813_v3 = vld [vmem:[%s28853_s3 + $0xa0] sm:$0xff]  }
 0x148   : > { %v1826_v18 = vor.u32 %v1825_v14, %v1779_v52  ;;  %v1772_v19 = vshrl.u32 %v21398_v9, 16  ;;  %v1775_v20 = vshll.u32 %v21398_v9, 16  ;;  %v1733_v21 = vmax.f32 %v1717_v62, 0.0 }
 0x149   : > { %v1046_v22 = vrot.slane %v1000_v57, 1  ;;  %v1044_v23 = vrot.slane %v993_v17, 1  ;;  %v949_v24 = vmax.f32 %v933_v28, 0.0  ;;  %v1715_v25 = vadd.f32 %v21227_v15, %v1672_v31 }
 0x14a   : > { %v1844_v27 = vsel %vm21271_vm4, %v1826_v18, 0  ;;  %v1823_v30 = vrot.slane %v1775_v20, 1  ;;  %v1718_v33 = vadd.f32 %v18298_v37, %v21227_v15  ;;  %v936_v34 = vadd.f32 %v18244_v32, %v21227_v15  ;;  %v19806_v32 = vld [vmem:[%s28853_s3 + $0x80] sm:$0xff]  }
 0x14b   : > { %1901 = vst.msk [vmem:[#allocation2 + $0xe8] sm:$0xff] %vm333_vm1, %v1844_v27  ;;  %v1047_v35 = vor.u32 %v1046_v22, %v997_v42  ;;  %v1045_v31 = vor.u32 %v1044_v23, %v990_v12  ;;  %v1731_v36 = vmax.f32 %v1715_v25, 0.0  ;;  %v934_v45 = vadd.f32 %v21227_v15, %v887_v40  ;;  %2991 = vmatpush1.bf16.msra.mxu1 %v19806_v32 }
 0x14c   : > { %v1824_v49 = vor.u32 %v1823_v30, %v1772_v19  ;;  %v1734_v1 = vmax.f32 %v1718_v33, 0.0  ;;  %v952_v13 = vmax.f32 %v936_v34, 0.0  ;;  %v1716_v37 = vadd.f32 %v21227_v15, %v1675_v59  ;;  %2992 = vmatprep.subr.bf16.mxu1 %v21343_v4 }
 0x14d   : > { %v1068_v14 = vsel %vm21271_vm4, %v1047_v35, 0  ;;  %v1067_v62 = vsel %vm21271_vm4, %v1045_v31, 0  ;;  %v950_v28 = vmax.f32 %v934_v45, 0.0  ;;  %v29210_v40 = vmov 0 }
 0x14e   : > { %v29211_v40 = vsel %vm21450_vm7, 4294967295, %v29210_v40  ;;  %v964_v15 = vrot.slane %v962_v55, 7  ;;  %1126 = vst.msk [vmem:[#allocation2 + $0x68] sm:$0xff] %vm333_vm1, %v1068_v14  ;;  %1125 = vst.msk [vmem:[#allocation2 + $0x58] sm:$0xff] %vm333_vm1, %v1067_v62  ;;  %v1843_v59 = vsel %vm21271_vm4, %v1824_v49, 0  ;;  %v21460_v18 = vpack.c.bf16 %v1734_v1, %v1733_v21 }
 0x14f   : > { %29212 = vst [vmem:[#allocation6_spill] sm:$0xff] %v29211_v40  ;;  %v960_v22 = vpack.c.bf16 %v952_v13, %v951_v16  ;;  %v1732_v23 = vmax.f32 %v1716_v37, 0.0  ;;  %1900 = vst.msk [vmem:[#allocation2 + $0xd8] sm:$0xff] %vm333_vm1, %v1843_v59  ;;  %v21463_v25 = vpack.c.bf16 %v950_v28, %v949_v24  ;;  %v971_v55 = vrot.slane %v969_v46, 7  ;;  %2993 = vmatpush1.bf16.msra.mxu1 %v19808_v44  ;;  %v22859_v40 = vld [vmem:[%s28855_s5 + $0x114] ss:$8 sps:$4 sm:$0xff]  }
 0x150   : > { %v967_v27 = vor.u32 %v965_v56, %v964_v15  ;;  %v978_v30 = vrot.slane %v976_v7, 7  ;;  %v1793_v21 = vshrl.u32 %v21460_v18, 16  ;;  %v1796_v16 = vshll.u32 %v21460_v18, 16  ;;  %2994 = vmatprep.subr.bf16.mxu1 %v21343_v4 }
 0x151   : > { %v1011_v33 = vshrl.u32 %v960_v22, 16  ;;  %v1014_v34 = vshll.u32 %v960_v22, 16  ;;  %1102 = vrot.lane.b32.xlu1 %v960_v22, %s20943_s23  ;;  %v1004_v56 = vshrl.u32 %v21463_v25, 16  ;;  %v1007_v46 = vshll.u32 %v21463_v25, 16  ;;  %1100 = vrot.lane.b32.xlu0 %v21463_v25, %s20943_s23  ;;  %v19811_v25 = vld [vmem:[%s28853_s3 + $0x98] sm:$0xff]  }
 0x152   : > { %v21480_v24 = vpack.c.bf16 %v1732_v23, %v1731_v36  ;;  %v1028_v7 = vsel %vm21450_vm7, 0, %v967_v27  ;;  %v1829_v35 = vrot.slane %v1796_v16, 1  ;;  %v974_v45 = vor.u32 %v972_v47, %v971_v55 }
 0x153   : > { %v1050_v31 = vrot.slane %v1014_v34, 1  ;;  %1072 = vst.msk [vmem:[#allocation2 + $0x10] sm:$0xff] %vm333_vm1, %v1028_v7  ;;  %v981_v49 = vor.u32 %v979_v8, %v978_v30  ;;  %v1048_v36 = vrot.slane %v1007_v46, 1  ;;  %v985_v37 = vrot.slane %v983_v5, 7  ;;  %2995 = vmatpush1.bf16.msra.mxu1 %v19810_v51  ;;  %v21668_v51 = vld [vmem:[#allocation2 + $0x38] sm:$0xff] }
 0x154   : > { %v1786_v1 = vshrl.u32 %v21480_v24, 16  ;;  %v1789_v13 = vshll.u32 %v21480_v24, 16  ;;  %v1830_v32 = vor.u32 %v1829_v35, %v1793_v21  ;;  %v1029_v41 = vsel %vm21450_vm7, 0, %v974_v45  ;;  %2996 = vmatprep.subr.bf16.mxu1 %v21343_v4 }
 0x155   : > { %v1051_v14 = vor.u32 %v1050_v31, %v1011_v33  ;;  %1866 = vrot.lane.b32.xlu1 %v21247_v43, %s20943_s23  ;;  %v1030_v47 = vsel %vm21450_vm7, 0, %v981_v49  ;;  %v1049_v5 = vor.u32 %v1048_v36, %v1004_v56  ;;  %1864 = vrot.lane.b32.xlu0 %v21253_v48, %s20943_s23  ;;  %1073 = vst.msk [vmem:[#allocation2 + $0x20] sm:$0xff] %vm333_vm1, %v1029_v41  ;;  %v999_v28 = vrot.slane %v997_v42, 7  ;;  %v19797_v36 = vld [vmem:[%s28853_s3 + $0xc0] sm:$0xff]  }
 0x156   : > { %v1827_v8 = vrot.slane %v1789_v13, 1  ;;  %1074 = vst.msk [vmem:[#allocation2 + $0x30] sm:$0xff] %vm333_vm1, %v1030_v47  ;;  %v988_v62 = vor.u32 %v986_v6, %v985_v37  ;;  %v1846_v15 = vsel %vm21271_vm4, %v1830_v32, 0  ;;  %v992_v22 = vrot.slane %v990_v12, 7  ;;  %v19799_v37 = vld [vmem:[%s28853_s3 + $0xc8] sm:$0xff]  }
 0x157   : > { %v1070_v59 = vsel %vm21271_vm4, %v1051_v14, 0  ;;  %v1013_v23 = vrot.slane %v1011_v33, 7  ;;  %1903 = vst.msk [vmem:[#allocation2 + $0x108] sm:$0xff] %vm333_vm1, %v1846_v15  ;;  %v1069_v50 = vsel %vm21271_vm4, %v1049_v5, 0  ;;  %v1002_v12 = vor.u32 %v1000_v57, %v999_v28  ;;  %2997 = vmatpush1.bf16.msra.mxu1 %v19811_v25  ;;  %v19801_v14 = vld [vmem:[%s28853_s3 + $0xd0] sm:$0xff]   ;;  %v19803_v5 = vld [vmem:[%s28853_s3 + $0xd8] sm:$0xff]  }
 0x158   : > { %1128 = vst.msk [vmem:[#allocation2 + $0x88] sm:$0xff] %vm333_vm1, %v1070_v59  ;;  %v1828_v6 = vor.u32 %v1827_v8, %v1786_v1  ;;  %v1031_v42 = vsel %vm21450_vm7, 0, %v988_v62  ;;  %1127 = vst.msk [vmem:[#allocation2 + $0x78] sm:$0xff] %vm333_vm1, %v1069_v50  ;;  %v995_v27 = vor.u32 %v993_v17, %v992_v22  ;;  %v1006_v30 = vrot.slane %v1004_v56, 7  ;;  %2998 = vmatprep.subr.bf16.mxu1 %v21343_v4  ;;  %v19805_v28 = vld [vmem:[%s28853_s3 + $0xe0] sm:$0xff]   ;;  %v21688_v59 = vld [vmem:[#allocation2 + $0x48] sm:$0xff] }
 0x159   : > { %1870 = vrot.lane.b32.xlu1 %v21312_v26, %s20943_s23  ;;  %1075 = vst.msk [vmem:[#allocation2 + $0x40] sm:$0xff] %vm333_vm1, %v1031_v42  ;;  %v1016_v55 = vor.u32 %v1014_v34, %v1013_v23  ;;  %v1753_v33 = vrot.slane %v1751_v53, 7  ;;  %1868 = vrot.lane.b32.xlu0 %v21339_v2, %s20943_s23  ;;  %v1033_v44 = vsel %vm21450_vm7, 0, %v1002_v12  ;;  %v1746_v0 = vrot.slane %v1744_v61, 7  ;;  %v19815_v2 = vld [vmem:[%s28853_s3 + $0xa8] sm:$0xff]   ;;  %v19809_v50 = vld [vmem:[%s28853_s3 + $0xf0] sm:$0xff]  }
 0x15a   : > { %v1845_v57 = vsel %vm21271_vm4, %v1828_v6, 0  ;;  %v1767_v17 = vrot.slane %v1765_v38, 7  ;;  %1077 = vst.msk [vmem:[#allocation2 + $0x60] sm:$0xff] %vm333_vm1, %v1033_v44  ;;  %v1032_v53 = vsel %vm21450_vm7, 0, %v995_v27  ;;  %v1009_v56 = vor.u32 %v1007_v46, %v1006_v30  ;;  %v19807_v22 = vld [vmem:[%s28853_s3 + $0xe8] sm:$0xff]   ;;  %v21708_v42 = vld [vmem:[#allocation2 + $0x58] sm:$0xff] }
 0x15b   : > { %1902 = vst.msk [vmem:[#allocation2 + $0xf8] sm:$0xff] %vm333_vm1, %v1845_v57  ;;  %v1035_v34 = vsel %vm21450_vm7, 0, %v1016_v55  ;;  %v1756_v7 = vor.u32 %v1754_v54, %v1753_v33  ;;  %1076 = vst.msk [vmem:[#allocation2 + $0x50] sm:$0xff] %vm333_vm1, %v1032_v53  ;;  %v1749_v61 = vor.u32 %v1747_v63, %v1746_v0  ;;  %v1760_v35 = vrot.slane %v1758_v10, 7  ;;  %2999 = vmatpush1.bf16.msra.mxu1 %v19813_v3  ;;  %v19812_v55 = vld [vmem:[%s28853_s3 + $0xf8] sm:$0xff]   ;;  %v19814_v3 = vld [vmem:[%s28853_s3 + $0x100] sm:$0xff]  }
 0x15c   : > { %1079 = vst.msk [vmem:[#allocation2 + $0x80] sm:$0xff] %vm333_vm1, %v1035_v34  ;;  %v1770_v38 = vor.u32 %v1768_v39, %v1767_v17  ;;  %v1781_v46 = vrot.slane %v1779_v52, 7  ;;  %v1034_v43 = vsel %vm21450_vm7, 0, %v1009_v56  ;;  %v1774_v54 = vrot.slane %v1772_v19, 7  ;;  %3000 = vmatprep.subr.bf16.mxu1 %v21343_v4  ;;  %v21730_v44 = vld [vmem:[#allocation2 + $0x68] sm:$0xff] }
 0x15d   : > { %1874 = vrot.lane.b32.xlu1 %v21374_v29, %s20943_s23  ;;  %v1808_v48 = vsel %vm21450_vm7, 0, %v1756_v7  ;;  %v1795_v63 = vrot.slane %v1793_v21, 7  ;;  %1872 = vrot.lane.b32.xlu0 %v21398_v9, %s20943_s23  ;;  %1078 = vst.msk [vmem:[#allocation2 + $0x70] sm:$0xff] %vm333_vm1, %v1034_v43  ;;  %v1807_v26 = vsel %vm21450_vm7, 0, %v1749_v61  ;;  %v1763_v10 = vor.u32 %v1761_v11, %v1760_v35  ;;  %v19816_v53 = vld [vmem:[%s28853_s3 + $0x108] sm:$0xff]   ;;  %v19819_v7 = vld [vmem:[%s28853_s3 + $0x110] sm:$0xff]  }
 0x15e   : > { %1849 = vst.msk [vmem:[#allocation2 + $0xa0] sm:$0xff] %vm333_vm1, %v1808_v48  ;;  %v1810_v39 = vsel %vm21450_vm7, 0, %v1770_v38  ;;  %v1784_v52 = vor.u32 %v1782_v58, %v1781_v46  ;;  %1848 = vst.msk [vmem:[#allocation2 + $0x90] sm:$0xff] %vm333_vm1, %v1807_v26  ;;  %v1777_v19 = vor.u32 %v1775_v20, %v1774_v54  ;;  %v1788_v31 = vrot.slane %v1786_v1, 7  ;;  %v19820_v35 = vld [vmem:[%s28853_s3 + $0x118] sm:$0xff]   ;;  %v19822_v54 = vld [vmem:[%s28853_s3 + $0xc0] sm:$0xff]  }
 0x15f   : > { %1851 = vst.msk [vmem:[#allocation2 + $0xc0] sm:$0xff] %vm333_vm1, %v1810_v39  ;;  %v1798_v21 = vor.u32 %v1796_v16, %v1795_v63  ;;  %v1809_v11 = vsel %vm21450_vm7, 0, %v1763_v10  ;;  %3001 = vmatpush1.bf16.msra.mxu1 %v19815_v2  ;;  %v21752_v38 = vld [vmem:[#allocation2 + $0x78] sm:$0xff]  ;;  %v21767_v43 = vld [vmem:[#allocation2 + $0x88] sm:$0xff]  ;;  %v21786_v10 = vpop.f32.mrb[16].mxu1  ;;  %v19821_v2 = vld [vmem:[%s28853_s3] sm:$0xff]  }
 0x160   : > { %v1812_v29 = vsel %vm21450_vm7, 0, %v1784_v52  ;;  %1850 = vst.msk [vmem:[#allocation2 + $0xb0] sm:$0xff] %vm333_vm1, %v1809_v11  ;;  %v1811_v58 = vsel %vm21450_vm7, 0, %v1777_v19  ;;  %v1791_v20 = vor.u32 %v1789_v13, %v1788_v31  ;;  %3002 = vmatprep.subr.bf16.mxu1 %v21343_v4  ;;  %v21648_v13 = vld [vmem:[#allocation2 + $0x28] sm:$0xff]  ;;  %v21769_v48 = vld [vmem:[#allocation2 + $0x98] sm:$0xff]  ;;  %v2318_v52 = vpop.f32.mrb[17].mxu1 }
 0x161   : > { %1878 = vrot.lane.b32.xlu1 %v21460_v18, %s20943_s23  ;;  %1853 = vst.msk [vmem:[#allocation2 + $0xe0] sm:$0xff] %vm333_vm1, %v1812_v29  ;;  %v1814_v9 = vsel %vm21450_vm7, 0, %v1798_v21  ;;  %1876 = vrot.lane.b32.xlu0 %v21480_v24, %s20943_s23  ;;  %1852 = vst.msk [vmem:[#allocation2 + $0xd0] sm:$0xff] %vm333_vm1, %v1811_v58  ;;  %v19817_v18 = vld [vmem:[%s28853_s3 + $0xb0] sm:$0xff]   ;;  %v19818_v24 = vld [vmem:[%s28853_s3 + $0xb8] sm:$0xff]   ;;  %v21795_v21 = vpop.f32.mrb[18].mxu1 }
 0x162   : > { %1855 = vst.msk [vmem:[#allocation2 + $0x100] sm:$0xff] %vm333_vm1, %v1814_v9  ;;  %v1813_v16 = vsel %vm21450_vm7, 0, %v1791_v20  ;;  %v21784_v39 = vld [vmem:[#allocation2 + $0xa8] sm:$0xff]  ;;  %v2321_v31 = vpop.f32.mrb[19].mxu1  ;;  %v19826_v29 = vld [vmem:[%s28853_s3 + $0xd0] sm:$0xff]   ;;  %v21811_v58 = vld [vmem:[#allocation2 + $0xb8] sm:$0xff] }
 0x163   : > { %1854 = vst.msk [vmem:[#allocation2 + $0xf0] sm:$0xff] %vm333_vm1, %v1813_v16  ;;  %3003 = vmatpush1.bf16.msra.mxu1 %v19817_v18  ;;  %v19824_v19 = vld [vmem:[%s28853_s3 + $0xc8] sm:$0xff]   ;;  %v19828_v20 = vld [vmem:[%s28853_s3 + $0xd8] sm:$0xff]   ;;  %v19825_v18 = vld [vmem:[%s28853_s3 + $0x10] sm:$0xff]   ;;  %s16189_s23 = sshll.u32 %s29855_s10, 2 }
 0x164   : > { %3004 = vmatprep.subr.bf16.mxu1 %v21343_v4  ;;  %v19823_v9 = vld [vmem:[%s28853_s3 + $0x8] sm:$0xff]   ;;  %v19878_v31 = vld [vmem:[%s28855_s5 + $0x230] ss:$8 sps:$4 sm:$0xff]   ;;  %s330_s29 = scalar_lea.vmem %s28859_s9, %s16189_s23 }
 0x165   : > { %v19875_v52 = vld [vmem:[%s28855_s5 + $0x220] ss:$8 sps:$4 sm:$0xff]  }
 0x167   : > { %3005 = vmatpush1.bf16.msra.mxu1 %v19818_v24  ;;  %v19830_v24 = vld [vmem:[%s28853_s3 + $0xe0] sm:$0xff]  }
 0x168   : > { %3409 = vmatprep.subr.bf16.mxu1 %v21343_v4 }
 0x1a4   : > { %v1089_v45 = vpop.permute.xlu0 %1088 }
 0x1a5   : > { %1113 = vst.msk [vmem:[#allocation2 + $0x10] sm:$0xff] %vm1112_vm8, %v1089_v45  ;;  %v21836_v45 = vld [vmem:[#allocation2 + $0xc8] sm:$0xff] }
 0x1a8   : > { %v1091_v49 = vpop.permute.xlu0 %1090 }
 0x1a9   : > { %1114 = vst.msk [vmem:[#allocation2 + $0x20] sm:$0xff] %vm1112_vm8, %v1091_v49  ;;  %v19827_v49 = vld [vmem:[%s28853_s3 + $0x18] sm:$0xff]  }
 0x1ac   : > { %v1952_v1 = vld [vmem:[#allocation2 + $0x10] sm:$0xff] }
 0x1ad   : > { %2122 = vmatmul.mubr.bf16.vlgmr.msra.gmra.mrb[16].mxu0 %v1952_v1  ;;  %2323 = vmatmul.mubr.bf16.gmra.mrb[20].mxu1 %v1952_v1  ;;  %v19829_v1 = vld [vmem:[%s28853_s3 + $0x20] sm:$0xff]  }
 0x1ae   : > { %2518 = vmatpush1.bf16.msra.mxu0 %v19797_v36  ;;  %16418 = vmatprep.mubr.msk.bf16.mxu0 %vm333_vm1, %v21648_v13  ;;  %v19832_v36 = vld [vmem:[%s28853_s3 + $0xe8] sm:$0xff]  }
 0x1af   : > { %16439 = vmatprep.mubr.msk.bf16.mxu1 %vm333_vm1, %v21648_v13  ;;  %2519 = vmatprep.subr.bf16.mxu0 %v21343_v4 }
 0x1b0   : > { %v1093_v32 = vpop.permute.xlu1 %1092  ;;  %v21663_v47 = vld [vmem:[#allocation2 + $0x20] sm:$0xff] }
 0x1b1   : > { %1115 = vst.msk [vmem:[#allocation2 + $0x30] sm:$0xff] %vm1112_vm8, %v1093_v32  ;;  %v21862_v32 = vld [vmem:[#allocation2 + $0xd8] sm:$0xff] }
 0x1b2   : > { %2520 = vmatpush1.bf16.msra.mxu0 %v19799_v37  ;;  %v19834_v37 = vld [vmem:[%s28853_s3 + $0xf0] sm:$0xff]  }
 0x1b3   : > { %2521 = vmatprep.subr.bf16.mxu0 %v21343_v4 }
 0x1b4   : > { %v1095_v41 = vpop.permute.xlu1 %1094 }
 0x1b5   : > { %1116 = vst.msk [vmem:[#allocation2 + $0x40] sm:$0xff] %vm1112_vm8, %v1095_v41  ;;  %2130 = vmatmul.mubr.bf16.gmra.mrb[20].mxu0 %v21663_v47  ;;  %2331 = vmatmul.mubr.bf16.gmra.mrb[24].mxu1 %v21663_v47  ;;  %v19835_v41 = vld [vmem:[%s28853_s3 + $0xf8] sm:$0xff]  }
 0x1b6   : > { %16419 = vmatprep.mubr.msk.bf16.mxu0 %vm333_vm1, %v21668_v51  ;;  %16440 = vmatprep.mubr.msk.bf16.mxu1 %vm333_vm1, %v21668_v51 }
 0x1b7   : > { %2522 = vmatpush1.bf16.msra.mxu0 %v19801_v14  ;;  %v19831_v14 = vld [vmem:[%s28853_s3 + $0x28] sm:$0xff]  }
 0x1b8   : > { %2523 = vmatprep.subr.bf16.mxu0 %v21343_v4  ;;  %v21683_v15 = vld [vmem:[#allocation2 + $0x30] sm:$0xff] }
 0x1b9   : > { %v1099_v8 = vpop.permute.xlu1 %1098  ;;  %v1097_v62 = vpop.permute.xlu0 %1096 }
 0x1ba   : > { %1118 = vst.msk [vmem:[#allocation2 + $0x60] sm:$0xff] %vm1112_vm8, %v1099_v8  ;;  %1117 = vst.msk [vmem:[#allocation2 + $0x50] sm:$0xff] %vm1112_vm8, %v1097_v62  ;;  %v21888_v8 = vld [vmem:[#allocation2 + $0xe8] sm:$0xff]  ;;  %v19836_v62 = vld [vmem:[%s28853_s3 + $0x38] sm:$0xff]  }
 0x1bb   : > { %2524 = vmatpush1.bf16.msra.mxu0 %v19803_v5  ;;  %v19837_v5 = vld [vmem:[%s28853_s3 + $0x100] sm:$0xff]  }
 0x1bc   : > { %2525 = vmatprep.subr.bf16.mxu0 %v21343_v4  ;;  %v21703_v6 = vld [vmem:[#allocation2 + $0x40] sm:$0xff] }
 0x1bd   : > { %2138 = vmatmul.mubr.bf16.gmra.mrb[24].mxu0 %v21683_v15  ;;  %2339 = vmatmul.mubr.bf16.gmra.mrb[28].mxu1 %v21683_v15 }
 0x1be   : > { %16420 = vmatprep.mubr.msk.bf16.mxu0 %vm333_vm1, %v21688_v59  ;;  %16441 = vmatprep.mubr.msk.bf16.mxu1 %vm333_vm1, %v21688_v59 }
 0x1bf   : > { %2526 = vmatpush1.bf16.msra.mxu0 %v19805_v28  ;;  %v19839_v28 = vld [vmem:[%s28853_s3 + $0x108] sm:$0xff]  }
 0x1c0   : > { %2527 = vmatprep.subr.bf16.mxu0 %v21343_v4 }
 0x1c1   : > { %v21725_v57 = vld [vmem:[#allocation2 + $0x50] sm:$0xff]  ;;  %v21747_v61 = vld [vmem:[#allocation2 + $0x60] sm:$0xff] }
 0x1c3   : > { %v1103_v23 = vpop.permute.xlu1 %1102  ;;  %v1101_v25 = vpop.permute.xlu0 %1100  ;;  %2528 = vmatpush1.bf16.msra.mxu0 %v19807_v22  ;;  %v19841_v22 = vld [vmem:[%s28853_s3 + $0x110] sm:$0xff]  }
 0x1c4   : > { %1120 = vst.msk [vmem:[#allocation2 + $0x80] sm:$0xff] %vm1112_vm8, %v1103_v23  ;;  %1119 = vst.msk [vmem:[#allocation2 + $0x70] sm:$0xff] %vm1112_vm8, %v1101_v25  ;;  %2529 = vmatprep.subr.bf16.mxu0 %v21343_v4  ;;  %v21914_v23 = vld [vmem:[#allocation2 + $0xf8] sm:$0xff]  ;;  %v19840_v25 = vld [vmem:[%s28853_s3 + $0x48] sm:$0xff]  }
 0x1c5   : > { %2146 = vmatmul.mubr.bf16.gmra.mrb[28].mxu0 %v21703_v6  ;;  %2347 = vmatmul.mubr.bf16.gmra.mrb[32].mxu1 %v21703_v6 }
 0x1c6   : > { %16421 = vmatprep.mubr.msk.bf16.mxu0 %vm333_vm1, %v21708_v42  ;;  %16442 = vmatprep.mubr.msk.bf16.mxu1 %vm333_vm1, %v21708_v42 }
 0x1c7   : > { %v1867_v12 = vpop.permute.xlu1 %1866  ;;  %v1865_v27 = vpop.permute.xlu0 %1864  ;;  %2530 = vmatpush1.bf16.msra.mxu0 %v19809_v50  ;;  %v19842_v50 = vld [vmem:[%s28853_s3 + $0x118] sm:$0xff]  }
 0x1c8   : > { %1889 = vst.msk [vmem:[#allocation2 + $0xa0] sm:$0xff] %vm1112_vm8, %v1867_v12  ;;  %1888 = vst.msk [vmem:[#allocation2 + $0x90] sm:$0xff] %vm1112_vm8, %v1865_v27  ;;  %2531 = vmatprep.subr.bf16.mxu0 %v21343_v4  ;;  %v21937_v12 = vld [vmem:[#allocation2 + $0x108] sm:$0xff] }
 0x1c9   : > { %v19847_v27 = vld [vmem:[%s28855_s5 + $0x184] ss:$8 sps:$4 sm:$0xff]  }
 0x1cb   : > { %v1871_v30 = vpop.permute.xlu1 %1870  ;;  %v1869_v33 = vpop.permute.xlu0 %1868  ;;  %2532 = vmatpush1.bf16.msra.mxu0 %v19812_v55  ;;  %v21762_v46 = vld [vmem:[#allocation2 + $0x70] sm:$0xff]  ;;  %v21778_v63 = vld [vmem:[#allocation2 + $0x80] sm:$0xff]  ;;  %v19844_v55 = vld [vmem:[%s28853_s3 + $0x58] sm:$0xff]  }
 0x1cc   : > { %1891 = vst.msk [vmem:[#allocation2 + $0xc0] sm:$0xff] %vm1112_vm8, %v1871_v30  ;;  %1890 = vst.msk [vmem:[#allocation2 + $0xb0] sm:$0xff] %vm1112_vm8, %v1869_v33  ;;  %2533 = vmatprep.subr.bf16.mxu0 %v21343_v4  ;;  %v19845_v33 = vld [vmem:[%s28855_s5 + $0x180] ss:$8 sps:$4 sm:$0xff]  }
 0x1cd   : > { %2154 = vmatmul.mubr.bf16.gmra.mrb[32].mxu0 %v21725_v57  ;;  %2355 = vmatmul.mubr.bf16.gmra.mrb[36].mxu1 %v21725_v57 }
 0x1ce   : > { %16422 = vmatprep.mubr.msk.bf16.mxu0 %vm333_vm1, %v21730_v44  ;;  %16443 = vmatprep.mubr.msk.bf16.mxu1 %vm333_vm1, %v21730_v44 }
 0x1cf   : > { %v1875_v0 = vpop.permute.xlu1 %1874  ;;  %v1873_v17 = vpop.permute.xlu0 %1872  ;;  %2534 = vmatpush1.bf16.msra.mxu0 %v19814_v3  ;;  %v21780_v26 = vld [vmem:[#allocation2 + $0x90] sm:$0xff]  ;;  %v21801_v11 = vld [vmem:[#allocation2 + $0xa0] sm:$0xff] }
 0x1d0   : > { %1893 = vst.msk [vmem:[#allocation2 + $0xe0] sm:$0xff] %vm1112_vm8, %v1875_v0  ;;  %1892 = vst.msk [vmem:[#allocation2 + $0xd0] sm:$0xff] %vm1112_vm8, %v1873_v17  ;;  %2535 = vmatprep.subr.bf16.mxu0 %v21343_v4  ;;  %v19850_v3 = vld [vmem:[%s28855_s5 + $0x194] ss:$8 sps:$4 sm:$0xff]   ;;  %v19851_v0 = vld [vmem:[%s28855_s5 + $0x1a0] ss:$8 sps:$4 sm:$0xff]  }
 0x1d1   : > { %v19856_v17 = vld [vmem:[%s28855_s5 + $0x1b4] ss:$8 sps:$4 sm:$0xff]  }
 0x1d3   : > { %v1879_v34 = vpop.permute.xlu1 %1878  ;;  %v1877_v56 = vpop.permute.xlu0 %1876  ;;  %2536 = vmatpush1.bf16.msra.mxu0 %v19816_v53  ;;  %v21829_v16 = vld [vmem:[#allocation2 + $0xb0] sm:$0xff] }
 0x1d4   : > { %1895 = vst.msk [vmem:[#allocation2 + $0x100] sm:$0xff] %vm1112_vm8, %v1879_v34  ;;  %1894 = vst.msk [vmem:[#allocation2 + $0xf0] sm:$0xff] %vm1112_vm8, %v1877_v56  ;;  %2537 = vmatprep.subr.bf16.mxu0 %v21343_v4  ;;  %v19854_v53 = vld [vmem:[%s28855_s5 + $0x1b0] ss:$8 sps:$4 sm:$0xff]   ;;  %v19859_v34 = vld [vmem:[%s28855_s5 + $0x1c4] ss:$8 sps:$4 sm:$0xff]  }
 0x1d5   : > { %2162 = vmatmul.mubr.bf16.gmra.mrb[36].mxu0 %v21747_v61  ;;  %2363 = vmatmul.mubr.bf16.gmra.mrb[40].mxu1 %v21747_v61  ;;  %v19857_v56 = vld [vmem:[%s28855_s5 + $0x1c0] ss:$8 sps:$4 sm:$0xff]  }
 0x1d6   : > { %16423 = vmatprep.mubr.msk.bf16.mxu0 %vm333_vm1, %v21752_v38  ;;  %16444 = vmatprep.mubr.msk.bf16.mxu1 %vm333_vm1, %v21752_v38 }
 0x1d7   : > { %2538 = vmatpush1.bf16.msra.mxu0 %v19819_v7  ;;  %v19862_v7 = vld [vmem:[%s28855_s5 + $0x1d4] ss:$8 sps:$4 sm:$0xff]  }
 0x1d8   : > { %2539 = vmatprep.subr.bf16.mxu0 %v21343_v4 }
 0x1db   : > { %2540 = vmatpush1.bf16.msra.mxu0 %v19820_v35  ;;  %v21950_v30 = vld [vmem:[#allocation2 + $0x100] sm:$0xff] }
 0x1dc   : > { %3175 = vmatprep.subr.bf16.mxu0 %v21343_v4  ;;  %v19863_v35 = vld [vmem:[%s28855_s5 + $0x1e0] ss:$8 sps:$4 sm:$0xff]  }
 0x1dd   : > { %2170 = vmatmul.mubr.bf16.gmra.mrb[40].mxu0 %v21762_v46  ;;  %2371 = vmatmul.mubr.bf16.gmra.mrb[44].mxu1 %v21762_v46 }
 0x1de   : > { %16424 = vmatprep.mubr.msk.bf16.mxu0 %vm333_vm1, %v21767_v43  ;;  %16526 = vmatprep.mubr.msk.bf16.mxu1 %vm333_vm1, %v21769_v48 }
 0x1e5   : > { %2178 = vmatmul.mubr.bf16.gmra.mrb[44].mxu0 %v21778_v63  ;;  %3015 = vmatmul.mubr.bf16.vlgmr.msra.gmra.mrb[48].mxu1 %v21780_v26 }
 0x1e6   : > { %16481 = vmatprep.mubr.msk.bf16.mxu0 %vm333_vm1, %v21648_v13  ;;  %16527 = vmatprep.mubr.msk.bf16.mxu1 %vm333_vm1, %v21784_v39  ;;  %v21854_v13 = vld [vmem:[#allocation2 + $0xc0] sm:$0xff] }
 0x1e7   : > { %3410 = vmatpush1.bf16.msra.mxu1 %v19822_v54  ;;  %v19869_v54 = vld [vmem:[%s28855_s5 + $0x200] ss:$8 sps:$4 sm:$0xff]  }
 0x1e8   : > { %3411 = vmatprep.subr.bf16.mxu1 %v21343_v4 }
 0x1eb   : > { %3412 = vmatpush1.bf16.msra.mxu1 %v19824_v19  ;;  %v19880_v19 = vld [vmem:[%s28855_s5 + $0x234] ss:$8 sps:$4 sm:$0xff]  }
 0x1ec   : > { %3413 = vmatprep.subr.bf16.mxu1 %v21343_v4  ;;  %v21818_v4 = vld [vmem:[#allocation2] sm:$0xff] }
 0x1ed   : > { %2550 = vmatmul.mubr.bf16.vlgmr.msra.gmra.mrb[48].mxu0 %v21663_v47  ;;  %3023 = vmatmul.mubr.bf16.gmra.mrb[52].mxu1 %v21801_v11  ;;  %v19833_v47 = vld [vmem:[%s28853_s3 + $0x30] sm:$0xff]  }
 0x1ee   : > { %3176 = vmatpush1.bf16.msra.mxu0 %v19821_v2  ;;  %16482 = vmatprep.mubr.msk.bf16.mxu0 %vm333_vm1, %v21668_v51  ;;  %v21880_v51 = vld [vmem:[#allocation2 + $0xd0] sm:$0xff]  ;;  %v19883_v2 = vld [vmem:[%s28855_s5 + $0x244] ss:$8 sps:$4 sm:$0xff]  }
 0x1ef   : > { %16528 = vmatprep.mubr.msk.bf16.mxu1 %vm333_vm1, %v21811_v58  ;;  %3177 = vmatprep.subr.bf16.mxu0 %v21818_v4 }
 0x1f0   : > { %3414 = vmatpush1.bf16.msra.mxu1 %v19826_v29  ;;  %v19881_v29 = vld [vmem:[%s28855_s5 + $0x240] ss:$8 sps:$4 sm:$0xff]  }
 0x1f1   : > { %3415 = vmatprep.subr.bf16.mxu1 %v21818_v4 }
 0x1f2   : > { %3178 = vmatpush1.bf16.msra.mxu0 %v19823_v9  ;;  %v19884_v9 = vld [vmem:[%s28855_s5 + $0x250] ss:$8 sps:$4 sm:$0xff]  }
 0x1f3   : > { %3179 = vmatprep.subr.bf16.mxu0 %v21818_v4 }
 0x1f4   : > { %3416 = vmatpush1.bf16.msra.mxu1 %v19828_v20  ;;  %v19889_v20 = vld [vmem:[%s28855_s5 + $0x264] ss:$8 sps:$4 sm:$0xff]  }
 0x1f5   : > { %2558 = vmatmul.mubr.bf16.gmra.mrb[52].mxu0 %v21683_v15  ;;  %3031 = vmatmul.mubr.bf16.gmra.mrb[56].mxu1 %v21829_v16  ;;  %v19838_v15 = vld [vmem:[%s28853_s3 + $0x40] sm:$0xff]  }
 0x1f6   : > { %16483 = vmatprep.mubr.msk.bf16.mxu0 %vm333_vm1, %v21688_v59  ;;  %16529 = vmatprep.mubr.msk.bf16.mxu1 %vm333_vm1, %v21836_v45  ;;  %v21906_v59 = vld [vmem:[#allocation2 + $0xe0] sm:$0xff] }
 0x1f7   : > { %3180 = vmatpush1.bf16.msra.mxu0 %v19825_v18  ;;  %3417 = vmatprep.subr.bf16.mxu1 %v21818_v4  ;;  %v19887_v18 = vld [vmem:[%s28855_s5 + $0x260] ss:$8 sps:$4 sm:$0xff]  }
 0x1f8   : > { %3181 = vmatprep.subr.bf16.mxu0 %v21818_v4  ;;  %3418 = vmatpush1.bf16.msra.mxu1 %v19830_v24  ;;  %v19890_v24 = vld [vmem:[%s28855_s5 + $0x270] ss:$8 sps:$4 sm:$0xff]  }
 0x1f9   : > { %3419 = vmatprep.subr.bf16.mxu1 %v21818_v4 }
 0x1fb   : > { %3182 = vmatpush1.bf16.msra.mxu0 %v19827_v49 }
 0x1fc   : > { %3183 = vmatprep.subr.bf16.mxu0 %v21818_v4  ;;  %3420 = vmatpush1.bf16.msra.mxu1 %v19832_v36 }
 0x1fd   : > { %2566 = vmatmul.mubr.bf16.gmra.mrb[56].mxu0 %v21703_v6  ;;  %3039 = vmatmul.mubr.bf16.gmra.mrb[60].mxu1 %v21854_v13  ;;  %v19843_v6 = vld [vmem:[%s28853_s3 + $0x50] sm:$0xff]  }
 0x1fe   : > { %16484 = vmatprep.mubr.msk.bf16.mxu0 %vm333_vm1, %v21708_v42  ;;  %16530 = vmatprep.mubr.msk.bf16.mxu1 %vm333_vm1, %v21862_v32  ;;  %v21932_v42 = vld [vmem:[#allocation2 + $0xf0] sm:$0xff] }
 0x1ff   : > { %3184 = vmatpush1.bf16.msra.mxu0 %v19829_v1  ;;  %3421 = vmatprep.subr.bf16.mxu1 %v21818_v4 }
 0x200   : > { %3185 = vmatprep.subr.bf16.mxu0 %v21818_v4  ;;  %3422 = vmatpush1.bf16.msra.mxu1 %v19834_v37 }
 0x201   : > { %3423 = vmatprep.subr.bf16.mxu1 %v21818_v4 }
 0x203   : > { %3186 = vmatpush1.bf16.msra.mxu0 %v19831_v14 }
 0x204   : > { %3187 = vmatprep.subr.bf16.mxu0 %v21818_v4  ;;  %3424 = vmatpush1.bf16.msra.mxu1 %v19835_v41 }
 0x205   : > { %2574 = vmatmul.mubr.bf16.gmra.mrb[60].mxu0 %v21725_v57  ;;  %3047 = vmatmul.mubr.bf16.gmra.mrb[64].mxu1 %v21880_v51  ;;  %v19848_v57 = vld [vmem:[%s28855_s5 + $0x190] ss:$8 sps:$4 sm:$0xff]  }
 0x206   : > { %16485 = vmatprep.mubr.msk.bf16.mxu0 %vm333_vm1, %v21730_v44  ;;  %16531 = vmatprep.mubr.msk.bf16.mxu1 %vm333_vm1, %v21888_v8  ;;  %v19853_v44 = vld [vmem:[%s28855_s5 + $0x1a4] ss:$8 sps:$4 sm:$0xff]  }
 0x207   : > { %3188 = vmatpush1.bf16.msra.mxu0 %v19833_v47  ;;  %3425 = vmatprep.subr.bf16.mxu1 %v21818_v4 }
 0x208   : > { %3189 = vmatprep.subr.bf16.mxu0 %v21818_v4  ;;  %3426 = vmatpush1.bf16.msra.mxu1 %v19837_v5 }
 0x209   : > { %3427 = vmatprep.subr.bf16.mxu1 %v21818_v4 }
 0x20b   : > { %3190 = vmatpush1.bf16.msra.mxu0 %v19836_v62 }
 0x20c   : > { %3191 = vmatprep.subr.bf16.mxu0 %v21818_v4  ;;  %3428 = vmatpush1.bf16.msra.mxu1 %v19839_v28 }
 0x20d   : > { %2582 = vmatmul.mubr.bf16.gmra.mrb[64].mxu0 %v21747_v61  ;;  %3055 = vmatmul.mubr.bf16.gmra.mrb[68].mxu1 %v21906_v59  ;;  %v19860_v61 = vld [vmem:[%s28855_s5 + $0x1d0] ss:$8 sps:$4 sm:$0xff]  }
 0x20e   : > { %16486 = vmatprep.mubr.msk.bf16.mxu0 %vm333_vm1, %v21752_v38  ;;  %16532 = vmatprep.mubr.msk.bf16.mxu1 %vm333_vm1, %v21914_v23  ;;  %v19865_v38 = vld [vmem:[%s28855_s5 + $0x1e4] ss:$8 sps:$4 sm:$0xff]  }
 0x20f   : > { %3192 = vmatpush1.bf16.msra.mxu0 %v19838_v15  ;;  %3429 = vmatprep.subr.bf16.mxu1 %v21818_v4 }
 0x210   : > { %3193 = vmatprep.subr.bf16.mxu0 %v21818_v4  ;;  %3430 = vmatpush1.bf16.msra.mxu1 %v19841_v22 }
 0x211   : > { %3431 = vmatprep.subr.bf16.mxu1 %v21818_v4 }
 0x213   : > { %3194 = vmatpush1.bf16.msra.mxu0 %v19840_v25 }
 0x214   : > { %3195 = vmatprep.subr.bf16.mxu0 %v21818_v4  ;;  %3432 = vmatpush1.bf16.msra.mxu1 %v19842_v50 }
 0x215   : > { %2590 = vmatmul.mubr.bf16.gmra.mrb[68].mxu0 %v21762_v46  ;;  %3063 = vmatmul.mubr.bf16.gmra.mrb[72].mxu1 %v21932_v42  ;;  %v19868_v46 = vld [vmem:[%s28855_s5 + $0x1f4] ss:$8 sps:$4 sm:$0xff]  }
 0x216   : > { %16487 = vmatprep.mubr.msk.bf16.mxu0 %vm333_vm1, %v21767_v43  ;;  %16533 = vmatprep.mubr.msk.bf16.mxu1 %vm333_vm1, %v21937_v12 }
 0x217   : > { %3196 = vmatpush1.bf16.msra.mxu0 %v19843_v6  ;;  %6087 = vmatprep.subr.bf16.mxu1 %v19847_v27 }
 0x218   : > { %3197 = vmatprep.subr.bf16.mxu0 %v21818_v4 }
 0x21b   : > { %3198 = vmatpush1.bf16.msra.mxu0 %v19844_v55 }
 0x21c   : > { %4090 = vmatprep.subr.bf16.mxu0 %v19847_v27 }
 0x21d   : > { %2598 = vmatmul.mubr.bf16.gmra.mrb[72].mxu0 %v21778_v63  ;;  %3071 = vmatmul.mubr.bf16.gmra.mrb[76].mxu1 %v21950_v30 }
 0x21e   : > { %16488 = vmatprep.mubr.msk.bf16.mxu0 %vm333_vm1, %v21769_v48  ;;  %16590 = vmatprep.mubr.msk.bf16.mxu1 %vm333_vm1, %v21784_v39 }
 0x225   : > { %2606 = vmatmul.mubr.bf16.gmra.mrb[76].mxu0 %v21780_v26  ;;  %3442 = vmatmul.mubr.bf16.vlgmr.msra.gmra.mrb[80].mxu1 %v21801_v11 }
 0x226   : > { %16546 = vmatprep.mubr.msk.bf16.mxu0 %vm333_vm1, %v21767_v43  ;;  %16591 = vmatprep.mubr.msk.bf16.mxu1 %vm333_vm1, %v21811_v58  ;;  %v19866_v43 = vld [vmem:[%s28855_s5 + $0x1f0] ss:$8 sps:$4 sm:$0xff]  }
 0x227   : > { %6088 = vmatpush1.bf16.msra.mxu1 %v19845_v33 }
 0x228   : > { %6089 = vmatprep.subr.bf16.mxu1 %v19850_v3 }
 0x22b   : > { %6090 = vmatpush1.bf16.msra.mxu1 %v19848_v57 }
 0x22c   : > { %6091 = vmatprep.subr.bf16.mxu1 %v19853_v44 }
 0x22d   : > { %3208 = vmatmul.mubr.bf16.vlgmr.msra.gmra.mrb[80].mxu0 %v21778_v63  ;;  %3450 = vmatmul.mubr.bf16.gmra.mrb[84].mxu1 %v21829_v16  ;;  %v19874_v63 = vld [vmem:[%s28855_s5 + $0x214] ss:$8 sps:$4 sm:$0xff]  }
 0x22e   : > { %16547 = vmatprep.mubr.msk.bf16.mxu0 %vm333_vm1, %v21769_v48  ;;  %16592 = vmatprep.mubr.msk.bf16.mxu1 %vm333_vm1, %v21836_v45  ;;  %v19871_v48 = vld [vmem:[%s28855_s5 + $0x204] ss:$8 sps:$4 sm:$0xff]  }
 0x22f   : > { %4091 = vmatpush1.bf16.msra.mxu0 %v19845_v33  ;;  %6092 = vmatpush1.bf16.msra.mxu1 %v19851_v0 }
 0x230   : > { %4092 = vmatprep.subr.bf16.mxu0 %v19850_v3  ;;  %6093 = vmatprep.subr.bf16.mxu1 %v19856_v17 }
 0x233   : > { %4093 = vmatpush1.bf16.msra.mxu0 %v19848_v57  ;;  %6094 = vmatpush1.bf16.msra.mxu1 %v19854_v53 }
 0x234   : > { %4094 = vmatprep.subr.bf16.mxu0 %v19853_v44  ;;  %6095 = vmatprep.subr.bf16.mxu1 %v19859_v34 }
 0x235   : > { %3216 = vmatmul.mubr.bf16.gmra.mrb[84].mxu0 %v21780_v26  ;;  %3458 = vmatmul.mubr.bf16.gmra.mrb[88].mxu1 %v21854_v13  ;;  %v19872_v26 = vld [vmem:[%s28855_s5 + $0x210] ss:$8 sps:$4 sm:$0xff]  }
 0x236   : > { %16548 = vmatprep.mubr.msk.bf16.mxu0 %vm333_vm1, %v21784_v39  ;;  %16593 = vmatprep.mubr.msk.bf16.mxu1 %vm333_vm1, %v21862_v32  ;;  %v19877_v39 = vld [vmem:[%s28855_s5 + $0x224] ss:$8 sps:$4 sm:$0xff]  }
 0x237   : > { %4095 = vmatpush1.bf16.msra.mxu0 %v19851_v0  ;;  %6096 = vmatpush1.bf16.msra.mxu1 %v19857_v56 }
 0x238   : > { %4096 = vmatprep.subr.bf16.mxu0 %v19856_v17  ;;  %6097 = vmatprep.subr.bf16.mxu1 %v19862_v7 }
 0x23b   : > { %4097 = vmatpush1.bf16.msra.mxu0 %v19854_v53  ;;  %6098 = vmatpush1.bf16.msra.mxu1 %v19860_v61 }
 0x23c   : > { %4098 = vmatprep.subr.bf16.mxu0 %v19859_v34  ;;  %6099 = vmatprep.subr.bf16.mxu1 %v19865_v38 }
 0x23d   : > { %3224 = vmatmul.mubr.bf16.gmra.mrb[88].mxu0 %v21801_v11  ;;  %3466 = vmatmul.mubr.bf16.gmra.mrb[92].mxu1 %v21880_v51  ;;  %v3288_v11 = vld [vmem:[#allocation2 + $0x118] sm:$0xff] }
 0x23e   : > { %16549 = vmatprep.mubr.msk.bf16.mxu0 %vm333_vm1, %v21811_v58  ;;  %16594 = vmatprep.mubr.msk.bf16.mxu1 %vm333_vm1, %v21888_v8  ;;  %v19886_v58 = vld [vmem:[%s28855_s5 + $0x254] ss:$8 sps:$4 sm:$0xff]  }
 0x23f   : > { %4099 = vmatpush1.bf16.msra.mxu0 %v19857_v56  ;;  %6100 = vmatpush1.bf16.msra.mxu1 %v19863_v35 }
 0x240   : > { %4100 = vmatprep.subr.bf16.mxu0 %v19862_v7  ;;  %6101 = vmatprep.subr.bf16.mxu1 %v19868_v46 }
 0x243   : > { %4101 = vmatpush1.bf16.msra.mxu0 %v19860_v61  ;;  %6102 = vmatpush1.bf16.msra.mxu1 %v19866_v43 }
 0x244   : > { %4102 = vmatprep.subr.bf16.mxu0 %v19865_v38  ;;  %6103 = vmatprep.subr.bf16.mxu1 %v19871_v48 }
 0x245   : > { %3232 = vmatmul.mubr.bf16.gmra.mrb[92].mxu0 %v21829_v16  ;;  %3474 = vmatmul.mubr.bf16.gmra.mrb[96].mxu1 %v21906_v59  ;;  %v19892_v16 = vld [vmem:[%s28855_s5 + $0x274] ss:$8 sps:$4 sm:$0xff]  }
 0x246   : > { %16550 = vmatprep.mubr.msk.bf16.mxu0 %vm333_vm1, %v21836_v45  ;;  %16595 = vmatprep.mubr.msk.bf16.mxu1 %vm333_vm1, %v21914_v23 }
 0x247   : > { %4103 = vmatpush1.bf16.msra.mxu0 %v19863_v35  ;;  %6104 = vmatpush1.bf16.msra.mxu1 %v19869_v54 }
 0x248   : > { %4104 = vmatprep.subr.bf16.mxu0 %v19868_v46  ;;  %6105 = vmatprep.subr.bf16.mxu1 %v19874_v63 }
 0x24b   : > { %4105 = vmatpush1.bf16.msra.mxu0 %v19866_v43  ;;  %6106 = vmatpush1.bf16.msra.mxu1 %v19872_v26 }
 0x24c   : > { %4106 = vmatprep.subr.bf16.mxu0 %v19871_v48  ;;  %6107 = vmatprep.subr.bf16.mxu1 %v19877_v39 }
 0x24d   : > { %3240 = vmatmul.mubr.bf16.gmra.mrb[96].mxu0 %v21854_v13  ;;  %3482 = vmatmul.mubr.bf16.gmra.mrb[100].mxu1 %v21932_v42 }
 0x24e   : > { %16551 = vmatprep.mubr.msk.bf16.mxu0 %vm333_vm1, %v21862_v32  ;;  %16596 = vmatprep.mubr.msk.bf16.mxu1 %vm333_vm1, %v21937_v12 }
 0x24f   : > { %4107 = vmatpush1.bf16.msra.mxu0 %v19869_v54  ;;  %6108 = vmatpush1.bf16.msra.mxu1 %v19875_v52 }
 0x250   : > { %4108 = vmatprep.subr.bf16.mxu0 %v19874_v63  ;;  %6109 = vmatprep.subr.bf16.mxu1 %v19880_v19 }
 0x253   : > { %4109 = vmatpush1.bf16.msra.mxu0 %v19872_v26  ;;  %6110 = vmatpush1.bf16.msra.mxu1 %v19878_v31 }
 0x254   : > { %4110 = vmatprep.subr.bf16.mxu0 %v19877_v39  ;;  %6111 = vmatprep.subr.bf16.mxu1 %v19883_v2 }
 0x255   : > { %3248 = vmatmul.mubr.bf16.gmra.mrb[100].mxu0 %v21880_v51  ;;  %3490 = vmatmul.mubr.bf16.gmra.mrb[104].mxu1 %v21950_v30 }
 0x256   : > { %16552 = vmatprep.mubr.msk.bf16.mxu0 %vm333_vm1, %v21888_v8  ;;  %16597 = vmatprep.mubr.msk.bf16.mxu1 %vm333_vm1, %v3288_v11 }
 0x257   : > { %4111 = vmatpush1.bf16.msra.mxu0 %v19875_v52  ;;  %6112 = vmatpush1.bf16.msra.mxu1 %v19881_v29 }
 0x258   : > { %4112 = vmatprep.subr.bf16.mxu0 %v19880_v19  ;;  %6113 = vmatprep.subr.bf16.mxu1 %v19886_v58 }
 0x25b   : > { %4113 = vmatpush1.bf16.msra.mxu0 %v19878_v31  ;;  %6114 = vmatpush1.bf16.msra.mxu1 %v19884_v9 }
 0x25c   : > { %4114 = vmatprep.subr.bf16.mxu0 %v19883_v2  ;;  %6115 = vmatprep.subr.bf16.mxu1 %v19889_v20 }
 0x25d   : > { %3256 = vmatmul.mubr.bf16.gmra.mrb[104].mxu0 %v21906_v59  ;;  %3498 = vmatmul.mubr.bf16.gmra.mrb[108].mxu1 %v21818_v4  ;;  %v19895_v4 = vld [vmem:[%s28855_s5 + $0x284] ss:$8 sps:$4 sm:$0xff]  }
 0x25e   : > { %16553 = vmatprep.mubr.msk.bf16.mxu0 %vm333_vm1, %v21914_v23 }
 0x25f   : > { %4115 = vmatpush1.bf16.msra.mxu0 %v19881_v29  ;;  %6116 = vmatpush1.bf16.msra.mxu1 %v19887_v18 }
 0x260   : > { %4116 = vmatprep.subr.bf16.mxu0 %v19886_v58  ;;  %6117 = vmatprep.subr.bf16.mxu1 %v19892_v16 }
 0x263   : > { %4117 = vmatpush1.bf16.msra.mxu0 %v19884_v9  ;;  %6118 = vmatpush1.bf16.msra.mxu1 %v19890_v24 }
 0x264   : > { %4118 = vmatprep.subr.bf16.mxu0 %v19889_v20  ;;  %6200 = vmatprep.subr.bf16.mxu1 %v19895_v4 }
 0x265   : > { %3264 = vmatmul.mubr.bf16.gmra.mrb[108].mxu0 %v21932_v42 }
 0x267   : > { %4119 = vmatpush1.bf16.msra.mxu0 %v19887_v18 }
 0x268   : > { %4120 = vmatprep.subr.bf16.mxu0 %v19892_v16 }
 0x26b   : > { %4121 = vmatpush1.bf16.msra.mxu0 %v19890_v24 }
 0x26c   : > { %4203 = vmatprep.subr.bf16.mxu0 %v19895_v4 }
 0x280   : > { %v2123_v45 = vpop.f32.mrb[16].mxu0  ;;  %v2324_v49 = vpop.f32.mrb[20].mxu1 }
 0x281   : > { %v22101_v36 = vadd.f32 %v21786_v10, %v2123_v45  ;;  %v2125_v1 = vpop.f32.mrb[17].mxu0  ;;  %v2326_v13 = vpop.f32.mrb[21].mxu1 }
 0x282   : > { %v2126_v37 = vpop.f32.mrb[18].mxu0  ;;  %v2327_v32 = vpop.f32.mrb[22].mxu1 }
 0x283   : > { %v22104_v14 = vadd.f32 %v21795_v21, %v2126_v37  ;;  %v2128_v41 = vpop.f32.mrb[19].mxu0  ;;  %v2329_v47 = vpop.f32.mrb[23].mxu1 }
 0x288   : > { %v2131_v51 = vpop.f32.mrb[20].mxu0  ;;  %v2332_v5 = vpop.f32.mrb[24].mxu1 }
 0x289   : > { %v22106_v8 = vadd.f32 %v2324_v49, %v2131_v51  ;;  %v2133_v62 = vpop.f32.mrb[21].mxu0  ;;  %v2334_v28 = vpop.f32.mrb[25].mxu1 }
 0x28a   : > { %v2134_v15 = vpop.f32.mrb[22].mxu0  ;;  %v2335_v59 = vpop.f32.mrb[26].mxu1 }
 0x28b   : > { %v22108_v22 = vadd.f32 %v2327_v32, %v2134_v15  ;;  %v2136_v10 = vpop.f32.mrb[23].mxu0  ;;  %v2337_v23 = vpop.f32.mrb[27].mxu1 }
 0x290   : > { %v2139_v25 = vpop.f32.mrb[24].mxu0  ;;  %v2340_v50 = vpop.f32.mrb[28].mxu1 }
 0x291   : > { %v22110_v6 = vadd.f32 %v2332_v5, %v2139_v25  ;;  %v2141_v21 = vpop.f32.mrb[25].mxu0  ;;  %v2342_v42 = vpop.f32.mrb[29].mxu1 }
 0x292   : > { %v2142_v12 = vpop.f32.mrb[26].mxu0  ;;  %v2343_v27 = vpop.f32.mrb[30].mxu1  ;;  %v22141_v21 = vld [vmem:[%s28854_s4] ss:$0 sm:$0xff] }
 0x293   : > { %v22112_v55 = vadd.f32 %v2335_v59, %v2142_v12  ;;  %v2144_v30 = vpop.f32.mrb[27].mxu0  ;;  %v2345_v33 = vpop.f32.mrb[31].mxu1 }
 0x298   : > { %v2147_v3 = vpop.f32.mrb[28].mxu0  ;;  %v2348_v57 = vpop.f32.mrb[32].mxu1 }
 0x299   : > { %v22114_v44 = vadd.f32 %v2340_v50, %v2147_v3  ;;  %v2149_v0 = vpop.f32.mrb[29].mxu0  ;;  %v2350_v17 = vpop.f32.mrb[33].mxu1 }
 0x29a   : > { %v2150_v53 = vpop.f32.mrb[30].mxu0  ;;  %v2351_v34 = vpop.f32.mrb[34].mxu1 }
 0x29b   : > { %v22116_v56 = vadd.f32 %v2343_v27, %v2150_v53  ;;  %v2152_v7 = vpop.f32.mrb[31].mxu0  ;;  %v2353_v61 = vpop.f32.mrb[35].mxu1 }
 0x2a0   : > { %v2155_v38 = vpop.f32.mrb[32].mxu0  ;;  %v2356_v35 = vpop.f32.mrb[36].mxu1 }
 0x2a1   : > { %v22118_v46 = vadd.f32 %v2348_v57, %v2155_v38  ;;  %v2157_v43 = vpop.f32.mrb[33].mxu0  ;;  %v2358_v48 = vpop.f32.mrb[37].mxu1 }
 0x2a2   : > { %v2158_v54 = vpop.f32.mrb[34].mxu0  ;;  %v2359_v63 = vpop.f32.mrb[38].mxu1 }
 0x2a3   : > { %v22120_v26 = vadd.f32 %v2351_v34, %v2158_v54  ;;  %v2160_v39 = vpop.f32.mrb[35].mxu0  ;;  %v2361_v52 = vpop.f32.mrb[39].mxu1 }
 0x2a8   : > { %v2163_v19 = vpop.f32.mrb[36].mxu0  ;;  %v2364_v31 = vpop.f32.mrb[40].mxu1 }
 0x2a9   : > { %v22122_v2 = vadd.f32 %v2356_v35, %v2163_v19  ;;  %v2165_v11 = vpop.f32.mrb[37].mxu0  ;;  %v2366_v29 = vpop.f32.mrb[41].mxu1 }
 0x2aa   : > { %v2166_v58 = vpop.f32.mrb[38].mxu0  ;;  %v2367_v9 = vpop.f32.mrb[42].mxu1 }
 0x2ab   : > { %v22124_v20 = vadd.f32 %v2359_v63, %v2166_v58  ;;  %v2168_v18 = vpop.f32.mrb[39].mxu0  ;;  %v2369_v16 = vpop.f32.mrb[43].mxu1 }
 0x2b0   : > { %v2171_v24 = vpop.f32.mrb[40].mxu0  ;;  %v2372_v4 = vpop.f32.mrb[44].mxu1 }
 0x2b1   : > { %v22126_v45 = vadd.f32 %v2364_v31, %v2171_v24  ;;  %v2173_v49 = vpop.f32.mrb[41].mxu0  ;;  %v2374_v1 = vpop.f32.mrb[45].mxu1 }
 0x2b2   : > { %v2174_v13 = vpop.f32.mrb[42].mxu0  ;;  %v2375_v37 = vpop.f32.mrb[46].mxu1  ;;  %v22178_v1 = vld [vmem:[%s28855_s5 + $0x294] ss:$8 sps:$4 sm:$0xff]  }
 0x2b3   : > { %v22128_v32 = vadd.f32 %v2367_v9, %v2174_v13  ;;  %v2176_v41 = vpop.f32.mrb[43].mxu0  ;;  %v2377_v47 = vpop.f32.mrb[47].mxu1 }
 0x2b8   : > { %v2179_v51 = vpop.f32.mrb[44].mxu0  ;;  %v22130_v5 = vpop.f32.mrb[48].mxu1 }
 0x2b9   : > { %v22132_v62 = vadd.f32 %v2372_v4, %v2179_v51  ;;  %v2181_v28 = vpop.f32.mrb[45].mxu0  ;;  %v3018_v15 = vpop.f32.mrb[49].mxu1 }
 0x2ba   : > { %v2182_v59 = vpop.f32.mrb[46].mxu0  ;;  %v22134_v10 = vpop.f32.mrb[50].mxu1 }
 0x2bb   : > { %v22136_v23 = vadd.f32 %v2375_v37, %v2182_v59  ;;  %v2184_v25 = vpop.f32.mrb[47].mxu0  ;;  %v3021_v50 = vpop.f32.mrb[51].mxu1 }
 0x2c0   : > { %v2551_v42 = vpop.f32.mrb[48].mxu0  ;;  %v22143_v12 = vpop.f32.mrb[52].mxu1 }
 0x2c1   : > { %v2614_v27 = vadd.f32 %v2551_v42, %v22101_v36  ;;  %v2553_v30 = vpop.f32.mrb[49].mxu0  ;;  %v3026_v33 = vpop.f32.mrb[53].mxu1 }
 0x2c2   : > { %v2554_v3 = vpop.f32.mrb[50].mxu0  ;;  %v22146_v57 = vpop.f32.mrb[54].mxu1  ;;  %v22204_v30 = vld [vmem:[%s28855_s5 + $0x2a4] ss:$8 sps:$4 sm:$0xff]  }
 0x2c3   : > { %v2636_v0 = vadd.f32 %v22141_v21, %v2614_v27  ;;  %v2615_v17 = vadd.f32 %v2554_v3, %v22104_v14  ;;  %v2556_v53 = vpop.f32.mrb[51].mxu0  ;;  %v3029_v34 = vpop.f32.mrb[55].mxu1  ;;  %v22198_v27 = vld [vmem:[%s28855_s5 + $0x290] ss:$8 sps:$4 sm:$0xff]  }
 0x2c4   : > { %v22216_v34 = vld [vmem:[%s28855_s5 + $0x2a0] ss:$8 sps:$4 sm:$0xff]  }
 0x2c5   : > { %v2637_v7 = vadd.f32 %v22141_v21, %v2615_v17  ;;  %v2652_v61 = vmax.f32 %v2636_v0, 0.0 }
 0x2c7   : > { %v2653_v38 = vmax.f32 %v2637_v7, 0.0 }
 0x2c8   : > { %v2559_v35 = vpop.f32.mrb[52].mxu0  ;;  %v22151_v43 = vpop.f32.mrb[56].mxu1 }
 0x2c9   : > { %v22153_v48 = vpack.c.bf16 %v2653_v38, %v2652_v61  ;;  %v2616_v36 = vadd.f32 %v2559_v35, %v22106_v8  ;;  %v2561_v54 = vpop.f32.mrb[53].mxu0  ;;  %v3034_v63 = vpop.f32.mrb[57].mxu1  ;;  %v22224_v38 = vld [vmem:[%s28855_s5 + $0x2b4] ss:$8 sps:$4 sm:$0xff]  }
 0x2ca   : > { %v2562_v39 = vpop.f32.mrb[54].mxu0  ;;  %v22156_v52 = vpop.f32.mrb[58].mxu1 }
 0x2cb   : > { %29213 = vst [vmem:[#allocation7_spill] sm:$0xff] %v22153_v48  ;;  %v2638_v14 = vadd.f32 %v22141_v21, %v2616_v36  ;;  %v2617_v19 = vadd.f32 %v2562_v39, %v22108_v22  ;;  %v2564_v31 = vpop.f32.mrb[55].mxu0  ;;  %v3037_v11 = vpop.f32.mrb[59].mxu1  ;;  %4122 = vmatprep.mubr.bf16.mxu0 %v22153_v48  ;;  %v28868_v29 = vshrl.u32 %v22153_v48, 16  ;;  %v28870_v9 = vshll.u32 %v22153_v48, 16 }
 0x2cc   : > { %v22171_v22 = vld [vmem:[%s28855_s5 + $0x280] ss:$8 sps:$4 sm:$0xff]  }
 0x2cd   : > { %v2639_v58 = vadd.f32 %v22141_v21, %v2617_v19  ;;  %v2679_v8 = vrot.slane %v28868_v29, 7  ;;  %v2654_v18 = vmax.f32 %v2638_v14, 0.0 }
 0x2cf   : > { %v2655_v16 = vmax.f32 %v2639_v58, 0.0  ;;  %v2682_v24 = vor.u32 %v28870_v9, %v2679_v8 }
 0x2d0   : > { %v2567_v4 = vpop.f32.mrb[56].mxu0  ;;  %v22173_v49 = vpop.f32.mrb[60].mxu1 }
 0x2d1   : > { %v22180_v13 = vpack.c.bf16 %v2655_v16, %v2654_v18  ;;  %v2618_v37 = vadd.f32 %v2567_v4, %v22110_v6  ;;  %v2569_v41 = vpop.f32.mrb[57].mxu0  ;;  %v3042_v47 = vpop.f32.mrb[61].mxu1  ;;  %v22185_v51 = vsel %vm21450_vm7, 0, %v2682_v24  ;;  %v22244_v18 = vld [vmem:[%s28855_s5 + $0x2b0] ss:$8 sps:$4 sm:$0xff]  }
 0x2d2   : > { %29214 = vst [vmem:[#allocation8_spill] sm:$0xff] %v22185_v51  ;;  %v2570_v28 = vpop.f32.mrb[58].mxu0  ;;  %v22187_v15 = vpop.f32.mrb[62].mxu1  ;;  %4123 = vmatmul.mubr.bf16.vlgmr.msra.gmra.mrb[112].mxu0 %v22185_v51  ;;  %v22250_v16 = vld [vmem:[%s28855_s5 + $0x2c4] ss:$8 sps:$4 sm:$0xff]  }
 0x2d3   : > { %v2640_v59 = vadd.f32 %v22141_v21, %v2618_v37  ;;  %v2619_v25 = vadd.f32 %v2570_v28, %v22112_v55  ;;  %v2572_v50 = vpop.f32.mrb[59].mxu0  ;;  %v3045_v42 = vpop.f32.mrb[63].mxu1  ;;  %4132 = vmatprep.mubr.bf16.mxu0 %v22180_v13  ;;  %v28866_v6 = vshrl.u32 %v22180_v13, 16  ;;  %4204 = vmatpush1.bf16.msra.mxu0 %v22171_v22  ;;  %v28867_v3 = vshll.u32 %v22180_v13, 16  ;;  %v22262_v28 = vld [vmem:[%s28855_s5 + $0x2c0] ss:$8 sps:$4 sm:$0xff]  }
 0x2d4   : > { %4205 = vmatprep.subr.bf16.mxu0 %v22178_v1  ;;  %v22270_v50 = vld [vmem:[%s28855_s5 + $0x2d4] ss:$8 sps:$4 sm:$0xff]  }
 0x2d5   : > { %v2641_v55 = vadd.f32 %v22141_v21, %v2619_v25  ;;  %v2686_v33 = vrot.slane %v28866_v6, 7  ;;  %v2656_v0 = vmax.f32 %v2640_v59, 0.0 }
 0x2d7   : > { %v2657_v17 = vmax.f32 %v2641_v55, 0.0  ;;  %v2689_v53 = vor.u32 %v28867_v3, %v2686_v33  ;;  %4206 = vmatpush1.bf16.msra.mxu0 %v22198_v27 }
 0x2d8   : > { %v2575_v7 = vpop.f32.mrb[60].mxu0  ;;  %v22218_v61 = vpop.f32.mrb[64].mxu1  ;;  %4207 = vmatprep.subr.bf16.mxu0 %v22204_v30 }
 0x2d9   : > { %v22226_v35 = vpack.c.bf16 %v2657_v17, %v2656_v0  ;;  %v2620_v36 = vadd.f32 %v2575_v7, %v22114_v44  ;;  %v2577_v54 = vpop.f32.mrb[61].mxu0  ;;  %v3050_v63 = vpop.f32.mrb[65].mxu1  ;;  %v22231_v39 = vsel %vm21450_vm7, 0, %v2689_v53 }
 0x2da   : > { %29216 = vst [vmem:[#allocation10_spill] sm:$0xff] %v22231_v39  ;;  %v2578_v14 = vpop.f32.mrb[62].mxu0  ;;  %v22233_v19 = vpop.f32.mrb[66].mxu1  ;;  %4133 = vmatmul.mubr.bf16.gmra.mrb[116].mxu0 %v22231_v39 }
 0x2db   : > { %29215 = vst [vmem:[#allocation9_spill] sm:$0xff] %v22226_v35  ;;  %v2642_v31 = vadd.f32 %v22141_v21, %v2620_v36  ;;  %v2621_v11 = vadd.f32 %v2578_v14, %v22116_v56  ;;  %v2580_v58 = vpop.f32.mrb[63].mxu0  ;;  %v3053_v8 = vpop.f32.mrb[67].mxu1  ;;  %4142 = vmatprep.mubr.bf16.mxu0 %v22226_v35  ;;  %v28862_v44 = vshrl.u32 %v22226_v35, 16  ;;  %4208 = vmatpush1.bf16.msra.mxu0 %v22216_v34  ;;  %v28864_v4 = vshll.u32 %v22226_v35, 16 }
 0x2dc   : > { %4209 = vmatprep.subr.bf16.mxu0 %v22224_v38 }
 0x2dd   : > { %v2643_v56 = vadd.f32 %v22141_v21, %v2621_v11  ;;  %v2693_v24 = vrot.slane %v28862_v44, 7  ;;  %v2658_v37 = vmax.f32 %v2642_v31, 0.0  ;;  %v22290_v31 = vld [vmem:[%s28855_s5 + $0x2d0] ss:$8 sps:$4 sm:$0xff]   ;;  %v22296_v11 = vld [vmem:[%s28855_s5 + $0x2e4] ss:$8 sps:$4 sm:$0xff]  }
 0x2df   : > { %v2659_v41 = vmax.f32 %v2643_v56, 0.0  ;;  %v2696_v47 = vor.u32 %v28864_v4, %v2693_v24  ;;  %4210 = vmatpush1.bf16.msra.mxu0 %v22244_v18 }
 0x2e0   : > { %v2583_v59 = vpop.f32.mrb[64].mxu0  ;;  %v22264_v25 = vpop.f32.mrb[68].mxu1  ;;  %4211 = vmatprep.subr.bf16.mxu0 %v22250_v16 }
 0x2e1   : > { %v22272_v42 = vpack.c.bf16 %v2659_v41, %v2658_v37  ;;  %v2622_v55 = vadd.f32 %v2583_v59, %v22118_v46  ;;  %v2585_v33 = vpop.f32.mrb[65].mxu0  ;;  %v3058_v0 = vpop.f32.mrb[69].mxu1  ;;  %v22277_v17 = vsel %vm21450_vm7, 0, %v2696_v47  ;;  %v22308_v41 = vld [vmem:[%s28855_s5 + $0x2e0] ss:$8 sps:$4 sm:$0xff]  }
 0x2e2   : > { %29217 = vst [vmem:[#allocation11_spill] sm:$0xff] %v22277_v17  ;;  %v2586_v53 = vpop.f32.mrb[66].mxu0  ;;  %v22279_v7 = vpop.f32.mrb[70].mxu1  ;;  %4143 = vmatmul.mubr.bf16.gmra.mrb[120].mxu0 %v22277_v17 }
 0x2e3   : > { %v2644_v36 = vadd.f32 %v22141_v21, %v2622_v55  ;;  %v2623_v54 = vadd.f32 %v2586_v53, %v22120_v26  ;;  %v2588_v63 = vpop.f32.mrb[67].mxu0  ;;  %v3061_v14 = vpop.f32.mrb[71].mxu1  ;;  %4152 = vmatprep.mubr.bf16.mxu0 %v22272_v42  ;;  %v28860_v46 = vshrl.u32 %v22272_v42, 16  ;;  %4212 = vmatpush1.bf16.msra.mxu0 %v22262_v28  ;;  %v28861_v8 = vshll.u32 %v22272_v42, 16  ;;  %v22316_v55 = vld [vmem:[%s28855_s5 + $0x2f4] ss:$8 sps:$4 sm:$0xff]  }
 0x2e4   : > { %4213 = vmatprep.subr.bf16.mxu0 %v22270_v50 }
 0x2e5   : > { %v2645_v26 = vadd.f32 %v22141_v21, %v2623_v54  ;;  %v2700_v58 = vrot.slane %v28860_v46, 7  ;;  %v2660_v56 = vmax.f32 %v2644_v36, 0.0 }
 0x2e7   : > { %v2661_v24 = vmax.f32 %v2645_v26, 0.0  ;;  %v2703_v37 = vor.u32 %v28861_v8, %v2700_v58  ;;  %4214 = vmatpush1.bf16.msra.mxu0 %v22290_v31 }
 0x2e8   : > { %v2591_v47 = vpop.f32.mrb[68].mxu0  ;;  %v22310_v59 = vpop.f32.mrb[72].mxu1  ;;  %4215 = vmatprep.subr.bf16.mxu0 %v22296_v11 }
 0x2e9   : > { %v22318_v33 = vpack.c.bf16 %v2661_v24, %v2660_v56  ;;  %v2624_v0 = vadd.f32 %v2591_v47, %v22122_v2  ;;  %v2593_v53 = vpop.f32.mrb[69].mxu0  ;;  %v3066_v36 = vpop.f32.mrb[73].mxu1  ;;  %v22323_v54 = vsel %vm21450_vm7, 0, %v2703_v37  ;;  %v22336_v24 = vld [vmem:[%s28855_s5 + $0x2f0] ss:$8 sps:$4 sm:$0xff]  }
 0x2ea   : > { %29218 = vst [vmem:[#allocation12_spill] sm:$0xff] %v22323_v54  ;;  %v2594_v63 = vpop.f32.mrb[70].mxu0  ;;  %v22325_v14 = vpop.f32.mrb[74].mxu1  ;;  %4153 = vmatmul.mubr.bf16.gmra.mrb[124].mxu0 %v22323_v54  ;;  %v22342_v37 = vld [vmem:[%s28855_s5 + $0x4] ss:$8 sps:$4 sm:$0xff]  }
 0x2eb   : > { %v2646_v26 = vadd.f32 %v22141_v21, %v2624_v0  ;;  %v2625_v58 = vadd.f32 %v2594_v63, %v22124_v20  ;;  %v2596_v46 = vpop.f32.mrb[71].mxu0  ;;  %v3069_v56 = vpop.f32.mrb[75].mxu1  ;;  %4162 = vmatprep.mubr.bf16.mxu0 %v22318_v33  ;;  %v28863_v2 = vshrl.u32 %v22318_v33, 16  ;;  %4216 = vmatpush1.bf16.msra.mxu0 %v22308_v41  ;;  %v28865_v47 = vshll.u32 %v22318_v33, 16 }
 0x2ec   : > { %4217 = vmatprep.subr.bf16.mxu0 %v22316_v55 }
 0x2ed   : > { %v2647_v20 = vadd.f32 %v22141_v21, %v2625_v58  ;;  %v2707_v46 = vrot.slane %v28863_v2, 7  ;;  %v2662_v0 = vmax.f32 %v2646_v26, 0.0 }
 0x2ef   : > { %v2663_v53 = vmax.f32 %v2647_v20, 0.0  ;;  %v2710_v36 = vor.u32 %v28865_v47, %v2707_v46  ;;  %4218 = vmatpush1.bf16.msra.mxu0 %v22336_v24 }
 0x2f0   : > { %v2599_v63 = vpop.f32.mrb[72].mxu0  ;;  %v22351_v56 = vpop.f32.mrb[76].mxu1  ;;  %4556 = vmatprep.subr.bf16.mxu0 %v22342_v37 }
 0x2f1   : > { %v22354_v8 = vpack.c.bf16 %v2663_v53, %v2662_v0  ;;  %v2626_v58 = vadd.f32 %v2599_v63, %v22126_v45  ;;  %v2601_v44 = vpop.f32.mrb[73].mxu0  ;;  %v3074_v2 = vpop.f32.mrb[77].mxu1  ;;  %v22359_v26 = vsel %vm21450_vm7, 0, %v2710_v36 }
 0x2f2   : > { %29219 = vst [vmem:[#allocation13_spill] sm:$0xff] %v22359_v26  ;;  %v2602_v20 = vpop.f32.mrb[74].mxu0  ;;  %v22361_v4 = vpop.f32.mrb[78].mxu1  ;;  %4163 = vmatmul.mubr.bf16.gmra.mrb[128].mxu0 %v22359_v26 }
 0x2f3   : > { %v2648_v46 = vadd.f32 %v22141_v21, %v2626_v58  ;;  %v2627_v47 = vadd.f32 %v2602_v20, %v22128_v32  ;;  %v2604_v6 = vpop.f32.mrb[75].mxu0  ;;  %v3077_v0 = vpop.f32.mrb[79].mxu1  ;;  %4172 = vmatprep.mubr.bf16.mxu0 %v22354_v8  ;;  %v28869_v45 = vshrl.u32 %v22354_v8, 16  ;;  %v28871_v53 = vshll.u32 %v22354_v8, 16 }
 0x2f5   : > { %v2649_v44 = vadd.f32 %v22141_v21, %v2627_v47  ;;  %v2714_v2 = vrot.slane %v28869_v45, 7  ;;  %v2664_v36 = vmax.f32 %v2648_v46, 0.0 }
 0x2f7   : > { %v2665_v63 = vmax.f32 %v2649_v44, 0.0  ;;  %v2717_v58 = vor.u32 %v28871_v53, %v2714_v2 }
 0x2f8   : > { %v2607_v3 = vpop.f32.mrb[76].mxu0  ;;  %v3443_v32 = vpop.f32.mrb[80].mxu1 }
 0x2f9   : > { %v22374_v6 = vpack.c.bf16 %v2665_v63, %v2664_v36  ;;  %v2628_v20 = vadd.f32 %v2607_v3, %v22132_v62  ;;  %v2609_v0 = vpop.f32.mrb[77].mxu0  ;;  %v3445_v29 = vpop.f32.mrb[81].mxu1  ;;  %v22379_v47 = vsel %vm21450_vm7, 0, %v2717_v58 }
 0x2fa   : > { %29220 = vst [vmem:[#allocation14_spill] sm:$0xff] %v22379_v47  ;;  %v2610_v45 = vpop.f32.mrb[78].mxu0  ;;  %v3446_v9 = vpop.f32.mrb[82].mxu1  ;;  %4173 = vmatmul.mubr.bf16.gmra.mrb[132].mxu0 %v22379_v47 }
 0x2fb   : > { %v2650_v46 = vadd.f32 %v22141_v21, %v2628_v20  ;;  %v2629_v44 = vadd.f32 %v2610_v45, %v22136_v23  ;;  %v2612_v2 = vpop.f32.mrb[79].mxu0  ;;  %v3448_v53 = vpop.f32.mrb[83].mxu1  ;;  %4182 = vmatprep.mubr.bf16.mxu0 %v22374_v6  ;;  %v28874_v62 = vshrl.u32 %v22374_v6, 16  ;;  %v28877_v36 = vshll.u32 %v22374_v6, 16 }
 0x2fd   : > { %v2651_v29 = vadd.f32 %v22141_v21, %v2629_v44  ;;  %v2721_v3 = vrot.slane %v28874_v62, 7  ;;  %v2666_v63 = vmax.f32 %v2650_v46, 0.0 }
 0x2ff   : > { %v2667_v58 = vmax.f32 %v2651_v29, 0.0  ;;  %v2724_v20 = vor.u32 %v28877_v36, %v2721_v3 }
 0x300   : > { %v3209_v0 = vpop.f32.mrb[80].mxu0  ;;  %v3451_v23 = vpop.f32.mrb[84].mxu1 }
 0x301   : > { %v22392_v45 = vpack.c.bf16 %v2667_v58, %v2666_v63  ;;  %v3210_v53 = vadd.f32 %v3209_v0, %v22130_v5  ;;  %v3211_v2 = vpop.f32.mrb[81].mxu0  ;;  %v3453_v47 = vpop.f32.mrb[85].mxu1  ;;  %v22397_v44 = vsel %vm21450_vm7, 0, %v2724_v20 }
 0x302   : > { %29222 = vst [vmem:[#allocation16_spill] sm:$0xff] %v22397_v44  ;;  %v3212_v62 = vpop.f32.mrb[82].mxu0  ;;  %v3454_v26 = vpop.f32.mrb[86].mxu1  ;;  %4183 = vmatmul.mubr.bf16.gmra.mrb[136].mxu0 %v22397_v44 }
 0x303   : > { %29221 = vst [vmem:[#allocation15_spill] sm:$0xff] %v22392_v45  ;;  %v3506_v46 = vadd.f32 %v3443_v32, %v3210_v53  ;;  %v3213_v29 = vadd.f32 %v3212_v62, %v22134_v10  ;;  %v3214_v3 = vpop.f32.mrb[83].mxu0  ;;  %v3456_v36 = vpop.f32.mrb[87].mxu1  ;;  %4192 = vmatprep.mubr.bf16.mxu0 %v22392_v45  ;;  %v28878_v63 = vshrl.u32 %v22392_v45, 16  ;;  %v28881_v20 = vshll.u32 %v22392_v45, 16 }
 0x304   : > { %v29223_v36 = vshll.u32 %v22153_v48, 16 }
 0x305   : > { %v3522_v5 = vadd.f32 %v22141_v21, %v3506_v46  ;;  %v3507_v47 = vadd.f32 %v3446_v9, %v3213_v29  ;;  %v2728_v58 = vrot.slane %v28878_v63, 7 }
 0x306   : > { %v2748_v53 = vrot.slane %v29223_v36, 1 }
 0x307   : > { %v3523_v0 = vadd.f32 %v22141_v21, %v3507_v47  ;;  %v2731_v32 = vor.u32 %v28881_v20, %v2728_v58  ;;  %v3538_v2 = vmax.f32 %v3522_v5, 0.0 }
 0x308   : > { %v3217_v10 = vpop.f32.mrb[84].mxu0  ;;  %v3459_v62 = vpop.f32.mrb[88].mxu1 }
 0x309   : > { %v3539_v3 = vmax.f32 %v3523_v0, 0.0  ;;  %v3218_v46 = vadd.f32 %v3217_v10, %v22143_v12  ;;  %v3219_v9 = vpop.f32.mrb[85].mxu0  ;;  %v3461_v29 = vpop.f32.mrb[89].mxu1  ;;  %v22415_v63 = vsel %vm21450_vm7, 0, %v2731_v32  ;;  %v22421_v0 = vld [vmem:[#allocation2] sm:$0xff]  ;;  %v29225_v12 = vshrl.u32 %v22153_v48, 16 }
 0x30a   : > { %29224 = vst [vmem:[#allocation17_spill] sm:$0xff] %v22415_v63  ;;  %v3220_v44 = vpop.f32.mrb[86].mxu0  ;;  %v3462_v47 = vpop.f32.mrb[90].mxu1  ;;  %4193 = vmatmul.mubr.bf16.gmra.mrb[140].mxu0 %v22415_v63 }
 0x30b   : > { %v22418_v58 = vpack.c.bf16 %v3539_v3, %v3538_v2  ;;  %v3508_v20 = vadd.f32 %v3451_v23, %v3218_v46  ;;  %v3221_v54 = vadd.f32 %v3220_v44, %v22146_v57  ;;  %v3222_v36 = vpop.f32.mrb[87].mxu0  ;;  %v3464_v5 = vpop.f32.mrb[91].mxu1  ;;  %4235 = vmatprep.mubr.bf16.mxu0 %v22421_v0  ;;  %v2749_v10 = vor.u32 %v2748_v53, %v29225_v12  ;;  %v22433_v57 = vld [vmem:[%s28855_s5] ss:$8 sps:$4 sm:$0xff]  }
 0x30d   : > { %v3524_v32 = vadd.f32 %v22141_v21, %v3508_v20  ;;  %v3509_v9 = vadd.f32 %v3454_v26, %v3221_v54  ;;  %6119 = vmatprep.mubr.bf16.mxu1 %v22418_v58  ;;  %v28884_v2 = vshrl.u32 %v22418_v58, 16  ;;  %v28896_v3 = vshll.u32 %v22418_v58, 16  ;;  %v22445_v26 = vld [vmem:[%s28855_s5 + $0x14] ss:$8 sps:$4 sm:$0xff]  }
 0x30e   : > { %v22440_v54 = vsel %vm21271_vm4, %v2749_v10, 0  ;;  %v29226_v20 = vshll.u32 %v22180_v13, 16 }
 0x30f   : > { %v3525_v23 = vadd.f32 %v22141_v21, %v3509_v9  ;;  %v3565_v44 = vrot.slane %v28884_v2, 7  ;;  %v3540_v36 = vmax.f32 %v3524_v32, 0.0  ;;  %v22464_v32 = vld [vmem:[%s28855_s5 + $0x10] ss:$8 sps:$4 sm:$0xff]  }
 0x310   : > { %v3225_v53 = vpop.f32.mrb[88].mxu0  ;;  %v3467_v46 = vpop.f32.mrb[92].mxu1  ;;  %v2750_v29 = vrot.slane %v29226_v20, 1 }
 0x311   : > { %v3541_v5 = vmax.f32 %v3525_v23, 0.0  ;;  %v3226_v12 = vadd.f32 %v3225_v53, %v22151_v43  ;;  %v3227_v9 = vpop.f32.mrb[89].mxu0  ;;  %v3469_v2 = vpop.f32.mrb[93].mxu1  ;;  %v3568_v63 = vor.u32 %v28896_v3, %v3565_v44  ;;  %v22486_v44 = vld [vmem:[%s28855_s5 + $0x20] ss:$8 sps:$4 sm:$0xff]  }
 0x312   : > { %v3228_v17 = vpop.f32.mrb[90].mxu0  ;;  %v3470_v10 = vpop.f32.mrb[94].mxu1  ;;  %4236 = vmatmul.mubr.bf16.vlgmr.msra.gmra.mrb[112].mxu0 %v22440_v54 }
 0x313   : > { %v22453_v39 = vpack.c.bf16 %v3541_v5, %v3540_v36  ;;  %v3510_v51 = vadd.f32 %v3459_v62, %v3226_v12  ;;  %v3229_v48 = vadd.f32 %v3228_v17, %v22156_v52  ;;  %v3230_v45 = vpop.f32.mrb[91].mxu0  ;;  %v3472_v20 = vpop.f32.mrb[95].mxu1  ;;  %4557 = vmatpush1.bf16.msra.mxu0 %v22433_v57  ;;  %v22459_v43 = vsel %vm21450_vm7, 0, %v3568_v63  ;;  %4245 = vmatprep.mubr.bf16.mxu0 %v22421_v0 }
 0x314   : > { %6120 = vmatmul.mubr.bf16.vlgmr.msra.gmra.mrb[112].mxu1 %v22459_v43  ;;  %4558 = vmatprep.subr.bf16.mxu0 %v22445_v26  ;;  %v29227_v52 = vshrl.u32 %v22180_v13, 16  ;;  %v22474_v45 = vld [vmem:[%s28855_s5 + $0x24] ss:$8 sps:$4 sm:$0xff]  }
 0x315   : > { %v3526_v63 = vadd.f32 %v22141_v21, %v3510_v51  ;;  %v3511_v62 = vadd.f32 %v3462_v47, %v3229_v48  ;;  %6201 = vmatpush1.bf16.msra.mxu1 %v22171_v22  ;;  %6129 = vmatprep.mubr.bf16.mxu1 %v22453_v39  ;;  %v28895_v2 = vshrl.u32 %v22453_v39, 16  ;;  %v28898_v22 = vshll.u32 %v22453_v39, 16 }
 0x316   : > { %v2751_v17 = vor.u32 %v2750_v29, %v29227_v52  ;;  %6202 = vmatprep.subr.bf16.mxu1 %v22178_v1  ;;  %v22499_v1 = vld [vmem:[%s28855_s5 + $0x34] ss:$8 sps:$4 sm:$0xff]   ;;  %v29228_v29 = vshll.u32 %v22226_v35, 16 }
 0x317   : > { %v3527_v23 = vadd.f32 %v22141_v21, %v3511_v62  ;;  %4559 = vmatpush1.bf16.msra.mxu0 %v22464_v32  ;;  %v3572_v48 = vrot.slane %v28895_v2, 7  ;;  %v3542_v5 = vmax.f32 %v3526_v63, 0.0 }
 0x318   : > { %v3233_v51 = vpop.f32.mrb[92].mxu0  ;;  %v3475_v47 = vpop.f32.mrb[96].mxu1  ;;  %v22493_v53 = vsel %vm21271_vm4, %v2751_v17, 0  ;;  %4560 = vmatprep.subr.bf16.mxu0 %v22474_v45  ;;  %v2752_v36 = vrot.slane %v29228_v29, 1 }
 0x319   : > { %v3543_v12 = vmax.f32 %v3527_v23, 0.0  ;;  %v3234_v9 = vadd.f32 %v3233_v51, %v22173_v49  ;;  %v3235_v20 = vpop.f32.mrb[93].mxu0  ;;  %v3477_v52 = vpop.f32.mrb[97].mxu1  ;;  %v3575_v17 = vor.u32 %v28898_v22, %v3572_v48  ;;  %6203 = vmatpush1.bf16.msra.mxu1 %v22198_v27  ;;  %v22520_v27 = vld [vmem:[%s28855_s5 + $0x30] ss:$8 sps:$4 sm:$0xff]  }
 0x31a   : > { %v3236_v62 = vpop.f32.mrb[94].mxu0  ;;  %v3478_v2 = vpop.f32.mrb[98].mxu1  ;;  %4246 = vmatmul.mubr.bf16.gmra.mrb[116].mxu0 %v22493_v53  ;;  %6204 = vmatprep.subr.bf16.mxu1 %v22204_v30 }
 0x31b   : > { %v22509_v3 = vpack.c.bf16 %v3543_v12, %v3542_v5  ;;  %v3512_v29 = vadd.f32 %v3467_v46, %v3234_v9  ;;  %v3237_v63 = vadd.f32 %v3236_v62, %v22187_v15  ;;  %v3238_v23 = vpop.f32.mrb[95].mxu0  ;;  %v3480_v49 = vpop.f32.mrb[99].mxu1  ;;  %4561 = vmatpush1.bf16.msra.mxu0 %v22486_v44  ;;  %v22515_v48 = vsel %vm21450_vm7, 0, %v3575_v17  ;;  %4255 = vmatprep.mubr.bf16.mxu0 %v22421_v0  ;;  %v22530_v46 = vld [vmem:[%s28855_s5 + $0x44] ss:$8 sps:$4 sm:$0xff]  }
 0x31c   : > { %29229 = vst [vmem:[#allocation18_spill] sm:$0xff] %v22515_v48  ;;  %6130 = vmatmul.mubr.bf16.gmra.mrb[116].mxu1 %v22515_v48  ;;  %4562 = vmatprep.subr.bf16.mxu0 %v22499_v1  ;;  %v29230_v15 = vshrl.u32 %v22226_v35, 16  ;;  %v29231_v62 = vshll.u32 %v22272_v42, 16 }
 0x31d   : > { %v3528_v51 = vadd.f32 %v22141_v21, %v3512_v29  ;;  %v3513_v5 = vadd.f32 %v3470_v10, %v3237_v63  ;;  %6139 = vmatprep.mubr.bf16.mxu1 %v22509_v3  ;;  %v28897_v12 = vshrl.u32 %v22509_v3, 16  ;;  %6205 = vmatpush1.bf16.msra.mxu1 %v22216_v34  ;;  %v28902_v20 = vshll.u32 %v22509_v3, 16 }
 0x31e   : > { %v2753_v30 = vor.u32 %v2752_v36, %v29230_v15  ;;  %6206 = vmatprep.subr.bf16.mxu1 %v22224_v38  ;;  %v22542_v36 = vld [vmem:[%s28855_s5 + $0x40] ss:$8 sps:$4 sm:$0xff]   ;;  %v22555_v38 = vld [vmem:[%s28855_s5 + $0x54] ss:$8 sps:$4 sm:$0xff]   ;;  %v2754_v29 = vrot.slane %v29231_v62, 1 }
 0x31f   : > { %v3529_v9 = vadd.f32 %v22141_v21, %v3513_v5  ;;  %4563 = vmatpush1.bf16.msra.mxu0 %v22520_v27  ;;  %v3579_v10 = vrot.slane %v28897_v12, 7  ;;  %v3544_v63 = vmax.f32 %v3528_v51, 0.0 }
 0x320   : > { %v3241_v52 = vpop.f32.mrb[96].mxu0  ;;  %v3483_v17 = vpop.f32.mrb[100].mxu1  ;;  %v22549_v34 = vsel %vm21271_vm4, %v2753_v30, 0  ;;  %4564 = vmatprep.subr.bf16.mxu0 %v22530_v46 }
 0x321   : > { %v3545_v23 = vmax.f32 %v3529_v9, 0.0  ;;  %v3242_v49 = vadd.f32 %v3241_v52, %v22218_v61  ;;  %v3243_v15 = vpop.f32.mrb[97].mxu0  ;;  %v3485_v5 = vpop.f32.mrb[101].mxu1  ;;  %v3582_v30 = vor.u32 %v28902_v20, %v3579_v10  ;;  %6207 = vmatpush1.bf16.msra.mxu1 %v22244_v18  ;;  %v22576_v18 = vld [vmem:[%s28855_s5 + $0x50] ss:$8 sps:$4 sm:$0xff]  }
 0x322   : > { %v3244_v12 = vpop.f32.mrb[98].mxu0  ;;  %v3486_v22 = vpop.f32.mrb[102].mxu1  ;;  %4256 = vmatmul.mubr.bf16.gmra.mrb[120].mxu0 %v22549_v34  ;;  %6208 = vmatprep.subr.bf16.mxu1 %v22250_v16 }
 0x323   : > { %v22565_v48 = vpack.c.bf16 %v3545_v23, %v3544_v63  ;;  %v3514_v62 = vadd.f32 %v3475_v47, %v3242_v49  ;;  %v3245_v51 = vadd.f32 %v3244_v12, %v22233_v19  ;;  %v3246_v9 = vpop.f32.mrb[99].mxu0  ;;  %v3488_v61 = vpop.f32.mrb[103].mxu1  ;;  %4565 = vmatpush1.bf16.msra.mxu0 %v22542_v36  ;;  %v22571_v10 = vsel %vm21450_vm7, 0, %v3582_v30  ;;  %4265 = vmatprep.mubr.bf16.mxu0 %v22421_v0  ;;  %v22586_v47 = vld [vmem:[%s28855_s5 + $0x64] ss:$8 sps:$4 sm:$0xff]  }
 0x324   : > { %29232 = vst [vmem:[#allocation19_spill] sm:$0xff] %v22571_v10  ;;  %6140 = vmatmul.mubr.bf16.gmra.mrb[120].mxu1 %v22571_v10  ;;  %4566 = vmatprep.subr.bf16.mxu0 %v22555_v38  ;;  %v29233_v19 = vshrl.u32 %v22272_v42, 16  ;;  %v29235_v30 = vshll.u32 %v22318_v33, 16 }
 0x325   : > { %v3530_v12 = vadd.f32 %v22141_v21, %v3514_v62  ;;  %v3515_v52 = vadd.f32 %v3478_v2, %v3245_v51  ;;  %6149 = vmatprep.mubr.bf16.mxu1 %v22565_v48  ;;  %v28901_v63 = vshrl.u32 %v22565_v48, 16  ;;  %6209 = vmatpush1.bf16.msra.mxu1 %v22262_v28  ;;  %v28906_v49 = vshll.u32 %v22565_v48, 16 }
 0x326   : > { %v2755_v16 = vor.u32 %v2754_v29, %v29233_v19  ;;  %6210 = vmatprep.subr.bf16.mxu1 %v22270_v50  ;;  %v22598_v29 = vld [vmem:[%s28855_s5 + $0x60] ss:$8 sps:$4 sm:$0xff]   ;;  %v22611_v50 = vld [vmem:[%s28855_s5 + $0x74] ss:$8 sps:$4 sm:$0xff]   ;;  %v2756_v62 = vrot.slane %v29235_v30, 1 }
 0x327   : > { %v3531_v23 = vadd.f32 %v22141_v21, %v3515_v52  ;;  %4567 = vmatpush1.bf16.msra.mxu0 %v22576_v18  ;;  %v3586_v2 = vrot.slane %v28901_v63, 7  ;;  %v3546_v51 = vmax.f32 %v3530_v12, 0.0 }
 0x328   : > { %v3249_v15 = vpop.f32.mrb[100].mxu0  ;;  %v3491_v5 = vpop.f32.mrb[104].mxu1  ;;  %v22605_v28 = vsel %vm21271_vm4, %v2755_v16, 0  ;;  %4568 = vmatprep.subr.bf16.mxu0 %v22586_v47 }
 0x329   : > { %29234 = vst [vmem:[#allocation20_spill] sm:$0xff] %v22605_v28  ;;  %v3547_v9 = vmax.f32 %v3531_v23, 0.0  ;;  %v3250_v61 = vadd.f32 %v3249_v15, %v22264_v25  ;;  %v3251_v19 = vpop.f32.mrb[101].mxu0  ;;  %v3493_v52 = vpop.f32.mrb[105].mxu1  ;;  %v3589_v16 = vor.u32 %v28906_v49, %v3586_v2  ;;  %6211 = vmatpush1.bf16.msra.mxu1 %v22290_v31  ;;  %v22632_v31 = vld [vmem:[%s28855_s5 + $0x70] ss:$8 sps:$4 sm:$0xff]  }
 0x32a   : > { %v3252_v63 = vpop.f32.mrb[102].mxu0  ;;  %v3494_v20 = vpop.f32.mrb[106].mxu1  ;;  %4266 = vmatmul.mubr.bf16.gmra.mrb[124].mxu0 %v22605_v28  ;;  %6212 = vmatprep.subr.bf16.mxu1 %v22296_v11 }
 0x32b   : > { %v22621_v10 = vpack.c.bf16 %v3547_v9, %v3546_v51  ;;  %v3516_v30 = vadd.f32 %v3483_v17, %v3250_v61  ;;  %v3253_v12 = vadd.f32 %v3252_v63, %v22279_v7  ;;  %v3254_v23 = vpop.f32.mrb[103].mxu0  ;;  %v3496_v25 = vpop.f32.mrb[107].mxu1  ;;  %4569 = vmatpush1.bf16.msra.mxu0 %v22598_v29  ;;  %v22627_v2 = vsel %vm21450_vm7, 0, %v3589_v16  ;;  %4275 = vmatprep.mubr.bf16.mxu0 %v22421_v0  ;;  %v22642_v17 = vld [vmem:[%s28855_s5 + $0x84] ss:$8 sps:$4 sm:$0xff]  }
 0x32c   : > { %29237 = vst [vmem:[#allocation22_spill] sm:$0xff] %v22627_v2  ;;  %6150 = vmatmul.mubr.bf16.gmra.mrb[124].mxu1 %v22627_v2  ;;  %4570 = vmatprep.subr.bf16.mxu0 %v22611_v50  ;;  %v29238_v7 = vshrl.u32 %v22318_v33, 16  ;;  %v29240_v16 = vshll.u32 %v22354_v8, 16 }
 0x32d   : > { %29236 = vst [vmem:[#allocation21_spill] sm:$0xff] %v22621_v10  ;;  %v3532_v63 = vadd.f32 %v22141_v21, %v3516_v30  ;;  %v3517_v15 = vadd.f32 %v3486_v22, %v3253_v12  ;;  %6159 = vmatprep.mubr.bf16.mxu1 %v22621_v10  ;;  %v28905_v51 = vshrl.u32 %v22621_v10, 16  ;;  %6213 = vmatpush1.bf16.msra.mxu1 %v22308_v41  ;;  %v28910_v61 = vshll.u32 %v22621_v10, 16 }
 0x32e   : > { %v2757_v11 = vor.u32 %v2756_v62, %v29238_v7  ;;  %6214 = vmatprep.subr.bf16.mxu1 %v22316_v55  ;;  %v22654_v62 = vld [vmem:[%s28855_s5 + $0x80] ss:$8 sps:$4 sm:$0xff]   ;;  %v22667_v55 = vld [vmem:[%s28855_s5 + $0x94] ss:$8 sps:$4 sm:$0xff]   ;;  %v2758_v30 = vrot.slane %v29240_v16, 1 }
 0x32f   : > { %v3533_v9 = vadd.f32 %v22141_v21, %v3517_v15  ;;  %4571 = vmatpush1.bf16.msra.mxu0 %v22632_v31  ;;  %v3593_v22 = vrot.slane %v28905_v51, 7  ;;  %v3548_v12 = vmax.f32 %v3532_v63, 0.0 }
 0x330   : > { %v3257_v19 = vpop.f32.mrb[104].mxu0  ;;  %v22661_v41 = vsel %vm21271_vm4, %v2757_v11, 0  ;;  %4572 = vmatprep.subr.bf16.mxu0 %v22642_v17  ;;  %v3499_v52 = vpop.f32.mrb[108].mxu1 }
 0x331   : > { %29239 = vst [vmem:[#allocation23_spill] sm:$0xff] %v22661_v41  ;;  %v3549_v23 = vmax.f32 %v3533_v9, 0.0  ;;  %v3258_v25 = vadd.f32 %v3257_v19, %v22310_v59  ;;  %v3259_v7 = vpop.f32.mrb[105].mxu0  ;;  %v3596_v11 = vor.u32 %v28910_v61, %v3593_v22  ;;  %v3501_v15 = vpop.f32.mrb[109].mxu1  ;;  %6215 = vmatpush1.bf16.msra.mxu1 %v22336_v24  ;;  %v22688_v24 = vld [vmem:[%s28855_s5 + $0x90] ss:$8 sps:$4 sm:$0xff]  }
 0x332   : > { %v3260_v51 = vpop.f32.mrb[106].mxu0  ;;  %4276 = vmatmul.mubr.bf16.gmra.mrb[128].mxu0 %v22661_v41  ;;  %v3502_v49 = vpop.f32.mrb[110].mxu1  ;;  %6553 = vmatprep.subr.bf16.mxu1 %v22342_v37  ;;  %v22721_v15 = vld [vmem:[%s28855_s5 + $0xb4] ss:$8 sps:$4 sm:$0xff]  }
 0x333   : > { %v22677_v2 = vpack.c.bf16 %v3549_v23, %v3548_v12  ;;  %v3518_v16 = vadd.f32 %v3491_v5, %v3258_v25  ;;  %v3261_v63 = vadd.f32 %v3260_v51, %v22325_v14  ;;  %v3262_v9 = vpop.f32.mrb[107].mxu0  ;;  %4573 = vmatpush1.bf16.msra.mxu0 %v22654_v62  ;;  %v22683_v59 = vsel %vm21450_vm7, 0, %v3596_v11  ;;  %4285 = vmatprep.mubr.bf16.mxu0 %v22421_v0  ;;  %v3504_v37 = vpop.f32.mrb[111].mxu1  ;;  %v22698_v51 = vld [vmem:[%s28855_s5 + $0xa4] ss:$8 sps:$4 sm:$0xff]  }
 0x334   : > { %29242 = vst [vmem:[#allocation25_spill] sm:$0xff] %v22683_v59  ;;  %6160 = vmatmul.mubr.bf16.gmra.mrb[128].mxu1 %v22683_v59  ;;  %4574 = vmatprep.subr.bf16.mxu0 %v22667_v55  ;;  %v29243_v14 = vshrl.u32 %v22354_v8, 16 }
 0x335   : > { %29241 = vst [vmem:[#allocation24_spill] sm:$0xff] %v22677_v2  ;;  %v3534_v22 = vadd.f32 %v22141_v21, %v3518_v16  ;;  %v3519_v19 = vadd.f32 %v3494_v20, %v3261_v63  ;;  %6169 = vmatprep.mubr.bf16.mxu1 %v22677_v2  ;;  %v28909_v12 = vshrl.u32 %v22677_v2, 16  ;;  %v28920_v7 = vshll.u32 %v22677_v2, 16 }
 0x336   : > { %v2759_v5 = vor.u32 %v2758_v30, %v29243_v14  ;;  %v22708_v30 = vld [vmem:[%s28855_s5 + $0xa0] ss:$8 sps:$4 sm:$0xff]   ;;  %v29245_v16 = vshll.u32 %v22374_v6, 16 }
 0x337   : > { %v3535_v23 = vadd.f32 %v22141_v21, %v3519_v19  ;;  %4575 = vmatpush1.bf16.msra.mxu0 %v22688_v24  ;;  %v3600_v25 = vrot.slane %v28909_v12, 7  ;;  %v3550_v9 = vmax.f32 %v3534_v22, 0.0 }
 0x338   : > { %v3265_v11 = vpop.f32.mrb[108].mxu0  ;;  %v22715_v20 = vsel %vm21271_vm4, %v2759_v5, 0  ;;  %4576 = vmatprep.subr.bf16.mxu0 %v22698_v51  ;;  %v2760_v63 = vrot.slane %v29245_v16, 1  ;;  %v22760_v16 = vld [vmem:[%s28855_s5 + $0xc0] ss:$8 sps:$4 sm:$0xff]  }
 0x339   : > { %29244 = vst [vmem:[#allocation26_spill] sm:$0xff] %v22715_v20  ;;  %v3551_v37 = vmax.f32 %v3535_v23, 0.0  ;;  %v3266_v14 = vadd.f32 %v3265_v11, %v22351_v56  ;;  %v3267_v19 = vpop.f32.mrb[109].mxu0  ;;  %v3603_v12 = vor.u32 %v28920_v7, %v3600_v25  ;;  %v22740_v56 = vld [vmem:[%s28855_s5 + $0xb0] ss:$8 sps:$4 sm:$0xff]  }
 0x33a   : > { %v3268_v5 = vpop.f32.mrb[110].mxu0  ;;  %4286 = vmatmul.mubr.bf16.gmra.mrb[132].mxu0 %v22715_v20 }
 0x33b   : > { %v22729_v61 = vpack.c.bf16 %v3551_v37, %v3550_v9  ;;  %v3520_v59 = vadd.f32 %v3499_v52, %v3266_v14  ;;  %v3269_v41 = vadd.f32 %v3268_v5, %v22361_v4  ;;  %v3270_v28 = vpop.f32.mrb[111].mxu0  ;;  %4577 = vmatpush1.bf16.msra.mxu0 %v22708_v30  ;;  %v22735_v22 = vsel %vm21450_vm7, 0, %v3603_v12  ;;  %4295 = vmatprep.mubr.bf16.mxu0 %v22421_v0  ;;  %v22750_v52 = vld [vmem:[%s28855_s5 + $0xc4] ss:$8 sps:$4 sm:$0xff]   ;;  %v29250_v14 = vld [vmem:[#allocation15_spill] sm:$0xff] }
 0x33c   : > { %29247 = vst [vmem:[#allocation28_spill] sm:$0xff] %v22735_v22  ;;  %6170 = vmatmul.mubr.bf16.gmra.mrb[132].mxu1 %v22735_v22  ;;  %4578 = vmatprep.subr.bf16.mxu0 %v22721_v15  ;;  %v29248_v4 = vshrl.u32 %v22374_v6, 16  ;;  %v29251_v19 = vshll.u32 %v29250_v14, 16  ;;  %v22913_v22 = vld [vmem:[%s28855_s5 + $0x130] ss:$8 sps:$4 sm:$0xff]  }
 0x33d   : > { %29246 = vst [vmem:[#allocation27_spill] sm:$0xff] %v22729_v61  ;;  %v3536_v12 = vadd.f32 %v22141_v21, %v3520_v59  ;;  %v3521_v23 = vadd.f32 %v3502_v49, %v3269_v41  ;;  %6179 = vmatprep.mubr.bf16.mxu1 %v22729_v61  ;;  %v28917_v25 = vshrl.u32 %v22729_v61, 16  ;;  %v28919_v9 = vshll.u32 %v22729_v61, 16 }
 0x33e   : > { %v2761_v28 = vor.u32 %v2760_v63, %v29248_v4  ;;  %v2762_v5 = vrot.slane %v29251_v19, 1 }
 0x33f   : > { %v3537_v11 = vadd.f32 %v22141_v21, %v3521_v23  ;;  %4579 = vmatpush1.bf16.msra.mxu0 %v22740_v56  ;;  %v3607_v63 = vrot.slane %v28917_v25, 7  ;;  %v22773_v21 = vld [vmem:[%s28855_s5 + $0xd4] ss:$8 sps:$4 sm:$0xff]   ;;  %v3552_v41 = vmax.f32 %v3536_v12, 0.0  ;;  %v22790_v12 = vld [vmem:[%s28855_s5 + $0xd0] ss:$8 sps:$4 sm:$0xff]  }
 0x340   : > { %v22767_v49 = vsel %vm21271_vm4, %v2761_v28, 0  ;;  %4580 = vmatprep.subr.bf16.mxu0 %v22750_v52  ;;  %v22798_v23 = vld [vmem:[%s28855_s5 + $0xe4] ss:$8 sps:$4 sm:$0xff]  }
 0x341   : > { %29249 = vst [vmem:[#allocation29_spill] sm:$0xff] %v22767_v49  ;;  %v3553_v59 = vmax.f32 %v3537_v11, 0.0  ;;  %v3610_v37 = vor.u32 %v28919_v9, %v3607_v63  ;;  %v29254_v11 = vshrl.u32 %v29250_v14, 16  ;;  %v22834_v9 = vld [vmem:[%s28855_s5 + $0xf0] ss:$8 sps:$4 sm:$0xff]  }
 0x342   : > { %4296 = vmatmul.mubr.bf16.gmra.mrb[136].mxu0 %v22767_v49 }
 0x343   : > { %v22780_v4 = vpack.c.bf16 %v3553_v59, %v3552_v41  ;;  %4581 = vmatpush1.bf16.msra.mxu0 %v22760_v16  ;;  %v22785_v28 = vsel %vm21450_vm7, 0, %v3610_v37  ;;  %4305 = vmatprep.mubr.bf16.mxu0 %v22421_v0  ;;  %v2763_v63 = vor.u32 %v2762_v5, %v29254_v11  ;;  %v22808_v59 = vld [vmem:[%s28855_s5 + $0xe0] ss:$8 sps:$4 sm:$0xff]   ;;  %v22817_v5 = vld [vmem:[%s28855_s5 + $0xf4] ss:$8 sps:$4 sm:$0xff]  }
 0x344   : > { %29253 = vst [vmem:[#allocation30_spill] sm:$0xff] %v22785_v28  ;;  %6180 = vmatmul.mubr.bf16.gmra.mrb[136].mxu1 %v22785_v28  ;;  %4582 = vmatprep.subr.bf16.mxu0 %v22773_v21  ;;  %v22873_v28 = vld [vmem:[%s28855_s5 + $0x110] ss:$8 sps:$4 sm:$0xff]  }
 0x345   : > { %29252 = vst [vmem:[#allocation15_spill] sm:$0xff] %v22780_v4  ;;  %6189 = vmatprep.mubr.bf16.mxu1 %v22780_v4  ;;  %v28918_v41 = vshrl.u32 %v22780_v4, 16  ;;  %v28921_v19 = vshll.u32 %v22780_v4, 16  ;;  %v22821_v11 = vsel %vm21271_vm4, %v2763_v63, 0  ;;  %v29257_v63 = vshll.u32 %v22418_v58, 16  ;;  %v29293_v60 = vld [vmem:[#allocation28_spill] sm:$0xff] }
 0x346   : > { %29255 = vst [vmem:[#allocation31_spill] sm:$0xff] %v22821_v11 }
 0x347   : > { %4583 = vmatpush1.bf16.msra.mxu0 %v22790_v12  ;;  %v3614_v37 = vrot.slane %v28918_v41, 7  ;;  %v3634_v7 = vrot.slane %v29257_v63, 1  ;;  %v22853_v63 = vld [vmem:[%s28855_s5 + $0x100] ss:$8 sps:$4 sm:$0xff]  }
 0x348   : > { %4584 = vmatprep.subr.bf16.mxu0 %v22798_v23 }
 0x349   : > { %v3617_v25 = vor.u32 %v28921_v19, %v3614_v37  ;;  %v22844_v37 = vld [vmem:[%s28855_s5 + $0x104] ss:$8 sps:$4 sm:$0xff]  }
 0x34a   : > { %4306 = vmatmul.mubr.bf16.gmra.mrb[140].mxu0 %v22821_v11 }
 0x34b   : > { %4585 = vmatpush1.bf16.msra.mxu0 %v22808_v59  ;;  %v22829_v41 = vsel %vm21450_vm7, 0, %v3617_v25  ;;  %4588 = vmatprep.mubr.bf16.mxu0 %v22421_v0  ;;  %v29258_v25 = vshrl.u32 %v22418_v58, 16 }
 0x34c   : > { %29256 = vst [vmem:[#allocation32_spill] sm:$0xff] %v22829_v41  ;;  %6190 = vmatmul.mubr.bf16.gmra.mrb[140].mxu1 %v22829_v41  ;;  %4586 = vmatprep.subr.bf16.mxu0 %v22817_v5  ;;  %v29259_v41 = vld [vmem:[#allocation7_spill] sm:$0xff] }
 0x34d   : > { %6232 = vmatprep.mubr.bf16.mxu1 %v22421_v0  ;;  %v3635_v19 = vor.u32 %v3634_v7, %v29258_v25  ;;  %v29261_v7 = vshll.u32 %v22453_v39, 16 }
 0x34f   : > { %4587 = vmatpush1.bf16.msra.mxu0 %v22834_v9  ;;  %v22865_v11 = vsel %vm21271_vm4, %v3635_v19, 0  ;;  %v3636_v25 = vrot.slane %v29261_v7, 1  ;;  %v29262_v19 = vshrl.u32 %v22453_v39, 16 }
 0x350   : > { %4669 = vmatprep.subr.bf16.mxu0 %v22844_v37  ;;  %29260 = vst [vmem:[#allocation7_spill] sm:$0xff] %v22865_v11 }
 0x351   : > { %v3637_v7 = vor.u32 %v3636_v25, %v29262_v19  ;;  %v29265_v19 = vshll.u32 %v22509_v3, 16 }
 0x352   : > { %4589 = vmatmul.mubr.bf16.vlgmr.msra.gmra.mrb[112].mxu0 %v22421_v0 }
 0x353   : > { %4598 = vmatprep.mubr.bf16.mxu0 %v29259_v41  ;;  %4670 = vmatpush1.bf16.msra.mxu0 %v22853_v63  ;;  %v22880_v41 = vld [vmem:[%s28855_s5 + $0x124] ss:$8 sps:$4 sm:$0xff]   ;;  %v22905_v25 = vsel %vm21271_vm4, %v3637_v7, 0  ;;  %v3638_v49 = vrot.slane %v29265_v19, 1  ;;  %v29269_v19 = vshll.u32 %v22565_v48, 16 }
 0x354   : > { %6233 = vmatmul.mubr.bf16.vlgmr.msra.gmra.mrb[112].mxu1 %v22865_v11  ;;  %4671 = vmatprep.subr.bf16.mxu0 %v22859_v40  ;;  %v22891_v11 = vld [vmem:[%s28855_s5 + $0x120] ss:$8 sps:$4 sm:$0xff]  }
 0x355   : > { %6554 = vmatpush1.bf16.msra.mxu1 %v22433_v57  ;;  %6242 = vmatprep.mubr.bf16.mxu1 %v22421_v0  ;;  %v22897_v57 = vld [vmem:[%s28855_s5 + $0x134] ss:$8 sps:$4 sm:$0xff]  }
 0x356   : > { %6555 = vmatprep.subr.bf16.mxu1 %v22445_v26  ;;  %v29263_v26 = vld [vmem:[#allocation8_spill] sm:$0xff] }
 0x357   : > { %4672 = vmatpush1.bf16.msra.mxu0 %v22873_v28  ;;  %29264 = vst [vmem:[#allocation8_spill] sm:$0xff] %v22905_v25 }
 0x358   : > { %4673 = vmatprep.subr.bf16.mxu0 %v22880_v41 }
 0x359   : > { %6556 = vmatpush1.bf16.msra.mxu1 %v22464_v32  ;;  %v22920_v32 = vld [vmem:[%s28855_s5 + $0x144] ss:$8 sps:$4 sm:$0xff]  }
 0x35a   : > { %4599 = vmatmul.mubr.bf16.gmra.mrb[116].mxu0 %v29263_v26  ;;  %6557 = vmatprep.subr.bf16.mxu1 %v22474_v45  ;;  %v29266_v45 = vshrl.u32 %v22509_v3, 16  ;;  %v22931_v26 = vld [vmem:[%s28855_s5 + $0x140] ss:$8 sps:$4 sm:$0xff]  }
 0x35b   : > { %4608 = vmatprep.mubr.bf16.mxu0 %v22180_v13  ;;  %4674 = vmatpush1.bf16.msra.mxu0 %v22891_v11 }
 0x35c   : > { %6243 = vmatmul.mubr.bf16.gmra.mrb[116].mxu1 %v22905_v25  ;;  %4675 = vmatprep.subr.bf16.mxu0 %v22897_v57  ;;  %v3639_v7 = vor.u32 %v3638_v49, %v29266_v45  ;;  %v3640_v45 = vrot.slane %v29269_v19, 1  ;;  %v22953_v25 = vld [vmem:[%s28855_s5 + $0x150] ss:$8 sps:$4 sm:$0xff]   ;;  %v22971_v19 = vld [vmem:[%s28855_s5 + $0x160] ss:$8 sps:$4 sm:$0xff]  }
 0x35d   : > { %6558 = vmatpush1.bf16.msra.mxu1 %v22486_v44  ;;  %6252 = vmatprep.mubr.bf16.mxu1 %v22421_v0  ;;  %v22937_v44 = vld [vmem:[%s28855_s5 + $0x154] ss:$8 sps:$4 sm:$0xff]  }
 0x35e   : > { %6559 = vmatprep.subr.bf16.mxu1 %v22499_v1  ;;  %v29267_v1 = vld [vmem:[#allocation10_spill] sm:$0xff]  ;;  %v22945_v49 = vsel %vm21271_vm4, %v3639_v7, 0 }
 0x35f   : > { %4676 = vmatpush1.bf16.msra.mxu0 %v22913_v22  ;;  %29268 = vst [vmem:[#allocation10_spill] sm:$0xff] %v22945_v49 }
 0x360   : > { %4677 = vmatprep.subr.bf16.mxu0 %v22920_v32 }
 0x361   : > { %6560 = vmatpush1.bf16.msra.mxu1 %v22520_v27  ;;  %v22960_v27 = vld [vmem:[%s28855_s5 + $0x164] ss:$8 sps:$4 sm:$0xff]  }
 0x362   : > { %4609 = vmatmul.mubr.bf16.gmra.mrb[120].mxu0 %v29267_v1  ;;  %6561 = vmatprep.subr.bf16.mxu1 %v22530_v46  ;;  %v29270_v46 = vshrl.u32 %v22565_v48, 16 }
 0x363   : > { %4618 = vmatprep.mubr.bf16.mxu0 %v22226_v35  ;;  %4678 = vmatpush1.bf16.msra.mxu0 %v22931_v26  ;;  %v22993_v35 = vld [vmem:[%s28855_s5 + $0x170] ss:$8 sps:$4 sm:$0xff]  }
 0x364   : > { %6253 = vmatmul.mubr.bf16.gmra.mrb[120].mxu1 %v22945_v49  ;;  %4679 = vmatprep.subr.bf16.mxu0 %v22937_v44  ;;  %v3641_v7 = vor.u32 %v3640_v45, %v29270_v46  ;;  %v29273_v46 = vshll.u32 %v22621_v10, 16 }
 0x365   : > { %6562 = vmatpush1.bf16.msra.mxu1 %v22542_v36  ;;  %6262 = vmatprep.mubr.bf16.mxu1 %v22421_v0  ;;  %v22977_v36 = vld [vmem:[%s28855_s5 + $0x174] ss:$8 sps:$4 sm:$0xff]  }
 0x366   : > { %6563 = vmatprep.subr.bf16.mxu1 %v22555_v38  ;;  %v29271_v38 = vld [vmem:[#allocation11_spill] sm:$0xff]  ;;  %v22985_v45 = vsel %vm21271_vm4, %v3641_v7, 0  ;;  %v3642_v49 = vrot.slane %v29273_v46, 1  ;;  %v29275_v46 = vld [vmem:[#allocation12_spill] sm:$0xff] }
 0x367   : > { %4680 = vmatpush1.bf16.msra.mxu0 %v22953_v25  ;;  %29272 = vst [vmem:[#allocation11_spill] sm:$0xff] %v22985_v45 }
 0x368   : > { %4681 = vmatprep.subr.bf16.mxu0 %v22960_v27 }
 0x369   : > { %6564 = vmatpush1.bf16.msra.mxu1 %v22576_v18  ;;  %v23000_v18 = vld [vmem:[%s28855_s5 + $0x304] ss:$8 sps:$4 sm:$0xff]  }
 0x36a   : > { %4619 = vmatmul.mubr.bf16.gmra.mrb[124].mxu0 %v29271_v38  ;;  %6565 = vmatprep.subr.bf16.mxu1 %v22586_v47  ;;  %v29274_v47 = vshrl.u32 %v22621_v10, 16 }
 0x36b   : > { %4628 = vmatprep.mubr.bf16.mxu0 %v22272_v42  ;;  %4682 = vmatpush1.bf16.msra.mxu0 %v22971_v19 }
 0x36c   : > { %6263 = vmatmul.mubr.bf16.gmra.mrb[124].mxu1 %v22985_v45  ;;  %4683 = vmatprep.subr.bf16.mxu0 %v22977_v36  ;;  %v3643_v7 = vor.u32 %v3642_v49, %v29274_v47  ;;  %v29278_v49 = vld [vmem:[#allocation13_spill] sm:$0xff] }
 0x36d   : > { %6566 = vmatpush1.bf16.msra.mxu1 %v22598_v29  ;;  %6272 = vmatprep.mubr.bf16.mxu1 %v22421_v0 }
 0x36e   : > { %6567 = vmatprep.subr.bf16.mxu1 %v22611_v50  ;;  %v23015_v29 = vsel %vm21271_vm4, %v3643_v7, 0  ;;  %v29276_v50 = vshll.u32 %v22677_v2, 16 }
 0x36f   : > { %4684 = vmatpush1.bf16.msra.mxu0 %v22993_v35 }
 0x370   : > { %5096 = vmatprep.subr.bf16.mxu0 %v23000_v18  ;;  %v3644_v45 = vrot.slane %v29276_v50, 1 }
 0x371   : > { %6568 = vmatpush1.bf16.msra.mxu1 %v22632_v31  ;;  %v29277_v31 = vshrl.u32 %v22677_v2, 16 }
 0x372   : > { %4629 = vmatmul.mubr.bf16.gmra.mrb[128].mxu0 %v29275_v46  ;;  %6569 = vmatprep.subr.bf16.mxu1 %v22642_v17 }
 0x373   : > { %4638 = vmatprep.mubr.bf16.mxu0 %v22318_v33  ;;  %v3645_v17 = vor.u32 %v3644_v45, %v29277_v31 }
 0x374   : > { %6273 = vmatmul.mubr.bf16.gmra.mrb[128].mxu1 %v23015_v29 }
 0x375   : > { %6570 = vmatpush1.bf16.msra.mxu1 %v22654_v62  ;;  %6282 = vmatprep.mubr.bf16.mxu1 %v22421_v0  ;;  %v23031_v47 = vsel %vm21271_vm4, %v3645_v17, 0  ;;  %v29279_v62 = vshll.u32 %v22729_v61, 16  ;;  %v29289_v17 = vld [vmem:[#allocation20_spill] sm:$0xff] }
 0x376   : > { %6571 = vmatprep.subr.bf16.mxu1 %v22667_v55  ;;  %v29280_v55 = vshrl.u32 %v22729_v61, 16 }
 0x377   : > { %v3646_v7 = vrot.slane %v29279_v62, 1  ;;  %v23235_v62 = vld [vmem:[%s28855_s5 + $0x3b4] ss:$8 sps:$4 sm:$0xff]  }
 0x379   : > { %6572 = vmatpush1.bf16.msra.mxu1 %v22688_v24  ;;  %v3647_v24 = vor.u32 %v3646_v7, %v29280_v55  ;;  %v29291_v7 = vld [vmem:[#allocation23_spill] sm:$0xff] }
 0x37a   : > { %4639 = vmatmul.mubr.bf16.gmra.mrb[132].mxu0 %v29278_v49  ;;  %6573 = vmatprep.subr.bf16.mxu1 %v22698_v51  ;;  %v29281_v51 = vld [vmem:[#allocation14_spill] sm:$0xff]  ;;  %v23242_v55 = vld [vmem:[%s28855_s5 + $0x3b0] ss:$8 sps:$4 sm:$0xff]  }
 0x37b   : > { %4648 = vmatprep.mubr.bf16.mxu0 %v22354_v8  ;;  %v23047_v45 = vsel %vm21271_vm4, %v3647_v24, 0  ;;  %v29292_v24 = vld [vmem:[#allocation25_spill] sm:$0xff] }
 0x37c   : > { %6283 = vmatmul.mubr.bf16.gmra.mrb[132].mxu1 %v23031_v47 }
 0x37d   : > { %6574 = vmatpush1.bf16.msra.mxu1 %v22708_v30  ;;  %6292 = vmatprep.mubr.bf16.mxu1 %v22421_v0  ;;  %v29282_v30 = vshll.u32 %v22780_v4, 16 }
 0x37e   : > { %6575 = vmatprep.subr.bf16.mxu1 %v22721_v15  ;;  %v29283_v15 = vshrl.u32 %v22780_v4, 16  ;;  %v23285_v4 = vld [vmem:[%s28855_s5 + $0x3e0] ss:$8 sps:$4 sm:$0xff]  }
 0x37f   : > { %v3648_v50 = vrot.slane %v29282_v30, 1  ;;  %v23250_v30 = vld [vmem:[%s28855_s5 + $0x3c4] ss:$8 sps:$4 sm:$0xff]  }
 0x381   : > { %6576 = vmatpush1.bf16.msra.mxu1 %v22740_v56  ;;  %v3649_v56 = vor.u32 %v3648_v50, %v29283_v15  ;;  %v23257_v50 = vld [vmem:[%s28855_s5 + $0x3c0] ss:$8 sps:$4 sm:$0xff]   ;;  %v23263_v15 = vld [vmem:[%s28855_s5 + $0x3d4] ss:$8 sps:$4 sm:$0xff]  }
 0x382   : > { %4649 = vmatmul.mubr.bf16.gmra.mrb[136].mxu0 %v29281_v51  ;;  %6577 = vmatprep.subr.bf16.mxu1 %v22750_v52  ;;  %v29284_v52 = vld [vmem:[#allocation16_spill] sm:$0xff] }
 0x383   : > { %4658 = vmatprep.mubr.bf16.mxu0 %v22374_v6  ;;  %v23062_v31 = vsel %vm21271_vm4, %v3649_v56, 0  ;;  %v23270_v56 = vld [vmem:[%s28855_s5 + $0x3d0] ss:$8 sps:$4 sm:$0xff]  }
 0x384   : > { %6293 = vmatmul.mubr.bf16.gmra.mrb[136].mxu1 %v23047_v45  ;;  %29285 = vst [vmem:[#allocation12_spill] sm:$0xff] %v23062_v31 }
 0x385   : > { %6578 = vmatpush1.bf16.msra.mxu1 %v22760_v16  ;;  %6302 = vmatprep.mubr.bf16.mxu1 %v22421_v0  ;;  %v23072_v16 = vld [vmem:[%s28855_s5 + $0x300] ss:$8 sps:$4 sm:$0xff]  }
 0x386   : > { %6579 = vmatprep.subr.bf16.mxu1 %v22773_v21  ;;  %v23077_v21 = vld [vmem:[%s28855_s5 + $0x314] ss:$8 sps:$4 sm:$0xff]  }
 0x389   : > { %6580 = vmatpush1.bf16.msra.mxu1 %v22790_v12  ;;  %v23086_v12 = vld [vmem:[%s28855_s5 + $0x310] ss:$8 sps:$4 sm:$0xff]  }
 0x38a   : > { %4659 = vmatmul.mubr.bf16.gmra.mrb[140].mxu0 %v29284_v52  ;;  %6581 = vmatprep.subr.bf16.mxu1 %v22798_v23  ;;  %v29286_v23 = vld [vmem:[#allocation17_spill] sm:$0xff] }
 0x38b   : > { %4701 = vmatprep.mubr.bf16.mxu0 %v22421_v0 }
 0x38c   : > { %6303 = vmatmul.mubr.bf16.gmra.mrb[140].mxu1 %v23062_v31  ;;  %v23278_v31 = vld [vmem:[%s28855_s5 + $0x3e4] ss:$8 sps:$4 sm:$0xff]  }
 0x38d   : > { %6582 = vmatpush1.bf16.msra.mxu1 %v22808_v59  ;;  %6585 = vmatprep.mubr.bf16.mxu1 %v29250_v14  ;;  %v23103_v59 = vld [vmem:[%s28855_s5 + $0x320] ss:$8 sps:$4 sm:$0xff]  }
 0x38e   : > { %6583 = vmatprep.subr.bf16.mxu1 %v22817_v5  ;;  %v23109_v5 = vld [vmem:[%s28855_s5 + $0x334] ss:$8 sps:$4 sm:$0xff]  }
 0x391   : > { %6584 = vmatpush1.bf16.msra.mxu1 %v22834_v9  ;;  %v23094_v9 = vld [vmem:[%s28855_s5 + $0x324] ss:$8 sps:$4 sm:$0xff]  }
 0x392   : > { %4702 = vmatmul.mubr.bf16.vlgmr.msra.gmra.mrb[112].mxu0 %v22421_v0  ;;  %6666 = vmatprep.subr.bf16.mxu1 %v22844_v37  ;;  %v23141_v37 = vld [vmem:[%s28855_s5 + $0x354] ss:$8 sps:$4 sm:$0xff]  }
 0x393   : > { %5097 = vmatpush1.bf16.msra.mxu0 %v23072_v16  ;;  %4711 = vmatprep.mubr.bf16.mxu0 %v22421_v0 }
 0x394   : > { %6586 = vmatmul.mubr.bf16.vlgmr.msra.gmra.mrb[112].mxu1 %v29286_v23  ;;  %5098 = vmatprep.subr.bf16.mxu0 %v23077_v21 }
 0x395   : > { %6667 = vmatpush1.bf16.msra.mxu1 %v22853_v63  ;;  %6595 = vmatprep.mubr.bf16.mxu1 %v22418_v58  ;;  %v29287_v63 = vld [vmem:[#allocation18_spill] sm:$0xff] }
 0x396   : > { %6668 = vmatprep.subr.bf16.mxu1 %v22859_v40  ;;  %v23118_v40 = vld [vmem:[%s28855_s5 + $0x330] ss:$8 sps:$4 sm:$0xff]  }
 0x397   : > { %5099 = vmatpush1.bf16.msra.mxu0 %v23086_v12 }
 0x398   : > { %5100 = vmatprep.subr.bf16.mxu0 %v23094_v9 }
 0x399   : > { %6669 = vmatpush1.bf16.msra.mxu1 %v22873_v28  ;;  %v23126_v28 = vld [vmem:[%s28855_s5 + $0x344] ss:$8 sps:$4 sm:$0xff]  }
 0x39a   : > { %4712 = vmatmul.mubr.bf16.gmra.mrb[116].mxu0 %v22440_v54  ;;  %6670 = vmatprep.subr.bf16.mxu1 %v22880_v41  ;;  %v23135_v54 = vld [vmem:[%s28855_s5 + $0x340] ss:$8 sps:$4 sm:$0xff]  }
 0x39b   : > { %5101 = vmatpush1.bf16.msra.mxu0 %v23103_v59  ;;  %4721 = vmatprep.mubr.bf16.mxu0 %v22421_v0  ;;  %v23167_v41 = vld [vmem:[%s28855_s5 + $0x360] ss:$8 sps:$4 sm:$0xff]  }
 0x39c   : > { %6596 = vmatmul.mubr.bf16.gmra.mrb[116].mxu1 %v22459_v43  ;;  %5102 = vmatprep.subr.bf16.mxu0 %v23109_v5 }
 0x39d   : > { %6605 = vmatprep.mubr.bf16.mxu1 %v22453_v39  ;;  %6671 = vmatpush1.bf16.msra.mxu1 %v22891_v11  ;;  %v23150_v11 = vld [vmem:[%s28855_s5 + $0x350] ss:$8 sps:$4 sm:$0xff]  }
 0x39e   : > { %6672 = vmatprep.subr.bf16.mxu1 %v22897_v57  ;;  %v23173_v57 = vld [vmem:[%s28855_s5 + $0x374] ss:$8 sps:$4 sm:$0xff]  }
 0x39f   : > { %5103 = vmatpush1.bf16.msra.mxu0 %v23118_v40 }
 0x3a0   : > { %5104 = vmatprep.subr.bf16.mxu0 %v23126_v28 }
 0x3a1   : > { %6673 = vmatpush1.bf16.msra.mxu1 %v22913_v22  ;;  %v23158_v22 = vld [vmem:[%s28855_s5 + $0x364] ss:$8 sps:$4 sm:$0xff]  }
 0x3a2   : > { %4722 = vmatmul.mubr.bf16.gmra.mrb[120].mxu0 %v22493_v53  ;;  %6674 = vmatprep.subr.bf16.mxu1 %v22920_v32  ;;  %v23182_v32 = vld [vmem:[%s28855_s5 + $0x370] ss:$8 sps:$4 sm:$0xff]  }
 0x3a3   : > { %5105 = vmatpush1.bf16.msra.mxu0 %v23135_v54  ;;  %4731 = vmatprep.mubr.bf16.mxu0 %v22421_v0 }
 0x3a4   : > { %6606 = vmatmul.mubr.bf16.gmra.mrb[120].mxu1 %v29287_v63  ;;  %5106 = vmatprep.subr.bf16.mxu0 %v23141_v37 }
 0x3a5   : > { %6615 = vmatprep.mubr.bf16.mxu1 %v22509_v3  ;;  %6675 = vmatpush1.bf16.msra.mxu1 %v22931_v26  ;;  %v29288_v26 = vld [vmem:[#allocation19_spill] sm:$0xff] }
 0x3a6   : > { %6676 = vmatprep.subr.bf16.mxu1 %v22937_v44  ;;  %v23199_v44 = vld [vmem:[%s28855_s5 + $0x380] ss:$8 sps:$4 sm:$0xff]  }
 0x3a7   : > { %5107 = vmatpush1.bf16.msra.mxu0 %v23150_v11 }
 0x3a8   : > { %5108 = vmatprep.subr.bf16.mxu0 %v23158_v22 }
 0x3a9   : > { %6677 = vmatpush1.bf16.msra.mxu1 %v22953_v25  ;;  %v23190_v25 = vld [vmem:[%s28855_s5 + $0x384] ss:$8 sps:$4 sm:$0xff]  }
 0x3aa   : > { %4732 = vmatmul.mubr.bf16.gmra.mrb[124].mxu0 %v22549_v34  ;;  %6678 = vmatprep.subr.bf16.mxu1 %v22960_v27  ;;  %v23205_v27 = vld [vmem:[%s28855_s5 + $0x394] ss:$8 sps:$4 sm:$0xff]  }
 0x3ab   : > { %5109 = vmatpush1.bf16.msra.mxu0 %v23167_v41  ;;  %4741 = vmatprep.mubr.bf16.mxu0 %v22421_v0 }
 0x3ac   : > { %6616 = vmatmul.mubr.bf16.gmra.mrb[124].mxu1 %v29288_v26  ;;  %5110 = vmatprep.subr.bf16.mxu0 %v23173_v57 }
 0x3ad   : > { %6625 = vmatprep.mubr.bf16.mxu1 %v22565_v48  ;;  %6679 = vmatpush1.bf16.msra.mxu1 %v22971_v19  ;;  %v23214_v19 = vld [vmem:[%s28855_s5 + $0x390] ss:$8 sps:$4 sm:$0xff]  }
 0x3ae   : > { %6680 = vmatprep.subr.bf16.mxu1 %v22977_v36  ;;  %v29290_v36 = vld [vmem:[#allocation22_spill] sm:$0xff] }
 0x3af   : > { %5111 = vmatpush1.bf16.msra.mxu0 %v23182_v32 }
 0x3b0   : > { %5112 = vmatprep.subr.bf16.mxu0 %v23190_v25 }
 0x3b1   : > { %6681 = vmatpush1.bf16.msra.mxu1 %v22993_v35  ;;  %v23222_v35 = vld [vmem:[%s28855_s5 + $0x3a4] ss:$8 sps:$4 sm:$0xff]  }
 0x3b2   : > { %4742 = vmatmul.mubr.bf16.gmra.mrb[128].mxu0 %v29289_v17  ;;  %7092 = vmatprep.subr.bf16.mxu1 %v23000_v18  ;;  %v23229_v18 = vld [vmem:[%s28855_s5 + $0x3a0] ss:$8 sps:$4 sm:$0xff]  }
 0x3b3   : > { %5113 = vmatpush1.bf16.msra.mxu0 %v23199_v44  ;;  %4751 = vmatprep.mubr.bf16.mxu0 %v22421_v0 }
 0x3b4   : > { %6626 = vmatmul.mubr.bf16.gmra.mrb[128].mxu1 %v29290_v36  ;;  %5114 = vmatprep.subr.bf16.mxu0 %v23205_v27 }
 0x3b5   : > { %6635 = vmatprep.mubr.bf16.mxu1 %v22621_v10  ;;  %v23334_v10 = vld [vmem:[%s28855_s5 + $0x424] ss:$8 sps:$4 sm:$0xff]  }
 0x3b7   : > { %5115 = vmatpush1.bf16.msra.mxu0 %v23214_v19 }
 0x3b8   : > { %5116 = vmatprep.subr.bf16.mxu0 %v23222_v35 }
 0x3ba   : > { %4752 = vmatmul.mubr.bf16.gmra.mrb[132].mxu0 %v29291_v7  ;;  %v29297_v7 = vld [vmem:[#allocation31_spill] sm:$0xff] }
 0x3bb   : > { %5117 = vmatpush1.bf16.msra.mxu0 %v23229_v18  ;;  %4761 = vmatprep.mubr.bf16.mxu0 %v22421_v0 }
 0x3bc   : > { %6636 = vmatmul.mubr.bf16.gmra.mrb[132].mxu1 %v29292_v24  ;;  %5118 = vmatprep.subr.bf16.mxu0 %v23235_v62  ;;  %v23306_v24 = vld [vmem:[%s28855_s5 + $0x404] ss:$8 sps:$4 sm:$0xff]  }
 0x3bd   : > { %6645 = vmatprep.mubr.bf16.mxu1 %v22677_v2  ;;  %v29295_v2 = vld [vmem:[#allocation30_spill] sm:$0xff] }
 0x3bf   : > { %5119 = vmatpush1.bf16.msra.mxu0 %v23242_v55 }
 0x3c0   : > { %5120 = vmatprep.subr.bf16.mxu0 %v23250_v30 }
 0x3c2   : > { %4762 = vmatmul.mubr.bf16.gmra.mrb[136].mxu0 %v22715_v20  ;;  %v29294_v20 = vld [vmem:[#allocation29_spill] sm:$0xff] }
 0x3c3   : > { %5121 = vmatpush1.bf16.msra.mxu0 %v23257_v50  ;;  %4771 = vmatprep.mubr.bf16.mxu0 %v22421_v0 }
 0x3c4   : > { %6646 = vmatmul.mubr.bf16.gmra.mrb[136].mxu1 %v29293_v60  ;;  %5122 = vmatprep.subr.bf16.mxu0 %v23263_v15  ;;  %v23291_v60 = vld [vmem:[%s28855_s5 + $0x3f4] ss:$8 sps:$4 sm:$0xff]  }
 0x3c5   : > { %6655 = vmatprep.mubr.bf16.mxu1 %v22729_v61  ;;  %v23299_v61 = vld [vmem:[%s28855_s5 + $0x3f0] ss:$8 sps:$4 sm:$0xff]  }
 0x3c7   : > { %5123 = vmatpush1.bf16.msra.mxu0 %v23270_v56 }
 0x3c8   : > { %5124 = vmatprep.subr.bf16.mxu0 %v23278_v31 }
 0x3ca   : > { %4772 = vmatmul.mubr.bf16.gmra.mrb[140].mxu0 %v29294_v20  ;;  %v29296_v20 = vld [vmem:[#allocation9_spill] sm:$0xff] }
 0x3cb   : > { %5125 = vmatpush1.bf16.msra.mxu0 %v23285_v4  ;;  %5128 = vmatprep.mubr.bf16.mxu0 %v22180_v13  ;;  %v23313_v13 = vld [vmem:[%s28855_s5 + $0x400] ss:$8 sps:$4 sm:$0xff]  }
 0x3cc   : > { %6656 = vmatmul.mubr.bf16.gmra.mrb[140].mxu1 %v29295_v2  ;;  %5126 = vmatprep.subr.bf16.mxu0 %v23291_v60  ;;  %v23319_v2 = vld [vmem:[%s28855_s5 + $0x414] ss:$8 sps:$4 sm:$0xff]  }
 0x3cd   : > { %6698 = vmatprep.mubr.bf16.mxu1 %v22421_v0  ;;  %v23327_v0 = vld [vmem:[%s28855_s5 + $0x410] ss:$8 sps:$4 sm:$0xff]  }
 0x3cf   : > { %5127 = vmatpush1.bf16.msra.mxu0 %v23299_v61 }
 0x3d0   : > { %5209 = vmatprep.subr.bf16.mxu0 %v23306_v24 }
 0x3d2   : > { %5129 = vmatmul.mubr.bf16.vlgmr.msra.gmra.mrb[112].mxu0 %v29267_v1  ;;  %v23337_v1 = vld [vmem:[#allocation2] sm:$0xff] }
 0x3d3   : > { %5138 = vmatprep.mubr.bf16.mxu0 %v29296_v20  ;;  %5210 = vmatpush1.bf16.msra.mxu0 %v23313_v13  ;;  %v23345_v20 = vld [vmem:[%s28855_s5 + $0x420] ss:$8 sps:$4 sm:$0xff]  }
 0x3d4   : > { %6699 = vmatmul.mubr.bf16.vlgmr.msra.gmra.mrb[112].mxu1 %v29297_v7  ;;  %5211 = vmatprep.subr.bf16.mxu0 %v23319_v2  ;;  %v23351_v7 = vld [vmem:[%s28855_s5 + $0x434] ss:$8 sps:$4 sm:$0xff]  }
 0x3d5   : > { %7093 = vmatpush1.bf16.msra.mxu1 %v23072_v16  ;;  %6708 = vmatprep.mubr.bf16.mxu1 %v23337_v1  ;;  %v23361_v16 = vld [vmem:[%s28855_s5 + $0x430] ss:$8 sps:$4 sm:$0xff]  }
 0x3d6   : > { %7094 = vmatprep.subr.bf16.mxu1 %v23077_v21  ;;  %v29298_v21 = vld [vmem:[#allocation7_spill] sm:$0xff] }
 0x3d7   : > { %5212 = vmatpush1.bf16.msra.mxu0 %v23327_v0 }
 0x3d8   : > { %5213 = vmatprep.subr.bf16.mxu0 %v23334_v10 }
 0x3d9   : > { %7095 = vmatpush1.bf16.msra.mxu1 %v23086_v12  ;;  %v23368_v12 = vld [vmem:[%s28855_s5 + $0x444] ss:$8 sps:$4 sm:$0xff]  }
 0x3da   : > { %5139 = vmatmul.mubr.bf16.gmra.mrb[116].mxu0 %v29271_v38  ;;  %7096 = vmatprep.subr.bf16.mxu1 %v23094_v9  ;;  %v23383_v38 = vld [vmem:[%s28855_s5 + $0x454] ss:$8 sps:$4 sm:$0xff]   ;;  %v23393_v9 = vld [vmem:[%s28855_s5 + $0x450] ss:$8 sps:$4 sm:$0xff]  }
 0x3db   : > { %5148 = vmatprep.mubr.bf16.mxu0 %v22272_v42  ;;  %5214 = vmatpush1.bf16.msra.mxu0 %v23345_v20  ;;  %v23377_v42 = vld [vmem:[%s28855_s5 + $0x440] ss:$8 sps:$4 sm:$0xff]  }
 0x3dc   : > { %6709 = vmatmul.mubr.bf16.gmra.mrb[116].mxu1 %v29298_v21  ;;  %5215 = vmatprep.subr.bf16.mxu0 %v23351_v7 }
 0x3dd   : > { %7097 = vmatpush1.bf16.msra.mxu1 %v23103_v59  ;;  %6718 = vmatprep.mubr.bf16.mxu1 %v23337_v1  ;;  %v29299_v59 = vld [vmem:[#allocation8_spill] sm:$0xff] }
 0x3de   : > { %7098 = vmatprep.subr.bf16.mxu1 %v23109_v5  ;;  %v23400_v5 = vld [vmem:[%s28855_s5 + $0x464] ss:$8 sps:$4 sm:$0xff]  }
 0x3df   : > { %5216 = vmatpush1.bf16.msra.mxu0 %v23361_v16 }
 0x3e0   : > { %5217 = vmatprep.subr.bf16.mxu0 %v23368_v12 }
 0x3e1   : > { %7099 = vmatpush1.bf16.msra.mxu1 %v23118_v40  ;;  %v23425_v40 = vld [vmem:[%s28855_s5 + $0x470] ss:$8 sps:$4 sm:$0xff]  }
 0x3e2   : > { %5149 = vmatmul.mubr.bf16.gmra.mrb[120].mxu0 %v29275_v46  ;;  %7100 = vmatprep.subr.bf16.mxu1 %v23126_v28  ;;  %v23415_v46 = vld [vmem:[%s28855_s5 + $0x474] ss:$8 sps:$4 sm:$0xff]   ;;  %v29300_v28 = vld [vmem:[#allocation10_spill] sm:$0xff] }
 0x3e3   : > { %5158 = vmatprep.mubr.bf16.mxu0 %v22318_v33  ;;  %5218 = vmatpush1.bf16.msra.mxu0 %v23377_v42  ;;  %v23409_v33 = vld [vmem:[%s28855_s5 + $0x460] ss:$8 sps:$4 sm:$0xff]  }
 0x3e4   : > { %6719 = vmatmul.mubr.bf16.gmra.mrb[120].mxu1 %v29299_v59  ;;  %5219 = vmatprep.subr.bf16.mxu0 %v23383_v38 }
 0x3e5   : > { %7101 = vmatpush1.bf16.msra.mxu1 %v23135_v54  ;;  %6728 = vmatprep.mubr.bf16.mxu1 %v23337_v1  ;;  %v23592_v54 = vld [vmem:[%s28857_s7 + $0x384] ss:$8 sps:$4 sm:$0xff]  }
 0x3e6   : > { %7102 = vmatprep.subr.bf16.mxu1 %v23141_v37  ;;  %v29305_v37 = vld [vmem:[#allocation24_spill] sm:$0xff] }
 0x3e7   : > { %5220 = vmatpush1.bf16.msra.mxu0 %v23393_v9 }
 0x3e8   : > { %5221 = vmatprep.subr.bf16.mxu0 %v23400_v5 }
 0x3e9   : > { %7103 = vmatpush1.bf16.msra.mxu1 %v23150_v11  ;;  %v23601_v11 = vld [vmem:[%s28857_s7 + $0x380] ss:$8 sps:$4 sm:$0xff]  }
 0x3ea   : > { %5159 = vmatmul.mubr.bf16.gmra.mrb[124].mxu0 %v29278_v49  ;;  %7104 = vmatprep.subr.bf16.mxu1 %v23158_v22  ;;  %v23569_v49 = vld [vmem:[%s28857_s7 + $0x360] ss:$8 sps:$4 sm:$0xff]  }
 0x3eb   : > { %5168 = vmatprep.mubr.bf16.mxu0 %v22354_v8  ;;  %5222 = vmatpush1.bf16.msra.mxu0 %v23409_v33  ;;  %v29301_v8 = vld [vmem:[#allocation11_spill] sm:$0xff]  ;;  %v29306_v22 = vld [vmem:[#allocation26_spill] sm:$0xff] }
 0x3ec   : > { %6729 = vmatmul.mubr.bf16.gmra.mrb[124].mxu1 %v29300_v28  ;;  %5223 = vmatprep.subr.bf16.mxu0 %v23415_v46 }
 0x3ed   : > { %7105 = vmatpush1.bf16.msra.mxu1 %v23167_v41  ;;  %6738 = vmatprep.mubr.bf16.mxu1 %v23337_v1  ;;  %v23617_v41 = vld [vmem:[%s28857_s7 + $0x390] ss:$8 sps:$4 sm:$0xff]  }
 0x3ee   : > { %7106 = vmatprep.subr.bf16.mxu1 %v23173_v57  ;;  %v29307_v57 = vld [vmem:[#allocation28_spill] sm:$0xff] }
 0x3ef   : > { %5224 = vmatpush1.bf16.msra.mxu0 %v23425_v40 }
 0x3f1   : > { %7107 = vmatpush1.bf16.msra.mxu1 %v23182_v32  ;;  %v23624_v32 = vld [vmem:[%s28857_s7 + $0x3a4] ss:$8 sps:$4 sm:$0xff]  }
 0x3f2   : > { %5169 = vmatmul.mubr.bf16.gmra.mrb[128].mxu0 %v29281_v51  ;;  %7108 = vmatprep.subr.bf16.mxu1 %v23190_v25  ;;  %v23575_v51 = vld [vmem:[%s28857_s7 + $0x374] ss:$8 sps:$4 sm:$0xff]   ;;  %v23631_v25 = vld [vmem:[%s28857_s7 + $0x3a0] ss:$8 sps:$4 sm:$0xff]  }
 0x3f3   : > { %5178 = vmatprep.mubr.bf16.mxu0 %v22374_v6  ;;  %v23465_v6 = vld [vmem:[%s28857_s7 + $0x304] ss:$8 sps:$4 sm:$0xff]  }
 0x3f4   : > { %6739 = vmatmul.mubr.bf16.gmra.mrb[128].mxu1 %v29301_v8  ;;  %8457 = vmatprep.subr.bf16.mxu0 %v23465_v6 }
 0x3f5   : > { %7109 = vmatpush1.bf16.msra.mxu1 %v23199_v44  ;;  %6748 = vmatprep.mubr.bf16.mxu1 %v23337_v1  ;;  %v23637_v44 = vld [vmem:[%s28857_s7 + $0x3b4] ss:$8 sps:$4 sm:$0xff]  }
 0x3f6   : > { %7110 = vmatprep.subr.bf16.mxu1 %v23205_v27  ;;  %v29309_v27 = vld [vmem:[#allocation29_spill] sm:$0xff] }
 0x3f9   : > { %7111 = vmatpush1.bf16.msra.mxu1 %v23214_v19  ;;  %v29310_v19 = vld [vmem:[#allocation30_spill] sm:$0xff] }
 0x3fa   : > { %5179 = vmatmul.mubr.bf16.gmra.mrb[132].mxu0 %v29284_v52  ;;  %7112 = vmatprep.subr.bf16.mxu1 %v23222_v35  ;;  %v29303_v52 = vld [vmem:[#allocation23_spill] sm:$0xff] }
 0x3fb   : > { %5188 = vmatprep.mubr.bf16.mxu0 %v29250_v14  ;;  %v23560_v14 = vld [vmem:[%s28857_s7 + $0x364] ss:$8 sps:$4 sm:$0xff]   ;;  %v29312_v35 = vld [vmem:[#allocation31_spill] sm:$0xff] }
 0x3fc   : > { %6749 = vmatmul.mubr.bf16.gmra.mrb[132].mxu1 %v23015_v29 }
 0x3fd   : > { %7113 = vmatpush1.bf16.msra.mxu1 %v23229_v18  ;;  %6758 = vmatprep.mubr.bf16.mxu1 %v23337_v1  ;;  %v29313_v18 = vld [vmem:[#allocation32_spill] sm:$0xff] }
 0x3fe   : > { %7114 = vmatprep.subr.bf16.mxu1 %v23235_v62  ;;  %v20097_v62 = vld [vmem:[%s28857_s7 + $0x3c0] ss:$8 sps:$4 sm:$0xff]  }
 0x401   : > { %7115 = vmatpush1.bf16.msra.mxu1 %v23242_v55  ;;  %v20102_v55 = vld [vmem:[%s28857_s7 + $0x3d4] ss:$8 sps:$4 sm:$0xff]  }
 0x402   : > { %5189 = vmatmul.mubr.bf16.gmra.mrb[136].mxu0 %v29286_v23  ;;  %7116 = vmatprep.subr.bf16.mxu1 %v23250_v30  ;;  %v29304_v23 = vld [vmem:[#allocation25_spill] sm:$0xff] }
 0x403   : > { %5198 = vmatprep.mubr.bf16.mxu0 %v22418_v58  ;;  %v23474_v58 = vld [vmem:[%s28857_s7 + $0x300] ss:$8 sps:$4 sm:$0xff]   ;;  %v20105_v30 = vld [vmem:[%s28857_s7 + $0x3e4] ss:$8 sps:$4 sm:$0xff]  }
 0x404   : > { %6759 = vmatmul.mubr.bf16.gmra.mrb[136].mxu1 %v23031_v47 }
 0x405   : > { %7117 = vmatpush1.bf16.msra.mxu1 %v23257_v50  ;;  %6768 = vmatprep.mubr.bf16.mxu1 %v23337_v1  ;;  %v20108_v50 = vld [vmem:[%s28857_s7 + $0x3f4] ss:$8 sps:$4 sm:$0xff]  }
 0x406   : > { %7118 = vmatprep.subr.bf16.mxu1 %v23263_v15  ;;  %v20111_v15 = vld [vmem:[%s28857_s7 + $0x404] ss:$8 sps:$4 sm:$0xff]  }
 0x409   : > { %7119 = vmatpush1.bf16.msra.mxu1 %v23270_v56  ;;  %v29314_v56 = vld [vmem:[#allocation12_spill] sm:$0xff] }
 0x40a   : > { %5199 = vmatmul.mubr.bf16.gmra.mrb[140].mxu0 %v22459_v43  ;;  %7120 = vmatprep.subr.bf16.mxu1 %v23278_v31  ;;  %v23479_v43 = vld [vmem:[%s28857_s7 + $0x314] ss:$8 sps:$4 sm:$0xff]   ;;  %v23585_v31 = vld [vmem:[%s28857_s7 + $0x370] ss:$8 sps:$4 sm:$0xff]  }
 0x40b   : > { %5241 = vmatprep.mubr.bf16.mxu0 %v23337_v1 }
 0x40c   : > { %6769 = vmatmul.mubr.bf16.gmra.mrb[140].mxu1 %v23047_v45 }
 0x40d   : > { %7121 = vmatpush1.bf16.msra.mxu1 %v23285_v4  ;;  %7124 = vmatprep.mubr.bf16.mxu1 %v22453_v39  ;;  %v23496_v39 = vld [vmem:[%s28857_s7 + $0x324] ss:$8 sps:$4 sm:$0xff]  }
 0x40e   : > { %7122 = vmatprep.subr.bf16.mxu1 %v23291_v60  ;;  %v23489_v60 = vld [vmem:[%s28857_s7 + $0x310] ss:$8 sps:$4 sm:$0xff]   ;;  %v29302_v4 = vld [vmem:[#allocation21_spill] sm:$0xff] }
 0x411   : > { %7123 = vmatpush1.bf16.msra.mxu1 %v23299_v61  ;;  %v23511_v61 = vld [vmem:[%s28857_s7 + $0x334] ss:$8 sps:$4 sm:$0xff]  }
 0x412   : > { %5242 = vmatmul.mubr.bf16.vlgmr.msra.gmra.mrb[112].mxu0 %v22493_v53  ;;  %7205 = vmatprep.subr.bf16.mxu1 %v23306_v24  ;;  %v23505_v53 = vld [vmem:[%s28857_s7 + $0x320] ss:$8 sps:$4 sm:$0xff]  }
 0x413   : > { %5251 = vmatprep.mubr.bf16.mxu0 %v23337_v1  ;;  %8458 = vmatpush1.bf16.msra.mxu0 %v23474_v58  ;;  %v20103_v24 = vld [vmem:[%s28857_s7 + $0x3e0] ss:$8 sps:$4 sm:$0xff]  }
 0x414   : > { %7125 = vmatmul.mubr.bf16.vlgmr.msra.gmra.mrb[112].mxu1 %v29287_v63  ;;  %8459 = vmatprep.subr.bf16.mxu0 %v23479_v43  ;;  %v23607_v63 = vld [vmem:[%s28857_s7 + $0x394] ss:$8 sps:$4 sm:$0xff]  }
 0x415   : > { %7206 = vmatpush1.bf16.msra.mxu1 %v23313_v13  ;;  %7134 = vmatprep.mubr.bf16.mxu1 %v22509_v3  ;;  %v23521_v3 = vld [vmem:[%s28857_s7 + $0x330] ss:$8 sps:$4 sm:$0xff]  }
 0x416   : > { %7207 = vmatprep.subr.bf16.mxu1 %v23319_v2  ;;  %v23528_v2 = vld [vmem:[%s28857_s7 + $0x344] ss:$8 sps:$4 sm:$0xff]  }
 0x417   : > { %8460 = vmatpush1.bf16.msra.mxu0 %v23489_v60 }
 0x418   : > { %8461 = vmatprep.subr.bf16.mxu0 %v23496_v39 }
 0x419   : > { %7208 = vmatpush1.bf16.msra.mxu1 %v23327_v0 }
 0x41a   : > { %5252 = vmatmul.mubr.bf16.gmra.mrb[116].mxu0 %v22549_v34  ;;  %7209 = vmatprep.subr.bf16.mxu1 %v23334_v10  ;;  %v23537_v34 = vld [vmem:[%s28857_s7 + $0x340] ss:$8 sps:$4 sm:$0xff]   ;;  %v23543_v10 = vld [vmem:[%s28857_s7 + $0x354] ss:$8 sps:$4 sm:$0xff]  }
 0x41b   : > { %5261 = vmatprep.mubr.bf16.mxu0 %v23337_v1  ;;  %8462 = vmatpush1.bf16.msra.mxu0 %v23505_v53 }
 0x41c   : > { %7135 = vmatmul.mubr.bf16.gmra.mrb[116].mxu1 %v29288_v26  ;;  %8463 = vmatprep.subr.bf16.mxu0 %v23511_v61  ;;  %v29308_v26 = vld [vmem:[#allocation27_spill] sm:$0xff] }
 0x41d   : > { %7144 = vmatprep.mubr.bf16.mxu1 %v22565_v48  ;;  %7210 = vmatpush1.bf16.msra.mxu1 %v23345_v20  ;;  %v23553_v48 = vld [vmem:[%s28857_s7 + $0x350] ss:$8 sps:$4 sm:$0xff]   ;;  %v3704_v20 = vld [vmem:[%s28856_s6] sm:$0x3] }
 0x41e   : > { %7211 = vmatprep.subr.bf16.mxu1 %v23351_v7  ;;  %v20099_v7 = vld [vmem:[%s28857_s7 + $0x3c4] ss:$8 sps:$4 sm:$0xff]  }
 0x41f   : > { %8464 = vmatpush1.bf16.msra.mxu0 %v23521_v3 }
 0x420   : > { %8465 = vmatprep.subr.bf16.mxu0 %v23528_v2 }
 0x421   : > { %7212 = vmatpush1.bf16.msra.mxu1 %v23361_v16 }
 0x422   : > { %5262 = vmatmul.mubr.bf16.gmra.mrb[120].mxu0 %v29289_v17  ;;  %7213 = vmatprep.subr.bf16.mxu1 %v23368_v12  ;;  %v23645_v17 = vld [vmem:[%s28857_s7 + $0x3b0] ss:$8 sps:$4 sm:$0xff]  }
 0x423   : > { %5271 = vmatprep.mubr.bf16.mxu0 %v23337_v1  ;;  %8466 = vmatpush1.bf16.msra.mxu0 %v23537_v34 }
 0x424   : > { %7145 = vmatmul.mubr.bf16.gmra.mrb[120].mxu1 %v29290_v36  ;;  %8467 = vmatprep.subr.bf16.mxu0 %v23543_v10  ;;  %v29311_v36 = vld [vmem:[#allocation15_spill] sm:$0xff] }
 0x425   : > { %7154 = vmatprep.mubr.bf16.mxu1 %v29302_v4  ;;  %7214 = vmatpush1.bf16.msra.mxu1 %v23377_v42 }
 0x426   : > { %7215 = vmatprep.subr.bf16.mxu1 %v23383_v38 }
 0x427   : > { %8468 = vmatpush1.bf16.msra.mxu0 %v23553_v48 }
 0x428   : > { %8469 = vmatprep.subr.bf16.mxu0 %v23560_v14 }
 0x429   : > { %7216 = vmatpush1.bf16.msra.mxu1 %v23393_v9 }
 0x42a   : > { %5272 = vmatmul.mubr.bf16.gmra.mrb[124].mxu0 %v29303_v52  ;;  %7217 = vmatprep.subr.bf16.mxu1 %v23400_v5 }
 0x42b   : > { %5281 = vmatprep.mubr.bf16.mxu0 %v23337_v1  ;;  %8470 = vmatpush1.bf16.msra.mxu0 %v23569_v49 }
 0x42c   : > { %7155 = vmatmul.mubr.bf16.gmra.mrb[124].mxu1 %v29304_v23  ;;  %8471 = vmatprep.subr.bf16.mxu0 %v23575_v51 }
 0x42d   : > { %7164 = vmatprep.mubr.bf16.mxu1 %v29305_v37  ;;  %7218 = vmatpush1.bf16.msra.mxu1 %v23409_v33 }
 0x42e   : > { %7219 = vmatprep.subr.bf16.mxu1 %v23415_v46 }
 0x42f   : > { %8472 = vmatpush1.bf16.msra.mxu0 %v23585_v31 }
 0x430   : > { %8473 = vmatprep.subr.bf16.mxu0 %v23592_v54 }
 0x431   : > { %7220 = vmatpush1.bf16.msra.mxu1 %v23425_v40 }
 0x432   : > { %5282 = vmatmul.mubr.bf16.gmra.mrb[128].mxu0 %v29306_v22  ;;  %10828 = vmatprep.subr.bf16.mxu1 %v23465_v6 }
 0x433   : > { %5291 = vmatprep.mubr.bf16.mxu0 %v23337_v1  ;;  %8474 = vmatpush1.bf16.msra.mxu0 %v23601_v11 }
 0x434   : > { %7165 = vmatmul.mubr.bf16.gmra.mrb[128].mxu1 %v29307_v57  ;;  %8475 = vmatprep.subr.bf16.mxu0 %v23607_v63 }
 0x435   : > { %7174 = vmatprep.mubr.bf16.mxu1 %v29308_v26 }
 0x437   : > { %8476 = vmatpush1.bf16.msra.mxu0 %v23617_v41 }
 0x438   : > { %8477 = vmatprep.subr.bf16.mxu0 %v23624_v32 }
 0x43a   : > { %5292 = vmatmul.mubr.bf16.gmra.mrb[132].mxu0 %v29309_v27 }
 0x43b   : > { %5301 = vmatprep.mubr.bf16.mxu0 %v23337_v1  ;;  %8478 = vmatpush1.bf16.msra.mxu0 %v23631_v25 }
 0x43c   : > { %7175 = vmatmul.mubr.bf16.gmra.mrb[132].mxu1 %v29310_v19  ;;  %8479 = vmatprep.subr.bf16.mxu0 %v23637_v44 }
 0x43d   : > { %7184 = vmatprep.mubr.bf16.mxu1 %v29311_v36  ;;  %v23777_v36 = vld [vmem:[%s28857_s7 + $0x414] ss:$8 sps:$4 sm:$0xff]  }
 0x43f   : > { %8480 = vmatpush1.bf16.msra.mxu0 %v23645_v17 }
 0x440   : > { %8481 = vmatprep.subr.bf16.mxu0 %v20099_v7 }
 0x442   : > { %5302 = vmatmul.mubr.bf16.gmra.mrb[136].mxu0 %v29312_v35 }
 0x443   : > { %5311 = vmatprep.mubr.bf16.mxu0 %v23337_v1  ;;  %8482 = vmatpush1.bf16.msra.mxu0 %v20097_v62 }
 0x444   : > { %7185 = vmatmul.mubr.bf16.gmra.mrb[136].mxu1 %v29313_v18  ;;  %8483 = vmatprep.subr.bf16.mxu0 %v20102_v55 }
 0x445   : > { %7194 = vmatprep.mubr.bf16.mxu1 %v23337_v1 }
 0x44a   : > { %5312 = vmatmul.mubr.bf16.gmra.mrb[140].mxu0 %v29298_v21 }
 0x44c   : > { %7195 = vmatmul.mubr.bf16.gmra.mrb[140].mxu1 %v23337_v1 }
 0x44d   : > { %7237 = vmatprep.mubr.bf16.mxu1 %v23337_v1 }
 0x454   : > { %7238 = vmatmul.mubr.bf16.vlgmr.msra.gmra.mrb[112].mxu1 %v29299_v59 }
 0x455   : > { %7247 = vmatprep.mubr.bf16.mxu1 %v23337_v1  ;;  %10829 = vmatpush1.bf16.msra.mxu1 %v23474_v58 }
 0x456   : > { %10830 = vmatprep.subr.bf16.mxu1 %v23479_v43 }
 0x459   : > { %10831 = vmatpush1.bf16.msra.mxu1 %v23489_v60 }
 0x45a   : > { %10832 = vmatprep.subr.bf16.mxu1 %v23496_v39 }
 0x45c   : > { %7248 = vmatmul.mubr.bf16.gmra.mrb[116].mxu1 %v29300_v28 }
 0x45d   : > { %7257 = vmatprep.mubr.bf16.mxu1 %v23337_v1  ;;  %10833 = vmatpush1.bf16.msra.mxu1 %v23505_v53 }
 0x45e   : > { %10834 = vmatprep.subr.bf16.mxu1 %v23511_v61 }
 0x461   : > { %10835 = vmatpush1.bf16.msra.mxu1 %v23521_v3 }
 0x462   : > { %10836 = vmatprep.subr.bf16.mxu1 %v23528_v2 }
 0x464   : > { %7258 = vmatmul.mubr.bf16.gmra.mrb[120].mxu1 %v29301_v8 }
 0x465   : > { %7267 = vmatprep.mubr.bf16.mxu1 %v23337_v1  ;;  %10837 = vmatpush1.bf16.msra.mxu1 %v23537_v34 }
 0x466   : > { %10838 = vmatprep.subr.bf16.mxu1 %v23543_v10 }
 0x469   : > { %10839 = vmatpush1.bf16.msra.mxu1 %v23553_v48 }
 0x46a   : > { %10840 = vmatprep.subr.bf16.mxu1 %v23560_v14 }
 0x46c   : > { %7268 = vmatmul.mubr.bf16.gmra.mrb[124].mxu1 %v23015_v29  ;;  %v20100_v29 = vld [vmem:[%s28857_s7 + $0x3d0] ss:$8 sps:$4 sm:$0xff]  }
 0x46d   : > { %7277 = vmatprep.mubr.bf16.mxu1 %v23337_v1  ;;  %10841 = vmatpush1.bf16.msra.mxu1 %v23569_v49 }
 0x46e   : > { %10842 = vmatprep.subr.bf16.mxu1 %v23575_v51  ;;  %8484 = vmatpush1.bf16.msra.mxu0 %v20100_v29 }
 0x46f   : > { %8485 = vmatprep.subr.bf16.mxu0 %v20105_v30 }
 0x471   : > { %10843 = vmatpush1.bf16.msra.mxu1 %v23585_v31 }
 0x472   : > { %10844 = vmatprep.subr.bf16.mxu1 %v23592_v54  ;;  %8486 = vmatpush1.bf16.msra.mxu0 %v20103_v24 }
 0x473   : > { %8487 = vmatprep.subr.bf16.mxu0 %v20108_v50 }
 0x474   : > { %7278 = vmatmul.mubr.bf16.gmra.mrb[128].mxu1 %v23031_v47  ;;  %v20106_v47 = vld [vmem:[%s28857_s7 + $0x3f0] ss:$8 sps:$4 sm:$0xff]  }
 0x475   : > { %7287 = vmatprep.mubr.bf16.mxu1 %v23337_v1  ;;  %10845 = vmatpush1.bf16.msra.mxu1 %v23601_v11 }
 0x476   : > { %10846 = vmatprep.subr.bf16.mxu1 %v23607_v63  ;;  %8488 = vmatpush1.bf16.msra.mxu0 %v20106_v47 }
 0x477   : > { %8570 = vmatprep.subr.bf16.mxu0 %v20111_v15 }
 0x479   : > { %10847 = vmatpush1.bf16.msra.mxu1 %v23617_v41 }
 0x47a   : > { %10848 = vmatprep.subr.bf16.mxu1 %v23624_v32 }
 0x47c   : > { %7288 = vmatmul.mubr.bf16.gmra.mrb[132].mxu1 %v23047_v45  ;;  %v28950_v45 = vlaneseq }
 0x47d   : > { %7297 = vmatprep.mubr.bf16.mxu1 %v23337_v1  ;;  %10849 = vmatpush1.bf16.msra.mxu1 %v23631_v25  ;;  %v23766_v25 = vld [vmem:[%s28857_s7 + $0x400] ss:$8 sps:$4 sm:$0xff]  }
 0x47e   : > { %10850 = vmatprep.subr.bf16.mxu1 %v23637_v44  ;;  %v23724_v13 = vshrl.u32 %v28950_v45, 7 }
 0x480   : > { %29315 = vst [vmem:[#allocation13_spill] sm:$0xff] %v23724_v13  ;;  %v23727_v0 = vsub.s32 0, %v23724_v13  ;;  %v23733_v16 = vsub.s32 1, %v23724_v13 }
 0x481   : > { %10851 = vmatpush1.bf16.msra.mxu1 %v23645_v17  ;;  %v24596_v17 = vld [vmem:[%s28857_s7] ss:$8 sps:$4 sm:$0xff]  }
 0x482   : > { %10852 = vmatprep.subr.bf16.mxu1 %v20099_v7  ;;  %29316 = vst [vmem:[#allocation14_spill] sm:$0xff] %v23727_v0  ;;  %29317 = vst [vmem:[#allocation16_spill] sm:$0xff] %v23733_v16  ;;  %v23739_v21 = vrot.slane %v3704_v20, %v23733_v16 }
 0x484   : > { %7298 = vmatmul.mubr.bf16.gmra.mrb[136].mxu1 %v29314_v56  ;;  %v23796_v56 = vld [vmem:[%s28857_s7 + $0x410] ss:$8 sps:$4 sm:$0xff]  }
 0x485   : > { %7307 = vmatprep.mubr.bf16.mxu1 %v23337_v1  ;;  %10853 = vmatpush1.bf16.msra.mxu1 %v20097_v62 }
 0x486   : > { %10854 = vmatprep.subr.bf16.mxu1 %v20102_v55 }
 0x489   : > { %10855 = vmatpush1.bf16.msra.mxu1 %v20100_v29 }
 0x48a   : > { %10856 = vmatprep.subr.bf16.mxu1 %v20105_v30 }
 0x48c   : > { %7308 = vmatmul.mubr.bf16.gmra.mrb[140].mxu1 %v23337_v1  ;;  %v23736_v1 = vrot.slane %v3704_v20, %v23727_v0 }
 0x48d   : > { %10857 = vmatpush1.bf16.msra.mxu1 %v20103_v24 }
 0x48e   : > { %10858 = vmatprep.subr.bf16.mxu1 %v20108_v50 }
 0x491   : > { %10859 = vmatpush1.bf16.msra.mxu1 %v20106_v47 }
 0x492   : > { %10941 = vmatprep.subr.bf16.mxu1 %v20111_v15 }
 0x4e5   : > { %v5243_v12 = vpop.f32.mrb[112].mxu0 }
 0x4e6   : > { %v5365_v42 = vadd.f32 %v23736_v1, %v5243_v12  ;;  %v5245_v38 = vpop.f32.mrb[113].mxu0 }
 0x4e7   : > { %v5366_v9 = vadd.f32 %v23739_v21, %v5245_v38  ;;  %v5247_v59 = vpop.f32.mrb[114].mxu0 }
 0x4e8   : > { %v5367_v5 = vadd.f32 %v23736_v1, %v5247_v59  ;;  %v5249_v33 = vpop.f32.mrb[115].mxu0  ;;  %v5397_v40 = vmax.f32 %v5365_v42, 0.0 }
 0x4e9   : > { %v5368_v46 = vadd.f32 %v23739_v21, %v5249_v33  ;;  %v5398_v8 = vmax.f32 %v5366_v9, 0.0  ;;  %v23803_v9 = vld [vmem:[%s28857_s7 + $0x424] ss:$8 sps:$4 sm:$0xff]  }
 0x4ea   : > { %v5399_v28 = vmax.f32 %v5367_v5, 0.0 }
 0x4eb   : > { %v5400_v6 = vmax.f32 %v5368_v46, 0.0 }
 0x4ec   : > { %v23745_v58 = vpack.c.bf16 %v5399_v28, %v5397_v40 }
 0x4ed   : > { %v23747_v43 = vpack.c.bf16 %v5400_v6, %v5398_v8  ;;  %v5253_v60 = vpop.f32.mrb[116].mxu0 }
 0x4ee   : > { %29318 = vst [vmem:[#allocation17_spill] sm:$0xff] %v23745_v58  ;;  %v5369_v39 = vadd.f32 %v23736_v1, %v5253_v60  ;;  %v5255_v53 = vpop.f32.mrb[117].mxu0  ;;  %v5446_v61 = vshrl.u32 %v23745_v58, 16  ;;  %v5449_v3 = vshll.u32 %v23745_v58, 16 }
 0x4ef   : > { %29319 = vst [vmem:[#allocation18_spill] sm:$0xff] %v23747_v43  ;;  %v5370_v2 = vadd.f32 %v23739_v21, %v5255_v53  ;;  %v5257_v34 = vpop.f32.mrb[118].mxu0  ;;  %v5453_v10 = vshrl.u32 %v23747_v43, 16  ;;  %v5456_v48 = vshll.u32 %v23747_v43, 16  ;;  %v23815_v53 = vld [vmem:[%s28857_s7 + $0x420] ss:$8 sps:$4 sm:$0xff]  }
 0x4f0   : > { %v5371_v14 = vadd.f32 %v23736_v1, %v5257_v34  ;;  %v5259_v4 = vpop.f32.mrb[119].mxu0  ;;  %v5448_v49 = vrot.slane %v5446_v61, 7  ;;  %v5589_v51 = vrot.slane %v5449_v3, 1  ;;  %v5401_v54 = vmax.f32 %v5369_v39, 0.0  ;;  %v23827_v34 = vld [vmem:[%s28857_s7 + $0x434] ss:$8 sps:$4 sm:$0xff]  }
 0x4f1   : > { %v5372_v52 = vadd.f32 %v23739_v21, %v5259_v4  ;;  %v5455_v31 = vrot.slane %v5453_v10, 7  ;;  %v5591_v23 = vrot.slane %v5456_v48, 1  ;;  %v5402_v22 = vmax.f32 %v5370_v2, 0.0 }
 0x4f2   : > { %v5403_v37 = vmax.f32 %v5371_v14, 0.0  ;;  %v5451_v11 = vor.u32 %v5449_v3, %v5448_v49  ;;  %v23757_v63 = vor.u32 %v5589_v51, %v5446_v61 }
 0x4f3   : > { %v5404_v41 = vmax.f32 %v5372_v52, 0.0  ;;  %v5458_v57 = vor.u32 %v5456_v48, %v5455_v31  ;;  %v23759_v32 = vor.u32 %v5591_v23, %v5453_v10 }
 0x4f4   : > { %29320 = vst [vmem:[#allocation19_spill] sm:$0xff] %v23757_v63  ;;  %v23761_v26 = vpack.c.bf16 %v5403_v37, %v5401_v54  ;;  %v23783_v62 = vsel %vm21450_vm7, 0, %v5451_v11  ;;  %v23846_v11 = vld [vmem:[%s28857_s7 + $0x430] ss:$8 sps:$4 sm:$0xff]   ;;  %v24065_v63 = vld [vmem:[%s28857_s7 + $0x4c0] ss:$8 sps:$4 sm:$0xff]  }
 0x4f5   : > { %29321 = vst [vmem:[#allocation20_spill] sm:$0xff] %v23759_v32  ;;  %v23768_v44 = vpack.c.bf16 %v5404_v41, %v5402_v22  ;;  %v5263_v27 = vpop.f32.mrb[120].mxu0  ;;  %v23772_v19 = vsel %vm21450_vm7, 0, %v5458_v57  ;;  %29326 = vst [vmem:[#allocation8_spill] sm:$0xff] %v23783_v62 }
 0x4f6   : > { %29322 = vst [vmem:[#allocation22_spill] sm:$0xff] %v23761_v26  ;;  %29325 = vst [vmem:[#allocation7_spill] sm:$0xff] %v23772_v19  ;;  %v5373_v35 = vadd.f32 %v23736_v1, %v5263_v27  ;;  %v5265_v18 = vpop.f32.mrb[121].mxu0  ;;  %8489 = vmatprep.mubr.bf16.mxu0 %v23772_v19  ;;  %v5460_v7 = vshrl.u32 %v23761_v26, 16  ;;  %v5463_v55 = vshll.u32 %v23761_v26, 16 }
 0x4f7   : > { %29323 = vst [vmem:[#allocation9_spill] sm:$0xff] %v23768_v44  ;;  %v5374_v29 = vadd.f32 %v23739_v21, %v5265_v18  ;;  %v5267_v24 = vpop.f32.mrb[122].mxu0  ;;  %8490 = vmatmul.mubr.bf16.vlgmr.msra.gmra.mrb[144].mxu0 %v23783_v62  ;;  %v5467_v30 = vshrl.u32 %v23768_v44, 16  ;;  %v5470_v50 = vshll.u32 %v23768_v44, 16  ;;  %29361 = vst [vmem:[#allocation51_spill] sm:$0xff] %v24065_v63 }
 0x4f8   : > { %v5375_v47 = vadd.f32 %v23736_v1, %v5267_v24  ;;  %v5269_v15 = vpop.f32.mrb[123].mxu0  ;;  %8571 = vmatpush1.bf16.msra.mxu0 %v23766_v25  ;;  %v5462_v20 = vrot.slane %v5460_v7, 7  ;;  %v5593_v12 = vrot.slane %v5463_v55, 1  ;;  %v5405_v5 = vmax.f32 %v5373_v35, 0.0  ;;  %v23853_v35 = vld [vmem:[%s28857_s7 + $0x444] ss:$8 sps:$4 sm:$0xff]  }
 0x4f9   : > { %v5376_v42 = vadd.f32 %v23739_v21, %v5269_v15  ;;  %8572 = vmatprep.subr.bf16.mxu0 %v23777_v36  ;;  %v5469_v38 = vrot.slane %v5467_v30, 7  ;;  %v5595_v59 = vrot.slane %v5470_v50, 1  ;;  %v5406_v28 = vmax.f32 %v5374_v29, 0.0 }
 0x4fa   : > { %v5407_v33 = vmax.f32 %v5375_v47, 0.0  ;;  %v5465_v46 = vor.u32 %v5463_v55, %v5462_v20  ;;  %v23805_v40 = vor.u32 %v5593_v12, %v5460_v7  ;;  %v23865_v12 = vld [vmem:[%s28857_s7 + $0x440] ss:$8 sps:$4 sm:$0xff]  }
 0x4fb   : > { %v5408_v8 = vmax.f32 %v5376_v42, 0.0  ;;  %v5472_v6 = vor.u32 %v5470_v50, %v5469_v38  ;;  %v23807_v60 = vor.u32 %v5595_v59, %v5467_v30 }
 0x4fc   : > { %29327 = vst [vmem:[#allocation10_spill] sm:$0xff] %v23805_v40  ;;  %v23809_v39 = vpack.c.bf16 %v5407_v33, %v5405_v5  ;;  %8573 = vmatpush1.bf16.msra.mxu0 %v23796_v56  ;;  %v23833_v14 = vsel %vm21450_vm7, 0, %v5465_v46  ;;  %v23877_v5 = vld [vmem:[%s28857_s7 + $0x454] ss:$8 sps:$4 sm:$0xff]  }
 0x4fd   : > { %29328 = vst [vmem:[#allocation11_spill] sm:$0xff] %v23807_v60  ;;  %v23817_v61 = vpack.c.bf16 %v5408_v8, %v5406_v28  ;;  %v5273_v3 = vpop.f32.mrb[124].mxu0  ;;  %v23821_v2 = vsel %vm21450_vm7, 0, %v5472_v6  ;;  %8574 = vmatprep.subr.bf16.mxu0 %v23803_v9  ;;  %29332 = vst [vmem:[#allocation24_spill] sm:$0xff] %v23833_v14 }
 0x4fe   : > { %29329 = vst [vmem:[#allocation21_spill] sm:$0xff] %v23809_v39  ;;  %29331 = vst [vmem:[#allocation25_spill] sm:$0xff] %v23821_v2  ;;  %v5377_v10 = vadd.f32 %v23736_v1, %v5273_v3  ;;  %v5275_v48 = vpop.f32.mrb[125].mxu0  ;;  %8499 = vmatprep.mubr.bf16.mxu0 %v23821_v2  ;;  %v5474_v4 = vshrl.u32 %v23809_v39, 16  ;;  %v5477_v49 = vshll.u32 %v23809_v39, 16 }
 0x4ff   : > { %29330 = vst [vmem:[#allocation23_spill] sm:$0xff] %v23817_v61  ;;  %v5378_v51 = vadd.f32 %v23739_v21, %v5275_v48  ;;  %v5277_v52 = vpop.f32.mrb[126].mxu0  ;;  %8500 = vmatmul.mubr.bf16.gmra.mrb[148].mxu0 %v23833_v14  ;;  %v5481_v31 = vshrl.u32 %v23817_v61, 16  ;;  %v5484_v23 = vshll.u32 %v23817_v61, 16 }
 0x500   : > { %v5379_v54 = vadd.f32 %v23736_v1, %v5277_v52  ;;  %v5279_v37 = vpop.f32.mrb[127].mxu0  ;;  %8575 = vmatpush1.bf16.msra.mxu0 %v23815_v53  ;;  %v5476_v22 = vrot.slane %v5474_v4, 7  ;;  %v5597_v41 = vrot.slane %v5477_v49, 1  ;;  %v5409_v7 = vmax.f32 %v5377_v10, 0.0  ;;  %v23896_v52 = vld [vmem:[%s28857_s7 + $0x450] ss:$8 sps:$4 sm:$0xff]  }
 0x501   : > { %v5380_v57 = vadd.f32 %v23739_v21, %v5279_v37  ;;  %8576 = vmatprep.subr.bf16.mxu0 %v23827_v34  ;;  %v5483_v27 = vrot.slane %v5481_v31, 7  ;;  %v5599_v18 = vrot.slane %v5484_v23, 1  ;;  %v5410_v30 = vmax.f32 %v5378_v51, 0.0 }
 0x502   : > { %v5411_v55 = vmax.f32 %v5379_v54, 0.0  ;;  %v5479_v29 = vor.u32 %v5477_v49, %v5476_v22  ;;  %v23855_v24 = vor.u32 %v5597_v41, %v5474_v4  ;;  %v23903_v22 = vld [vmem:[%s28857_s7 + $0x464] ss:$8 sps:$4 sm:$0xff]  }
 0x503   : > { %v5412_v50 = vmax.f32 %v5380_v57, 0.0  ;;  %v5486_v47 = vor.u32 %v5484_v23, %v5483_v27  ;;  %v23857_v15 = vor.u32 %v5599_v18, %v5481_v31 }
 0x504   : > { %29333 = vst [vmem:[#allocation26_spill] sm:$0xff] %v23855_v24  ;;  %v23859_v20 = vpack.c.bf16 %v5411_v55, %v5409_v7  ;;  %8577 = vmatpush1.bf16.msra.mxu0 %v23846_v11  ;;  %v23883_v28 = vsel %vm21450_vm7, 0, %v5479_v29 }
 0x505   : > { %29334 = vst [vmem:[#allocation28_spill] sm:$0xff] %v23857_v15  ;;  %v23867_v42 = vpack.c.bf16 %v5412_v50, %v5410_v30  ;;  %v5283_v38 = vpop.f32.mrb[128].mxu0  ;;  %v23871_v59 = vsel %vm21450_vm7, 0, %v5486_v47  ;;  %8578 = vmatprep.subr.bf16.mxu0 %v23853_v35  ;;  %29338 = vst [vmem:[#allocation15_spill] sm:$0xff] %v23883_v28 }
 0x506   : > { %29335 = vst [vmem:[#allocation27_spill] sm:$0xff] %v23859_v20  ;;  %29337 = vst [vmem:[#allocation30_spill] sm:$0xff] %v23871_v59  ;;  %v5381_v33 = vadd.f32 %v23736_v1, %v5283_v38  ;;  %v5285_v46 = vpop.f32.mrb[129].mxu0  ;;  %8509 = vmatprep.mubr.bf16.mxu0 %v23871_v59  ;;  %v5488_v8 = vshrl.u32 %v23859_v20, 16  ;;  %v5491_v6 = vshll.u32 %v23859_v20, 16 }
 0x507   : > { %29336 = vst [vmem:[#allocation29_spill] sm:$0xff] %v23867_v42  ;;  %v5382_v3 = vadd.f32 %v23739_v21, %v5285_v46  ;;  %v5287_v10 = vpop.f32.mrb[130].mxu0  ;;  %8510 = vmatmul.mubr.bf16.gmra.mrb[152].mxu0 %v23883_v28  ;;  %v5495_v48 = vshrl.u32 %v23867_v42, 16  ;;  %v5498_v4 = vshll.u32 %v23867_v42, 16  ;;  %v23915_v38 = vld [vmem:[%s28857_s7 + $0x460] ss:$8 sps:$4 sm:$0xff]  }
 0x508   : > { %v5383_v49 = vadd.f32 %v23736_v1, %v5287_v10  ;;  %v5289_v51 = vpop.f32.mrb[131].mxu0  ;;  %8579 = vmatpush1.bf16.msra.mxu0 %v23865_v12  ;;  %v5490_v31 = vrot.slane %v5488_v8, 7  ;;  %v5601_v23 = vrot.slane %v5491_v6, 1  ;;  %v5413_v57 = vmax.f32 %v5381_v33, 0.0  ;;  %v23965_v28 = vld [vmem:[%s28857_s7 + $0x480] ss:$8 sps:$4 sm:$0xff]  }
 0x509   : > { %v5384_v54 = vadd.f32 %v23739_v21, %v5289_v51  ;;  %8580 = vmatprep.subr.bf16.mxu0 %v23877_v5  ;;  %v5497_v37 = vrot.slane %v5495_v48, 7  ;;  %v5603_v41 = vrot.slane %v5498_v4, 1  ;;  %v5414_v55 = vmax.f32 %v5382_v3, 0.0 }
 0x50a   : > { %v5415_v27 = vmax.f32 %v5383_v49, 0.0  ;;  %v5493_v18 = vor.u32 %v5491_v6, %v5490_v31  ;;  %v23905_v7 = vor.u32 %v5601_v23, %v5488_v8  ;;  %v23927_v6 = vld [vmem:[%s28857_s7 + $0x474] ss:$8 sps:$4 sm:$0xff]  }
 0x50b   : > { %v5416_v29 = vmax.f32 %v5384_v54, 0.0  ;;  %v5500_v30 = vor.u32 %v5498_v4, %v5497_v37  ;;  %v23907_v50 = vor.u32 %v5603_v41, %v5495_v48 }
 0x50c   : > { %29339 = vst [vmem:[#allocation31_spill] sm:$0xff] %v23905_v7  ;;  %v23909_v47 = vpack.c.bf16 %v5415_v27, %v5413_v57  ;;  %8581 = vmatpush1.bf16.msra.mxu0 %v23896_v52  ;;  %v23933_v48 = vsel %vm21450_vm7, 0, %v5493_v18  ;;  %v23946_v57 = vld [vmem:[%s28857_s7 + $0x470] ss:$8 sps:$4 sm:$0xff]   ;;  %v24015_v7 = vld [vmem:[%s28857_s7 + $0x4a0] ss:$8 sps:$4 sm:$0xff]  }
 0x50d   : > { %29340 = vst [vmem:[#allocation32_spill] sm:$0xff] %v23907_v50  ;;  %v23917_v46 = vpack.c.bf16 %v5416_v29, %v5414_v55  ;;  %v5293_v33 = vpop.f32.mrb[132].mxu0  ;;  %v23921_v8 = vsel %vm21450_vm7, 0, %v5500_v30  ;;  %8582 = vmatprep.subr.bf16.mxu0 %v23903_v22  ;;  %29344 = vst [vmem:[#allocation34_spill] sm:$0xff] %v23933_v48  ;;  %v23953_v30 = vld [vmem:[%s28857_s7 + $0x484] ss:$8 sps:$4 sm:$0xff]  }
 0x50e   : > { %29341 = vst [vmem:[#allocation12_spill] sm:$0xff] %v23909_v47  ;;  %29343 = vst [vmem:[#allocation33_spill] sm:$0xff] %v23921_v8  ;;  %v5385_v3 = vadd.f32 %v23736_v1, %v5293_v33  ;;  %v5295_v10 = vpop.f32.mrb[133].mxu0  ;;  %8519 = vmatprep.mubr.bf16.mxu0 %v23921_v8  ;;  %v5502_v4 = vshrl.u32 %v23909_v47, 16  ;;  %v5505_v49 = vshll.u32 %v23909_v47, 16 }
 0x50f   : > { %29342 = vst [vmem:[#allocation6_spill] sm:$0xff] %v23917_v46  ;;  %v5386_v51 = vadd.f32 %v23739_v21, %v5295_v10  ;;  %v5297_v31 = vpop.f32.mrb[134].mxu0  ;;  %8520 = vmatmul.mubr.bf16.gmra.mrb[156].mxu0 %v23933_v48  ;;  %v5509_v23 = vshrl.u32 %v23917_v46, 16  ;;  %v5512_v54 = vshll.u32 %v23917_v46, 16 }
 0x510   : > { %v5387_v37 = vadd.f32 %v23736_v1, %v5297_v31  ;;  %v5299_v41 = vpop.f32.mrb[135].mxu0  ;;  %8583 = vmatpush1.bf16.msra.mxu0 %v23915_v38  ;;  %v5504_v27 = vrot.slane %v5502_v4, 7  ;;  %v5605_v18 = vrot.slane %v5505_v49, 1  ;;  %v5417_v10 = vmax.f32 %v5385_v3, 0.0 }
 0x511   : > { %v5388_v55 = vadd.f32 %v23739_v21, %v5299_v41  ;;  %8584 = vmatprep.subr.bf16.mxu0 %v23927_v6  ;;  %v5511_v29 = vrot.slane %v5509_v23, 7  ;;  %v5607_v33 = vrot.slane %v5512_v54, 1  ;;  %v5418_v16 = vmax.f32 %v5386_v51, 0.0 }
 0x512   : > { %v5419_v31 = vmax.f32 %v5387_v37, 0.0  ;;  %v5507_v45 = vor.u32 %v5505_v49, %v5504_v27  ;;  %v23955_v13 = vor.u32 %v5605_v18, %v5502_v4  ;;  %v23977_v49 = vld [vmem:[%s28857_s7 + $0x494] ss:$8 sps:$4 sm:$0xff]  }
 0x513   : > { %v5420_v0 = vmax.f32 %v5388_v55, 0.0  ;;  %v5514_v48 = vor.u32 %v5512_v54, %v5511_v29  ;;  %v23957_v8 = vor.u32 %v5607_v33, %v5509_v23 }
 0x514   : > { %29345 = vst [vmem:[#allocation35_spill] sm:$0xff] %v23955_v13  ;;  %v23959_v41 = vpack.c.bf16 %v5419_v31, %v5417_v10  ;;  %8585 = vmatpush1.bf16.msra.mxu0 %v23946_v57 }
 0x515   : > { %29346 = vst [vmem:[#allocation36_spill] sm:$0xff] %v23957_v8  ;;  %v23967_v59 = vpack.c.bf16 %v5420_v0, %v5418_v16  ;;  %v5303_v3 = vpop.f32.mrb[136].mxu0  ;;  %v23971_v4 = vsel %vm21450_vm7, 0, %v5514_v48  ;;  %8586 = vmatprep.subr.bf16.mxu0 %v23953_v30  ;;  %v23983_v0 = vsel %vm21450_vm7, 0, %v5507_v45  ;;  %v23996_v45 = vld [vmem:[%s28857_s7 + $0x490] ss:$8 sps:$4 sm:$0xff]  }
 0x516   : > { %29347 = vst [vmem:[#allocation37_spill] sm:$0xff] %v23959_v41  ;;  %29349 = vst [vmem:[#allocation39_spill] sm:$0xff] %v23971_v4  ;;  %v5389_v51 = vadd.f32 %v23736_v1, %v5303_v3  ;;  %v5305_v23 = vpop.f32.mrb[137].mxu0  ;;  %8529 = vmatprep.mubr.bf16.mxu0 %v23971_v4  ;;  %v5516_v16 = vshrl.u32 %v23959_v41, 16  ;;  %v5519_v48 = vshll.u32 %v23959_v41, 16 }
 0x517   : > { %29348 = vst [vmem:[#allocation38_spill] sm:$0xff] %v23967_v59  ;;  %29350 = vst [vmem:[#allocation40_spill] sm:$0xff] %v23983_v0  ;;  %v5390_v54 = vadd.f32 %v23739_v21, %v5305_v23  ;;  %v5307_v37 = vpop.f32.mrb[138].mxu0  ;;  %8530 = vmatmul.mubr.bf16.gmra.mrb[160].mxu0 %v23983_v0  ;;  %v5523_v27 = vshrl.u32 %v23967_v59, 16  ;;  %v5526_v18 = vshll.u32 %v23967_v59, 16 }
 0x518   : > { %v5391_v55 = vadd.f32 %v23736_v1, %v5307_v37  ;;  %v5309_v29 = vpop.f32.mrb[139].mxu0  ;;  %8587 = vmatpush1.bf16.msra.mxu0 %v23965_v28  ;;  %v5518_v33 = vrot.slane %v5516_v16, 7  ;;  %v5609_v10 = vrot.slane %v5519_v48, 1  ;;  %v24003_v23 = vld [vmem:[%s28857_s7 + $0x4a4] ss:$8 sps:$4 sm:$0xff]   ;;  %v5421_v0 = vmax.f32 %v5389_v51, 0.0 }
 0x519   : > { %v5392_v31 = vadd.f32 %v23739_v21, %v5309_v29  ;;  %8588 = vmatprep.subr.bf16.mxu0 %v23977_v49  ;;  %v5525_v3 = vrot.slane %v5523_v27, 7  ;;  %v5611_v37 = vrot.slane %v5526_v18, 1  ;;  %v5422_v62 = vmax.f32 %v5390_v54, 0.0 }
 0x51a   : > { %v5423_v4 = vmax.f32 %v5391_v55, 0.0  ;;  %v5521_v14 = vor.u32 %v5519_v48, %v5518_v33  ;;  %v24005_v2 = vor.u32 %v5609_v10, %v5516_v16 }
 0x51b   : > { %v5424_v19 = vmax.f32 %v5392_v31, 0.0  ;;  %v5528_v13 = vor.u32 %v5526_v18, %v5525_v3  ;;  %v24007_v8 = vor.u32 %v5611_v37, %v5523_v27 }
 0x51c   : > { %29351 = vst [vmem:[#allocation41_spill] sm:$0xff] %v24005_v2  ;;  %v24009_v29 = vpack.c.bf16 %v5423_v4, %v5421_v0  ;;  %8589 = vmatpush1.bf16.msra.mxu0 %v23996_v45  ;;  %v24027_v4 = vld [vmem:[%s28857_s7 + $0x4b4] ss:$8 sps:$4 sm:$0xff]  }
 0x51d   : > { %29352 = vst [vmem:[#allocation42_spill] sm:$0xff] %v24007_v8  ;;  %v24017_v50 = vpack.c.bf16 %v5424_v19, %v5422_v62  ;;  %v5313_v51 = vpop.f32.mrb[140].mxu0  ;;  %v24021_v16 = vsel %vm21450_vm7, 0, %v5528_v13  ;;  %8590 = vmatprep.subr.bf16.mxu0 %v24003_v23  ;;  %v24033_v19 = vsel %vm21450_vm7, 0, %v5521_v14  ;;  %v24046_v14 = vld [vmem:[%s28857_s7 + $0x4b0] ss:$8 sps:$4 sm:$0xff]  }
 0x51e   : > { %29353 = vst [vmem:[#allocation43_spill] sm:$0xff] %v24009_v29  ;;  %29355 = vst [vmem:[#allocation45_spill] sm:$0xff] %v24021_v16  ;;  %v5393_v0 = vadd.f32 %v23736_v1, %v5313_v51  ;;  %v5315_v48 = vpop.f32.mrb[141].mxu0  ;;  %8539 = vmatprep.mubr.bf16.mxu0 %v24021_v16  ;;  %v5530_v62 = vshrl.u32 %v24009_v29, 16  ;;  %v5533_v13 = vshll.u32 %v24009_v29, 16 }
 0x51f   : > { %29354 = vst [vmem:[#allocation44_spill] sm:$0xff] %v24017_v50  ;;  %29356 = vst [vmem:[#allocation46_spill] sm:$0xff] %v24033_v19  ;;  %v5394_v54 = vadd.f32 %v23739_v21, %v5315_v48  ;;  %v5317_v27 = vpop.f32.mrb[142].mxu0  ;;  %8540 = vmatmul.mubr.bf16.gmra.mrb[164].mxu0 %v24033_v19  ;;  %v5537_v18 = vshrl.u32 %v24017_v50, 16  ;;  %v5540_v55 = vshll.u32 %v24017_v50, 16 }
 0x520   : > { %v5395_v33 = vadd.f32 %v23736_v1, %v5317_v27  ;;  %v5319_v10 = vpop.f32.mrb[143].mxu0  ;;  %8591 = vmatpush1.bf16.msra.mxu0 %v24015_v7  ;;  %v5532_v31 = vrot.slane %v5530_v62, 7  ;;  %v5613_v3 = vrot.slane %v5533_v13, 1  ;;  %v24053_v48 = vld [vmem:[%s28857_s7 + $0x4c4] ss:$8 sps:$4 sm:$0xff]   ;;  %v5425_v19 = vmax.f32 %v5393_v0, 0.0 }
 0x521   : > { %v5396_v37 = vadd.f32 %v23739_v21, %v5319_v10  ;;  %8592 = vmatprep.subr.bf16.mxu0 %v24027_v4  ;;  %v5539_v51 = vrot.slane %v5537_v18, 7  ;;  %29357 = vst [vmem:[#allocation47_spill] sm:$0xff] %v24053_v48  ;;  %v5615_v27 = vrot.slane %v5540_v55, 1  ;;  %v5426_v24 = vmax.f32 %v5394_v54, 0.0 }
 0x522   : > { %v5427_v16 = vmax.f32 %v5395_v33, 0.0  ;;  %v5535_v2 = vor.u32 %v5533_v13, %v5532_v31  ;;  %v24055_v8 = vor.u32 %v5613_v3, %v5530_v62 }
 0x523   : > { %v5428_v15 = vmax.f32 %v5396_v37, 0.0  ;;  %v5542_v40 = vor.u32 %v5540_v55, %v5539_v51  ;;  %v24057_v60 = vor.u32 %v5615_v27, %v5537_v18  ;;  %v24101_v51 = vld [vmem:[%s28857_s7 + $0x4e4] ss:$8 sps:$4 sm:$0xff]  }
 0x524   : > { %29358 = vst [vmem:[#allocation48_spill] sm:$0xff] %v24055_v8  ;;  %v24059_v10 = vpack.c.bf16 %v5427_v16, %v5425_v19  ;;  %8593 = vmatpush1.bf16.msra.mxu0 %v24046_v14  ;;  %v24077_v16 = vld [vmem:[%s28857_s7 + $0x4d4] ss:$8 sps:$4 sm:$0xff]   ;;  %v24082_v19 = vsel %vm21450_vm7, 0, %v5535_v2  ;;  %v24094_v2 = vld [vmem:[%s28857_s7 + $0x4d0] ss:$8 sps:$4 sm:$0xff]  }
 0x525   : > { %29359 = vst [vmem:[#allocation49_spill] sm:$0xff] %v24057_v60  ;;  %v24067_v32 = vpack.c.bf16 %v5428_v15, %v5426_v24  ;;  %v24071_v0 = vsel %vm21450_vm7, 0, %v5542_v40  ;;  %8594 = vmatprep.subr.bf16.mxu0 %v24053_v48  ;;  %29364 = vst [vmem:[#allocation54_spill] sm:$0xff] %v24077_v16  ;;  %v24113_v48 = vld [vmem:[%s28857_s7 + $0x4e0] ss:$8 sps:$4 sm:$0xff]  }
 0x526   : > { %29360 = vst [vmem:[#allocation50_spill] sm:$0xff] %v24059_v10  ;;  %29363 = vst [vmem:[#allocation53_spill] sm:$0xff] %v24071_v0  ;;  %8549 = vmatprep.mubr.bf16.mxu0 %v24071_v0  ;;  %v5544_v24 = vshrl.u32 %v24059_v10, 16  ;;  %v5547_v15 = vshll.u32 %v24059_v10, 16 }
 0x527   : > { %29362 = vst [vmem:[#allocation52_spill] sm:$0xff] %v24067_v32  ;;  %29365 = vst [vmem:[#allocation55_spill] sm:$0xff] %v24082_v19  ;;  %v7239_v62 = vpop.f32.mrb[112].mxu1  ;;  %8550 = vmatmul.mubr.bf16.gmra.mrb[168].mxu0 %v24082_v19  ;;  %v5551_v40 = vshrl.u32 %v24067_v32, 16  ;;  %v5554_v13 = vshll.u32 %v24067_v32, 16 }
 0x528   : > { %v7350_v54 = vadd.f32 %v7239_v62, %v23736_v1  ;;  %v7241_v18 = vpop.f32.mrb[113].mxu1  ;;  %8595 = vmatpush1.bf16.msra.mxu0 %v24065_v63  ;;  %v5546_v55 = vrot.slane %v5544_v24, 7  ;;  %v5617_v33 = vrot.slane %v5547_v15, 1  ;;  %29368 = vst [vmem:[#allocation58_spill] sm:$0xff] %v24113_v48 }
 0x529   : > { %v7351_v31 = vadd.f32 %v7241_v18, %v23739_v21  ;;  %v7243_v3 = vpop.f32.mrb[114].mxu1  ;;  %8596 = vmatprep.subr.bf16.mxu0 %v24077_v16  ;;  %v5553_v37 = vrot.slane %v5551_v40, 7  ;;  %v5619_v27 = vrot.slane %v5554_v13, 1 }
 0x52a   : > { %v7352_v62 = vadd.f32 %v7243_v3, %v23736_v1  ;;  %v7245_v19 = vpop.f32.mrb[115].mxu1  ;;  %v5549_v0 = vor.u32 %v5547_v15, %v5546_v55  ;;  %v24104_v8 = vor.u32 %v5617_v33, %v5544_v24  ;;  %v7382_v63 = vmax.f32 %v7350_v54, 0.0  ;;  %v24150_v33 = vld [vmem:[%s28857_s7 + $0x504] ss:$8 sps:$4 sm:$0xff]  }
 0x52b   : > { %v7353_v60 = vadd.f32 %v7245_v19, %v23739_v21  ;;  %v5556_v10 = vor.u32 %v5554_v13, %v5553_v37  ;;  %v24107_v18 = vor.u32 %v5619_v27, %v5551_v40  ;;  %v7383_v32 = vmax.f32 %v7351_v31, 0.0  ;;  %v24123_v19 = vld [vmem:[%s28857_s7 + $0x4f4] ss:$8 sps:$4 sm:$0xff]  }
 0x52c   : > { %29366 = vst [vmem:[#allocation56_spill] sm:$0xff] %v24104_v8  ;;  %v7384_v16 = vmax.f32 %v7352_v62, 0.0  ;;  %8597 = vmatpush1.bf16.msra.mxu0 %v24094_v2  ;;  %29370 = vst [vmem:[#allocation60_spill] sm:$0xff] %v24123_v19  ;;  %v24130_v40 = vsel %vm21450_vm7, 0, %v5549_v0 }
 0x52d   : > { %29367 = vst [vmem:[#allocation57_spill] sm:$0xff] %v24107_v18  ;;  %v7385_v3 = vmax.f32 %v7353_v60, 0.0  ;;  %v24117_v24 = vsel %vm21450_vm7, 0, %v5556_v10  ;;  %8598 = vmatprep.subr.bf16.mxu0 %v24101_v51  ;;  %29372 = vst [vmem:[#allocation62_spill] sm:$0xff] %v24130_v40 }
 0x52e   : > { %29369 = vst [vmem:[#allocation59_spill] sm:$0xff] %v24117_v24  ;;  %v24125_v15 = vpack.c.bf16 %v7384_v16, %v7382_v63  ;;  %8559 = vmatprep.mubr.bf16.mxu0 %v24117_v24  ;;  %v24141_v63 = vld [vmem:[%s28857_s7 + $0x4f0] ss:$8 sps:$4 sm:$0xff]  }
 0x52f   : > { %v24132_v60 = vpack.c.bf16 %v7385_v3, %v7383_v32  ;;  %v7249_v13 = vpop.f32.mrb[116].mxu1  ;;  %8560 = vmatmul.mubr.bf16.gmra.mrb[172].mxu0 %v24130_v40  ;;  %29374 = vst [vmem:[#allocation64_spill] sm:$0xff] %v24141_v63 }
 0x530   : > { %29371 = vst [vmem:[#allocation61_spill] sm:$0xff] %v24125_v15  ;;  %v7354_v10 = vadd.f32 %v7249_v13, %v23736_v1  ;;  %v7251_v54 = vpop.f32.mrb[117].mxu1  ;;  %8599 = vmatpush1.bf16.msra.mxu0 %v24113_v48  ;;  %8602 = vmatprep.mubr.bf16.mxu0 %v23747_v43  ;;  %v7431_v0 = vshrl.u32 %v24125_v15, 16  ;;  %v7434_v32 = vshll.u32 %v24125_v15, 16  ;;  %v24160_v15 = vld [vmem:[%s28857_s7 + $0x500] ss:$8 sps:$4 sm:$0xff]  }
 0x531   : > { %29373 = vst [vmem:[#allocation63_spill] sm:$0xff] %v24132_v60  ;;  %v7355_v16 = vadd.f32 %v7251_v54, %v23739_v21  ;;  %v7253_v55 = vpop.f32.mrb[118].mxu1  ;;  %8600 = vmatprep.subr.bf16.mxu0 %v24123_v19  ;;  %v7438_v31 = vshrl.u32 %v24132_v60, 16  ;;  %v7441_v37 = vshll.u32 %v24132_v60, 16 }
 0x532   : > { %v7356_v27 = vadd.f32 %v7253_v55, %v23736_v1  ;;  %v7255_v62 = vpop.f32.mrb[119].mxu1  ;;  %v7433_v3 = vrot.slane %v7431_v0, 7  ;;  %v7574_v13 = vrot.slane %v7434_v32, 1  ;;  %v7386_v24 = vmax.f32 %v7354_v10, 0.0  ;;  %v24168_v10 = vld [vmem:[%s28857_s7 + $0x514] ss:$8 sps:$4 sm:$0xff]  }
 0x533   : > { %v7357_v40 = vadd.f32 %v7255_v62, %v23739_v21  ;;  %v7440_v54 = vrot.slane %v7438_v31, 7  ;;  %v7576_v43 = vrot.slane %v7441_v37, 1  ;;  %v7387_v8 = vmax.f32 %v7355_v16, 0.0  ;;  %29376 = vst [vmem:[#allocation66_spill] sm:$0xff] %v24168_v10 }
 0x534   : > { %v7388_v18 = vmax.f32 %v7356_v27, 0.0  ;;  %8601 = vmatpush1.bf16.msra.mxu0 %v24141_v63  ;;  %v24162_v19 = vor.u32 %v7574_v13, %v7431_v0  ;;  %v7436_v48 = vor.u32 %v7434_v32, %v7433_v3 }
 0x535   : > { %v7389_v55 = vmax.f32 %v7357_v40, 0.0  ;;  %8683 = vmatprep.subr.bf16.mxu0 %v24150_v33  ;;  %v7443_v60 = vor.u32 %v7441_v37, %v7440_v54  ;;  %v24170_v16 = vor.u32 %v7576_v43, %v7438_v31  ;;  %v24187_v43 = vld [vmem:[%s28857_s7 + $0x510] ss:$8 sps:$4 sm:$0xff]   ;;  %v24201_v31 = vld [vmem:[%s28857_s7 + $0x524] ss:$8 sps:$4 sm:$0xff]  }
 0x536   : > { %29375 = vst [vmem:[#allocation65_spill] sm:$0xff] %v24162_v19  ;;  %v24172_v27 = vpack.c.bf16 %v7388_v18, %v7386_v24 }
 0x537   : > { %29377 = vst [vmem:[#allocation67_spill] sm:$0xff] %v24170_v16  ;;  %v24174_v62 = vpack.c.bf16 %v7389_v55, %v7387_v8  ;;  %v7259_v63 = vpop.f32.mrb[120].mxu1  ;;  %8603 = vmatmul.mubr.bf16.vlgmr.msra.gmra.mrb[144].mxu0 %v23745_v58  ;;  %v24179_v40 = vsel %vm21450_vm7, 0, %v7443_v60 }
 0x538   : > { %29378 = vst [vmem:[#allocation68_spill] sm:$0xff] %v24172_v27  ;;  %29380 = vst [vmem:[#allocation70_spill] sm:$0xff] %v24179_v40  ;;  %v7358_v0 = vadd.f32 %v7259_v63, %v23736_v1  ;;  %v7261_v32 = vpop.f32.mrb[121].mxu1  ;;  %8612 = vmatprep.mubr.bf16.mxu0 %v23768_v44  ;;  %8684 = vmatpush1.bf16.msra.mxu0 %v24160_v15  ;;  %v7445_v8 = vshrl.u32 %v24172_v27, 16  ;;  %v7448_v18 = vshll.u32 %v24172_v27, 16  ;;  %v24195_v63 = vsel %vm21450_vm7, 0, %v7436_v48 }
 0x539   : > { %29379 = vst [vmem:[#allocation69_spill] sm:$0xff] %v24174_v62  ;;  %v7359_v24 = vadd.f32 %v7261_v32, %v23739_v21  ;;  %10860 = vmatprep.mubr.bf16.mxu1 %v24179_v40  ;;  %v7263_v60 = vpop.f32.mrb[122].mxu1  ;;  %29381 = vst [vmem:[#allocation71_spill] sm:$0xff] %v24195_v63  ;;  %8685 = vmatprep.subr.bf16.mxu0 %v24168_v10  ;;  %v7452_v37 = vshrl.u32 %v24174_v62, 16  ;;  %v7455_v3 = vshll.u32 %v24174_v62, 16 }
 0x53a   : > { %v7360_v13 = vadd.f32 %v7263_v60, %v23736_v1  ;;  %10861 = vmatmul.mubr.bf16.vlgmr.msra.gmra.mrb[144].mxu1 %v24195_v63  ;;  %v7265_v54 = vpop.f32.mrb[123].mxu1  ;;  %v7447_v55 = vrot.slane %v7445_v8, 7  ;;  %v7578_v32 = vrot.slane %v7448_v18, 1  ;;  %v7390_v40 = vmax.f32 %v7358_v0, 0.0  ;;  %v24214_v60 = vld [vmem:[%s28857_s7 + $0x520] ss:$8 sps:$4 sm:$0xff]  }
 0x53b   : > { %10942 = vmatpush1.bf16.msra.mxu1 %v23766_v25  ;;  %v7361_v48 = vadd.f32 %v7265_v54, %v23739_v21  ;;  %v7454_v44 = vrot.slane %v7452_v37, 7  ;;  %v7580_v58 = vrot.slane %v7455_v3, 1  ;;  %v7391_v19 = vmax.f32 %v7359_v24, 0.0 }
 0x53c   : > { %v7392_v16 = vmax.f32 %v7360_v13, 0.0  ;;  %8686 = vmatpush1.bf16.msra.mxu0 %v24187_v43  ;;  %10943 = vmatprep.subr.bf16.mxu1 %v23777_v36  ;;  %v24216_v63 = vor.u32 %v7578_v32, %v7445_v8  ;;  %v7450_v54 = vor.u32 %v7448_v18, %v7447_v55  ;;  %v24226_v36 = vld [vmem:[%s28857_s7 + $0x534] ss:$8 sps:$4 sm:$0xff]  }
 0x53d   : > { %v7393_v27 = vmax.f32 %v7361_v48, 0.0  ;;  %8687 = vmatprep.subr.bf16.mxu0 %v24201_v31  ;;  %v7457_v25 = vor.u32 %v7455_v3, %v7454_v44  ;;  %v24219_v10 = vor.u32 %v7580_v58, %v7452_v37  ;;  %v24256_v3 = vld [vmem:[%s28857_s7 + $0x544] ss:$8 sps:$4 sm:$0xff]  }
 0x53e   : > { %29382 = vst [vmem:[#allocation72_spill] sm:$0xff] %v24216_v63  ;;  %v24221_v0 = vpack.c.bf16 %v7392_v16, %v7390_v40  ;;  %v24251_v37 = vsel %vm21450_vm7, 0, %v7450_v54 }
 0x53f   : > { %29383 = vst [vmem:[#allocation73_spill] sm:$0xff] %v24219_v10  ;;  %v24228_v24 = vpack.c.bf16 %v7393_v27, %v7391_v19  ;;  %10944 = vmatpush1.bf16.msra.mxu1 %v23796_v56  ;;  %v7269_v8 = vpop.f32.mrb[124].mxu1  ;;  %8613 = vmatmul.mubr.bf16.gmra.mrb[148].mxu0 %v23761_v26  ;;  %v24234_v44 = vsel %vm21450_vm7, 0, %v7457_v25  ;;  %v24242_v19 = vld [vmem:[%s28857_s7 + $0x530] ss:$8 sps:$4 sm:$0xff]   ;;  %29387 = vst [vmem:[#allocation77_spill] sm:$0xff] %v24251_v37 }
 0x540   : > { %29384 = vst [vmem:[#allocation74_spill] sm:$0xff] %v24221_v0  ;;  %29386 = vst [vmem:[#allocation76_spill] sm:$0xff] %v24234_v44  ;;  %v7362_v58 = vadd.f32 %v7269_v8, %v23736_v1  ;;  %v7271_v16 = vpop.f32.mrb[125].mxu1  ;;  %8622 = vmatprep.mubr.bf16.mxu0 %v23817_v61  ;;  %8688 = vmatpush1.bf16.msra.mxu0 %v24214_v60  ;;  %v7459_v56 = vshrl.u32 %v24221_v0, 16  ;;  %v7462_v27 = vshll.u32 %v24221_v0, 16 }
 0x541   : > { %29385 = vst [vmem:[#allocation75_spill] sm:$0xff] %v24228_v24  ;;  %v7363_v40 = vadd.f32 %v7271_v16, %v23739_v21  ;;  %10870 = vmatprep.mubr.bf16.mxu1 %v24234_v44  ;;  %10945 = vmatprep.subr.bf16.mxu1 %v23803_v9  ;;  %v7273_v18 = vpop.f32.mrb[126].mxu1  ;;  %v7466_v13 = vshrl.u32 %v24228_v24, 16  ;;  %v7469_v55 = vshll.u32 %v24228_v24, 16 }
 0x542   : > { %v7364_v32 = vadd.f32 %v7273_v18, %v23736_v1  ;;  %10871 = vmatmul.mubr.bf16.gmra.mrb[148].mxu1 %v24251_v37  ;;  %v7275_v48 = vpop.f32.mrb[127].mxu1  ;;  %8689 = vmatprep.subr.bf16.mxu0 %v24226_v36  ;;  %v7461_v9 = vrot.slane %v7459_v56, 7  ;;  %v7582_v25 = vrot.slane %v7462_v27, 1  ;;  %v7394_v61 = vmax.f32 %v7362_v58, 0.0  ;;  %v24270_v18 = vld [vmem:[%s28857_s7 + $0x540] ss:$8 sps:$4 sm:$0xff]  }
 0x543   : > { %10946 = vmatpush1.bf16.msra.mxu1 %v23815_v53  ;;  %v7365_v54 = vadd.f32 %v7275_v48, %v23739_v21  ;;  %v7468_v8 = vrot.slane %v7466_v13, 7  ;;  %v7584_v16 = vrot.slane %v7469_v55, 1  ;;  %v7395_v26 = vmax.f32 %v7363_v40, 0.0 }
 0x544   : > { %v7396_v44 = vmax.f32 %v7364_v32, 0.0  ;;  %8690 = vmatpush1.bf16.msra.mxu0 %v24242_v19  ;;  %10947 = vmatprep.subr.bf16.mxu1 %v23827_v34  ;;  %v24272_v37 = vor.u32 %v7582_v25, %v7459_v56  ;;  %v7464_v48 = vor.u32 %v7462_v27, %v7461_v9  ;;  %v24282_v34 = vld [vmem:[%s28857_s7 + $0x554] ss:$8 sps:$4 sm:$0xff]   ;;  %v24312_v9 = vld [vmem:[%s28857_s7 + $0x564] ss:$8 sps:$4 sm:$0xff]  }
 0x545   : > { %v7397_v63 = vmax.f32 %v7365_v54, 0.0  ;;  %8691 = vmatprep.subr.bf16.mxu0 %v24256_v3  ;;  %v7471_v53 = vor.u32 %v7469_v55, %v7468_v8  ;;  %v24275_v10 = vor.u32 %v7584_v16, %v7466_v13 }
 0x546   : > { %29388 = vst [vmem:[#allocation78_spill] sm:$0xff] %v24272_v37  ;;  %v24277_v58 = vpack.c.bf16 %v7396_v44, %v7394_v61  ;;  %v24307_v32 = vsel %vm21450_vm7, 0, %v7464_v48 }
 0x547   : > { %29389 = vst [vmem:[#allocation79_spill] sm:$0xff] %v24275_v10  ;;  %v24284_v40 = vpack.c.bf16 %v7397_v63, %v7395_v26  ;;  %10948 = vmatpush1.bf16.msra.mxu1 %v23846_v11  ;;  %v7279_v56 = vpop.f32.mrb[128].mxu1  ;;  %8623 = vmatmul.mubr.bf16.gmra.mrb[152].mxu0 %v23809_v39  ;;  %v24290_v55 = vsel %vm21450_vm7, 0, %v7471_v53  ;;  %v24298_v26 = vld [vmem:[%s28857_s7 + $0x550] ss:$8 sps:$4 sm:$0xff]   ;;  %29393 = vst [vmem:[#allocation83_spill] sm:$0xff] %v24307_v32 }
 0x548   : > { %29390 = vst [vmem:[#allocation80_spill] sm:$0xff] %v24277_v58  ;;  %29392 = vst [vmem:[#allocation82_spill] sm:$0xff] %v24290_v55  ;;  %v7366_v27 = vadd.f32 %v7279_v56, %v23736_v1  ;;  %v7281_v61 = vpop.f32.mrb[129].mxu1  ;;  %8632 = vmatprep.mubr.bf16.mxu0 %v23867_v42  ;;  %8692 = vmatpush1.bf16.msra.mxu0 %v24270_v18  ;;  %v7473_v11 = vshrl.u32 %v24277_v58, 16  ;;  %v7476_v63 = vshll.u32 %v24277_v58, 16 }
 0x549   : > { %29391 = vst [vmem:[#allocation81_spill] sm:$0xff] %v24284_v40  ;;  %v7367_v44 = vadd.f32 %v7281_v61, %v23739_v21  ;;  %10880 = vmatprep.mubr.bf16.mxu1 %v24290_v55  ;;  %10949 = vmatprep.subr.bf16.mxu1 %v23853_v35  ;;  %v7283_v13 = vpop.f32.mrb[130].mxu1  ;;  %v7480_v25 = vshrl.u32 %v24284_v40, 16  ;;  %v7483_v54 = vshll.u32 %v24284_v40, 16 }
 0x54a   : > { %v7368_v8 = vadd.f32 %v7283_v13, %v23736_v1  ;;  %10881 = vmatmul.mubr.bf16.gmra.mrb[152].mxu1 %v24307_v32  ;;  %v7285_v16 = vpop.f32.mrb[131].mxu1  ;;  %8693 = vmatprep.subr.bf16.mxu0 %v24282_v34  ;;  %v7475_v35 = vrot.slane %v7473_v11, 7  ;;  %v7586_v53 = vrot.slane %v7476_v63, 1  ;;  %v7398_v42 = vmax.f32 %v7366_v27, 0.0  ;;  %v24326_v13 = vld [vmem:[%s28857_s7 + $0x560] ss:$8 sps:$4 sm:$0xff]  }
 0x54b   : > { %10950 = vmatpush1.bf16.msra.mxu1 %v23865_v12  ;;  %v7369_v48 = vadd.f32 %v7285_v16, %v23739_v21  ;;  %v7482_v56 = vrot.slane %v7480_v25, 7  ;;  %v7588_v61 = vrot.slane %v7483_v54, 1  ;;  %v7399_v39 = vmax.f32 %v7367_v44, 0.0 }
 0x54c   : > { %v7400_v55 = vmax.f32 %v7368_v8, 0.0  ;;  %8694 = vmatpush1.bf16.msra.mxu0 %v24298_v26  ;;  %10951 = vmatprep.subr.bf16.mxu1 %v23877_v5  ;;  %v24328_v32 = vor.u32 %v7586_v53, %v7473_v11  ;;  %v7478_v16 = vor.u32 %v7476_v63, %v7475_v35  ;;  %v24338_v5 = vld [vmem:[%s28857_s7 + $0x574] ss:$8 sps:$4 sm:$0xff]   ;;  %v24368_v35 = vld [vmem:[%s28857_s7 + $0x584] ss:$8 sps:$4 sm:$0xff]  }
 0x54d   : > { %v7401_v37 = vmax.f32 %v7369_v48, 0.0  ;;  %8695 = vmatprep.subr.bf16.mxu0 %v24312_v9  ;;  %v7485_v12 = vor.u32 %v7483_v54, %v7482_v56  ;;  %v24331_v10 = vor.u32 %v7588_v61, %v7480_v25 }
 0x54e   : > { %29394 = vst [vmem:[#allocation84_spill] sm:$0xff] %v24328_v32  ;;  %v24333_v27 = vpack.c.bf16 %v7400_v55, %v7398_v42  ;;  %v24363_v8 = vsel %vm21450_vm7, 0, %v7478_v16 }
 0x54f   : > { %29395 = vst [vmem:[#allocation85_spill] sm:$0xff] %v24331_v10  ;;  %v24340_v44 = vpack.c.bf16 %v7401_v37, %v7399_v39  ;;  %10952 = vmatpush1.bf16.msra.mxu1 %v23896_v52  ;;  %v7289_v11 = vpop.f32.mrb[132].mxu1  ;;  %8633 = vmatmul.mubr.bf16.gmra.mrb[156].mxu0 %v23859_v20  ;;  %v24346_v54 = vsel %vm21450_vm7, 0, %v7485_v12  ;;  %v24354_v39 = vld [vmem:[%s28857_s7 + $0x570] ss:$8 sps:$4 sm:$0xff]   ;;  %29399 = vst [vmem:[#allocation89_spill] sm:$0xff] %v24363_v8 }
 0x550   : > { %29396 = vst [vmem:[#allocation86_spill] sm:$0xff] %v24333_v27  ;;  %29398 = vst [vmem:[#allocation88_spill] sm:$0xff] %v24346_v54  ;;  %v7370_v63 = vadd.f32 %v7289_v11, %v23736_v1  ;;  %v7291_v42 = vpop.f32.mrb[133].mxu1  ;;  %8642 = vmatprep.mubr.bf16.mxu0 %v23917_v46  ;;  %8696 = vmatpush1.bf16.msra.mxu0 %v24326_v13  ;;  %v7487_v52 = vshrl.u32 %v24333_v27, 16  ;;  %v7490_v37 = vshll.u32 %v24333_v27, 16 }
 0x551   : > { %29397 = vst [vmem:[#allocation87_spill] sm:$0xff] %v24340_v44  ;;  %v7371_v55 = vadd.f32 %v7291_v42, %v23739_v21  ;;  %10890 = vmatprep.mubr.bf16.mxu1 %v24346_v54  ;;  %10953 = vmatprep.subr.bf16.mxu1 %v23903_v22  ;;  %v7293_v25 = vpop.f32.mrb[134].mxu1  ;;  %v7494_v53 = vshrl.u32 %v24340_v44, 16  ;;  %v7497_v48 = vshll.u32 %v24340_v44, 16 }
 0x552   : > { %v7372_v56 = vadd.f32 %v7293_v25, %v23736_v1  ;;  %10891 = vmatmul.mubr.bf16.gmra.mrb[156].mxu1 %v24363_v8  ;;  %v7295_v61 = vpop.f32.mrb[135].mxu1  ;;  %8697 = vmatprep.subr.bf16.mxu0 %v24338_v5  ;;  %v7489_v22 = vrot.slane %v7487_v52, 7  ;;  %v7590_v12 = vrot.slane %v7490_v37, 1  ;;  %v7402_v46 = vmax.f32 %v7370_v63, 0.0  ;;  %v24382_v25 = vld [vmem:[%s28857_s7 + $0x580] ss:$8 sps:$4 sm:$0xff]  }
 0x553   : > { %10954 = vmatpush1.bf16.msra.mxu1 %v23915_v38  ;;  %v7373_v16 = vadd.f32 %v7295_v61, %v23739_v21  ;;  %v7496_v11 = vrot.slane %v7494_v53, 7  ;;  %v7592_v42 = vrot.slane %v7497_v48, 1  ;;  %v7403_v20 = vmax.f32 %v7371_v55, 0.0 }
 0x554   : > { %v7404_v54 = vmax.f32 %v7372_v56, 0.0  ;;  %8698 = vmatpush1.bf16.msra.mxu0 %v24354_v39  ;;  %10955 = vmatprep.subr.bf16.mxu1 %v23927_v6  ;;  %v24384_v8 = vor.u32 %v7590_v12, %v7487_v52  ;;  %v7492_v61 = vor.u32 %v7490_v37, %v7489_v22  ;;  %v24394_v6 = vld [vmem:[%s28857_s7 + $0x594] ss:$8 sps:$4 sm:$0xff]   ;;  %v24424_v22 = vld [vmem:[%s28857_s7 + $0x5a4] ss:$8 sps:$4 sm:$0xff]  }
 0x555   : > { %v7405_v32 = vmax.f32 %v7373_v16, 0.0  ;;  %8699 = vmatprep.subr.bf16.mxu0 %v24368_v35  ;;  %v7499_v38 = vor.u32 %v7497_v48, %v7496_v11  ;;  %v24387_v10 = vor.u32 %v7592_v42, %v7494_v53 }
 0x556   : > { %29400 = vst [vmem:[#allocation90_spill] sm:$0xff] %v24384_v8  ;;  %v24389_v63 = vpack.c.bf16 %v7404_v54, %v7402_v46  ;;  %v24419_v56 = vsel %vm21450_vm7, 0, %v7492_v61 }
 0x557   : > { %29401 = vst [vmem:[#allocation91_spill] sm:$0xff] %v24387_v10  ;;  %v24396_v55 = vpack.c.bf16 %v7405_v32, %v7403_v20  ;;  %10956 = vmatpush1.bf16.msra.mxu1 %v23946_v57  ;;  %v7299_v52 = vpop.f32.mrb[136].mxu1  ;;  %8643 = vmatmul.mubr.bf16.gmra.mrb[160].mxu0 %v23909_v47  ;;  %v24402_v48 = vsel %vm21450_vm7, 0, %v7499_v38  ;;  %v24410_v20 = vld [vmem:[%s28857_s7 + $0x590] ss:$8 sps:$4 sm:$0xff]   ;;  %29405 = vst [vmem:[#allocation95_spill] sm:$0xff] %v24419_v56 }
 0x558   : > { %29402 = vst [vmem:[#allocation92_spill] sm:$0xff] %v24389_v63  ;;  %29404 = vst [vmem:[#allocation94_spill] sm:$0xff] %v24402_v48  ;;  %v7374_v37 = vadd.f32 %v7299_v52, %v23736_v1  ;;  %v7301_v46 = vpop.f32.mrb[137].mxu1  ;;  %8652 = vmatprep.mubr.bf16.mxu0 %v23967_v59  ;;  %8700 = vmatpush1.bf16.msra.mxu0 %v24382_v25  ;;  %v7501_v57 = vshrl.u32 %v24389_v63, 16  ;;  %v7504_v32 = vshll.u32 %v24389_v63, 16 }
 0x559   : > { %29403 = vst [vmem:[#allocation93_spill] sm:$0xff] %v24396_v55  ;;  %v7375_v54 = vadd.f32 %v7301_v46, %v23739_v21  ;;  %10900 = vmatprep.mubr.bf16.mxu1 %v24402_v48  ;;  %10957 = vmatprep.subr.bf16.mxu1 %v23953_v30  ;;  %v7303_v53 = vpop.f32.mrb[138].mxu1  ;;  %v7508_v12 = vshrl.u32 %v24396_v55, 16  ;;  %v7511_v16 = vshll.u32 %v24396_v55, 16 }
 0x55a   : > { %v7376_v11 = vadd.f32 %v7303_v53, %v23736_v1  ;;  %10901 = vmatmul.mubr.bf16.gmra.mrb[160].mxu1 %v24419_v56  ;;  %v7305_v42 = vpop.f32.mrb[139].mxu1  ;;  %8701 = vmatprep.subr.bf16.mxu0 %v24394_v6  ;;  %v7503_v30 = vrot.slane %v7501_v57, 7  ;;  %v7594_v38 = vrot.slane %v7504_v32, 1  ;;  %v7406_v59 = vmax.f32 %v7374_v37, 0.0  ;;  %v24438_v53 = vld [vmem:[%s28857_s7 + $0x5a0] ss:$8 sps:$4 sm:$0xff]  }
 0x55b   : > { %10958 = vmatpush1.bf16.msra.mxu1 %v23965_v28  ;;  %v7377_v61 = vadd.f32 %v7305_v42, %v23739_v21  ;;  %v7510_v52 = vrot.slane %v7508_v12, 7  ;;  %v7596_v46 = vrot.slane %v7511_v16, 1  ;;  %v7407_v47 = vmax.f32 %v7375_v54, 0.0 }
 0x55c   : > { %v7408_v48 = vmax.f32 %v7376_v11, 0.0  ;;  %8702 = vmatpush1.bf16.msra.mxu0 %v24410_v20  ;;  %10959 = vmatprep.subr.bf16.mxu1 %v23977_v49  ;;  %v24440_v56 = vor.u32 %v7594_v38, %v7501_v57  ;;  %v7506_v42 = vor.u32 %v7504_v32, %v7503_v30  ;;  %v24450_v49 = vld [vmem:[%s28857_s7 + $0x5b4] ss:$8 sps:$4 sm:$0xff]   ;;  %v24480_v30 = vld [vmem:[%s28857_s7 + $0x5c4] ss:$8 sps:$4 sm:$0xff]  }
 0x55d   : > { %v7409_v8 = vmax.f32 %v7377_v61, 0.0  ;;  %8703 = vmatprep.subr.bf16.mxu0 %v24424_v22  ;;  %v7513_v28 = vor.u32 %v7511_v16, %v7510_v52  ;;  %v24443_v10 = vor.u32 %v7596_v46, %v7508_v12 }
 0x55e   : > { %v24445_v37 = vpack.c.bf16 %v7408_v48, %v7406_v59  ;;  %v24475_v11 = vsel %vm21450_vm7, 0, %v7506_v42 }
 0x55f   : > { %v24452_v54 = vpack.c.bf16 %v7409_v8, %v7407_v47  ;;  %10960 = vmatpush1.bf16.msra.mxu1 %v23996_v45  ;;  %v7309_v57 = vpop.f32.mrb[140].mxu1  ;;  %8653 = vmatmul.mubr.bf16.gmra.mrb[164].mxu0 %v23959_v41  ;;  %v24458_v16 = vsel %vm21450_vm7, 0, %v7513_v28  ;;  %v24466_v47 = vld [vmem:[%s28857_s7 + $0x5b0] ss:$8 sps:$4 sm:$0xff]   ;;  %29409 = vst [vmem:[#allocation99_spill] sm:$0xff] %v24475_v11 }
 0x560   : > { %29406 = vst [vmem:[#allocation96_spill] sm:$0xff] %v24445_v37  ;;  %29408 = vst [vmem:[#allocation98_spill] sm:$0xff] %v24458_v16  ;;  %v7378_v32 = vadd.f32 %v7309_v57, %v23736_v1  ;;  %v7311_v59 = vpop.f32.mrb[141].mxu1  ;;  %8662 = vmatprep.mubr.bf16.mxu0 %v24017_v50  ;;  %8704 = vmatpush1.bf16.msra.mxu0 %v24438_v53  ;;  %v7515_v45 = vshrl.u32 %v24445_v37, 16  ;;  %v7518_v8 = vshll.u32 %v24445_v37, 16 }
 0x561   : > { %29407 = vst [vmem:[#allocation97_spill] sm:$0xff] %v24452_v54  ;;  %v7379_v48 = vadd.f32 %v7311_v59, %v23739_v21  ;;  %10910 = vmatprep.mubr.bf16.mxu1 %v24458_v16  ;;  %10961 = vmatprep.subr.bf16.mxu1 %v24003_v23  ;;  %v7313_v12 = vpop.f32.mrb[142].mxu1  ;;  %v7522_v38 = vshrl.u32 %v24452_v54, 16  ;;  %v7525_v61 = vshll.u32 %v24452_v54, 16 }
 0x562   : > { %v7380_v52 = vadd.f32 %v7313_v12, %v23736_v1  ;;  %10911 = vmatmul.mubr.bf16.gmra.mrb[164].mxu1 %v24475_v11  ;;  %v7315_v46 = vpop.f32.mrb[143].mxu1  ;;  %8705 = vmatprep.subr.bf16.mxu0 %v24450_v49  ;;  %v7517_v23 = vrot.slane %v7515_v45, 7  ;;  %v7598_v28 = vrot.slane %v7518_v8, 1  ;;  %v7410_v50 = vmax.f32 %v7378_v32, 0.0  ;;  %v24494_v1 = vld [vmem:[%s28857_s7 + $0x5c0] ss:$8 sps:$4 sm:$0xff]  }
 0x563   : > { %10962 = vmatpush1.bf16.msra.mxu1 %v24015_v7  ;;  %v7381_v42 = vadd.f32 %v7315_v46, %v23739_v21  ;;  %v7524_v57 = vrot.slane %v7522_v38, 7  ;;  %v7600_v59 = vrot.slane %v7525_v61, 1  ;;  %v7411_v41 = vmax.f32 %v7379_v48, 0.0 }
 0x564   : > { %v7412_v16 = vmax.f32 %v7380_v52, 0.0  ;;  %8706 = vmatpush1.bf16.msra.mxu0 %v24466_v47  ;;  %10963 = vmatprep.subr.bf16.mxu1 %v24027_v4  ;;  %v24496_v12 = vor.u32 %v7598_v28, %v7515_v45  ;;  %v7520_v7 = vor.u32 %v7518_v8, %v7517_v23  ;;  %v24506_v4 = vld [vmem:[%s28857_s7 + $0x5d4] ss:$8 sps:$4 sm:$0xff]  }
 0x565   : > { %v7413_v11 = vmax.f32 %v7381_v42, 0.0  ;;  %8707 = vmatprep.subr.bf16.mxu0 %v24480_v30  ;;  %v7527_v21 = vor.u32 %v7525_v61, %v7524_v57  ;;  %v24499_v46 = vor.u32 %v7600_v59, %v7522_v38  ;;  %v29414_v8 = vld [vmem:[#allocation52_spill] sm:$0xff]  ;;  %v24534_v38 = vld [vmem:[%s28857_s7 + $0x5e4] ss:$8 sps:$4 sm:$0xff]   ;;  %v29417_v42 = vld [vmem:[#allocation51_spill] sm:$0xff] }
 0x566   : > { %29410 = vst [vmem:[#allocation100_spill] sm:$0xff] %v24496_v12  ;;  %v24501_v32 = vpack.c.bf16 %v7412_v16, %v7410_v50  ;;  %v24521_v50 = vld [vmem:[%s28857_s7 + $0x5d0] ss:$8 sps:$4 sm:$0xff]   ;;  %v25265_v12 = vld [vmem:[%s28857_s7 + $0x200] ss:$8 sps:$4 sm:$0xff]  }
 0x567   : > { %v24508_v48 = vpack.c.bf16 %v7413_v11, %v7411_v41  ;;  %10964 = vmatpush1.bf16.msra.mxu1 %v24046_v14  ;;  %8663 = vmatmul.mubr.bf16.gmra.mrb[168].mxu0 %v24009_v29  ;;  %v24514_v45 = vsel %vm21450_vm7, 0, %v7527_v21  ;;  %v29415_v14 = vld [vmem:[#allocation47_spill] sm:$0xff]  ;;  %v24529_v11 = vsel %vm21450_vm7, 0, %v7520_v7  ;;  %v29418_v21 = vld [vmem:[#allocation54_spill] sm:$0xff] }
 0x568   : > { %29411 = vst [vmem:[#allocation101_spill] sm:$0xff] %v24501_v32  ;;  %29413 = vst [vmem:[#allocation103_spill] sm:$0xff] %v24514_v45  ;;  %8672 = vmatprep.mubr.bf16.mxu0 %v29414_v8  ;;  %8708 = vmatpush1.bf16.msra.mxu0 %v24494_v1  ;;  %v7529_v41 = vshrl.u32 %v24501_v32, 16  ;;  %v7532_v16 = vshll.u32 %v24501_v32, 16  ;;  %v24546_v7 = vld [vmem:[%s28857_s7 + $0x5e0] ss:$8 sps:$4 sm:$0xff]  }
 0x569   : > { %29412 = vst [vmem:[#allocation102_spill] sm:$0xff] %v24508_v48  ;;  %10920 = vmatprep.mubr.bf16.mxu1 %v24514_v45  ;;  %10965 = vmatprep.subr.bf16.mxu1 %v29415_v14  ;;  %29416 = vst [vmem:[#allocation47_spill] sm:$0xff] %v24529_v11  ;;  %v7536_v61 = vshrl.u32 %v24508_v48, 16  ;;  %v7539_v52 = vshll.u32 %v24508_v48, 16  ;;  %v29420_v45 = vld [vmem:[#allocation20_spill] sm:$0xff] }
 0x56a   : > { %10921 = vmatmul.mubr.bf16.gmra.mrb[168].mxu1 %v24529_v11  ;;  %8709 = vmatprep.subr.bf16.mxu0 %v24506_v4  ;;  %v7531_v23 = vrot.slane %v7529_v41, 7  ;;  %v7602_v28 = vrot.slane %v7532_v16, 1 }
 0x56b   : > { %10966 = vmatpush1.bf16.msra.mxu1 %v29417_v42  ;;  %v7538_v57 = vrot.slane %v7536_v61, 7  ;;  %v7604_v59 = vrot.slane %v7539_v52, 1  ;;  %v24556_v42 = vld [vmem:[%s28857_s7 + $0x5f4] ss:$8 sps:$4 sm:$0xff]  }
 0x56c   : > { %8710 = vmatpush1.bf16.msra.mxu0 %v24521_v50  ;;  %10967 = vmatprep.subr.bf16.mxu1 %v29418_v21  ;;  %v24548_v14 = vor.u32 %v7602_v28, %v7529_v41  ;;  %v7534_v11 = vor.u32 %v7532_v16, %v7531_v23  ;;  %v29419_v21 = vld [vmem:[#allocation50_spill] sm:$0xff]  ;;  %v24563_v41 = vsel %vm21271_vm4, %v29420_v45, 0  ;;  %v24574_v16 = vld [vmem:[%s28857_s7 + $0x5f0] ss:$8 sps:$4 sm:$0xff]  }
 0x56d   : > { %8711 = vmatprep.subr.bf16.mxu0 %v24534_v38  ;;  %v7541_v8 = vor.u32 %v7539_v52, %v7538_v57  ;;  %v24551_v29 = vor.u32 %v7604_v59, %v7536_v61  ;;  %29422 = vst [vmem:[#allocation51_spill] sm:$0xff] %v24563_v41  ;;  %v24585_v45 = vld [vmem:[%s28857_s7 + $0x4] ss:$8 sps:$4 sm:$0xff]   ;;  %v29426_v61 = vld [vmem:[#allocation63_spill] sm:$0xff]  ;;  %v29430_v57 = vld [vmem:[#allocation64_spill] sm:$0xff] }
 0x56e   : > { %v29428_v23 = vld [vmem:[#allocation19_spill] sm:$0xff] }
 0x56f   : > { %10968 = vmatpush1.bf16.msra.mxu1 %v24094_v2  ;;  %8673 = vmatmul.mubr.bf16.gmra.mrb[172].mxu0 %v29419_v21  ;;  %v24567_v52 = vsel %vm21450_vm7, 0, %v7541_v8  ;;  %v24580_v2 = vsel %vm21450_vm7, 0, %v7534_v11  ;;  %v29425_v8 = vld [vmem:[#allocation58_spill] sm:$0xff]  ;;  %v24602_v11 = vld [vmem:[%s28857_s7 + $0x14] ss:$8 sps:$4 sm:$0xff]   ;;  %v24607_v28 = vsel %vm21271_vm4, %v29428_v23, 0 }
 0x570   : > { %29423 = vst [vmem:[#allocation54_spill] sm:$0xff] %v24567_v52  ;;  %8712 = vmatpush1.bf16.msra.mxu0 %v24546_v7  ;;  %8715 = vmatprep.mubr.bf16.mxu0 %v24563_v41  ;;  %29424 = vst [vmem:[#allocation20_spill] sm:$0xff] %v24580_v2  ;;  %v29431_v59 = vld [vmem:[#allocation11_spill] sm:$0xff]  ;;  %v24628_v23 = vld [vmem:[%s28857_s7 + $0x24] ss:$8 sps:$4 sm:$0xff]  }
 0x571   : > { %10930 = vmatprep.mubr.bf16.mxu1 %v24567_v52  ;;  %10969 = vmatprep.subr.bf16.mxu1 %v24101_v51  ;;  %v29427_v51 = vld [vmem:[#allocation60_spill] sm:$0xff]  ;;  %29429 = vst [vmem:[#allocation5_spill] sm:$0xff] %v24607_v28  ;;  %v29435_v52 = vld [vmem:[#allocation10_spill] sm:$0xff] }
 0x572   : > { %10931 = vmatmul.mubr.bf16.gmra.mrb[172].mxu1 %v24580_v2  ;;  %8713 = vmatprep.subr.bf16.mxu0 %v24556_v42  ;;  %v24644_v2 = vld [vmem:[%s28857_s7 + $0x34] ss:$8 sps:$4 sm:$0xff]  }
 0x573   : > { %10970 = vmatpush1.bf16.msra.mxu1 %v29425_v8  ;;  %10973 = vmatprep.mubr.bf16.mxu1 %v29426_v61  ;;  %v24614_v8 = vsel %vm21271_vm4, %v29431_v59, 0  ;;  %v29434_v59 = vld [vmem:[#allocation66_spill] sm:$0xff] }
 0x574   : > { %8714 = vmatpush1.bf16.msra.mxu0 %v24574_v16  ;;  %10971 = vmatprep.subr.bf16.mxu1 %v29427_v51  ;;  %29432 = vst [vmem:[#allocation58_spill] sm:$0xff] %v24614_v8  ;;  %v24621_v51 = vld [vmem:[%s28857_s7 + $0x10] ss:$8 sps:$4 sm:$0xff]  }
 0x575   : > { %9276 = vmatprep.subr.bf16.mxu0 %v24585_v45 }
 0x577   : > { %10972 = vmatpush1.bf16.msra.mxu1 %v29430_v57  ;;  %8716 = vmatmul.mubr.bf16.vlgmr.msra.gmra.mrb[144].mxu0 %v24607_v28  ;;  %v29433_v57 = vld [vmem:[#allocation61_spill] sm:$0xff] }
 0x578   : > { %8725 = vmatprep.mubr.bf16.mxu0 %v24614_v8  ;;  %9277 = vmatpush1.bf16.msra.mxu0 %v24596_v17 }
 0x579   : > { %11054 = vmatprep.subr.bf16.mxu1 %v24150_v33  ;;  %9278 = vmatprep.subr.bf16.mxu0 %v24602_v11  ;;  %v24638_v33 = vld [vmem:[%s28857_s7 + $0x20] ss:$8 sps:$4 sm:$0xff]  }
 0x57a   : > { %10974 = vmatmul.mubr.bf16.vlgmr.msra.gmra.mrb[144].mxu1 %v29433_v57  ;;  %v24663_v57 = vld [vmem:[%s28857_s7 + $0x30] ss:$8 sps:$4 sm:$0xff]  }
 0x57b   : > { %11055 = vmatpush1.bf16.msra.mxu1 %v24160_v15  ;;  %10983 = vmatprep.mubr.bf16.mxu1 %v24174_v62  ;;  %v24649_v15 = vsel %vm21271_vm4, %v29435_v52, 0  ;;  %v29439_v52 = vld [vmem:[#allocation68_spill] sm:$0xff] }
 0x57c   : > { %9279 = vmatpush1.bf16.msra.mxu0 %v24621_v51  ;;  %11056 = vmatprep.subr.bf16.mxu1 %v29434_v59  ;;  %29436 = vst [vmem:[#allocation60_spill] sm:$0xff] %v24649_v15  ;;  %v29437_v59 = vld [vmem:[#allocation28_spill] sm:$0xff] }
 0x57d   : > { %9280 = vmatprep.subr.bf16.mxu0 %v24628_v23  ;;  %v24656_v62 = vsel %vm21271_vm4, %v29437_v59, 0  ;;  %v24686_v59 = vld [vmem:[%s28857_s7 + $0x54] ss:$8 sps:$4 sm:$0xff]  }
 0x57e   : > { %29438 = vst [vmem:[#allocation19_spill] sm:$0xff] %v24656_v62 }
 0x57f   : > { %11057 = vmatpush1.bf16.msra.mxu1 %v24187_v43  ;;  %8726 = vmatmul.mubr.bf16.gmra.mrb[148].mxu0 %v24649_v15  ;;  %v24670_v43 = vld [vmem:[%s28857_s7 + $0x44] ss:$8 sps:$4 sm:$0xff]  }
 0x580   : > { %8735 = vmatprep.mubr.bf16.mxu0 %v24656_v62  ;;  %9281 = vmatpush1.bf16.msra.mxu0 %v24638_v33  ;;  %v24705_v62 = vld [vmem:[%s28857_s7 + $0x50] ss:$8 sps:$4 sm:$0xff]  }
 0x581   : > { %11058 = vmatprep.subr.bf16.mxu1 %v24201_v31  ;;  %9282 = vmatprep.subr.bf16.mxu0 %v24644_v2  ;;  %v24680_v31 = vld [vmem:[%s28857_s7 + $0x40] ss:$8 sps:$4 sm:$0xff]  }
 0x582   : > { %10984 = vmatmul.mubr.bf16.gmra.mrb[148].mxu1 %v29439_v52  ;;  %v29440_v52 = vld [vmem:[#allocation26_spill] sm:$0xff] }
 0x583   : > { %11059 = vmatpush1.bf16.msra.mxu1 %v24214_v60  ;;  %10993 = vmatprep.mubr.bf16.mxu1 %v24228_v24  ;;  %v24691_v60 = vsel %vm21271_vm4, %v29440_v52, 0  ;;  %v24728_v52 = vld [vmem:[%s28857_s7 + $0x74] ss:$8 sps:$4 sm:$0xff]  }
 0x584   : > { %9283 = vmatpush1.bf16.msra.mxu0 %v24663_v57  ;;  %11060 = vmatprep.subr.bf16.mxu1 %v24226_v36  ;;  %29441 = vst [vmem:[#allocation64_spill] sm:$0xff] %v24691_v60  ;;  %v29442_v36 = vld [vmem:[#allocation32_spill] sm:$0xff] }
 0x585   : > { %9284 = vmatprep.subr.bf16.mxu0 %v24670_v43  ;;  %v24698_v24 = vsel %vm21271_vm4, %v29442_v36, 0  ;;  %v29444_v36 = vld [vmem:[#allocation31_spill] sm:$0xff] }
 0x586   : > { %29443 = vst [vmem:[#allocation11_spill] sm:$0xff] %v24698_v24 }
 0x587   : > { %11061 = vmatpush1.bf16.msra.mxu1 %v24242_v19  ;;  %8736 = vmatmul.mubr.bf16.gmra.mrb[152].mxu0 %v24691_v60  ;;  %v24712_v19 = vld [vmem:[%s28857_s7 + $0x64] ss:$8 sps:$4 sm:$0xff]  }
 0x588   : > { %8745 = vmatprep.mubr.bf16.mxu0 %v24698_v24  ;;  %9285 = vmatpush1.bf16.msra.mxu0 %v24680_v31 }
 0x589   : > { %11062 = vmatprep.subr.bf16.mxu1 %v24256_v3  ;;  %9286 = vmatprep.subr.bf16.mxu0 %v24686_v59  ;;  %v24722_v3 = vld [vmem:[%s28857_s7 + $0x60] ss:$8 sps:$4 sm:$0xff]  }
 0x58a   : > { %10994 = vmatmul.mubr.bf16.gmra.mrb[152].mxu1 %v24221_v0  ;;  %v24747_v0 = vld [vmem:[%s28857_s7 + $0x70] ss:$8 sps:$4 sm:$0xff]  }
 0x58b   : > { %11063 = vmatpush1.bf16.msra.mxu1 %v24270_v18  ;;  %11003 = vmatprep.mubr.bf16.mxu1 %v24284_v40  ;;  %v24733_v18 = vsel %vm21271_vm4, %v29444_v36, 0  ;;  %v24770_v36 = vld [vmem:[%s28857_s7 + $0x94] ss:$8 sps:$4 sm:$0xff]  }
 0x58c   : > { %9287 = vmatpush1.bf16.msra.mxu0 %v24705_v62  ;;  %11064 = vmatprep.subr.bf16.mxu1 %v24282_v34  ;;  %29445 = vst [vmem:[#allocation66_spill] sm:$0xff] %v24733_v18  ;;  %v29446_v34 = vld [vmem:[#allocation36_spill] sm:$0xff] }
 0x58d   : > { %9288 = vmatprep.subr.bf16.mxu0 %v24712_v19  ;;  %v24740_v40 = vsel %vm21271_vm4, %v29446_v34, 0  ;;  %v29448_v34 = vld [vmem:[#allocation35_spill] sm:$0xff] }
 0x58e   : > { %29447 = vst [vmem:[#allocation10_spill] sm:$0xff] %v24740_v40 }
 0x58f   : > { %11065 = vmatpush1.bf16.msra.mxu1 %v24298_v26  ;;  %8746 = vmatmul.mubr.bf16.gmra.mrb[156].mxu0 %v24733_v18  ;;  %v24754_v26 = vld [vmem:[%s28857_s7 + $0x84] ss:$8 sps:$4 sm:$0xff]  }
 0x590   : > { %8755 = vmatprep.mubr.bf16.mxu0 %v24740_v40  ;;  %9289 = vmatpush1.bf16.msra.mxu0 %v24722_v3 }
 0x591   : > { %11066 = vmatprep.subr.bf16.mxu1 %v24312_v9  ;;  %9290 = vmatprep.subr.bf16.mxu0 %v24728_v52  ;;  %v24764_v9 = vld [vmem:[%s28857_s7 + $0x80] ss:$8 sps:$4 sm:$0xff]  }
 0x592   : > { %11004 = vmatmul.mubr.bf16.gmra.mrb[156].mxu1 %v24277_v58  ;;  %v24789_v58 = vld [vmem:[%s28857_s7 + $0x90] ss:$8 sps:$4 sm:$0xff]  }
 0x593   : > { %11067 = vmatpush1.bf16.msra.mxu1 %v24326_v13  ;;  %11013 = vmatprep.mubr.bf16.mxu1 %v24340_v44  ;;  %v24775_v13 = vsel %vm21271_vm4, %v29448_v34, 0  ;;  %v24812_v34 = vld [vmem:[%s28857_s7 + $0xb4] ss:$8 sps:$4 sm:$0xff]  }
 0x594   : > { %9291 = vmatpush1.bf16.msra.mxu0 %v24747_v0  ;;  %11068 = vmatprep.subr.bf16.mxu1 %v24338_v5  ;;  %29449 = vst [vmem:[#allocation28_spill] sm:$0xff] %v24775_v13  ;;  %v29450_v5 = vld [vmem:[#allocation42_spill] sm:$0xff] }
 0x595   : > { %9292 = vmatprep.subr.bf16.mxu0 %v24754_v26  ;;  %v24782_v44 = vsel %vm21271_vm4, %v29450_v5, 0  ;;  %v29452_v5 = vld [vmem:[#allocation41_spill] sm:$0xff] }
 0x596   : > { %29451 = vst [vmem:[#allocation26_spill] sm:$0xff] %v24782_v44 }
 0x597   : > { %11069 = vmatpush1.bf16.msra.mxu1 %v24354_v39  ;;  %8756 = vmatmul.mubr.bf16.gmra.mrb[160].mxu0 %v24775_v13  ;;  %v24796_v39 = vld [vmem:[%s28857_s7 + $0xa4] ss:$8 sps:$4 sm:$0xff]  }
 0x598   : > { %8765 = vmatprep.mubr.bf16.mxu0 %v24782_v44  ;;  %9293 = vmatpush1.bf16.msra.mxu0 %v24764_v9 }
 0x599   : > { %11070 = vmatprep.subr.bf16.mxu1 %v24368_v35  ;;  %9294 = vmatprep.subr.bf16.mxu0 %v24770_v36  ;;  %v24806_v35 = vld [vmem:[%s28857_s7 + $0xa0] ss:$8 sps:$4 sm:$0xff]  }
 0x59a   : > { %11014 = vmatmul.mubr.bf16.gmra.mrb[160].mxu1 %v24333_v27  ;;  %v24831_v27 = vld [vmem:[%s28857_s7 + $0xb0] ss:$8 sps:$4 sm:$0xff]  }
 0x59b   : > { %11071 = vmatpush1.bf16.msra.mxu1 %v24382_v25  ;;  %11023 = vmatprep.mubr.bf16.mxu1 %v24396_v55  ;;  %v24817_v25 = vsel %vm21271_vm4, %v29452_v5, 0  ;;  %v24854_v5 = vld [vmem:[%s28857_s7 + $0xd4] ss:$8 sps:$4 sm:$0xff]  }
 0x59c   : > { %9295 = vmatpush1.bf16.msra.mxu0 %v24789_v58  ;;  %11072 = vmatprep.subr.bf16.mxu1 %v24394_v6  ;;  %29453 = vst [vmem:[#allocation32_spill] sm:$0xff] %v24817_v25  ;;  %v29454_v6 = vld [vmem:[#allocation49_spill] sm:$0xff] }
 0x59d   : > { %9296 = vmatprep.subr.bf16.mxu0 %v24796_v39  ;;  %v24824_v55 = vsel %vm21271_vm4, %v29454_v6, 0  ;;  %v29456_v6 = vld [vmem:[#allocation48_spill] sm:$0xff] }
 0x59e   : > { %29455 = vst [vmem:[#allocation31_spill] sm:$0xff] %v24824_v55 }
 0x59f   : > { %11073 = vmatpush1.bf16.msra.mxu1 %v24410_v20  ;;  %8766 = vmatmul.mubr.bf16.gmra.mrb[164].mxu0 %v24817_v25  ;;  %v24838_v20 = vld [vmem:[%s28857_s7 + $0xc4] ss:$8 sps:$4 sm:$0xff]  }
 0x5a0   : > { %8775 = vmatprep.mubr.bf16.mxu0 %v24824_v55  ;;  %9297 = vmatpush1.bf16.msra.mxu0 %v24806_v35 }
 0x5a1   : > { %11074 = vmatprep.subr.bf16.mxu1 %v24424_v22  ;;  %9298 = vmatprep.subr.bf16.mxu0 %v24812_v34  ;;  %v24848_v22 = vld [vmem:[%s28857_s7 + $0xc0] ss:$8 sps:$4 sm:$0xff]  }
 0x5a2   : > { %11024 = vmatmul.mubr.bf16.gmra.mrb[164].mxu1 %v24389_v63  ;;  %v24873_v63 = vld [vmem:[%s28857_s7 + $0xd0] ss:$8 sps:$4 sm:$0xff]  }
 0x5a3   : > { %11075 = vmatpush1.bf16.msra.mxu1 %v24438_v53  ;;  %11033 = vmatprep.mubr.bf16.mxu1 %v24452_v54  ;;  %v24859_v53 = vsel %vm21271_vm4, %v29456_v6, 0  ;;  %v24896_v6 = vld [vmem:[%s28857_s7 + $0xf4] ss:$8 sps:$4 sm:$0xff]  }
 0x5a4   : > { %9299 = vmatpush1.bf16.msra.mxu0 %v24831_v27  ;;  %11076 = vmatprep.subr.bf16.mxu1 %v24450_v49  ;;  %29457 = vst [vmem:[#allocation36_spill] sm:$0xff] %v24859_v53  ;;  %v29458_v49 = vld [vmem:[#allocation57_spill] sm:$0xff] }
 0x5a5   : > { %9300 = vmatprep.subr.bf16.mxu0 %v24838_v20  ;;  %v24866_v54 = vsel %vm21271_vm4, %v29458_v49, 0  ;;  %v29460_v49 = vld [vmem:[#allocation56_spill] sm:$0xff] }
 0x5a6   : > { %29459 = vst [vmem:[#allocation35_spill] sm:$0xff] %v24866_v54 }
 0x5a7   : > { %11077 = vmatpush1.bf16.msra.mxu1 %v24466_v47  ;;  %8776 = vmatmul.mubr.bf16.gmra.mrb[168].mxu0 %v24859_v53  ;;  %v24880_v47 = vld [vmem:[%s28857_s7 + $0xe4] ss:$8 sps:$4 sm:$0xff]  }
 0x5a8   : > { %8785 = vmatprep.mubr.bf16.mxu0 %v24866_v54  ;;  %9301 = vmatpush1.bf16.msra.mxu0 %v24848_v22 }
 0x5a9   : > { %11078 = vmatprep.subr.bf16.mxu1 %v24480_v30  ;;  %9302 = vmatprep.subr.bf16.mxu0 %v24854_v5  ;;  %v24890_v30 = vld [vmem:[%s28857_s7 + $0xe0] ss:$8 sps:$4 sm:$0xff]  }
 0x5aa   : > { %11034 = vmatmul.mubr.bf16.gmra.mrb[168].mxu1 %v24445_v37 }
 0x5ab   : > { %11079 = vmatpush1.bf16.msra.mxu1 %v24494_v1  ;;  %11043 = vmatprep.mubr.bf16.mxu1 %v24508_v48  ;;  %v24901_v1 = vsel %vm21271_vm4, %v29460_v49, 0  ;;  %v24913_v48 = vld [vmem:[#allocation2] sm:$0xff]  ;;  %v29462_v49 = vld [vmem:[#allocation67_spill] sm:$0xff] }
 0x5ac   : > { %9303 = vmatpush1.bf16.msra.mxu0 %v24873_v63  ;;  %11080 = vmatprep.subr.bf16.mxu1 %v24506_v4  ;;  %29461 = vst [vmem:[#allocation42_spill] sm:$0xff] %v24901_v1  ;;  %v24910_v4 = vld [vmem:[%s28857_s7 + $0xf0] ss:$8 sps:$4 sm:$0xff]  }
 0x5ad   : > { %9304 = vmatprep.subr.bf16.mxu0 %v24880_v47 }
 0x5af   : > { %11081 = vmatpush1.bf16.msra.mxu1 %v24521_v50  ;;  %8786 = vmatmul.mubr.bf16.gmra.mrb[172].mxu0 %v24901_v1  ;;  %v24919_v50 = vld [vmem:[%s28857_s7 + $0x104] ss:$8 sps:$4 sm:$0xff]   ;;  %v24934_v1 = vld [vmem:[%s28857_s7 + $0x100] ss:$8 sps:$4 sm:$0xff]  }
 0x5b0   : > { %9305 = vmatpush1.bf16.msra.mxu0 %v24890_v30  ;;  %11082 = vmatprep.subr.bf16.mxu1 %v24534_v38  ;;  %v24925_v38 = vsel %vm21271_vm4, %v29462_v49, 0  ;;  %v24940_v49 = vld [vmem:[%s28857_s7 + $0x114] ss:$8 sps:$4 sm:$0xff]  }
 0x5b1   : > { %9306 = vmatprep.subr.bf16.mxu0 %v24896_v6  ;;  %9308 = vmatprep.mubr.bf16.mxu0 %v24913_v48  ;;  %29463 = vst [vmem:[#allocation41_spill] sm:$0xff] %v24925_v38 }
 0x5b2   : > { %11044 = vmatmul.mubr.bf16.gmra.mrb[172].mxu1 %v24501_v32  ;;  %v29465_v32 = vld [vmem:[#allocation65_spill] sm:$0xff] }
 0x5b3   : > { %11083 = vmatpush1.bf16.msra.mxu1 %v24546_v7  ;;  %11086 = vmatprep.mubr.bf16.mxu1 %v24925_v38  ;;  %v29464_v7 = vld [vmem:[#allocation7_spill] sm:$0xff]  ;;  %v24955_v38 = vsel %vm21271_vm4, %v29465_v32, 0  ;;  %v24976_v32 = vld [vmem:[%s28857_s7 + $0x120] ss:$8 sps:$4 sm:$0xff]  }
 0x5b4   : > { %9307 = vmatpush1.bf16.msra.mxu0 %v24910_v4  ;;  %11084 = vmatprep.subr.bf16.mxu1 %v24556_v42  ;;  %v24949_v42 = vld [vmem:[%s28857_s7 + $0x110] ss:$8 sps:$4 sm:$0xff]   ;;  %29466 = vst [vmem:[#allocation49_spill] sm:$0xff] %v24955_v38 }
 0x5b5   : > { %9389 = vmatprep.subr.bf16.mxu0 %v24919_v50 }
 0x5b7   : > { %11085 = vmatpush1.bf16.msra.mxu1 %v24574_v16  ;;  %9309 = vmatmul.mubr.bf16.vlgmr.msra.gmra.mrb[144].mxu0 %v24913_v48  ;;  %v24961_v16 = vld [vmem:[%s28857_s7 + $0x124] ss:$8 sps:$4 sm:$0xff]  }
 0x5b8   : > { %9318 = vmatprep.mubr.bf16.mxu0 %v29464_v7  ;;  %9390 = vmatpush1.bf16.msra.mxu0 %v24934_v1  ;;  %v29467_v7 = vld [vmem:[#allocation73_spill] sm:$0xff] }
 0x5b9   : > { %11167 = vmatprep.subr.bf16.mxu1 %v24585_v45  ;;  %9391 = vmatprep.subr.bf16.mxu0 %v24940_v49  ;;  %v24967_v54 = vsel %vm21271_vm4, %v29467_v7, 0  ;;  %v24982_v45 = vld [vmem:[%s28857_s7 + $0x134] ss:$8 sps:$4 sm:$0xff]   ;;  %v29470_v7 = vld [vmem:[#allocation25_spill] sm:$0xff] }
 0x5ba   : > { %11087 = vmatmul.mubr.bf16.vlgmr.msra.gmra.mrb[144].mxu1 %v24955_v38  ;;  %29468 = vst [vmem:[#allocation48_spill] sm:$0xff] %v24967_v54 }
 0x5bb   : > { %11168 = vmatpush1.bf16.msra.mxu1 %v24596_v17  ;;  %11096 = vmatprep.mubr.bf16.mxu1 %v24967_v54  ;;  %v29469_v17 = vld [vmem:[#allocation8_spill] sm:$0xff] }
 0x5bc   : > { %9392 = vmatpush1.bf16.msra.mxu0 %v24949_v42  ;;  %11169 = vmatprep.subr.bf16.mxu1 %v24602_v11  ;;  %v24991_v11 = vld [vmem:[%s28857_s7 + $0x130] ss:$8 sps:$4 sm:$0xff]  }
 0x5bd   : > { %9393 = vmatprep.subr.bf16.mxu0 %v24961_v16  ;;  %v29471_v54 = vld [vmem:[#allocation72_spill] sm:$0xff] }
 0x5be   : > { %v24997_v38 = vsel %vm21271_vm4, %v29471_v54, 0  ;;  %v25018_v54 = vld [vmem:[%s28857_s7 + $0x140] ss:$8 sps:$4 sm:$0xff]  }
 0x5bf   : > { %11170 = vmatpush1.bf16.msra.mxu1 %v24621_v51  ;;  %9319 = vmatmul.mubr.bf16.gmra.mrb[148].mxu0 %v29469_v17  ;;  %29472 = vst [vmem:[#allocation57_spill] sm:$0xff] %v24997_v38  ;;  %v25003_v51 = vld [vmem:[%s28857_s7 + $0x144] ss:$8 sps:$4 sm:$0xff]   ;;  %v29473_v17 = vld [vmem:[#allocation79_spill] sm:$0xff] }
 0x5c0   : > { %9328 = vmatprep.mubr.bf16.mxu0 %v29470_v7  ;;  %9394 = vmatpush1.bf16.msra.mxu0 %v24976_v32  ;;  %v25009_v37 = vsel %vm21271_vm4, %v29473_v17, 0  ;;  %v29476_v17 = vld [vmem:[#allocation30_spill] sm:$0xff] }
 0x5c1   : > { %11171 = vmatprep.subr.bf16.mxu1 %v24628_v23  ;;  %9395 = vmatprep.subr.bf16.mxu0 %v24982_v45  ;;  %29474 = vst [vmem:[#allocation56_spill] sm:$0xff] %v25009_v37  ;;  %v25024_v23 = vld [vmem:[%s28857_s7 + $0x154] ss:$8 sps:$4 sm:$0xff]  }
 0x5c2   : > { %11097 = vmatmul.mubr.bf16.gmra.mrb[148].mxu1 %v24997_v38 }
 0x5c3   : > { %11172 = vmatpush1.bf16.msra.mxu1 %v24638_v33  ;;  %11106 = vmatprep.mubr.bf16.mxu1 %v25009_v37  ;;  %v29475_v33 = vld [vmem:[#allocation24_spill] sm:$0xff]  ;;  %v29477_v37 = vld [vmem:[#allocation78_spill] sm:$0xff] }
 0x5c4   : > { %9396 = vmatpush1.bf16.msra.mxu0 %v24991_v11  ;;  %11173 = vmatprep.subr.bf16.mxu1 %v24644_v2  ;;  %v25033_v2 = vld [vmem:[%s28857_s7 + $0x150] ss:$8 sps:$4 sm:$0xff]   ;;  %v25039_v38 = vsel %vm21271_vm4, %v29477_v37, 0  ;;  %v25060_v37 = vld [vmem:[%s28857_s7 + $0x160] ss:$8 sps:$4 sm:$0xff]  }
 0x5c5   : > { %9397 = vmatprep.subr.bf16.mxu0 %v25003_v51  ;;  %29478 = vst [vmem:[#allocation67_spill] sm:$0xff] %v25039_v38 }
 0x5c7   : > { %11174 = vmatpush1.bf16.msra.mxu1 %v24663_v57  ;;  %9329 = vmatmul.mubr.bf16.gmra.mrb[152].mxu0 %v29475_v33  ;;  %v25045_v57 = vld [vmem:[%s28857_s7 + $0x164] ss:$8 sps:$4 sm:$0xff]  }
 0x5c8   : > { %9338 = vmatprep.mubr.bf16.mxu0 %v29476_v17  ;;  %9398 = vmatpush1.bf16.msra.mxu0 %v25018_v54  ;;  %v29479_v17 = vld [vmem:[#allocation85_spill] sm:$0xff] }
 0x5c9   : > { %11175 = vmatprep.subr.bf16.mxu1 %v24670_v43  ;;  %9399 = vmatprep.subr.bf16.mxu0 %v25024_v23  ;;  %v25051_v33 = vsel %vm21271_vm4, %v29479_v17, 0  ;;  %v25066_v43 = vld [vmem:[%s28857_s7 + $0x174] ss:$8 sps:$4 sm:$0xff]   ;;  %v29482_v17 = vld [vmem:[#allocation33_spill] sm:$0xff] }
 0x5ca   : > { %11107 = vmatmul.mubr.bf16.gmra.mrb[152].mxu1 %v25039_v38  ;;  %29480 = vst [vmem:[#allocation65_spill] sm:$0xff] %v25051_v33 }
 0x5cb   : > { %11176 = vmatpush1.bf16.msra.mxu1 %v24680_v31  ;;  %11116 = vmatprep.mubr.bf16.mxu1 %v25051_v33  ;;  %v29481_v31 = vld [vmem:[#allocation15_spill] sm:$0xff]  ;;  %v29483_v33 = vld [vmem:[#allocation84_spill] sm:$0xff] }
 0x5cc   : > { %9400 = vmatpush1.bf16.msra.mxu0 %v25033_v2  ;;  %11177 = vmatprep.subr.bf16.mxu1 %v24686_v59  ;;  %v25075_v59 = vld [vmem:[%s28857_s7 + $0x170] ss:$8 sps:$4 sm:$0xff]   ;;  %v25081_v38 = vsel %vm21271_vm4, %v29483_v33, 0  ;;  %v25108_v33 = vld [vmem:[%s28857_s7 + $0x194] ss:$8 sps:$4 sm:$0xff]  }
 0x5cd   : > { %9401 = vmatprep.subr.bf16.mxu0 %v25045_v57  ;;  %29484 = vst [vmem:[#allocation73_spill] sm:$0xff] %v25081_v38 }
 0x5cf   : > { %11178 = vmatpush1.bf16.msra.mxu1 %v24705_v62  ;;  %9339 = vmatmul.mubr.bf16.gmra.mrb[156].mxu0 %v29481_v31  ;;  %v25087_v62 = vld [vmem:[%s28857_s7 + $0x184] ss:$8 sps:$4 sm:$0xff]  }
 0x5d0   : > { %9348 = vmatprep.mubr.bf16.mxu0 %v29482_v17  ;;  %9402 = vmatpush1.bf16.msra.mxu0 %v25060_v37  ;;  %v29485_v17 = vld [vmem:[#allocation91_spill] sm:$0xff] }
 0x5d1   : > { %11179 = vmatprep.subr.bf16.mxu1 %v24712_v19  ;;  %9403 = vmatprep.subr.bf16.mxu0 %v25066_v43  ;;  %v25093_v31 = vsel %vm21271_vm4, %v29485_v17, 0  ;;  %v25102_v19 = vld [vmem:[%s28857_s7 + $0x180] ss:$8 sps:$4 sm:$0xff]   ;;  %v29488_v17 = vld [vmem:[#allocation39_spill] sm:$0xff] }
 0x5d2   : > { %11117 = vmatmul.mubr.bf16.gmra.mrb[156].mxu1 %v25081_v38  ;;  %29486 = vst [vmem:[#allocation72_spill] sm:$0xff] %v25093_v31 }
 0x5d3   : > { %11180 = vmatpush1.bf16.msra.mxu1 %v24722_v3  ;;  %11126 = vmatprep.mubr.bf16.mxu1 %v25093_v31  ;;  %v29487_v3 = vld [vmem:[#allocation34_spill] sm:$0xff] }
 0x5d4   : > { %9404 = vmatpush1.bf16.msra.mxu0 %v25075_v59  ;;  %11181 = vmatprep.subr.bf16.mxu1 %v24728_v52  ;;  %v25117_v52 = vld [vmem:[%s28857_s7 + $0x190] ss:$8 sps:$4 sm:$0xff]   ;;  %v29489_v31 = vld [vmem:[#allocation90_spill] sm:$0xff] }
 0x5d5   : > { %9405 = vmatprep.subr.bf16.mxu0 %v25087_v62  ;;  %v25123_v38 = vsel %vm21271_vm4, %v29489_v31, 0  ;;  %v29493_v31 = vld [vmem:[#allocation45_spill] sm:$0xff] }
 0x5d6   : > { %29490 = vst [vmem:[#allocation79_spill] sm:$0xff] %v25123_v38 }
 0x5d7   : > { %11182 = vmatpush1.bf16.msra.mxu1 %v24747_v0  ;;  %9349 = vmatmul.mubr.bf16.gmra.mrb[160].mxu0 %v29487_v3  ;;  %v25129_v0 = vld [vmem:[%s28857_s7 + $0x1a4] ss:$8 sps:$4 sm:$0xff]  }
 0x5d8   : > { %9358 = vmatprep.mubr.bf16.mxu0 %v29488_v17  ;;  %9406 = vmatpush1.bf16.msra.mxu0 %v25102_v19  ;;  %v25135_v17 = vsel %vm21271_vm4, %v24443_v10, 0  ;;  %v25150_v10 = vld [vmem:[%s28857_s7 + $0x1b4] ss:$8 sps:$4 sm:$0xff]  }
 0x5d9   : > { %11183 = vmatprep.subr.bf16.mxu1 %v24754_v26  ;;  %9407 = vmatprep.subr.bf16.mxu0 %v25108_v33  ;;  %29491 = vst [vmem:[#allocation78_spill] sm:$0xff] %v25135_v17  ;;  %v25144_v26 = vld [vmem:[%s28857_s7 + $0x1a0] ss:$8 sps:$4 sm:$0xff]  }
 0x5da   : > { %11127 = vmatmul.mubr.bf16.gmra.mrb[160].mxu1 %v25123_v38  ;;  %v25177_v38 = vsel %vm21271_vm4, %v24499_v46, 0  ;;  %v25192_v46 = vld [vmem:[%s28857_s7 + $0x1d4] ss:$8 sps:$4 sm:$0xff]  }
 0x5db   : > { %11184 = vmatpush1.bf16.msra.mxu1 %v24764_v9  ;;  %11136 = vmatprep.mubr.bf16.mxu1 %v25135_v17  ;;  %v29492_v9 = vld [vmem:[#allocation40_spill] sm:$0xff]  ;;  %v25165_v17 = vsel %vm21271_vm4, %v24440_v56, 0  ;;  %29495 = vst [vmem:[#allocation84_spill] sm:$0xff] %v25177_v38  ;;  %v25186_v56 = vld [vmem:[%s28857_s7 + $0x1c0] ss:$8 sps:$4 sm:$0xff]  }
 0x5dc   : > { %9408 = vmatpush1.bf16.msra.mxu0 %v25117_v52  ;;  %11185 = vmatprep.subr.bf16.mxu1 %v24770_v36  ;;  %v25159_v36 = vld [vmem:[%s28857_s7 + $0x1b0] ss:$8 sps:$4 sm:$0xff]   ;;  %29494 = vst [vmem:[#allocation85_spill] sm:$0xff] %v25165_v17 }
 0x5dd   : > { %9409 = vmatprep.subr.bf16.mxu0 %v25129_v0 }
 0x5df   : > { %11186 = vmatpush1.bf16.msra.mxu1 %v24789_v58  ;;  %9359 = vmatmul.mubr.bf16.gmra.mrb[164].mxu0 %v29492_v9  ;;  %v25171_v58 = vld [vmem:[%s28857_s7 + $0x1c4] ss:$8 sps:$4 sm:$0xff]  }
 0x5e0   : > { %9368 = vmatprep.mubr.bf16.mxu0 %v29493_v31  ;;  %9410 = vmatpush1.bf16.msra.mxu0 %v25144_v26 }
 0x5e1   : > { %11187 = vmatprep.subr.bf16.mxu1 %v24796_v39  ;;  %9411 = vmatprep.subr.bf16.mxu0 %v25150_v10  ;;  %v29496_v39 = vld [vmem:[#allocation46_spill] sm:$0xff] }
 0x5e2   : > { %11137 = vmatmul.mubr.bf16.gmra.mrb[164].mxu1 %v25165_v17 }
 0x5e3   : > { %11188 = vmatpush1.bf16.msra.mxu1 %v24806_v35  ;;  %11146 = vmatprep.mubr.bf16.mxu1 %v25177_v38  ;;  %v29497_v35 = vld [vmem:[#allocation53_spill] sm:$0xff]  ;;  %v29498_v38 = vld [vmem:[#allocation100_spill] sm:$0xff] }
 0x5e4   : > { %9412 = vmatpush1.bf16.msra.mxu0 %v25159_v36  ;;  %11189 = vmatprep.subr.bf16.mxu1 %v24812_v34  ;;  %v25201_v34 = vld [vmem:[%s28857_s7 + $0x1d0] ss:$8 sps:$4 sm:$0xff]   ;;  %v25207_v17 = vsel %vm21271_vm4, %v29498_v38, 0  ;;  %v25248_v38 = vsel %vm21271_vm4, %v24548_v14, 0  ;;  %v25271_v14 = vld [vmem:[%s28857_s7 + $0x214] ss:$8 sps:$4 sm:$0xff]  }
 0x5e5   : > { %9413 = vmatprep.subr.bf16.mxu0 %v25171_v58  ;;  %29499 = vst [vmem:[#allocation91_spill] sm:$0xff] %v25207_v17  ;;  %29502 = vst [vmem:[#allocation100_spill] sm:$0xff] %v25248_v38 }
 0x5e7   : > { %11190 = vmatpush1.bf16.msra.mxu1 %v24831_v27  ;;  %9369 = vmatmul.mubr.bf16.gmra.mrb[168].mxu0 %v29496_v39  ;;  %v25213_v27 = vld [vmem:[%s28857_s7 + $0x1e4] ss:$8 sps:$4 sm:$0xff]  }
 0x5e8   : > { %9378 = vmatprep.mubr.bf16.mxu0 %v29497_v35  ;;  %9414 = vmatpush1.bf16.msra.mxu0 %v25186_v56  ;;  %v25219_v35 = vsel %vm21271_vm4, %v24551_v29, 0  ;;  %v25234_v29 = vld [vmem:[%s28857_s7 + $0x1f4] ss:$8 sps:$4 sm:$0xff]  }
 0x5e9   : > { %11191 = vmatprep.subr.bf16.mxu1 %v24838_v20  ;;  %9415 = vmatprep.subr.bf16.mxu0 %v25192_v46  ;;  %29500 = vst [vmem:[#allocation90_spill] sm:$0xff] %v25219_v35  ;;  %v25228_v20 = vld [vmem:[%s28857_s7 + $0x1e0] ss:$8 sps:$4 sm:$0xff]  }
 0x5ea   : > { %11147 = vmatmul.mubr.bf16.gmra.mrb[168].mxu1 %v25207_v17  ;;  %v29508_v17 = vld [vmem:[#allocation9_spill] sm:$0xff] }
 0x5eb   : > { %11192 = vmatpush1.bf16.msra.mxu1 %v24848_v22  ;;  %11156 = vmatprep.mubr.bf16.mxu1 %v25219_v35  ;;  %v29501_v22 = vld [vmem:[#allocation55_spill] sm:$0xff] }
 0x5ec   : > { %9416 = vmatpush1.bf16.msra.mxu0 %v25201_v34  ;;  %11193 = vmatprep.subr.bf16.mxu1 %v24854_v5  ;;  %v25243_v5 = vld [vmem:[%s28857_s7 + $0x1f0] ss:$8 sps:$4 sm:$0xff]   ;;  %v25303_v35 = vld [vmem:[%s28857_s7 + $0x234] ss:$8 sps:$4 sm:$0xff]  }
 0x5ed   : > { %9417 = vmatprep.subr.bf16.mxu0 %v25213_v27 }
 0x5ef   : > { %11194 = vmatpush1.bf16.msra.mxu1 %v24873_v63  ;;  %9379 = vmatmul.mubr.bf16.gmra.mrb[172].mxu0 %v29501_v22  ;;  %v25255_v63 = vld [vmem:[%s28857_s7 + $0x204] ss:$8 sps:$4 sm:$0xff]  }
 0x5f0   : > { %9418 = vmatpush1.bf16.msra.mxu0 %v25228_v20  ;;  %11195 = vmatprep.subr.bf16.mxu1 %v24880_v47  ;;  %v29503_v47 = vld [vmem:[#allocation59_spill] sm:$0xff] }
 0x5f1   : > { %9419 = vmatprep.subr.bf16.mxu0 %v25234_v29  ;;  %9421 = vmatprep.mubr.bf16.mxu0 %v24913_v48 }
 0x5f2   : > { %11157 = vmatmul.mubr.bf16.gmra.mrb[172].mxu1 %v25248_v38  ;;  %v25287_v38 = vld [vmem:[%s28857_s7 + $0x224] ss:$8 sps:$4 sm:$0xff]  }
 0x5f3   : > { %11196 = vmatpush1.bf16.msra.mxu1 %v24890_v30  ;;  %11199 = vmatprep.mubr.bf16.mxu1 %v29503_v47  ;;  %v29504_v30 = vld [vmem:[#allocation18_spill] sm:$0xff] }
 0x5f4   : > { %9420 = vmatpush1.bf16.msra.mxu0 %v25243_v5  ;;  %11197 = vmatprep.subr.bf16.mxu1 %v24896_v6  ;;  %v25280_v6 = vld [vmem:[%s28857_s7 + $0x210] ss:$8 sps:$4 sm:$0xff]  }
 0x5f5   : > { %9502 = vmatprep.subr.bf16.mxu0 %v25255_v63 }
 0x5f7   : > { %11198 = vmatpush1.bf16.msra.mxu1 %v24910_v4  ;;  %9422 = vmatmul.mubr.bf16.vlgmr.msra.gmra.mrb[144].mxu0 %v24913_v48  ;;  %v29505_v4 = vld [vmem:[#allocation62_spill] sm:$0xff] }
 0x5f8   : > { %9431 = vmatprep.mubr.bf16.mxu0 %v29504_v30  ;;  %9503 = vmatpush1.bf16.msra.mxu0 %v25265_v12  ;;  %v29506_v30 = vld [vmem:[#allocation70_spill] sm:$0xff] }
 0x5f9   : > { %11280 = vmatprep.subr.bf16.mxu1 %v24919_v50  ;;  %9504 = vmatprep.subr.bf16.mxu0 %v25271_v14  ;;  %v25297_v50 = vld [vmem:[%s28857_s7 + $0x220] ss:$8 sps:$4 sm:$0xff]  }
 0x5fa   : > { %11200 = vmatmul.mubr.bf16.vlgmr.msra.gmra.mrb[144].mxu1 %v29505_v4 }
 0x5fb   : > { %11281 = vmatpush1.bf16.msra.mxu1 %v24934_v1  ;;  %11209 = vmatprep.mubr.bf16.mxu1 %v29506_v30  ;;  %v29507_v1 = vld [vmem:[#allocation17_spill] sm:$0xff] }
 0x5fc   : > { %9505 = vmatpush1.bf16.msra.mxu0 %v25280_v6  ;;  %11282 = vmatprep.subr.bf16.mxu1 %v24940_v49  ;;  %v25312_v49 = vld [vmem:[%s28857_s7 + $0x230] ss:$8 sps:$4 sm:$0xff]   ;;  %v25319_v30 = vld [vmem:[%s28857_s7 + $0x244] ss:$8 sps:$4 sm:$0xff]  }
 0x5fd   : > { %9506 = vmatprep.subr.bf16.mxu0 %v25287_v38 }
 0x5ff   : > { %11283 = vmatpush1.bf16.msra.mxu1 %v24949_v42  ;;  %9432 = vmatmul.mubr.bf16.gmra.mrb[148].mxu0 %v29507_v1  ;;  %v29509_v42 = vld [vmem:[#allocation71_spill] sm:$0xff]  ;;  %v29510_v1 = vld [vmem:[#allocation76_spill] sm:$0xff] }
 0x600   : > { %9441 = vmatprep.mubr.bf16.mxu0 %v29508_v17  ;;  %9507 = vmatpush1.bf16.msra.mxu0 %v25297_v50  ;;  %v25335_v17 = vld [vmem:[%s28857_s7 + $0x254] ss:$8 sps:$4 sm:$0xff]  }
 0x601   : > { %11284 = vmatprep.subr.bf16.mxu1 %v24961_v16  ;;  %9508 = vmatprep.subr.bf16.mxu0 %v25303_v35  ;;  %v25329_v16 = vld [vmem:[%s28857_s7 + $0x240] ss:$8 sps:$4 sm:$0xff]  }
 0x602   : > { %11210 = vmatmul.mubr.bf16.gmra.mrb[148].mxu1 %v29509_v42  ;;  %v25351_v42 = vld [vmem:[%s28857_s7 + $0x264] ss:$8 sps:$4 sm:$0xff]  }
 0x603   : > { %11285 = vmatpush1.bf16.msra.mxu1 %v24976_v32  ;;  %11219 = vmatprep.mubr.bf16.mxu1 %v29510_v1  ;;  %v29511_v32 = vld [vmem:[#allocation22_spill] sm:$0xff]  ;;  %v29512_v1 = vld [vmem:[#allocation23_spill] sm:$0xff] }
 0x604   : > { %9509 = vmatpush1.bf16.msra.mxu0 %v25312_v49  ;;  %11286 = vmatprep.subr.bf16.mxu1 %v24982_v45  ;;  %v25344_v45 = vld [vmem:[%s28857_s7 + $0x250] ss:$8 sps:$4 sm:$0xff]  }
 0x605   : > { %9510 = vmatprep.subr.bf16.mxu0 %v25319_v30 }
 0x607   : > { %11287 = vmatpush1.bf16.msra.mxu1 %v24991_v11  ;;  %9442 = vmatmul.mubr.bf16.gmra.mrb[152].mxu0 %v29511_v32  ;;  %v29513_v11 = vld [vmem:[#allocation77_spill] sm:$0xff]  ;;  %v25367_v32 = vld [vmem:[%s28857_s7 + $0x274] ss:$8 sps:$4 sm:$0xff]  }
 0x608   : > { %9451 = vmatprep.mubr.bf16.mxu0 %v29512_v1  ;;  %9511 = vmatpush1.bf16.msra.mxu0 %v25329_v16  ;;  %v29514_v1 = vld [vmem:[#allocation82_spill] sm:$0xff] }
 0x609   : > { %11288 = vmatprep.subr.bf16.mxu1 %v25003_v51  ;;  %9512 = vmatprep.subr.bf16.mxu0 %v25335_v17  ;;  %v25361_v51 = vld [vmem:[%s28857_s7 + $0x260] ss:$8 sps:$4 sm:$0xff]  }
 0x60a   : > { %11220 = vmatmul.mubr.bf16.gmra.mrb[152].mxu1 %v29513_v11  ;;  %v25383_v11 = vld [vmem:[%s28857_s7 + $0x284] ss:$8 sps:$4 sm:$0xff]  }
 0x60b   : > { %11289 = vmatpush1.bf16.msra.mxu1 %v25018_v54  ;;  %11229 = vmatprep.mubr.bf16.mxu1 %v29514_v1  ;;  %v29515_v54 = vld [vmem:[#allocation21_spill] sm:$0xff] }
 0x60c   : > { %9513 = vmatpush1.bf16.msra.mxu0 %v25344_v45  ;;  %11290 = vmatprep.subr.bf16.mxu1 %v25024_v23  ;;  %v29516_v1 = vld [vmem:[#allocation29_spill] sm:$0xff]  ;;  %v25376_v23 = vld [vmem:[%s28857_s7 + $0x270] ss:$8 sps:$4 sm:$0xff]  }
 0x60d   : > { %9514 = vmatprep.subr.bf16.mxu0 %v25351_v42 }
 0x60f   : > { %11291 = vmatpush1.bf16.msra.mxu1 %v25033_v2  ;;  %9452 = vmatmul.mubr.bf16.gmra.mrb[156].mxu0 %v29515_v54  ;;  %v29517_v2 = vld [vmem:[#allocation83_spill] sm:$0xff] }
 0x610   : > { %9461 = vmatprep.mubr.bf16.mxu0 %v29516_v1  ;;  %9515 = vmatpush1.bf16.msra.mxu0 %v25361_v51  ;;  %v29518_v1 = vld [vmem:[#allocation88_spill] sm:$0xff] }
 0x611   : > { %11292 = vmatprep.subr.bf16.mxu1 %v25045_v57  ;;  %9516 = vmatprep.subr.bf16.mxu0 %v25367_v32  ;;  %v25393_v57 = vld [vmem:[%s28857_s7 + $0x280] ss:$8 sps:$4 sm:$0xff]   ;;  %v25399_v54 = vld [vmem:[%s28857_s7 + $0x294] ss:$8 sps:$4 sm:$0xff]  }
 0x612   : > { %11230 = vmatmul.mubr.bf16.gmra.mrb[156].mxu1 %v29517_v2  ;;  %v25415_v2 = vld [vmem:[%s28857_s7 + $0x2a4] ss:$8 sps:$4 sm:$0xff]  }
 0x613   : > { %11293 = vmatpush1.bf16.msra.mxu1 %v25060_v37  ;;  %11239 = vmatprep.mubr.bf16.mxu1 %v29518_v1  ;;  %v29519_v37 = vld [vmem:[#allocation27_spill] sm:$0xff]  ;;  %v29520_v1 = vld [vmem:[#allocation6_spill] sm:$0xff] }
 0x614   : > { %9517 = vmatpush1.bf16.msra.mxu0 %v25376_v23  ;;  %11294 = vmatprep.subr.bf16.mxu1 %v25066_v43  ;;  %v25408_v43 = vld [vmem:[%s28857_s7 + $0x290] ss:$8 sps:$4 sm:$0xff]  }
 0x615   : > { %9518 = vmatprep.subr.bf16.mxu0 %v25383_v11 }
 0x617   : > { %11295 = vmatpush1.bf16.msra.mxu1 %v25075_v59  ;;  %9462 = vmatmul.mubr.bf16.gmra.mrb[160].mxu0 %v29519_v37  ;;  %v29521_v59 = vld [vmem:[#allocation89_spill] sm:$0xff]  ;;  %v25431_v37 = vld [vmem:[%s28857_s7 + $0x2b4] ss:$8 sps:$4 sm:$0xff]  }
 0x618   : > { %9471 = vmatprep.mubr.bf16.mxu0 %v29520_v1  ;;  %9519 = vmatpush1.bf16.msra.mxu0 %v25393_v57  ;;  %v29522_v1 = vld [vmem:[#allocation94_spill] sm:$0xff] }
 0x619   : > { %11296 = vmatprep.subr.bf16.mxu1 %v25087_v62  ;;  %9520 = vmatprep.subr.bf16.mxu0 %v25399_v54  ;;  %v25425_v62 = vld [vmem:[%s28857_s7 + $0x2a0] ss:$8 sps:$4 sm:$0xff]  }
 0x61a   : > { %11240 = vmatmul.mubr.bf16.gmra.mrb[160].mxu1 %v29521_v59  ;;  %v25447_v59 = vld [vmem:[%s28857_s7 + $0x2c4] ss:$8 sps:$4 sm:$0xff]  }
 0x61b   : > { %11297 = vmatpush1.bf16.msra.mxu1 %v25102_v19  ;;  %11249 = vmatprep.mubr.bf16.mxu1 %v29522_v1  ;;  %v29523_v19 = vld [vmem:[#allocation12_spill] sm:$0xff]  ;;  %v29524_v1 = vld [vmem:[#allocation38_spill] sm:$0xff] }
 0x61c   : > { %9521 = vmatpush1.bf16.msra.mxu0 %v25408_v43  ;;  %11298 = vmatprep.subr.bf16.mxu1 %v25108_v33  ;;  %v25440_v33 = vld [vmem:[%s28857_s7 + $0x2b0] ss:$8 sps:$4 sm:$0xff]  }
 0x61d   : > { %9522 = vmatprep.subr.bf16.mxu0 %v25415_v2 }
 0x61f   : > { %11299 = vmatpush1.bf16.msra.mxu1 %v25117_v52  ;;  %9472 = vmatmul.mubr.bf16.gmra.mrb[164].mxu0 %v29523_v19  ;;  %v29525_v52 = vld [vmem:[#allocation95_spill] sm:$0xff] }
 0x620   : > { %9481 = vmatprep.mubr.bf16.mxu0 %v29524_v1  ;;  %9523 = vmatpush1.bf16.msra.mxu0 %v25425_v62  ;;  %v29526_v1 = vld [vmem:[#allocation98_spill] sm:$0xff]  ;;  %v25463_v19 = vld [vmem:[%s28857_s7 + $0x2d4] ss:$8 sps:$4 sm:$0xff]  }
 0x621   : > { %11300 = vmatprep.subr.bf16.mxu1 %v25129_v0  ;;  %9524 = vmatprep.subr.bf16.mxu0 %v25431_v37  ;;  %v25457_v0 = vld [vmem:[%s28857_s7 + $0x2c0] ss:$8 sps:$4 sm:$0xff]  }
 0x622   : > { %11250 = vmatmul.mubr.bf16.gmra.mrb[164].mxu1 %v29525_v52  ;;  %v25479_v52 = vld [vmem:[%s28857_s7 + $0x2e4] ss:$8 sps:$4 sm:$0xff]  }
 0x623   : > { %11301 = vmatpush1.bf16.msra.mxu1 %v25144_v26  ;;  %11259 = vmatprep.mubr.bf16.mxu1 %v29526_v1  ;;  %v29527_v26 = vld [vmem:[#allocation37_spill] sm:$0xff]  ;;  %v29528_v1 = vld [vmem:[#allocation44_spill] sm:$0xff] }
 0x624   : > { %9525 = vmatpush1.bf16.msra.mxu0 %v25440_v33  ;;  %11302 = vmatprep.subr.bf16.mxu1 %v25150_v10  ;;  %v25472_v10 = vld [vmem:[%s28857_s7 + $0x2d0] ss:$8 sps:$4 sm:$0xff]  }
 0x625   : > { %9526 = vmatprep.subr.bf16.mxu0 %v25447_v59 }
 0x627   : > { %11303 = vmatpush1.bf16.msra.mxu1 %v25159_v36  ;;  %9482 = vmatmul.mubr.bf16.gmra.mrb[168].mxu0 %v29527_v26  ;;  %v29529_v36 = vld [vmem:[#allocation99_spill] sm:$0xff] }
 0x628   : > { %9491 = vmatprep.mubr.bf16.mxu0 %v29528_v1  ;;  %9527 = vmatpush1.bf16.msra.mxu0 %v25457_v0  ;;  %v29530_v1 = vld [vmem:[#allocation103_spill] sm:$0xff] }
 0x629   : > { %11304 = vmatprep.subr.bf16.mxu1 %v25171_v58  ;;  %9528 = vmatprep.subr.bf16.mxu0 %v25463_v19  ;;  %v25489_v58 = vld [vmem:[%s28857_s7 + $0x2e0] ss:$8 sps:$4 sm:$0xff]   ;;  %v25495_v26 = vld [vmem:[%s28857_s7 + $0x2f4] ss:$8 sps:$4 sm:$0xff]  }
 0x62a   : > { %11260 = vmatmul.mubr.bf16.gmra.mrb[168].mxu1 %v29529_v36  ;;  %v25527_v36 = vld [vmem:[%s28857_s7 + $0x614] ss:$8 sps:$4 sm:$0xff]  }
 0x62b   : > { %11305 = vmatpush1.bf16.msra.mxu1 %v25186_v56  ;;  %11269 = vmatprep.mubr.bf16.mxu1 %v29530_v1  ;;  %v29531_v56 = vld [vmem:[#allocation43_spill] sm:$0xff]  ;;  %v25511_v1 = vld [vmem:[%s28857_s7 + $0x604] ss:$8 sps:$4 sm:$0xff]  }
 0x62c   : > { %9529 = vmatpush1.bf16.msra.mxu0 %v25472_v10  ;;  %11306 = vmatprep.subr.bf16.mxu1 %v25192_v46  ;;  %v25504_v46 = vld [vmem:[%s28857_s7 + $0x2f0] ss:$8 sps:$4 sm:$0xff]  }
 0x62d   : > { %9530 = vmatprep.subr.bf16.mxu0 %v25479_v52 }
 0x62f   : > { %11307 = vmatpush1.bf16.msra.mxu1 %v25201_v34  ;;  %9492 = vmatmul.mubr.bf16.gmra.mrb[172].mxu0 %v29531_v56  ;;  %v29532_v34 = vld [vmem:[#allocation47_spill] sm:$0xff]  ;;  %v29533_v56 = vld [vmem:[#allocation52_spill] sm:$0xff] }
 0x630   : > { %9531 = vmatpush1.bf16.msra.mxu0 %v25489_v58  ;;  %11308 = vmatprep.subr.bf16.mxu1 %v25213_v27  ;;  %v25521_v27 = vld [vmem:[%s28857_s7 + $0x600] ss:$8 sps:$4 sm:$0xff]  }
 0x631   : > { %9532 = vmatprep.subr.bf16.mxu0 %v25495_v26  ;;  %9534 = vmatprep.mubr.bf16.mxu0 %v24913_v48 }
 0x632   : > { %11270 = vmatmul.mubr.bf16.gmra.mrb[172].mxu1 %v29532_v34 }
 0x633   : > { %11309 = vmatpush1.bf16.msra.mxu1 %v25228_v20  ;;  %11312 = vmatprep.mubr.bf16.mxu1 %v29533_v56  ;;  %v25536_v20 = vld [vmem:[%s28857_s7 + $0x610] ss:$8 sps:$4 sm:$0xff]  }
 0x634   : > { %9533 = vmatpush1.bf16.msra.mxu0 %v25504_v46  ;;  %11310 = vmatprep.subr.bf16.mxu1 %v25234_v29  ;;  %v25543_v29 = vld [vmem:[%s28857_s7 + $0x624] ss:$8 sps:$4 sm:$0xff]  }
 0x635   : > { %10241 = vmatprep.subr.bf16.mxu0 %v25511_v1 }
 0x637   : > { %11311 = vmatpush1.bf16.msra.mxu1 %v25243_v5  ;;  %9535 = vmatmul.mubr.bf16.vlgmr.msra.gmra.mrb[144].mxu0 %v24913_v48  ;;  %v25553_v48 = vld [vmem:[%s28857_s7 + $0x620] ss:$8 sps:$4 sm:$0xff]   ;;  %v25559_v5 = vld [vmem:[%s28857_s7 + $0x634] ss:$8 sps:$4 sm:$0xff]  }
 0x638   : > { %9544 = vmatprep.mubr.bf16.mxu0 %v24563_v41  ;;  %10242 = vmatpush1.bf16.msra.mxu0 %v25521_v27  ;;  %v25607_v41 = vld [vmem:[%s28857_s7 + $0x664] ss:$8 sps:$4 sm:$0xff]  }
 0x639   : > { %11393 = vmatprep.subr.bf16.mxu1 %v25255_v63  ;;  %10243 = vmatprep.subr.bf16.mxu0 %v25527_v36  ;;  %v25568_v63 = vld [vmem:[%s28857_s7 + $0x630] ss:$8 sps:$4 sm:$0xff]  }
 0x63a   : > { %11313 = vmatmul.mubr.bf16.vlgmr.msra.gmra.mrb[144].mxu1 %v29419_v21 }
 0x63b   : > { %11394 = vmatpush1.bf16.msra.mxu1 %v25265_v12  ;;  %11322 = vmatprep.mubr.bf16.mxu1 %v29426_v61  ;;  %v25575_v12 = vld [vmem:[%s28857_s7 + $0x644] ss:$8 sps:$4 sm:$0xff]  }
 0x63c   : > { %10244 = vmatpush1.bf16.msra.mxu0 %v25536_v20  ;;  %11395 = vmatprep.subr.bf16.mxu1 %v25271_v14  ;;  %v29534_v14 = vld [vmem:[#allocation61_spill] sm:$0xff] }
 0x63d   : > { %10245 = vmatprep.subr.bf16.mxu0 %v25543_v29 }
 0x63f   : > { %11396 = vmatpush1.bf16.msra.mxu1 %v25280_v6  ;;  %9545 = vmatmul.mubr.bf16.gmra.mrb[148].mxu0 %v24607_v28  ;;  %v29535_v6 = vld [vmem:[#allocation69_spill] sm:$0xff]  ;;  %v25591_v28 = vld [vmem:[%s28857_s7 + $0x654] ss:$8 sps:$4 sm:$0xff]  }
 0x640   : > { %9554 = vmatprep.mubr.bf16.mxu0 %v24614_v8  ;;  %10246 = vmatpush1.bf16.msra.mxu0 %v25553_v48 }
 0x641   : > { %11397 = vmatprep.subr.bf16.mxu1 %v25287_v38  ;;  %10247 = vmatprep.subr.bf16.mxu0 %v25559_v5  ;;  %v25585_v38 = vld [vmem:[%s28857_s7 + $0x640] ss:$8 sps:$4 sm:$0xff]  }
 0x642   : > { %11323 = vmatmul.mubr.bf16.gmra.mrb[148].mxu1 %v29534_v14 }
 0x643   : > { %11398 = vmatpush1.bf16.msra.mxu1 %v25297_v50  ;;  %11332 = vmatprep.mubr.bf16.mxu1 %v29535_v6  ;;  %v29536_v50 = vld [vmem:[#allocation19_spill] sm:$0xff] }
 0x644   : > { %10248 = vmatpush1.bf16.msra.mxu0 %v25568_v63  ;;  %11399 = vmatprep.subr.bf16.mxu1 %v25303_v35  ;;  %v25600_v35 = vld [vmem:[%s28857_s7 + $0x650] ss:$8 sps:$4 sm:$0xff]  }
 0x645   : > { %10249 = vmatprep.subr.bf16.mxu0 %v25575_v12 }
 0x647   : > { %11400 = vmatpush1.bf16.msra.mxu1 %v25312_v49  ;;  %9555 = vmatmul.mubr.bf16.gmra.mrb[152].mxu0 %v24649_v15  ;;  %v29537_v49 = vld [vmem:[#allocation68_spill] sm:$0xff] }
 0x648   : > { %9564 = vmatprep.mubr.bf16.mxu0 %v29536_v50  ;;  %10250 = vmatpush1.bf16.msra.mxu0 %v25585_v38  ;;  %v29538_v50 = vld [vmem:[#allocation75_spill] sm:$0xff] }
 0x649   : > { %11401 = vmatprep.subr.bf16.mxu1 %v25319_v30  ;;  %10251 = vmatprep.subr.bf16.mxu0 %v25591_v28  ;;  %v25617_v30 = vld [vmem:[%s28857_s7 + $0x660] ss:$8 sps:$4 sm:$0xff]   ;;  %v25623_v15 = vld [vmem:[%s28857_s7 + $0x674] ss:$8 sps:$4 sm:$0xff]  }
 0x64a   : > { %11333 = vmatmul.mubr.bf16.gmra.mrb[152].mxu1 %v29537_v49 }
 0x64b   : > { %11402 = vmatpush1.bf16.msra.mxu1 %v25329_v16  ;;  %11342 = vmatprep.mubr.bf16.mxu1 %v29538_v50  ;;  %v25639_v16 = vld [vmem:[%s28857_s7 + $0x684] ss:$8 sps:$4 sm:$0xff]  }
 0x64c   : > { %10252 = vmatpush1.bf16.msra.mxu0 %v25600_v35  ;;  %11403 = vmatprep.subr.bf16.mxu1 %v25335_v17  ;;  %v25632_v17 = vld [vmem:[%s28857_s7 + $0x670] ss:$8 sps:$4 sm:$0xff]  }
 0x64d   : > { %10253 = vmatprep.subr.bf16.mxu0 %v25607_v41 }
 0x64f   : > { %11404 = vmatpush1.bf16.msra.mxu1 %v25344_v45  ;;  %9565 = vmatmul.mubr.bf16.gmra.mrb[156].mxu0 %v24691_v60  ;;  %v29539_v45 = vld [vmem:[#allocation74_spill] sm:$0xff]  ;;  %v25655_v60 = vld [vmem:[%s28857_s7 + $0x694] ss:$8 sps:$4 sm:$0xff]  }
 0x650   : > { %9574 = vmatprep.mubr.bf16.mxu0 %v24698_v24  ;;  %10254 = vmatpush1.bf16.msra.mxu0 %v25617_v30  ;;  %v29540_v24 = vld [vmem:[#allocation81_spill] sm:$0xff] }
 0x651   : > { %11405 = vmatprep.subr.bf16.mxu1 %v25351_v42  ;;  %10255 = vmatprep.subr.bf16.mxu0 %v25623_v15  ;;  %v25649_v42 = vld [vmem:[%s28857_s7 + $0x680] ss:$8 sps:$4 sm:$0xff]  }
 0x652   : > { %11343 = vmatmul.mubr.bf16.gmra.mrb[156].mxu1 %v29539_v45 }
 0x653   : > { %11406 = vmatpush1.bf16.msra.mxu1 %v25361_v51  ;;  %11352 = vmatprep.mubr.bf16.mxu1 %v29540_v24  ;;  %v25671_v51 = vld [vmem:[%s28857_s7 + $0x6a4] ss:$8 sps:$4 sm:$0xff]  }
 0x654   : > { %10256 = vmatpush1.bf16.msra.mxu0 %v25632_v17  ;;  %11407 = vmatprep.subr.bf16.mxu1 %v25367_v32  ;;  %v25664_v32 = vld [vmem:[%s28857_s7 + $0x690] ss:$8 sps:$4 sm:$0xff]  }
 0x655   : > { %10257 = vmatprep.subr.bf16.mxu0 %v25639_v16 }
 0x657   : > { %11408 = vmatpush1.bf16.msra.mxu1 %v25376_v23  ;;  %9575 = vmatmul.mubr.bf16.gmra.mrb[160].mxu0 %v24733_v18  ;;  %v29541_v23 = vld [vmem:[#allocation80_spill] sm:$0xff] }
 0x658   : > { %9584 = vmatprep.mubr.bf16.mxu0 %v24740_v40  ;;  %10258 = vmatpush1.bf16.msra.mxu0 %v25649_v42  ;;  %v29542_v40 = vld [vmem:[#allocation87_spill] sm:$0xff] }
 0x659   : > { %11409 = vmatprep.subr.bf16.mxu1 %v25383_v11  ;;  %10259 = vmatprep.subr.bf16.mxu0 %v25655_v60  ;;  %v25681_v11 = vld [vmem:[%s28857_s7 + $0x6a0] ss:$8 sps:$4 sm:$0xff]   ;;  %v25687_v18 = vld [vmem:[%s28857_s7 + $0x6b4] ss:$8 sps:$4 sm:$0xff]  }
 0x65a   : > { %11353 = vmatmul.mubr.bf16.gmra.mrb[160].mxu1 %v29541_v23 }
 0x65b   : > { %11410 = vmatpush1.bf16.msra.mxu1 %v25393_v57  ;;  %11362 = vmatprep.mubr.bf16.mxu1 %v29542_v40  ;;  %v25703_v57 = vld [vmem:[%s28857_s7 + $0x6c4] ss:$8 sps:$4 sm:$0xff]  }
 0x65c   : > { %10260 = vmatpush1.bf16.msra.mxu0 %v25664_v32  ;;  %11411 = vmatprep.subr.bf16.mxu1 %v25399_v54  ;;  %v25696_v54 = vld [vmem:[%s28857_s7 + $0x6b0] ss:$8 sps:$4 sm:$0xff]  }
 0x65d   : > { %10261 = vmatprep.subr.bf16.mxu0 %v25671_v51 }
 0x65f   : > { %11412 = vmatpush1.bf16.msra.mxu1 %v25408_v43  ;;  %9585 = vmatmul.mubr.bf16.gmra.mrb[164].mxu0 %v24775_v13  ;;  %v29543_v43 = vld [vmem:[#allocation86_spill] sm:$0xff]  ;;  %v25719_v13 = vld [vmem:[%s28857_s7 + $0x6d4] ss:$8 sps:$4 sm:$0xff]  }
 0x660   : > { %9594 = vmatprep.mubr.bf16.mxu0 %v24782_v44  ;;  %10262 = vmatpush1.bf16.msra.mxu0 %v25681_v11  ;;  %v29544_v44 = vld [vmem:[#allocation93_spill] sm:$0xff] }
 0x661   : > { %11413 = vmatprep.subr.bf16.mxu1 %v25415_v2  ;;  %10263 = vmatprep.subr.bf16.mxu0 %v25687_v18  ;;  %v25713_v2 = vld [vmem:[%s28857_s7 + $0x6c0] ss:$8 sps:$4 sm:$0xff]  }
 0x662   : > { %11363 = vmatmul.mubr.bf16.gmra.mrb[164].mxu1 %v29543_v43 }
 0x663   : > { %11414 = vmatpush1.bf16.msra.mxu1 %v25425_v62  ;;  %11372 = vmatprep.mubr.bf16.mxu1 %v29544_v44  ;;  %v25735_v62 = vld [vmem:[%s28857_s7 + $0x6e4] ss:$8 sps:$4 sm:$0xff]  }
 0x664   : > { %10264 = vmatpush1.bf16.msra.mxu0 %v25696_v54  ;;  %11415 = vmatprep.subr.bf16.mxu1 %v25431_v37  ;;  %v25728_v37 = vld [vmem:[%s28857_s7 + $0x6d0] ss:$8 sps:$4 sm:$0xff]  }
 0x665   : > { %10265 = vmatprep.subr.bf16.mxu0 %v25703_v57 }
 0x667   : > { %11416 = vmatpush1.bf16.msra.mxu1 %v25440_v33  ;;  %9595 = vmatmul.mubr.bf16.gmra.mrb[168].mxu0 %v24817_v25  ;;  %v29545_v33 = vld [vmem:[#allocation92_spill] sm:$0xff] }
 0x668   : > { %9604 = vmatprep.mubr.bf16.mxu0 %v24824_v55  ;;  %10266 = vmatpush1.bf16.msra.mxu0 %v25713_v2  ;;  %v29546_v55 = vld [vmem:[#allocation97_spill] sm:$0xff]  ;;  %v25751_v25 = vld [vmem:[%s28857_s7 + $0x6f4] ss:$8 sps:$4 sm:$0xff]  }
 0x669   : > { %11417 = vmatprep.subr.bf16.mxu1 %v25447_v59  ;;  %10267 = vmatprep.subr.bf16.mxu0 %v25719_v13  ;;  %v25745_v59 = vld [vmem:[%s28857_s7 + $0x6e0] ss:$8 sps:$4 sm:$0xff]  }
 0x66a   : > { %11373 = vmatmul.mubr.bf16.gmra.mrb[168].mxu1 %v29545_v33 }
 0x66b   : > { %11418 = vmatpush1.bf16.msra.mxu1 %v25457_v0  ;;  %11382 = vmatprep.mubr.bf16.mxu1 %v29546_v55  ;;  %v25767_v0 = vld [vmem:[%s28857_s7 + $0x704] ss:$8 sps:$4 sm:$0xff]  }
 0x66c   : > { %10268 = vmatpush1.bf16.msra.mxu0 %v25728_v37  ;;  %11419 = vmatprep.subr.bf16.mxu1 %v25463_v19  ;;  %v25760_v19 = vld [vmem:[%s28857_s7 + $0x6f0] ss:$8 sps:$4 sm:$0xff]  }
 0x66d   : > { %10269 = vmatprep.subr.bf16.mxu0 %v25735_v62 }
 0x66f   : > { %11420 = vmatpush1.bf16.msra.mxu1 %v25472_v10  ;;  %9605 = vmatmul.mubr.bf16.gmra.mrb[172].mxu0 %v24859_v53  ;;  %v29547_v10 = vld [vmem:[#allocation96_spill] sm:$0xff]  ;;  %v29548_v53 = vld [vmem:[#allocation35_spill] sm:$0xff] }
 0x670   : > { %10270 = vmatpush1.bf16.msra.mxu0 %v25745_v59  ;;  %10273 = vmatprep.mubr.bf16.mxu0 %v29470_v7  ;;  %v25783_v7 = vld [vmem:[%s28857_s7 + $0x714] ss:$8 sps:$4 sm:$0xff]  }
 0x671   : > { %11421 = vmatprep.subr.bf16.mxu1 %v25479_v52  ;;  %10271 = vmatprep.subr.bf16.mxu0 %v25751_v25  ;;  %v25777_v52 = vld [vmem:[%s28857_s7 + $0x700] ss:$8 sps:$4 sm:$0xff]  }
 0x672   : > { %11383 = vmatmul.mubr.bf16.gmra.mrb[172].mxu1 %v29547_v10  ;;  %v29550_v10 = vld [vmem:[#allocation30_spill] sm:$0xff] }
 0x673   : > { %11422 = vmatpush1.bf16.msra.mxu1 %v25489_v58  ;;  %11425 = vmatprep.mubr.bf16.mxu1 %v29548_v53  ;;  %v29549_v58 = vld [vmem:[#allocation24_spill] sm:$0xff]  ;;  %v25799_v53 = vld [vmem:[%s28857_s7 + $0x724] ss:$8 sps:$4 sm:$0xff]  }
 0x674   : > { %10272 = vmatpush1.bf16.msra.mxu0 %v25760_v19  ;;  %11423 = vmatprep.subr.bf16.mxu1 %v25495_v26  ;;  %v25792_v26 = vld [vmem:[%s28857_s7 + $0x710] ss:$8 sps:$4 sm:$0xff]  }
 0x675   : > { %10354 = vmatprep.subr.bf16.mxu0 %v25767_v0 }
 0x677   : > { %11424 = vmatpush1.bf16.msra.mxu1 %v25504_v46  ;;  %10274 = vmatmul.mubr.bf16.vlgmr.msra.gmra.mrb[144].mxu0 %v29549_v58  ;;  %v29551_v46 = vld [vmem:[#allocation42_spill] sm:$0xff]  ;;  %v25815_v58 = vld [vmem:[%s28857_s7 + $0x734] ss:$8 sps:$4 sm:$0xff]  }
 0x678   : > { %10283 = vmatprep.mubr.bf16.mxu0 %v29550_v10  ;;  %10355 = vmatpush1.bf16.msra.mxu0 %v25777_v52  ;;  %v29552_v10 = vld [vmem:[#allocation41_spill] sm:$0xff] }
 0x679   : > { %11555 = vmatprep.subr.bf16.mxu1 %v25511_v1  ;;  %10356 = vmatprep.subr.bf16.mxu0 %v25783_v7  ;;  %v25809_v1 = vld [vmem:[%s28857_s7 + $0x720] ss:$8 sps:$4 sm:$0xff]  }
 0x67a   : > { %11426 = vmatmul.mubr.bf16.vlgmr.msra.gmra.mrb[144].mxu1 %v29551_v46  ;;  %v25831_v46 = vld [vmem:[%s28857_s7 + $0x744] ss:$8 sps:$4 sm:$0xff]  }
 0x67b   : > { %11556 = vmatpush1.bf16.msra.mxu1 %v25521_v27  ;;  %11435 = vmatprep.mubr.bf16.mxu1 %v29552_v10  ;;  %v29553_v27 = vld [vmem:[#allocation15_spill] sm:$0xff]  ;;  %v29554_v10 = vld [vmem:[#allocation33_spill] sm:$0xff] }
 0x67c   : > { %10357 = vmatpush1.bf16.msra.mxu0 %v25792_v26  ;;  %11557 = vmatprep.subr.bf16.mxu1 %v25527_v36  ;;  %v25824_v36 = vld [vmem:[%s28857_s7 + $0x730] ss:$8 sps:$4 sm:$0xff]  }
 0x67d   : > { %10358 = vmatprep.subr.bf16.mxu0 %v25799_v53 }
 0x67f   : > { %11558 = vmatpush1.bf16.msra.mxu1 %v25536_v20  ;;  %10284 = vmatmul.mubr.bf16.gmra.mrb[148].mxu0 %v29553_v27  ;;  %v29555_v20 = vld [vmem:[#allocation49_spill] sm:$0xff]  ;;  %v25847_v27 = vld [vmem:[%s28857_s7 + $0x754] ss:$8 sps:$4 sm:$0xff]  }
 0x680   : > { %10293 = vmatprep.mubr.bf16.mxu0 %v29554_v10  ;;  %10359 = vmatpush1.bf16.msra.mxu0 %v25809_v1  ;;  %v29556_v10 = vld [vmem:[#allocation48_spill] sm:$0xff] }
 0x681   : > { %11559 = vmatprep.subr.bf16.mxu1 %v25543_v29  ;;  %10360 = vmatprep.subr.bf16.mxu0 %v25815_v58  ;;  %v25841_v29 = vld [vmem:[%s28857_s7 + $0x740] ss:$8 sps:$4 sm:$0xff]  }
 0x682   : > { %11436 = vmatmul.mubr.bf16.gmra.mrb[148].mxu1 %v29555_v20 }
 0x683   : > { %11560 = vmatpush1.bf16.msra.mxu1 %v25553_v48  ;;  %11445 = vmatprep.mubr.bf16.mxu1 %v29556_v10  ;;  %v29557_v48 = vld [vmem:[#allocation39_spill] sm:$0xff]  ;;  %v25863_v10 = vld [vmem:[%s28857_s7 + $0x764] ss:$8 sps:$4 sm:$0xff]  }
 0x684   : > { %10361 = vmatpush1.bf16.msra.mxu0 %v25824_v36  ;;  %11561 = vmatprep.subr.bf16.mxu1 %v25559_v5  ;;  %v25856_v5 = vld [vmem:[%s28857_s7 + $0x750] ss:$8 sps:$4 sm:$0xff]  }
 0x685   : > { %10362 = vmatprep.subr.bf16.mxu0 %v25831_v46 }
 0x687   : > { %11562 = vmatpush1.bf16.msra.mxu1 %v25568_v63  ;;  %10294 = vmatmul.mubr.bf16.gmra.mrb[152].mxu0 %v29487_v3  ;;  %v29558_v63 = vld [vmem:[#allocation57_spill] sm:$0xff]  ;;  %v25879_v3 = vld [vmem:[%s28857_s7 + $0x774] ss:$8 sps:$4 sm:$0xff]  }
 0x688   : > { %10303 = vmatprep.mubr.bf16.mxu0 %v29557_v48  ;;  %10363 = vmatpush1.bf16.msra.mxu0 %v25841_v29  ;;  %v29559_v48 = vld [vmem:[#allocation56_spill] sm:$0xff] }
 0x689   : > { %11563 = vmatprep.subr.bf16.mxu1 %v25575_v12  ;;  %10364 = vmatprep.subr.bf16.mxu0 %v25847_v27  ;;  %v25873_v12 = vld [vmem:[%s28857_s7 + $0x760] ss:$8 sps:$4 sm:$0xff]  }
 0x68a   : > { %11446 = vmatmul.mubr.bf16.gmra.mrb[152].mxu1 %v29558_v63 }
 0x68b   : > { %11564 = vmatpush1.bf16.msra.mxu1 %v25585_v38  ;;  %11455 = vmatprep.mubr.bf16.mxu1 %v29559_v48  ;;  %v25895_v38 = vld [vmem:[%s28857_s7 + $0x784] ss:$8 sps:$4 sm:$0xff]  }
 0x68c   : > { %10365 = vmatpush1.bf16.msra.mxu0 %v25856_v5  ;;  %11565 = vmatprep.subr.bf16.mxu1 %v25591_v28  ;;  %v25888_v28 = vld [vmem:[%s28857_s7 + $0x770] ss:$8 sps:$4 sm:$0xff]  }
 0x68d   : > { %10366 = vmatprep.subr.bf16.mxu0 %v25863_v10 }
 0x68f   : > { %11566 = vmatpush1.bf16.msra.mxu1 %v25600_v35  ;;  %10304 = vmatmul.mubr.bf16.gmra.mrb[156].mxu0 %v29492_v9  ;;  %v29560_v35 = vld [vmem:[#allocation67_spill] sm:$0xff] }
 0x690   : > { %10313 = vmatprep.mubr.bf16.mxu0 %v29493_v31  ;;  %10367 = vmatpush1.bf16.msra.mxu0 %v25873_v12  ;;  %v29561_v31 = vld [vmem:[#allocation65_spill] sm:$0xff]  ;;  %v25911_v9 = vld [vmem:[%s28857_s7 + $0x794] ss:$8 sps:$4 sm:$0xff]  }
 0x691   : > { %11567 = vmatprep.subr.bf16.mxu1 %v25607_v41  ;;  %10368 = vmatprep.subr.bf16.mxu0 %v25879_v3  ;;  %v25905_v41 = vld [vmem:[%s28857_s7 + $0x780] ss:$8 sps:$4 sm:$0xff]  }
 0x692   : > { %11456 = vmatmul.mubr.bf16.gmra.mrb[156].mxu1 %v29560_v35 }
 0x693   : > { %11568 = vmatpush1.bf16.msra.mxu1 %v25617_v30  ;;  %11465 = vmatprep.mubr.bf16.mxu1 %v29561_v31  ;;  %v29562_v30 = vld [vmem:[#allocation53_spill] sm:$0xff] }
 0x694   : > { %10369 = vmatpush1.bf16.msra.mxu0 %v25888_v28  ;;  %11569 = vmatprep.subr.bf16.mxu1 %v25623_v15  ;;  %v25920_v15 = vld [vmem:[%s28857_s7 + $0x790] ss:$8 sps:$4 sm:$0xff]   ;;  %v25927_v31 = vld [vmem:[%s28857_s7 + $0x7a4] ss:$8 sps:$4 sm:$0xff]  }
 0x695   : > { %10370 = vmatprep.subr.bf16.mxu0 %v25895_v38 }
 0x697   : > { %11570 = vmatpush1.bf16.msra.mxu1 %v25632_v17  ;;  %10314 = vmatmul.mubr.bf16.gmra.mrb[160].mxu0 %v29496_v39  ;;  %v29563_v17 = vld [vmem:[#allocation73_spill] sm:$0xff]  ;;  %v25943_v39 = vld [vmem:[%s28857_s7 + $0x7b4] ss:$8 sps:$4 sm:$0xff]  }
 0x698   : > { %10323 = vmatprep.mubr.bf16.mxu0 %v29562_v30  ;;  %10371 = vmatpush1.bf16.msra.mxu0 %v25905_v41  ;;  %v29564_v30 = vld [vmem:[#allocation72_spill] sm:$0xff] }
 0x699   : > { %11571 = vmatprep.subr.bf16.mxu1 %v25639_v16  ;;  %10372 = vmatprep.subr.bf16.mxu0 %v25911_v9  ;;  %v25937_v16 = vld [vmem:[%s28857_s7 + $0x7a0] ss:$8 sps:$4 sm:$0xff]  }
 0x69a   : > { %11466 = vmatmul.mubr.bf16.gmra.mrb[160].mxu1 %v29563_v17 }
 0x69b   : > { %11572 = vmatpush1.bf16.msra.mxu1 %v25649_v42  ;;  %11475 = vmatprep.mubr.bf16.mxu1 %v29564_v30  ;;  %v25959_v42 = vld [vmem:[%s28857_s7 + $0x7c4] ss:$8 sps:$4 sm:$0xff]  }
 0x69c   : > { %10373 = vmatpush1.bf16.msra.mxu0 %v25920_v15  ;;  %11573 = vmatprep.subr.bf16.mxu1 %v25655_v60  ;;  %v25952_v60 = vld [vmem:[%s28857_s7 + $0x7b0] ss:$8 sps:$4 sm:$0xff]  }
 0x69d   : > { %10374 = vmatprep.subr.bf16.mxu0 %v25927_v31 }
 0x69f   : > { %11574 = vmatpush1.bf16.msra.mxu1 %v25664_v32  ;;  %10324 = vmatmul.mubr.bf16.gmra.mrb[164].mxu0 %v29501_v22  ;;  %v29565_v32 = vld [vmem:[#allocation79_spill] sm:$0xff] }
 0x6a0   : > { %10333 = vmatprep.mubr.bf16.mxu0 %v29503_v47  ;;  %10375 = vmatpush1.bf16.msra.mxu0 %v25937_v16  ;;  %v29566_v47 = vld [vmem:[#allocation78_spill] sm:$0xff]  ;;  %v25975_v22 = vld [vmem:[%s28857_s7 + $0x7d4] ss:$8 sps:$4 sm:$0xff]  }
 0x6a1   : > { %11575 = vmatprep.subr.bf16.mxu1 %v25671_v51  ;;  %10376 = vmatprep.subr.bf16.mxu0 %v25943_v39  ;;  %v25969_v51 = vld [vmem:[%s28857_s7 + $0x7c0] ss:$8 sps:$4 sm:$0xff]  }
 0x6a2   : > { %11476 = vmatmul.mubr.bf16.gmra.mrb[164].mxu1 %v29565_v32 }
 0x6a3   : > { %11576 = vmatpush1.bf16.msra.mxu1 %v25681_v11  ;;  %11485 = vmatprep.mubr.bf16.mxu1 %v29566_v47  ;;  %v29567_v11 = vld [vmem:[#allocation70_spill] sm:$0xff] }
 0x6a4   : > { %10377 = vmatpush1.bf16.msra.mxu0 %v25952_v60  ;;  %11577 = vmatprep.subr.bf16.mxu1 %v25687_v18  ;;  %v25984_v18 = vld [vmem:[%s28857_s7 + $0x7d0] ss:$8 sps:$4 sm:$0xff]   ;;  %v25991_v47 = vld [vmem:[%s28857_s7 + $0x7e4] ss:$8 sps:$4 sm:$0xff]  }
 0x6a5   : > { %10378 = vmatprep.subr.bf16.mxu0 %v25959_v42 }
 0x6a7   : > { %11578 = vmatpush1.bf16.msra.mxu1 %v25696_v54  ;;  %10334 = vmatmul.mubr.bf16.gmra.mrb[168].mxu0 %v29505_v4  ;;  %v29568_v54 = vld [vmem:[#allocation85_spill] sm:$0xff]  ;;  %v26007_v4 = vld [vmem:[%s28857_s7 + $0x7f4] ss:$8 sps:$4 sm:$0xff]  }
 0x6a8   : > { %10343 = vmatprep.mubr.bf16.mxu0 %v29567_v11  ;;  %10379 = vmatpush1.bf16.msra.mxu0 %v25969_v51  ;;  %v29569_v11 = vld [vmem:[#allocation84_spill] sm:$0xff] }
 0x6a9   : > { %11579 = vmatprep.subr.bf16.mxu1 %v25703_v57  ;;  %10380 = vmatprep.subr.bf16.mxu0 %v25975_v22  ;;  %v26001_v57 = vld [vmem:[%s28857_s7 + $0x7e0] ss:$8 sps:$4 sm:$0xff]  }
 0x6aa   : > { %11486 = vmatmul.mubr.bf16.gmra.mrb[168].mxu1 %v29568_v54  ;;  %v26023_v54 = vld [vmem:[%s28857_s7 + $0x804] ss:$8 sps:$4 sm:$0xff]  }
 0x6ab   : > { %11580 = vmatpush1.bf16.msra.mxu1 %v25713_v2  ;;  %11495 = vmatprep.mubr.bf16.mxu1 %v29569_v11  ;;  %v29570_v2 = vld [vmem:[#allocation71_spill] sm:$0xff]  ;;  %v29571_v11 = vld [vmem:[#allocation9_spill] sm:$0xff] }
 0x6ac   : > { %10381 = vmatpush1.bf16.msra.mxu0 %v25984_v18  ;;  %11581 = vmatprep.subr.bf16.mxu1 %v25719_v13  ;;  %v26016_v13 = vld [vmem:[%s28857_s7 + $0x7f0] ss:$8 sps:$4 sm:$0xff]  }
 0x6ad   : > { %10382 = vmatprep.subr.bf16.mxu0 %v25991_v47 }
 0x6af   : > { %11582 = vmatpush1.bf16.msra.mxu1 %v25728_v37  ;;  %10344 = vmatmul.mubr.bf16.gmra.mrb[172].mxu0 %v29570_v2  ;;  %v29572_v37 = vld [vmem:[#allocation91_spill] sm:$0xff]  ;;  %v29573_v2 = vld [vmem:[#allocation76_spill] sm:$0xff] }
 0x6b0   : > { %10383 = vmatpush1.bf16.msra.mxu0 %v26001_v57  ;;  %10386 = vmatprep.mubr.bf16.mxu0 %v29571_v11  ;;  %v26039_v11 = vld [vmem:[%s28857_s7 + $0x814] ss:$8 sps:$4 sm:$0xff]  }
 0x6b1   : > { %11583 = vmatprep.subr.bf16.mxu1 %v25735_v62  ;;  %10384 = vmatprep.subr.bf16.mxu0 %v26007_v4  ;;  %v26033_v62 = vld [vmem:[%s28857_s7 + $0x800] ss:$8 sps:$4 sm:$0xff]  }
 0x6b2   : > { %11496 = vmatmul.mubr.bf16.gmra.mrb[172].mxu1 %v29572_v37  ;;  %v26055_v37 = vld [vmem:[%s28857_s7 + $0x824] ss:$8 sps:$4 sm:$0xff]  }
 0x6b3   : > { %11584 = vmatpush1.bf16.msra.mxu1 %v25745_v59  ;;  %11587 = vmatprep.mubr.bf16.mxu1 %v29573_v2  ;;  %v29574_v59 = vld [vmem:[#allocation22_spill] sm:$0xff]  ;;  %v29575_v2 = vld [vmem:[#allocation23_spill] sm:$0xff] }
 0x6b4   : > { %10385 = vmatpush1.bf16.msra.mxu0 %v26016_v13  ;;  %11585 = vmatprep.subr.bf16.mxu1 %v25751_v25  ;;  %v26048_v25 = vld [vmem:[%s28857_s7 + $0x810] ss:$8 sps:$4 sm:$0xff]  }
 0x6b5   : > { %10467 = vmatprep.subr.bf16.mxu0 %v26023_v54 }
 0x6b7   : > { %11586 = vmatpush1.bf16.msra.mxu1 %v25760_v19  ;;  %10387 = vmatmul.mubr.bf16.vlgmr.msra.gmra.mrb[144].mxu0 %v29574_v59  ;;  %v29576_v19 = vld [vmem:[#allocation77_spill] sm:$0xff]  ;;  %v26071_v59 = vld [vmem:[%s28857_s7 + $0x834] ss:$8 sps:$4 sm:$0xff]  }
 0x6b8   : > { %10396 = vmatprep.mubr.bf16.mxu0 %v29575_v2  ;;  %10468 = vmatpush1.bf16.msra.mxu0 %v26033_v62  ;;  %v29577_v2 = vld [vmem:[#allocation82_spill] sm:$0xff] }
 0x6b9   : > { %11668 = vmatprep.subr.bf16.mxu1 %v25767_v0  ;;  %10469 = vmatprep.subr.bf16.mxu0 %v26039_v11  ;;  %v26065_v0 = vld [vmem:[%s28857_s7 + $0x820] ss:$8 sps:$4 sm:$0xff]  }
 0x6ba   : > { %11588 = vmatmul.mubr.bf16.vlgmr.msra.gmra.mrb[144].mxu1 %v29576_v19  ;;  %v26087_v19 = vld [vmem:[%s28857_s7 + $0x844] ss:$8 sps:$4 sm:$0xff]  }
 0x6bb   : > { %11669 = vmatpush1.bf16.msra.mxu1 %v25777_v52  ;;  %11597 = vmatprep.mubr.bf16.mxu1 %v29577_v2  ;;  %v29578_v52 = vld [vmem:[#allocation21_spill] sm:$0xff] }
 0x6bc   : > { %10470 = vmatpush1.bf16.msra.mxu0 %v26048_v25  ;;  %11670 = vmatprep.subr.bf16.mxu1 %v25783_v7  ;;  %v29579_v2 = vld [vmem:[#allocation29_spill] sm:$0xff]  ;;  %v26080_v7 = vld [vmem:[%s28857_s7 + $0x830] ss:$8 sps:$4 sm:$0xff]  }
 0x6bd   : > { %10471 = vmatprep.subr.bf16.mxu0 %v26055_v37 }
 0x6bf   : > { %11671 = vmatpush1.bf16.msra.mxu1 %v25792_v26  ;;  %10397 = vmatmul.mubr.bf16.gmra.mrb[148].mxu0 %v29578_v52  ;;  %v29580_v26 = vld [vmem:[#allocation83_spill] sm:$0xff] }
 0x6c0   : > { %10406 = vmatprep.mubr.bf16.mxu0 %v29579_v2  ;;  %10472 = vmatpush1.bf16.msra.mxu0 %v26065_v0  ;;  %v29581_v2 = vld [vmem:[#allocation88_spill] sm:$0xff] }
 0x6c1   : > { %11672 = vmatprep.subr.bf16.mxu1 %v25799_v53  ;;  %10473 = vmatprep.subr.bf16.mxu0 %v26071_v59  ;;  %v26097_v53 = vld [vmem:[%s28857_s7 + $0x840] ss:$8 sps:$4 sm:$0xff]   ;;  %v26103_v52 = vld [vmem:[%s28857_s7 + $0x854] ss:$8 sps:$4 sm:$0xff]  }
 0x6c2   : > { %11598 = vmatmul.mubr.bf16.gmra.mrb[148].mxu1 %v29580_v26  ;;  %v26119_v26 = vld [vmem:[%s28857_s7 + $0x864] ss:$8 sps:$4 sm:$0xff]  }
 0x6c3   : > { %11673 = vmatpush1.bf16.msra.mxu1 %v25809_v1  ;;  %11607 = vmatprep.mubr.bf16.mxu1 %v29581_v2  ;;  %v29582_v1 = vld [vmem:[#allocation27_spill] sm:$0xff]  ;;  %v29583_v2 = vld [vmem:[#allocation6_spill] sm:$0xff] }
 0x6c4   : > { %10474 = vmatpush1.bf16.msra.mxu0 %v26080_v7  ;;  %11674 = vmatprep.subr.bf16.mxu1 %v25815_v58  ;;  %v26112_v58 = vld [vmem:[%s28857_s7 + $0x850] ss:$8 sps:$4 sm:$0xff]  }
 0x6c5   : > { %10475 = vmatprep.subr.bf16.mxu0 %v26087_v19 }
 0x6c7   : > { %11675 = vmatpush1.bf16.msra.mxu1 %v25824_v36  ;;  %10407 = vmatmul.mubr.bf16.gmra.mrb[152].mxu0 %v29582_v1  ;;  %v29584_v36 = vld [vmem:[#allocation89_spill] sm:$0xff]  ;;  %v26135_v1 = vld [vmem:[%s28857_s7 + $0x874] ss:$8 sps:$4 sm:$0xff]  }
 0x6c8   : > { %10416 = vmatprep.mubr.bf16.mxu0 %v29583_v2  ;;  %10476 = vmatpush1.bf16.msra.mxu0 %v26097_v53  ;;  %v29585_v2 = vld [vmem:[#allocation94_spill] sm:$0xff] }
 0x6c9   : > { %11676 = vmatprep.subr.bf16.mxu1 %v25831_v46  ;;  %10477 = vmatprep.subr.bf16.mxu0 %v26103_v52  ;;  %v26129_v46 = vld [vmem:[%s28857_s7 + $0x860] ss:$8 sps:$4 sm:$0xff]  }
 0x6ca   : > { %11608 = vmatmul.mubr.bf16.gmra.mrb[152].mxu1 %v29584_v36  ;;  %v26151_v36 = vld [vmem:[%s28857_s7 + $0x884] ss:$8 sps:$4 sm:$0xff]  }
 0x6cb   : > { %11677 = vmatpush1.bf16.msra.mxu1 %v25841_v29  ;;  %11617 = vmatprep.mubr.bf16.mxu1 %v29585_v2  ;;  %v29586_v29 = vld [vmem:[#allocation12_spill] sm:$0xff]  ;;  %v29587_v2 = vld [vmem:[#allocation38_spill] sm:$0xff] }
 0x6cc   : > { %10478 = vmatpush1.bf16.msra.mxu0 %v26112_v58  ;;  %11678 = vmatprep.subr.bf16.mxu1 %v25847_v27  ;;  %v26144_v27 = vld [vmem:[%s28857_s7 + $0x870] ss:$8 sps:$4 sm:$0xff]  }
 0x6cd   : > { %10479 = vmatprep.subr.bf16.mxu0 %v26119_v26 }
 0x6cf   : > { %11679 = vmatpush1.bf16.msra.mxu1 %v25856_v5  ;;  %10417 = vmatmul.mubr.bf16.gmra.mrb[156].mxu0 %v29586_v29  ;;  %v29588_v5 = vld [vmem:[#allocation95_spill] sm:$0xff] }
 0x6d0   : > { %10426 = vmatprep.mubr.bf16.mxu0 %v29587_v2  ;;  %10480 = vmatpush1.bf16.msra.mxu0 %v26129_v46  ;;  %v29589_v2 = vld [vmem:[#allocation98_spill] sm:$0xff]  ;;  %v26167_v29 = vld [vmem:[%s28857_s7 + $0x894] ss:$8 sps:$4 sm:$0xff]  }
 0x6d1   : > { %11680 = vmatprep.subr.bf16.mxu1 %v25863_v10  ;;  %10481 = vmatprep.subr.bf16.mxu0 %v26135_v1  ;;  %v26161_v10 = vld [vmem:[%s28857_s7 + $0x880] ss:$8 sps:$4 sm:$0xff]  }
 0x6d2   : > { %11618 = vmatmul.mubr.bf16.gmra.mrb[156].mxu1 %v29588_v5  ;;  %v26183_v5 = vld [vmem:[%s28857_s7 + $0x8a4] ss:$8 sps:$4 sm:$0xff]  }
 0x6d3   : > { %11681 = vmatpush1.bf16.msra.mxu1 %v25873_v12  ;;  %11627 = vmatprep.mubr.bf16.mxu1 %v29589_v2  ;;  %v29590_v12 = vld [vmem:[#allocation37_spill] sm:$0xff]  ;;  %v29591_v2 = vld [vmem:[#allocation44_spill] sm:$0xff] }
 0x6d4   : > { %10482 = vmatpush1.bf16.msra.mxu0 %v26144_v27  ;;  %11682 = vmatprep.subr.bf16.mxu1 %v25879_v3  ;;  %v26176_v3 = vld [vmem:[%s28857_s7 + $0x890] ss:$8 sps:$4 sm:$0xff]  }
 0x6d5   : > { %10483 = vmatprep.subr.bf16.mxu0 %v26151_v36 }
 0x6d7   : > { %11683 = vmatpush1.bf16.msra.mxu1 %v25888_v28  ;;  %10427 = vmatmul.mubr.bf16.gmra.mrb[160].mxu0 %v29590_v12  ;;  %v29592_v28 = vld [vmem:[#allocation99_spill] sm:$0xff] }
 0x6d8   : > { %10436 = vmatprep.mubr.bf16.mxu0 %v29591_v2  ;;  %10484 = vmatpush1.bf16.msra.mxu0 %v26161_v10  ;;  %v29593_v2 = vld [vmem:[#allocation103_spill] sm:$0xff] }
 0x6d9   : > { %11684 = vmatprep.subr.bf16.mxu1 %v25895_v38  ;;  %10485 = vmatprep.subr.bf16.mxu0 %v26167_v29  ;;  %v26193_v38 = vld [vmem:[%s28857_s7 + $0x8a0] ss:$8 sps:$4 sm:$0xff]   ;;  %v26199_v12 = vld [vmem:[%s28857_s7 + $0x8b4] ss:$8 sps:$4 sm:$0xff]  }
 0x6da   : > { %11628 = vmatmul.mubr.bf16.gmra.mrb[160].mxu1 %v29592_v28 }
 0x6db   : > { %11685 = vmatpush1.bf16.msra.mxu1 %v25905_v41  ;;  %11637 = vmatprep.mubr.bf16.mxu1 %v29593_v2  ;;  %v29594_v41 = vld [vmem:[#allocation43_spill] sm:$0xff]  ;;  %v26215_v2 = vld [vmem:[%s28857_s7 + $0x8c4] ss:$8 sps:$4 sm:$0xff]  }
 0x6dc   : > { %10486 = vmatpush1.bf16.msra.mxu0 %v26176_v3  ;;  %11686 = vmatprep.subr.bf16.mxu1 %v25911_v9  ;;  %v26208_v9 = vld [vmem:[%s28857_s7 + $0x8b0] ss:$8 sps:$4 sm:$0xff]  }
 0x6dd   : > { %10487 = vmatprep.subr.bf16.mxu0 %v26183_v5 }
 0x6df   : > { %11687 = vmatpush1.bf16.msra.mxu1 %v25920_v15  ;;  %10437 = vmatmul.mubr.bf16.gmra.mrb[164].mxu0 %v29594_v41  ;;  %v29595_v15 = vld [vmem:[#allocation54_spill] sm:$0xff] }
 0x6e0   : > { %10446 = vmatprep.mubr.bf16.mxu0 %v29533_v56  ;;  %10488 = vmatpush1.bf16.msra.mxu0 %v26193_v38  ;;  %v26231_v56 = vld [vmem:[%s28857_s7 + $0x8d4] ss:$8 sps:$4 sm:$0xff]  }
 0x6e1   : > { %11688 = vmatprep.subr.bf16.mxu1 %v25927_v31  ;;  %10489 = vmatprep.subr.bf16.mxu0 %v26199_v12  ;;  %v26225_v31 = vld [vmem:[%s28857_s7 + $0x8c0] ss:$8 sps:$4 sm:$0xff]  }
 0x6e2   : > { %11638 = vmatmul.mubr.bf16.gmra.mrb[164].mxu1 %v29532_v34 }
 0x6e3   : > { %11689 = vmatpush1.bf16.msra.mxu1 %v25937_v16  ;;  %11647 = vmatprep.mubr.bf16.mxu1 %v29595_v15  ;;  %v26247_v16 = vld [vmem:[%s28857_s7 + $0x8e4] ss:$8 sps:$4 sm:$0xff]  }
 0x6e4   : > { %10490 = vmatpush1.bf16.msra.mxu0 %v26208_v9  ;;  %11690 = vmatprep.subr.bf16.mxu1 %v25943_v39  ;;  %v26240_v39 = vld [vmem:[%s28857_s7 + $0x8d0] ss:$8 sps:$4 sm:$0xff]  }
 0x6e5   : > { %10491 = vmatprep.subr.bf16.mxu0 %v26215_v2 }
 0x6e7   : > { %11691 = vmatpush1.bf16.msra.mxu1 %v25952_v60  ;;  %10447 = vmatmul.mubr.bf16.gmra.mrb[168].mxu0 %v29419_v21  ;;  %v29596_v60 = vld [vmem:[#allocation20_spill] sm:$0xff] }
 0x6e8   : > { %10456 = vmatprep.mubr.bf16.mxu0 %v29426_v61  ;;  %10492 = vmatpush1.bf16.msra.mxu0 %v26225_v31  ;;  %v26251_v61 = vld [vmem:[#allocation2] sm:$0xff] }
 0x6e9   : > { %11692 = vmatprep.subr.bf16.mxu1 %v25959_v42  ;;  %10493 = vmatprep.subr.bf16.mxu0 %v26231_v56  ;;  %v26259_v42 = vld [vmem:[%s28857_s7 + $0x8e0] ss:$8 sps:$4 sm:$0xff]  }
 0x6ea   : > { %11648 = vmatmul.mubr.bf16.gmra.mrb[168].mxu1 %v29596_v60  ;;  %v26265_v60 = vld [vmem:[%s28857_s7 + $0x8f4] ss:$8 sps:$4 sm:$0xff]  }
 0x6eb   : > { %11693 = vmatpush1.bf16.msra.mxu1 %v25969_v51  ;;  %11657 = vmatprep.mubr.bf16.mxu1 %v26251_v61  ;;  %v26281_v51 = vld [vmem:[%s28857_s7 + $0xc04] ss:$8 sps:$4 sm:$0xff]  }
 0x6ec   : > { %10494 = vmatpush1.bf16.msra.mxu0 %v26240_v39  ;;  %11694 = vmatprep.subr.bf16.mxu1 %v25975_v22  ;;  %v26274_v22 = vld [vmem:[%s28857_s7 + $0x8f0] ss:$8 sps:$4 sm:$0xff]  }
 0x6ed   : > { %10495 = vmatprep.subr.bf16.mxu0 %v26247_v16 }
 0x6ef   : > { %11695 = vmatpush1.bf16.msra.mxu1 %v25984_v18  ;;  %10457 = vmatmul.mubr.bf16.gmra.mrb[172].mxu0 %v29534_v14  ;;  %v26297_v18 = vld [vmem:[%s28857_s7 + $0xc14] ss:$8 sps:$4 sm:$0xff]  }
 0x6f0   : > { %10496 = vmatpush1.bf16.msra.mxu0 %v26259_v42  ;;  %10499 = vmatprep.mubr.bf16.mxu0 %v24614_v8 }
 0x6f1   : > { %11696 = vmatprep.subr.bf16.mxu1 %v25991_v47  ;;  %10497 = vmatprep.subr.bf16.mxu0 %v26265_v60  ;;  %v26291_v47 = vld [vmem:[%s28857_s7 + $0xc00] ss:$8 sps:$4 sm:$0xff]  }
 0x6f2   : > { %11658 = vmatmul.mubr.bf16.gmra.mrb[172].mxu1 %v26251_v61 }
 0x6f3   : > { %11697 = vmatpush1.bf16.msra.mxu1 %v26001_v57  ;;  %11700 = vmatprep.mubr.bf16.mxu1 %v29535_v6  ;;  %v29597_v57 = vld [vmem:[#allocation60_spill] sm:$0xff]  ;;  %v29598_v6 = vld [vmem:[#allocation19_spill] sm:$0xff] }
 0x6f4   : > { %10498 = vmatpush1.bf16.msra.mxu0 %v26274_v22  ;;  %11698 = vmatprep.subr.bf16.mxu1 %v26007_v4  ;;  %v26307_v4 = vld [vmem:[%s28857_s7 + $0xc10] ss:$8 sps:$4 sm:$0xff]  }
 0x6f5   : > { %12710 = vmatprep.subr.bf16.mxu0 %v26281_v51 }
 0x6f7   : > { %11699 = vmatpush1.bf16.msra.mxu1 %v26016_v13  ;;  %10500 = vmatmul.mubr.bf16.vlgmr.msra.gmra.mrb[144].mxu0 %v29597_v57  ;;  %v26314_v13 = vld [vmem:[%s28857_s7 + $0xc24] ss:$8 sps:$4 sm:$0xff]  }
 0x6f8   : > { %10509 = vmatprep.mubr.bf16.mxu0 %v29598_v6  ;;  %11781 = vmatprep.subr.bf16.mxu1 %v26023_v54  ;;  %v26323_v54 = vld [vmem:[%s28857_s7 + $0xc20] ss:$8 sps:$4 sm:$0xff]  }
 0x6f9   : > { %12711 = vmatpush1.bf16.msra.mxu0 %v26291_v47 }
 0x6fa   : > { %11701 = vmatmul.mubr.bf16.vlgmr.msra.gmra.mrb[144].mxu1 %v29537_v49  ;;  %12712 = vmatprep.subr.bf16.mxu0 %v26297_v18  ;;  %v26329_v49 = vld [vmem:[%s28857_s7 + $0xc34] ss:$8 sps:$4 sm:$0xff]  }
 0x6fb   : > { %11782 = vmatpush1.bf16.msra.mxu1 %v26033_v62  ;;  %11710 = vmatprep.mubr.bf16.mxu1 %v29538_v50  ;;  %v29599_v62 = vld [vmem:[#allocation64_spill] sm:$0xff]  ;;  %v29600_v50 = vld [vmem:[#allocation11_spill] sm:$0xff] }
 0x6fc   : > { %11783 = vmatprep.subr.bf16.mxu1 %v26039_v11  ;;  %v26339_v11 = vld [vmem:[%s28857_s7 + $0xc30] ss:$8 sps:$4 sm:$0xff]  }
 0x6fd   : > { %12713 = vmatpush1.bf16.msra.mxu0 %v26307_v4 }
 0x6fe   : > { %12714 = vmatprep.subr.bf16.mxu0 %v26314_v13 }
 0x6ff   : > { %11784 = vmatpush1.bf16.msra.mxu1 %v26048_v25  ;;  %10510 = vmatmul.mubr.bf16.gmra.mrb[148].mxu0 %v29599_v62  ;;  %v26346_v25 = vld [vmem:[%s28857_s7 + $0xc44] ss:$8 sps:$4 sm:$0xff]  }
 0x700   : > { %10519 = vmatprep.mubr.bf16.mxu0 %v29600_v50  ;;  %11785 = vmatprep.subr.bf16.mxu1 %v26055_v37  ;;  %v26355_v37 = vld [vmem:[%s28857_s7 + $0xc40] ss:$8 sps:$4 sm:$0xff]  }
 0x701   : > { %12715 = vmatpush1.bf16.msra.mxu0 %v26323_v54 }
 0x702   : > { %11711 = vmatmul.mubr.bf16.gmra.mrb[148].mxu1 %v29539_v45  ;;  %12716 = vmatprep.subr.bf16.mxu0 %v26329_v49  ;;  %v26361_v45 = vld [vmem:[%s28857_s7 + $0xc54] ss:$8 sps:$4 sm:$0xff]  }
 0x703   : > { %11786 = vmatpush1.bf16.msra.mxu1 %v26065_v0  ;;  %11720 = vmatprep.mubr.bf16.mxu1 %v29540_v24  ;;  %v29601_v0 = vld [vmem:[#allocation66_spill] sm:$0xff] }
 0x704   : > { %11787 = vmatprep.subr.bf16.mxu1 %v26071_v59  ;;  %v29602_v24 = vld [vmem:[#allocation10_spill] sm:$0xff]  ;;  %v26371_v59 = vld [vmem:[%s28857_s7 + $0xc50] ss:$8 sps:$4 sm:$0xff]  }
 0x705   : > { %12717 = vmatpush1.bf16.msra.mxu0 %v26339_v11 }
 0x706   : > { %12718 = vmatprep.subr.bf16.mxu0 %v26346_v25 }
 0x707   : > { %11788 = vmatpush1.bf16.msra.mxu1 %v26080_v7  ;;  %10520 = vmatmul.mubr.bf16.gmra.mrb[152].mxu0 %v29601_v0  ;;  %v26378_v7 = vld [vmem:[%s28857_s7 + $0xc64] ss:$8 sps:$4 sm:$0xff]  }
 0x708   : > { %10529 = vmatprep.mubr.bf16.mxu0 %v29602_v24  ;;  %11789 = vmatprep.subr.bf16.mxu1 %v26087_v19  ;;  %v26387_v19 = vld [vmem:[%s28857_s7 + $0xc60] ss:$8 sps:$4 sm:$0xff]  }
 0x709   : > { %12719 = vmatpush1.bf16.msra.mxu0 %v26355_v37 }
 0x70a   : > { %11721 = vmatmul.mubr.bf16.gmra.mrb[152].mxu1 %v29541_v23  ;;  %12720 = vmatprep.subr.bf16.mxu0 %v26361_v45  ;;  %v26393_v23 = vld [vmem:[%s28857_s7 + $0xc74] ss:$8 sps:$4 sm:$0xff]  }
 0x70b   : > { %11790 = vmatpush1.bf16.msra.mxu1 %v26097_v53  ;;  %11730 = vmatprep.mubr.bf16.mxu1 %v29542_v40  ;;  %v29603_v53 = vld [vmem:[#allocation28_spill] sm:$0xff]  ;;  %v29604_v40 = vld [vmem:[#allocation26_spill] sm:$0xff] }
 0x70c   : > { %11791 = vmatprep.subr.bf16.mxu1 %v26103_v52  ;;  %v26403_v52 = vld [vmem:[%s28857_s7 + $0xc70] ss:$8 sps:$4 sm:$0xff]  }
 0x70d   : > { %12721 = vmatpush1.bf16.msra.mxu0 %v26371_v59 }
 0x70e   : > { %12722 = vmatprep.subr.bf16.mxu0 %v26378_v7 }
 0x70f   : > { %11792 = vmatpush1.bf16.msra.mxu1 %v26112_v58  ;;  %10530 = vmatmul.mubr.bf16.gmra.mrb[156].mxu0 %v29603_v53  ;;  %v26410_v58 = vld [vmem:[%s28857_s7 + $0xc84] ss:$8 sps:$4 sm:$0xff]  }
 0x710   : > { %10539 = vmatprep.mubr.bf16.mxu0 %v29604_v40  ;;  %11793 = vmatprep.subr.bf16.mxu1 %v26119_v26  ;;  %v26419_v26 = vld [vmem:[%s28857_s7 + $0xc80] ss:$8 sps:$4 sm:$0xff]  }
 0x711   : > { %12723 = vmatpush1.bf16.msra.mxu0 %v26387_v19 }
 0x712   : > { %11731 = vmatmul.mubr.bf16.gmra.mrb[156].mxu1 %v29543_v43  ;;  %12724 = vmatprep.subr.bf16.mxu0 %v26393_v23  ;;  %v26425_v43 = vld [vmem:[%s28857_s7 + $0xc94] ss:$8 sps:$4 sm:$0xff]  }
 0x713   : > { %11794 = vmatpush1.bf16.msra.mxu1 %v26129_v46  ;;  %11740 = vmatprep.mubr.bf16.mxu1 %v29544_v44  ;;  %v29605_v46 = vld [vmem:[#allocation32_spill] sm:$0xff]  ;;  %v29606_v44 = vld [vmem:[#allocation31_spill] sm:$0xff] }
 0x714   : > { %11795 = vmatprep.subr.bf16.mxu1 %v26135_v1  ;;  %v26435_v1 = vld [vmem:[%s28857_s7 + $0xc90] ss:$8 sps:$4 sm:$0xff]  }
 0x715   : > { %12725 = vmatpush1.bf16.msra.mxu0 %v26403_v52 }
 0x716   : > { %12726 = vmatprep.subr.bf16.mxu0 %v26410_v58 }
 0x717   : > { %11796 = vmatpush1.bf16.msra.mxu1 %v26144_v27  ;;  %10540 = vmatmul.mubr.bf16.gmra.mrb[160].mxu0 %v29605_v46  ;;  %v26442_v27 = vld [vmem:[%s28857_s7 + $0xca4] ss:$8 sps:$4 sm:$0xff]  }
 0x718   : > { %10549 = vmatprep.mubr.bf16.mxu0 %v29606_v44  ;;  %11797 = vmatprep.subr.bf16.mxu1 %v26151_v36  ;;  %v26451_v36 = vld [vmem:[%s28857_s7 + $0xca0] ss:$8 sps:$4 sm:$0xff]   ;;  %v29609_v44 = vld [vmem:[#allocation96_spill] sm:$0xff] }
 0x719   : > { %12727 = vmatpush1.bf16.msra.mxu0 %v26419_v26 }
 0x71a   : > { %11741 = vmatmul.mubr.bf16.gmra.mrb[160].mxu1 %v29545_v33  ;;  %12728 = vmatprep.subr.bf16.mxu0 %v26425_v43  ;;  %v26457_v33 = vld [vmem:[%s28857_s7 + $0xcb4] ss:$8 sps:$4 sm:$0xff]  }
 0x71b   : > { %11798 = vmatpush1.bf16.msra.mxu1 %v26161_v10  ;;  %11750 = vmatprep.mubr.bf16.mxu1 %v29546_v55  ;;  %v29607_v10 = vld [vmem:[#allocation36_spill] sm:$0xff]  ;;  %v29608_v55 = vld [vmem:[#allocation35_spill] sm:$0xff] }
 0x71c   : > { %11799 = vmatprep.subr.bf16.mxu1 %v26167_v29  ;;  %v26467_v29 = vld [vmem:[%s28857_s7 + $0xcb0] ss:$8 sps:$4 sm:$0xff]  }
 0x71d   : > { %12729 = vmatpush1.bf16.msra.mxu0 %v26435_v1 }
 0x71e   : > { %12730 = vmatprep.subr.bf16.mxu0 %v26442_v27 }
 0x71f   : > { %11800 = vmatpush1.bf16.msra.mxu1 %v26176_v3  ;;  %10550 = vmatmul.mubr.bf16.gmra.mrb[164].mxu0 %v29607_v10  ;;  %v26474_v3 = vld [vmem:[%s28857_s7 + $0xcc4] ss:$8 sps:$4 sm:$0xff]  }
 0x720   : > { %10559 = vmatprep.mubr.bf16.mxu0 %v29608_v55  ;;  %11801 = vmatprep.subr.bf16.mxu1 %v26183_v5  ;;  %v29610_v55 = vld [vmem:[#allocation102_spill] sm:$0xff]  ;;  %v29613_v10 = vld [vmem:[#allocation101_spill] sm:$0xff] }
 0x721   : > { %12731 = vmatpush1.bf16.msra.mxu0 %v26451_v36  ;;  %v26483_v5 = vld [vmem:[%s28857_s7 + $0xcc0] ss:$8 sps:$4 sm:$0xff]  }
 0x722   : > { %11751 = vmatmul.mubr.bf16.gmra.mrb[164].mxu1 %v29609_v44  ;;  %12732 = vmatprep.subr.bf16.mxu0 %v26457_v33  ;;  %v26489_v44 = vld [vmem:[%s28857_s7 + $0xcd4] ss:$8 sps:$4 sm:$0xff]  }
 0x723   : > { %11802 = vmatpush1.bf16.msra.mxu1 %v26193_v38  ;;  %11760 = vmatprep.mubr.bf16.mxu1 %v29610_v55  ;;  %v29611_v38 = vld [vmem:[#allocation42_spill] sm:$0xff]  ;;  %v29612_v55 = vld [vmem:[#allocation41_spill] sm:$0xff] }
 0x724   : > { %11803 = vmatprep.subr.bf16.mxu1 %v26199_v12  ;;  %v26499_v12 = vld [vmem:[%s28857_s7 + $0xcd0] ss:$8 sps:$4 sm:$0xff]  }
 0x725   : > { %12733 = vmatpush1.bf16.msra.mxu0 %v26467_v29 }
 0x726   : > { %12734 = vmatprep.subr.bf16.mxu0 %v26474_v3 }
 0x727   : > { %11804 = vmatpush1.bf16.msra.mxu1 %v26208_v9  ;;  %10560 = vmatmul.mubr.bf16.gmra.mrb[168].mxu0 %v29611_v38  ;;  %v26506_v9 = vld [vmem:[%s28857_s7 + $0xce4] ss:$8 sps:$4 sm:$0xff]  }
 0x728   : > { %10569 = vmatprep.mubr.bf16.mxu0 %v29612_v55  ;;  %11805 = vmatprep.subr.bf16.mxu1 %v26215_v2  ;;  %v26515_v2 = vld [vmem:[%s28857_s7 + $0xce0] ss:$8 sps:$4 sm:$0xff]   ;;  %v26521_v55 = vld [vmem:[%s28857_s7 + $0xcf4] ss:$8 sps:$4 sm:$0xff]  }
 0x729   : > { %12735 = vmatpush1.bf16.msra.mxu0 %v26483_v5 }
 0x72a   : > { %11761 = vmatmul.mubr.bf16.gmra.mrb[168].mxu1 %v29613_v10  ;;  %12736 = vmatprep.subr.bf16.mxu0 %v26489_v44 }
 0x72b   : > { %11806 = vmatpush1.bf16.msra.mxu1 %v26225_v31  ;;  %11770 = vmatprep.mubr.bf16.mxu1 %v26251_v61  ;;  %v26531_v31 = vld [vmem:[%s28857_s7 + $0xcf0] ss:$8 sps:$4 sm:$0xff]  }
 0x72c   : > { %11807 = vmatprep.subr.bf16.mxu1 %v26231_v56  ;;  %v29614_v56 = vld [vmem:[#allocation7_spill] sm:$0xff] }
 0x72d   : > { %12737 = vmatpush1.bf16.msra.mxu0 %v26499_v12 }
 0x72e   : > { %12738 = vmatprep.subr.bf16.mxu0 %v26506_v9 }
 0x72f   : > { %11808 = vmatpush1.bf16.msra.mxu1 %v26240_v39  ;;  %10570 = vmatmul.mubr.bf16.gmra.mrb[172].mxu0 %v29555_v20  ;;  %v26538_v39 = vld [vmem:[%s28857_s7 + $0xd04] ss:$8 sps:$4 sm:$0xff]   ;;  %v26547_v20 = vld [vmem:[%s28857_s7 + $0xd00] ss:$8 sps:$4 sm:$0xff]  }
 0x730   : > { %11809 = vmatprep.subr.bf16.mxu1 %v26247_v16  ;;  %12742 = vmatprep.mubr.bf16.mxu0 %v29614_v56  ;;  %v29615_v16 = vld [vmem:[#allocation48_spill] sm:$0xff] }
 0x731   : > { %12739 = vmatpush1.bf16.msra.mxu0 %v26515_v2  ;;  %v26553_v56 = vld [vmem:[%s28857_s7 + $0xd14] ss:$8 sps:$4 sm:$0xff]  }
 0x732   : > { %11771 = vmatmul.mubr.bf16.gmra.mrb[172].mxu1 %v26251_v61  ;;  %12740 = vmatprep.subr.bf16.mxu0 %v26521_v55 }
 0x733   : > { %11810 = vmatpush1.bf16.msra.mxu1 %v26259_v42  ;;  %11813 = vmatprep.mubr.bf16.mxu1 %v29615_v16  ;;  %v29616_v42 = vld [vmem:[#allocation8_spill] sm:$0xff] }
 0x734   : > { %11811 = vmatprep.subr.bf16.mxu1 %v26265_v60  ;;  %v29617_v60 = vld [vmem:[#allocation25_spill] sm:$0xff]  ;;  %v26563_v16 = vld [vmem:[%s28857_s7 + $0xd10] ss:$8 sps:$4 sm:$0xff]  }
 0x735   : > { %12741 = vmatpush1.bf16.msra.mxu0 %v26531_v31 }
 0x736   : > { %12823 = vmatprep.subr.bf16.mxu0 %v26538_v39 }
 0x737   : > { %11812 = vmatpush1.bf16.msra.mxu1 %v26274_v22  ;;  %v26570_v22 = vld [vmem:[%s28857_s7 + $0xd24] ss:$8 sps:$4 sm:$0xff]  }
 0x738   : > { %12743 = vmatmul.mubr.bf16.vlgmr.msra.gmra.mrb[176].mxu0 %v29616_v42  ;;  %14935 = vmatprep.subr.bf16.mxu1 %v26281_v51  ;;  %v26579_v51 = vld [vmem:[%s28857_s7 + $0xd20] ss:$8 sps:$4 sm:$0xff]  }
 0x739   : > { %12752 = vmatprep.mubr.bf16.mxu0 %v29617_v60  ;;  %12824 = vmatpush1.bf16.msra.mxu0 %v26547_v20 }
 0x73a   : > { %11814 = vmatmul.mubr.bf16.vlgmr.msra.gmra.mrb[144].mxu1 %v29558_v63  ;;  %12825 = vmatprep.subr.bf16.mxu0 %v26553_v56  ;;  %v26585_v63 = vld [vmem:[%s28857_s7 + $0xd34] ss:$8 sps:$4 sm:$0xff]  }
 0x73b   : > { %14936 = vmatpush1.bf16.msra.mxu1 %v26291_v47  ;;  %11823 = vmatprep.mubr.bf16.mxu1 %v29559_v48  ;;  %v29618_v47 = vld [vmem:[#allocation24_spill] sm:$0xff] }
 0x73c   : > { %14937 = vmatprep.subr.bf16.mxu1 %v26297_v18  ;;  %v29619_v18 = vld [vmem:[#allocation30_spill] sm:$0xff]  ;;  %v26595_v48 = vld [vmem:[%s28857_s7 + $0xd30] ss:$8 sps:$4 sm:$0xff]  }
 0x73d   : > { %12826 = vmatpush1.bf16.msra.mxu0 %v26563_v16 }
 0x73e   : > { %12827 = vmatprep.subr.bf16.mxu0 %v26570_v22 }
 0x73f   : > { %14938 = vmatpush1.bf16.msra.mxu1 %v26307_v4  ;;  %v26602_v4 = vld [vmem:[%s28857_s7 + $0xd44] ss:$8 sps:$4 sm:$0xff]  }
 0x740   : > { %12753 = vmatmul.mubr.bf16.gmra.mrb[180].mxu0 %v29618_v47  ;;  %14939 = vmatprep.subr.bf16.mxu1 %v26314_v13  ;;  %v29620_v13 = vld [vmem:[#allocation65_spill] sm:$0xff] }
 0x741   : > { %12762 = vmatprep.mubr.bf16.mxu0 %v29619_v18  ;;  %12828 = vmatpush1.bf16.msra.mxu0 %v26579_v51  ;;  %v26611_v18 = vld [vmem:[%s28857_s7 + $0xd40] ss:$8 sps:$4 sm:$0xff]  }
 0x742   : > { %11824 = vmatmul.mubr.bf16.gmra.mrb[148].mxu1 %v29560_v35  ;;  %12829 = vmatprep.subr.bf16.mxu0 %v26585_v63  ;;  %v26617_v35 = vld [vmem:[%s28857_s7 + $0xd54] ss:$8 sps:$4 sm:$0xff]  }
 0x743   : > { %14940 = vmatpush1.bf16.msra.mxu1 %v26323_v54  ;;  %11833 = vmatprep.mubr.bf16.mxu1 %v29620_v13  ;;  %v29621_v54 = vld [vmem:[#allocation15_spill] sm:$0xff] }
 0x744   : > { %14941 = vmatprep.subr.bf16.mxu1 %v26329_v49  ;;  %v29622_v49 = vld [vmem:[#allocation33_spill] sm:$0xff]  ;;  %v26627_v13 = vld [vmem:[%s28857_s7 + $0xd50] ss:$8 sps:$4 sm:$0xff]  }
 0x745   : > { %12830 = vmatpush1.bf16.msra.mxu0 %v26595_v48 }
 0x746   : > { %12831 = vmatprep.subr.bf16.mxu0 %v26602_v4 }
 0x747   : > { %14942 = vmatpush1.bf16.msra.mxu1 %v26339_v11  ;;  %v26634_v11 = vld [vmem:[%s28857_s7 + $0xd64] ss:$8 sps:$4 sm:$0xff]  }
 0x748   : > { %12763 = vmatmul.mubr.bf16.gmra.mrb[184].mxu0 %v29621_v54  ;;  %14943 = vmatprep.subr.bf16.mxu1 %v26346_v25  ;;  %v26643_v25 = vld [vmem:[%s28857_s7 + $0xd60] ss:$8 sps:$4 sm:$0xff]  }
 0x749   : > { %12772 = vmatprep.mubr.bf16.mxu0 %v29622_v49  ;;  %12832 = vmatpush1.bf16.msra.mxu0 %v26611_v18 }
 0x74a   : > { %11834 = vmatmul.mubr.bf16.gmra.mrb[152].mxu1 %v29563_v17  ;;  %12833 = vmatprep.subr.bf16.mxu0 %v26617_v35  ;;  %v26649_v17 = vld [vmem:[%s28857_s7 + $0xd74] ss:$8 sps:$4 sm:$0xff]  }
 0x74b   : > { %14944 = vmatpush1.bf16.msra.mxu1 %v26355_v37  ;;  %11843 = vmatprep.mubr.bf16.mxu1 %v29564_v30  ;;  %v29623_v37 = vld [vmem:[#allocation34_spill] sm:$0xff]  ;;  %v26659_v30 = vld [vmem:[%s28857_s7 + $0xd70] ss:$8 sps:$4 sm:$0xff]  }
 0x74c   : > { %14945 = vmatprep.subr.bf16.mxu1 %v26361_v45  ;;  %v29624_v45 = vld [vmem:[#allocation39_spill] sm:$0xff] }
 0x74d   : > { %12834 = vmatpush1.bf16.msra.mxu0 %v26627_v13 }
 0x74e   : > { %12835 = vmatprep.subr.bf16.mxu0 %v26634_v11 }
 0x74f   : > { %14946 = vmatpush1.bf16.msra.mxu1 %v26371_v59  ;;  %v26666_v59 = vld [vmem:[%s28857_s7 + $0xd84] ss:$8 sps:$4 sm:$0xff]  }
 0x750   : > { %12773 = vmatmul.mubr.bf16.gmra.mrb[188].mxu0 %v29623_v37  ;;  %14947 = vmatprep.subr.bf16.mxu1 %v26378_v7  ;;  %v29625_v7 = vld [vmem:[#allocation78_spill] sm:$0xff]  ;;  %v29628_v37 = vld [vmem:[#allocation85_spill] sm:$0xff] }
 0x751   : > { %12782 = vmatprep.mubr.bf16.mxu0 %v29624_v45  ;;  %12836 = vmatpush1.bf16.msra.mxu0 %v26643_v25  ;;  %v26675_v45 = vld [vmem:[%s28857_s7 + $0xd80] ss:$8 sps:$4 sm:$0xff]  }
 0x752   : > { %11844 = vmatmul.mubr.bf16.gmra.mrb[156].mxu1 %v29565_v32  ;;  %12837 = vmatprep.subr.bf16.mxu0 %v26649_v17  ;;  %v26681_v32 = vld [vmem:[%s28857_s7 + $0xd94] ss:$8 sps:$4 sm:$0xff]  }
 0x753   : > { %14948 = vmatpush1.bf16.msra.mxu1 %v26387_v19  ;;  %11853 = vmatprep.mubr.bf16.mxu1 %v29625_v7  ;;  %v29626_v19 = vld [vmem:[#allocation40_spill] sm:$0xff] }
 0x754   : > { %14949 = vmatprep.subr.bf16.mxu1 %v26393_v23  ;;  %v29627_v23 = vld [vmem:[#allocation45_spill] sm:$0xff]  ;;  %v26691_v7 = vld [vmem:[%s28857_s7 + $0xd90] ss:$8 sps:$4 sm:$0xff]  }
 0x755   : > { %12838 = vmatpush1.bf16.msra.mxu0 %v26659_v30 }
 0x756   : > { %12839 = vmatprep.subr.bf16.mxu0 %v26666_v59 }
 0x757   : > { %14950 = vmatpush1.bf16.msra.mxu1 %v26403_v52  ;;  %v26698_v52 = vld [vmem:[%s28857_s7 + $0xda4] ss:$8 sps:$4 sm:$0xff]  }
 0x758   : > { %12783 = vmatmul.mubr.bf16.gmra.mrb[192].mxu0 %v29626_v19  ;;  %14951 = vmatprep.subr.bf16.mxu1 %v26410_v58  ;;  %v29629_v58 = vld [vmem:[#allocation84_spill] sm:$0xff]  ;;  %v29632_v19 = vld [vmem:[#allocation91_spill] sm:$0xff] }
 0x759   : > { %12792 = vmatprep.mubr.bf16.mxu0 %v29627_v23  ;;  %12840 = vmatpush1.bf16.msra.mxu0 %v26675_v45  ;;  %v26707_v23 = vld [vmem:[%s28857_s7 + $0xda0] ss:$8 sps:$4 sm:$0xff]  }
 0x75a   : > { %11854 = vmatmul.mubr.bf16.gmra.mrb[160].mxu1 %v29628_v37  ;;  %12841 = vmatprep.subr.bf16.mxu0 %v26681_v32  ;;  %v26713_v37 = vld [vmem:[%s28857_s7 + $0xdb4] ss:$8 sps:$4 sm:$0xff]  }
 0x75b   : > { %14952 = vmatpush1.bf16.msra.mxu1 %v26419_v26  ;;  %11863 = vmatprep.mubr.bf16.mxu1 %v29629_v58  ;;  %v29630_v26 = vld [vmem:[#allocation46_spill] sm:$0xff]  ;;  %v26723_v58 = vld [vmem:[%s28857_s7 + $0xdb0] ss:$8 sps:$4 sm:$0xff]  }
 0x75c   : > { %14953 = vmatprep.subr.bf16.mxu1 %v26425_v43  ;;  %v29631_v43 = vld [vmem:[#allocation53_spill] sm:$0xff] }
 0x75d   : > { %12842 = vmatpush1.bf16.msra.mxu0 %v26691_v7 }
 0x75e   : > { %12843 = vmatprep.subr.bf16.mxu0 %v26698_v52 }
 0x75f   : > { %14954 = vmatpush1.bf16.msra.mxu1 %v26435_v1  ;;  %v26730_v1 = vld [vmem:[%s28857_s7 + $0xdc4] ss:$8 sps:$4 sm:$0xff]  }
 0x760   : > { %12793 = vmatmul.mubr.bf16.gmra.mrb[196].mxu0 %v29630_v26  ;;  %14955 = vmatprep.subr.bf16.mxu1 %v26442_v27  ;;  %v29633_v27 = vld [vmem:[#allocation90_spill] sm:$0xff]  ;;  %v29636_v26 = vld [vmem:[#allocation100_spill] sm:$0xff] }
 0x761   : > { %12802 = vmatprep.mubr.bf16.mxu0 %v29631_v43  ;;  %12844 = vmatpush1.bf16.msra.mxu0 %v26707_v23  ;;  %v26739_v43 = vld [vmem:[%s28857_s7 + $0xdc0] ss:$8 sps:$4 sm:$0xff]  }
 0x762   : > { %11864 = vmatmul.mubr.bf16.gmra.mrb[164].mxu1 %v29632_v19  ;;  %12845 = vmatprep.subr.bf16.mxu0 %v26713_v37  ;;  %v26745_v19 = vld [vmem:[%s28857_s7 + $0xdd4] ss:$8 sps:$4 sm:$0xff]  }
 0x763   : > { %14956 = vmatpush1.bf16.msra.mxu1 %v26451_v36  ;;  %11873 = vmatprep.mubr.bf16.mxu1 %v29633_v27  ;;  %v29634_v36 = vld [vmem:[#allocation55_spill] sm:$0xff] }
 0x764   : > { %14957 = vmatprep.subr.bf16.mxu1 %v26457_v33  ;;  %v29635_v33 = vld [vmem:[#allocation59_spill] sm:$0xff] }
 0x765   : > { %12846 = vmatpush1.bf16.msra.mxu0 %v26723_v58  ;;  %v26755_v27 = vld [vmem:[%s28857_s7 + $0xdd0] ss:$8 sps:$4 sm:$0xff]  }
 0x766   : > { %12847 = vmatprep.subr.bf16.mxu0 %v26730_v1 }
 0x767   : > { %14958 = vmatpush1.bf16.msra.mxu1 %v26467_v29  ;;  %v26762_v29 = vld [vmem:[%s28857_s7 + $0xde4] ss:$8 sps:$4 sm:$0xff]  }
 0x768   : > { %12803 = vmatmul.mubr.bf16.gmra.mrb[200].mxu0 %v29634_v36  ;;  %14959 = vmatprep.subr.bf16.mxu1 %v26474_v3  ;;  %v26771_v3 = vld [vmem:[%s28857_s7 + $0xde0] ss:$8 sps:$4 sm:$0xff]  }
 0x769   : > { %12812 = vmatprep.mubr.bf16.mxu0 %v29635_v33  ;;  %12848 = vmatpush1.bf16.msra.mxu0 %v26739_v43  ;;  %v26777_v33 = vld [vmem:[%s28857_s7 + $0xdf4] ss:$8 sps:$4 sm:$0xff]  }
 0x76a   : > { %11874 = vmatmul.mubr.bf16.gmra.mrb[168].mxu1 %v29636_v26  ;;  %12849 = vmatprep.subr.bf16.mxu0 %v26745_v19  ;;  %v26787_v26 = vld [vmem:[%s28857_s7 + $0xdf0] ss:$8 sps:$4 sm:$0xff]  }
 0x76b   : > { %14960 = vmatpush1.bf16.msra.mxu1 %v26483_v5  ;;  %11883 = vmatprep.mubr.bf16.mxu1 %v26251_v61  ;;  %v29637_v5 = vld [vmem:[#allocation62_spill] sm:$0xff] }
 0x76c   : > { %14961 = vmatprep.subr.bf16.mxu1 %v26489_v44  ;;  %v29638_v44 = vld [vmem:[#allocation18_spill] sm:$0xff] }
 0x76d   : > { %12850 = vmatpush1.bf16.msra.mxu0 %v26755_v27 }
 0x76e   : > { %12851 = vmatprep.subr.bf16.mxu0 %v26762_v29 }
 0x76f   : > { %14962 = vmatpush1.bf16.msra.mxu1 %v26499_v12  ;;  %v26794_v12 = vld [vmem:[%s28857_s7 + $0xe04] ss:$8 sps:$4 sm:$0xff]  }
 0x770   : > { %12813 = vmatmul.mubr.bf16.gmra.mrb[204].mxu0 %v29637_v5  ;;  %14963 = vmatprep.subr.bf16.mxu1 %v26506_v9  ;;  %v29639_v9 = vld [vmem:[#allocation70_spill] sm:$0xff] }
 0x771   : > { %12852 = vmatpush1.bf16.msra.mxu0 %v26771_v3  ;;  %12855 = vmatprep.mubr.bf16.mxu0 %v29638_v44  ;;  %v26803_v5 = vld [vmem:[%s28857_s7 + $0xe00] ss:$8 sps:$4 sm:$0xff]   ;;  %v29642_v44 = vld [vmem:[#allocation71_spill] sm:$0xff] }
 0x772   : > { %11884 = vmatmul.mubr.bf16.gmra.mrb[172].mxu1 %v26251_v61  ;;  %12853 = vmatprep.subr.bf16.mxu0 %v26777_v33  ;;  %v26809_v61 = vld [vmem:[%s28857_s7 + $0xe14] ss:$8 sps:$4 sm:$0xff]  }
 0x773   : > { %14964 = vmatpush1.bf16.msra.mxu1 %v26515_v2  ;;  %14967 = vmatprep.mubr.bf16.mxu1 %v29639_v9  ;;  %v29640_v2 = vld [vmem:[#allocation17_spill] sm:$0xff]  ;;  %v26819_v9 = vld [vmem:[%s28857_s7 + $0xe10] ss:$8 sps:$4 sm:$0xff]  }
 0x774   : > { %14965 = vmatprep.subr.bf16.mxu1 %v26521_v55  ;;  %v29641_v55 = vld [vmem:[#allocation9_spill] sm:$0xff] }
 0x775   : > { %12854 = vmatpush1.bf16.msra.mxu0 %v26787_v26 }
 0x776   : > { %12936 = vmatprep.subr.bf16.mxu0 %v26794_v12 }
 0x777   : > { %14966 = vmatpush1.bf16.msra.mxu1 %v26531_v31  ;;  %v26826_v31 = vld [vmem:[%s28857_s7 + $0xe24] ss:$8 sps:$4 sm:$0xff]  }
 0x778   : > { %12856 = vmatmul.mubr.bf16.vlgmr.msra.gmra.mrb[176].mxu0 %v29640_v2  ;;  %15048 = vmatprep.subr.bf16.mxu1 %v26538_v39  ;;  %v29643_v39 = vld [vmem:[#allocation76_spill] sm:$0xff]  ;;  %v29646_v2 = vld [vmem:[#allocation77_spill] sm:$0xff] }
 0x779   : > { %12865 = vmatprep.mubr.bf16.mxu0 %v29641_v55  ;;  %12937 = vmatpush1.bf16.msra.mxu0 %v26803_v5  ;;  %v26835_v55 = vld [vmem:[%s28857_s7 + $0xe20] ss:$8 sps:$4 sm:$0xff]  }
 0x77a   : > { %14968 = vmatmul.mubr.bf16.vlgmr.msra.gmra.mrb[176].mxu1 %v29642_v44  ;;  %12938 = vmatprep.subr.bf16.mxu0 %v26809_v61  ;;  %v26841_v44 = vld [vmem:[%s28857_s7 + $0xe34] ss:$8 sps:$4 sm:$0xff]  }
 0x77b   : > { %15049 = vmatpush1.bf16.msra.mxu1 %v26547_v20  ;;  %14977 = vmatprep.mubr.bf16.mxu1 %v29643_v39  ;;  %v29644_v20 = vld [vmem:[#allocation22_spill] sm:$0xff]  ;;  %v26851_v39 = vld [vmem:[%s28857_s7 + $0xe30] ss:$8 sps:$4 sm:$0xff]  }
 0x77c   : > { %15050 = vmatprep.subr.bf16.mxu1 %v26553_v56  ;;  %v29645_v56 = vld [vmem:[#allocation23_spill] sm:$0xff] }
 0x77d   : > { %12939 = vmatpush1.bf16.msra.mxu0 %v26819_v9 }
 0x77e   : > { %12940 = vmatprep.subr.bf16.mxu0 %v26826_v31 }
 0x77f   : > { %15051 = vmatpush1.bf16.msra.mxu1 %v26563_v16  ;;  %v26858_v16 = vld [vmem:[%s28857_s7 + $0xe44] ss:$8 sps:$4 sm:$0xff]  }
 0x780   : > { %12866 = vmatmul.mubr.bf16.gmra.mrb[180].mxu0 %v29644_v20  ;;  %15052 = vmatprep.subr.bf16.mxu1 %v26570_v22  ;;  %v29647_v22 = vld [vmem:[#allocation82_spill] sm:$0xff]  ;;  %v29650_v20 = vld [vmem:[#allocation83_spill] sm:$0xff] }
 0x781   : > { %12875 = vmatprep.mubr.bf16.mxu0 %v29645_v56  ;;  %12941 = vmatpush1.bf16.msra.mxu0 %v26835_v55  ;;  %v26867_v56 = vld [vmem:[%s28857_s7 + $0xe40] ss:$8 sps:$4 sm:$0xff]  }
 0x782   : > { %14978 = vmatmul.mubr.bf16.gmra.mrb[180].mxu1 %v29646_v2  ;;  %12942 = vmatprep.subr.bf16.mxu0 %v26841_v44  ;;  %v26873_v2 = vld [vmem:[%s28857_s7 + $0xe54] ss:$8 sps:$4 sm:$0xff]  }
 0x783   : > { %15053 = vmatpush1.bf16.msra.mxu1 %v26579_v51  ;;  %14987 = vmatprep.mubr.bf16.mxu1 %v29647_v22  ;;  %v29648_v51 = vld [vmem:[#allocation21_spill] sm:$0xff]  ;;  %v26883_v22 = vld [vmem:[%s28857_s7 + $0xe50] ss:$8 sps:$4 sm:$0xff]  }
 0x784   : > { %15054 = vmatprep.subr.bf16.mxu1 %v26585_v63  ;;  %v29649_v63 = vld [vmem:[#allocation29_spill] sm:$0xff] }
 0x785   : > { %12943 = vmatpush1.bf16.msra.mxu0 %v26851_v39 }
 0x786   : > { %12944 = vmatprep.subr.bf16.mxu0 %v26858_v16 }
 0x787   : > { %15055 = vmatpush1.bf16.msra.mxu1 %v26595_v48  ;;  %v26890_v48 = vld [vmem:[%s28857_s7 + $0xe64] ss:$8 sps:$4 sm:$0xff]  }
 0x788   : > { %12876 = vmatmul.mubr.bf16.gmra.mrb[184].mxu0 %v29648_v51  ;;  %15056 = vmatprep.subr.bf16.mxu1 %v26602_v4  ;;  %v29651_v4 = vld [vmem:[#allocation88_spill] sm:$0xff]  ;;  %v29654_v51 = vld [vmem:[#allocation89_spill] sm:$0xff] }
 0x789   : > { %12885 = vmatprep.mubr.bf16.mxu0 %v29649_v63  ;;  %12945 = vmatpush1.bf16.msra.mxu0 %v26867_v56  ;;  %v26899_v63 = vld [vmem:[%s28857_s7 + $0xe60] ss:$8 sps:$4 sm:$0xff]  }
 0x78a   : > { %14988 = vmatmul.mubr.bf16.gmra.mrb[184].mxu1 %v29650_v20  ;;  %12946 = vmatprep.subr.bf16.mxu0 %v26873_v2  ;;  %v26905_v20 = vld [vmem:[%s28857_s7 + $0xe74] ss:$8 sps:$4 sm:$0xff]  }
 0x78b   : > { %15057 = vmatpush1.bf16.msra.mxu1 %v26611_v18  ;;  %14997 = vmatprep.mubr.bf16.mxu1 %v29651_v4  ;;  %v29652_v18 = vld [vmem:[#allocation27_spill] sm:$0xff] }
 0x78c   : > { %15058 = vmatprep.subr.bf16.mxu1 %v26617_v35  ;;  %v29653_v35 = vld [vmem:[#allocation6_spill] sm:$0xff]  ;;  %v26915_v4 = vld [vmem:[%s28857_s7 + $0xe70] ss:$8 sps:$4 sm:$0xff]  }
 0x78d   : > { %12947 = vmatpush1.bf16.msra.mxu0 %v26883_v22 }
 0x78e   : > { %12948 = vmatprep.subr.bf16.mxu0 %v26890_v48 }
 0x78f   : > { %15059 = vmatpush1.bf16.msra.mxu1 %v26627_v13  ;;  %v26922_v13 = vld [vmem:[%s28857_s7 + $0xe84] ss:$8 sps:$4 sm:$0xff]  }
 0x790   : > { %12886 = vmatmul.mubr.bf16.gmra.mrb[188].mxu0 %v29652_v18  ;;  %15060 = vmatprep.subr.bf16.mxu1 %v26634_v11  ;;  %v29655_v11 = vld [vmem:[#allocation94_spill] sm:$0xff]  ;;  %v29658_v18 = vld [vmem:[#allocation95_spill] sm:$0xff] }
 0x791   : > { %12895 = vmatprep.mubr.bf16.mxu0 %v29653_v35  ;;  %12949 = vmatpush1.bf16.msra.mxu0 %v26899_v63  ;;  %v26931_v35 = vld [vmem:[%s28857_s7 + $0xe80] ss:$8 sps:$4 sm:$0xff]  }
 0x792   : > { %14998 = vmatmul.mubr.bf16.gmra.mrb[188].mxu1 %v29654_v51  ;;  %12950 = vmatprep.subr.bf16.mxu0 %v26905_v20  ;;  %v26937_v51 = vld [vmem:[%s28857_s7 + $0xe94] ss:$8 sps:$4 sm:$0xff]  }
 0x793   : > { %15061 = vmatpush1.bf16.msra.mxu1 %v26643_v25  ;;  %15007 = vmatprep.mubr.bf16.mxu1 %v29655_v11  ;;  %v29656_v25 = vld [vmem:[#allocation12_spill] sm:$0xff] }
 0x794   : > { %15062 = vmatprep.subr.bf16.mxu1 %v26649_v17  ;;  %v29657_v17 = vld [vmem:[#allocation38_spill] sm:$0xff]  ;;  %v26947_v11 = vld [vmem:[%s28857_s7 + $0xe90] ss:$8 sps:$4 sm:$0xff]  }
 0x795   : > { %12951 = vmatpush1.bf16.msra.mxu0 %v26915_v4 }
 0x796   : > { %12952 = vmatprep.subr.bf16.mxu0 %v26922_v13 }
 0x797   : > { %15063 = vmatpush1.bf16.msra.mxu1 %v26659_v30  ;;  %v26954_v30 = vld [vmem:[%s28857_s7 + $0xea4] ss:$8 sps:$4 sm:$0xff]  }
 0x798   : > { %12896 = vmatmul.mubr.bf16.gmra.mrb[192].mxu0 %v29656_v25  ;;  %15064 = vmatprep.subr.bf16.mxu1 %v26666_v59  ;;  %v29659_v59 = vld [vmem:[#allocation98_spill] sm:$0xff] }
 0x799   : > { %12905 = vmatprep.mubr.bf16.mxu0 %v29657_v17  ;;  %12953 = vmatpush1.bf16.msra.mxu0 %v26931_v35  ;;  %v26963_v17 = vld [vmem:[%s28857_s7 + $0xea0] ss:$8 sps:$4 sm:$0xff]  }
 0x79a   : > { %15008 = vmatmul.mubr.bf16.gmra.mrb[192].mxu1 %v29658_v18  ;;  %12954 = vmatprep.subr.bf16.mxu0 %v26937_v51  ;;  %v26969_v18 = vld [vmem:[%s28857_s7 + $0xeb4] ss:$8 sps:$4 sm:$0xff]  }
 0x79b   : > { %15065 = vmatpush1.bf16.msra.mxu1 %v26675_v45  ;;  %15017 = vmatprep.mubr.bf16.mxu1 %v29659_v59  ;;  %v29660_v45 = vld [vmem:[#allocation37_spill] sm:$0xff]  ;;  %v26979_v59 = vld [vmem:[%s28857_s7 + $0xeb0] ss:$8 sps:$4 sm:$0xff]  }
 0x79c   : > { %15066 = vmatprep.subr.bf16.mxu1 %v26681_v32  ;;  %v29661_v32 = vld [vmem:[#allocation44_spill] sm:$0xff] }
 0x79d   : > { %12955 = vmatpush1.bf16.msra.mxu0 %v26947_v11 }
 0x79e   : > { %12956 = vmatprep.subr.bf16.mxu0 %v26954_v30 }
 0x79f   : > { %15067 = vmatpush1.bf16.msra.mxu1 %v26691_v7  ;;  %v26986_v7 = vld [vmem:[%s28857_s7 + $0xec4] ss:$8 sps:$4 sm:$0xff]  }
 0x7a0   : > { %12906 = vmatmul.mubr.bf16.gmra.mrb[196].mxu0 %v29660_v45  ;;  %15068 = vmatprep.subr.bf16.mxu1 %v26698_v52  ;;  %v29662_v52 = vld [vmem:[#allocation103_spill] sm:$0xff] }
 0x7a1   : > { %12915 = vmatprep.mubr.bf16.mxu0 %v29661_v32  ;;  %12957 = vmatpush1.bf16.msra.mxu0 %v26963_v17  ;;  %v26995_v32 = vld [vmem:[%s28857_s7 + $0xec0] ss:$8 sps:$4 sm:$0xff]  }
 0x7a2   : > { %15018 = vmatmul.mubr.bf16.gmra.mrb[196].mxu1 %v29592_v28  ;;  %12958 = vmatprep.subr.bf16.mxu0 %v26969_v18  ;;  %v27001_v28 = vld [vmem:[%s28857_s7 + $0xed4] ss:$8 sps:$4 sm:$0xff]  }
 0x7a3   : > { %15069 = vmatpush1.bf16.msra.mxu1 %v26707_v23  ;;  %15027 = vmatprep.mubr.bf16.mxu1 %v29662_v52  ;;  %v27011_v23 = vld [vmem:[%s28857_s7 + $0xed0] ss:$8 sps:$4 sm:$0xff]  }
 0x7a4   : > { %15070 = vmatprep.subr.bf16.mxu1 %v26713_v37  ;;  %v29663_v37 = vld [vmem:[#allocation52_spill] sm:$0xff] }
 0x7a5   : > { %12959 = vmatpush1.bf16.msra.mxu0 %v26979_v59 }
 0x7a6   : > { %12960 = vmatprep.subr.bf16.mxu0 %v26986_v7 }
 0x7a7   : > { %15071 = vmatpush1.bf16.msra.mxu1 %v26723_v58  ;;  %v27018_v58 = vld [vmem:[%s28857_s7 + $0xee4] ss:$8 sps:$4 sm:$0xff]  }
 0x7a8   : > { %12916 = vmatmul.mubr.bf16.gmra.mrb[200].mxu0 %v29594_v41  ;;  %15072 = vmatprep.subr.bf16.mxu1 %v26730_v1  ;;  %v27027_v1 = vld [vmem:[%s28857_s7 + $0xee0] ss:$8 sps:$4 sm:$0xff]  }
 0x7a9   : > { %12925 = vmatprep.mubr.bf16.mxu0 %v29663_v37  ;;  %12961 = vmatpush1.bf16.msra.mxu0 %v26995_v32  ;;  %v27033_v37 = vld [vmem:[%s28857_s7 + $0xef4] ss:$8 sps:$4 sm:$0xff]  }
 0x7aa   : > { %15028 = vmatmul.mubr.bf16.gmra.mrb[200].mxu1 %v29532_v34  ;;  %12962 = vmatprep.subr.bf16.mxu0 %v27001_v28  ;;  %v27167_v34 = vld [vmem:[%s28857_s7 + $0x960] ss:$8 sps:$4 sm:$0xff]  }
 0x7ab   : > { %15073 = vmatpush1.bf16.msra.mxu1 %v26739_v43  ;;  %15037 = vmatprep.mubr.bf16.mxu1 %v29595_v15  ;;  %v27043_v43 = vld [vmem:[%s28857_s7 + $0xef0] ss:$8 sps:$4 sm:$0xff]  }
 0x7ac   : > { %15074 = vmatprep.subr.bf16.mxu1 %v26745_v19  ;;  %v29664_v19 = vld [vmem:[#allocation51_spill] sm:$0xff]  ;;  %v29665_v15 = vld [vmem:[#allocation20_spill] sm:$0xff] }
 0x7ad   : > { %12963 = vmatpush1.bf16.msra.mxu0 %v27011_v23 }
 0x7ae   : > { %12964 = vmatprep.subr.bf16.mxu0 %v27018_v58 }
 0x7af   : > { %15075 = vmatpush1.bf16.msra.mxu1 %v26755_v27  ;;  %v27050_v27 = vld [vmem:[%s28857_s7 + $0x904] ss:$8 sps:$4 sm:$0xff]  }
 0x7b0   : > { %12926 = vmatmul.mubr.bf16.gmra.mrb[204].mxu0 %v29419_v21  ;;  %15076 = vmatprep.subr.bf16.mxu1 %v26762_v29  ;;  %v29666_v29 = vld [vmem:[#allocation63_spill] sm:$0xff]  ;;  %v27059_v21 = vld [vmem:[%s28857_s7 + $0x900] ss:$8 sps:$4 sm:$0xff]  }
 0x7b1   : > { %12965 = vmatpush1.bf16.msra.mxu0 %v27027_v1  ;;  %12968 = vmatprep.mubr.bf16.mxu0 %v29664_v19 }
 0x7b2   : > { %15038 = vmatmul.mubr.bf16.gmra.mrb[204].mxu1 %v29665_v15  ;;  %12966 = vmatprep.subr.bf16.mxu0 %v27033_v37  ;;  %v27065_v15 = vld [vmem:[%s28857_s7 + $0x914] ss:$8 sps:$4 sm:$0xff]  }
 0x7b3   : > { %15077 = vmatpush1.bf16.msra.mxu1 %v26771_v3  ;;  %15080 = vmatprep.mubr.bf16.mxu1 %v29666_v29  ;;  %v29667_v3 = vld [vmem:[#allocation5_spill] sm:$0xff] }
 0x7b4   : > { %15078 = vmatprep.subr.bf16.mxu1 %v26777_v33  ;;  %v27075_v33 = vld [vmem:[%s28857_s7 + $0x910] ss:$8 sps:$4 sm:$0xff]  }
 0x7b5   : > { %12967 = vmatpush1.bf16.msra.mxu0 %v27043_v43 }
 0x7b6   : > { %13529 = vmatprep.subr.bf16.mxu0 %v27050_v27 }
 0x7b7   : > { %15079 = vmatpush1.bf16.msra.mxu1 %v26787_v26  ;;  %v27082_v26 = vld [vmem:[%s28857_s7 + $0x924] ss:$8 sps:$4 sm:$0xff]  }
 0x7b8   : > { %12969 = vmatmul.mubr.bf16.vlgmr.msra.gmra.mrb[176].mxu0 %v29667_v3  ;;  %15161 = vmatprep.subr.bf16.mxu1 %v26794_v12  ;;  %v29668_v12 = vld [vmem:[#allocation69_spill] sm:$0xff]  ;;  %v27148_v3 = vld [vmem:[%s28857_s7 + $0x950] ss:$8 sps:$4 sm:$0xff]  }
 0x7b9   : > { %12978 = vmatprep.mubr.bf16.mxu0 %v24614_v8  ;;  %13530 = vmatpush1.bf16.msra.mxu0 %v27059_v21  ;;  %v27091_v8 = vld [vmem:[%s28857_s7 + $0x920] ss:$8 sps:$4 sm:$0xff]  }
 0x7ba   : > { %15081 = vmatmul.mubr.bf16.vlgmr.msra.gmra.mrb[176].mxu1 %v29534_v14  ;;  %13531 = vmatprep.subr.bf16.mxu0 %v27065_v15  ;;  %v27097_v14 = vld [vmem:[%s28857_s7 + $0x934] ss:$8 sps:$4 sm:$0xff]  }
 0x7bb   : > { %15162 = vmatpush1.bf16.msra.mxu1 %v26803_v5  ;;  %15090 = vmatprep.mubr.bf16.mxu1 %v29668_v12  ;;  %v27107_v5 = vld [vmem:[%s28857_s7 + $0x930] ss:$8 sps:$4 sm:$0xff]  }
 0x7bc   : > { %15163 = vmatprep.subr.bf16.mxu1 %v26809_v61  ;;  %v29669_v61 = vld [vmem:[#allocation68_spill] sm:$0xff] }
 0x7bd   : > { %13532 = vmatpush1.bf16.msra.mxu0 %v27075_v33 }
 0x7be   : > { %13533 = vmatprep.subr.bf16.mxu0 %v27082_v26 }
 0x7bf   : > { %15164 = vmatpush1.bf16.msra.mxu1 %v26819_v9  ;;  %v27114_v9 = vld [vmem:[%s28857_s7 + $0x944] ss:$8 sps:$4 sm:$0xff]  }
 0x7c0   : > { %12979 = vmatmul.mubr.bf16.gmra.mrb[180].mxu0 %v29597_v57  ;;  %15165 = vmatprep.subr.bf16.mxu1 %v26826_v31  ;;  %v29670_v31 = vld [vmem:[#allocation75_spill] sm:$0xff]  ;;  %v29672_v57 = vld [vmem:[#allocation16_spill] sm:$0xff] }
 0x7c1   : > { %12988 = vmatprep.mubr.bf16.mxu0 %v29598_v6  ;;  %13534 = vmatpush1.bf16.msra.mxu0 %v27091_v8  ;;  %v7687_v6 = vld [vmem:[%s28858_s8] sm:$0x3] }
 0x7c2   : > { %15091 = vmatmul.mubr.bf16.gmra.mrb[180].mxu1 %v29669_v61  ;;  %13535 = vmatprep.subr.bf16.mxu0 %v27097_v14  ;;  %v27126_v61 = vld [vmem:[%s28857_s7 + $0x940] ss:$8 sps:$4 sm:$0xff]   ;;  %v27141_v12 = vrot.slane %v7687_v6, %v29672_v57 }
 0x7c3   : > { %15166 = vmatpush1.bf16.msra.mxu1 %v26835_v55  ;;  %15100 = vmatprep.mubr.bf16.mxu1 %v29670_v31  ;;  %v27132_v55 = vld [vmem:[%s28857_s7 + $0x954] ss:$8 sps:$4 sm:$0xff]   ;;  %v29674_v57 = vld [vmem:[#allocation81_spill] sm:$0xff] }
 0x7c4   : > { %15167 = vmatprep.subr.bf16.mxu1 %v26841_v44  ;;  %v29671_v44 = vld [vmem:[#allocation14_spill] sm:$0xff] }
 0x7c5   : > { %13536 = vmatpush1.bf16.msra.mxu0 %v27107_v5  ;;  %v27136_v31 = vrot.slane %v7687_v6, %v29671_v44 }
 0x7c6   : > { %13537 = vmatprep.subr.bf16.mxu0 %v27114_v9 }
 0x7c7   : > { %15168 = vmatpush1.bf16.msra.mxu1 %v26851_v39  ;;  %v29673_v39 = vld [vmem:[#allocation74_spill] sm:$0xff] }
 0x7c8   : > { %12989 = vmatmul.mubr.bf16.gmra.mrb[184].mxu0 %v29599_v62  ;;  %15169 = vmatprep.subr.bf16.mxu1 %v26858_v16  ;;  %v27155_v16 = vld [vmem:[%s28857_s7 + $0x964] ss:$8 sps:$4 sm:$0xff]  }
 0x7c9   : > { %12998 = vmatprep.mubr.bf16.mxu0 %v29600_v50  ;;  %13538 = vmatpush1.bf16.msra.mxu0 %v27126_v61 }
 0x7ca   : > { %15101 = vmatmul.mubr.bf16.gmra.mrb[184].mxu1 %v29673_v39  ;;  %v10501_v44 = vpop.f32.mrb[144].mxu0  ;;  %13539 = vmatprep.subr.bf16.mxu0 %v27132_v55 }
 0x7cb   : > { %15170 = vmatpush1.bf16.msra.mxu1 %v26867_v56  ;;  %v10623_v6 = vadd.f32 %v27136_v31, %v10501_v44  ;;  %15110 = vmatprep.mubr.bf16.mxu1 %v29674_v57  ;;  %v10503_v50 = vpop.f32.mrb[145].mxu0 }
 0x7cc   : > { %v10624_v62 = vadd.f32 %v27141_v12, %v10503_v50  ;;  %v10505_v29 = vpop.f32.mrb[146].mxu0  ;;  %15171 = vmatprep.subr.bf16.mxu1 %v26873_v2  ;;  %v27174_v50 = vld [vmem:[%s28857_s7 + $0x974] ss:$8 sps:$4 sm:$0xff]  }
 0x7cd   : > { %v10625_v39 = vadd.f32 %v27136_v31, %v10505_v29  ;;  %13540 = vmatpush1.bf16.msra.mxu0 %v27148_v3  ;;  %v10507_v19 = vpop.f32.mrb[147].mxu0  ;;  %v10655_v2 = vmax.f32 %v10623_v6, 0.0 }
 0x7ce   : > { %v10626_v56 = vadd.f32 %v27141_v12, %v10507_v19  ;;  %13541 = vmatprep.subr.bf16.mxu0 %v27155_v16  ;;  %v10656_v29 = vmax.f32 %v10624_v62, 0.0  ;;  %v27184_v19 = vld [vmem:[%s28857_s7 + $0x970] ss:$8 sps:$4 sm:$0xff]   ;;  %v27191_v62 = vld [vmem:[%s28857_s7 + $0x984] ss:$8 sps:$4 sm:$0xff]  }
 0x7cf   : > { %v10657_v44 = vmax.f32 %v10625_v39, 0.0  ;;  %15172 = vmatpush1.bf16.msra.mxu1 %v26883_v22  ;;  %v29675_v39 = vld [vmem:[#allocation80_spill] sm:$0xff] }
 0x7d0   : > { %v10658_v57 = vmax.f32 %v10626_v56, 0.0  ;;  %12999 = vmatmul.mubr.bf16.gmra.mrb[188].mxu0 %v29601_v0  ;;  %15173 = vmatprep.subr.bf16.mxu1 %v26890_v48  ;;  %v29676_v56 = vld [vmem:[#allocation87_spill] sm:$0xff] }
 0x7d1   : > { %v10687_v41 = vadd.f32 %v10657_v44, %v10655_v2  ;;  %13008 = vmatprep.mubr.bf16.mxu0 %v29602_v24  ;;  %13542 = vmatpush1.bf16.msra.mxu0 %v27167_v34 }
 0x7d2   : > { %v10708_v6 = vadd.f32 %v10658_v57, %v10656_v29  ;;  %15111 = vmatmul.mubr.bf16.gmra.mrb[188].mxu1 %v29675_v39  ;;  %v10511_v22 = vpop.f32.mrb[148].mxu0  ;;  %13543 = vmatprep.subr.bf16.mxu0 %v27174_v50 }
 0x7d3   : > { %15174 = vmatpush1.bf16.msra.mxu1 %v26899_v63  ;;  %v10627_v48 = vadd.f32 %v27136_v31, %v10511_v22  ;;  %15120 = vmatprep.mubr.bf16.mxu1 %v29676_v56  ;;  %v10513_v2 = vpop.f32.mrb[149].mxu0  ;;  %v27203_v63 = vld [vmem:[%s28857_s7 + $0x980] ss:$8 sps:$4 sm:$0xff]  }
 0x7d4   : > { %v10628_v44 = vadd.f32 %v27141_v12, %v10513_v2  ;;  %v10515_v57 = vpop.f32.mrb[150].mxu0  ;;  %15175 = vmatprep.subr.bf16.mxu1 %v26905_v20  ;;  %v27210_v20 = vld [vmem:[%s28857_s7 + $0x994] ss:$8 sps:$4 sm:$0xff]  }
 0x7d5   : > { %v10659_v29 = vmax.f32 %v10627_v48, 0.0  ;;  %v10629_v39 = vadd.f32 %v27136_v31, %v10515_v57  ;;  %13544 = vmatpush1.bf16.msra.mxu0 %v27184_v19  ;;  %v10517_v24 = vpop.f32.mrb[151].mxu0 }
 0x7d6   : > { %v10660_v22 = vmax.f32 %v10628_v44, 0.0  ;;  %v10630_v56 = vadd.f32 %v27141_v12, %v10517_v24  ;;  %13545 = vmatprep.subr.bf16.mxu0 %v27191_v62  ;;  %v27220_v24 = vld [vmem:[%s28857_s7 + $0x990] ss:$8 sps:$4 sm:$0xff]  }
 0x7d7   : > { %v10688_v48 = vadd.f32 %v10687_v41, %v10659_v29  ;;  %v10661_v2 = vmax.f32 %v10629_v39, 0.0  ;;  %15176 = vmatpush1.bf16.msra.mxu1 %v26915_v4  ;;  %v29677_v39 = vld [vmem:[#allocation86_spill] sm:$0xff] }
 0x7d8   : > { %v10709_v57 = vadd.f32 %v10708_v6, %v10660_v22  ;;  %v10662_v0 = vmax.f32 %v10630_v56, 0.0  ;;  %13009 = vmatmul.mubr.bf16.gmra.mrb[192].mxu0 %v29603_v53  ;;  %15177 = vmatprep.subr.bf16.mxu1 %v26922_v13  ;;  %v27227_v13 = vld [vmem:[%s28857_s7 + $0x9a4] ss:$8 sps:$4 sm:$0xff]  }
 0x7d9   : > { %v10689_v44 = vadd.f32 %v10688_v48, %v10661_v2  ;;  %13018 = vmatprep.mubr.bf16.mxu0 %v29604_v40  ;;  %13546 = vmatpush1.bf16.msra.mxu0 %v27203_v63  ;;  %v29678_v56 = vld [vmem:[#allocation93_spill] sm:$0xff]  ;;  %v29679_v40 = vld [vmem:[#allocation31_spill] sm:$0xff] }
 0x7da   : > { %v10710_v41 = vadd.f32 %v10709_v57, %v10662_v0  ;;  %15121 = vmatmul.mubr.bf16.gmra.mrb[192].mxu1 %v29677_v39  ;;  %v10521_v4 = vpop.f32.mrb[152].mxu0  ;;  %13547 = vmatprep.subr.bf16.mxu0 %v27210_v20 }
 0x7db   : > { %15178 = vmatpush1.bf16.msra.mxu1 %v26931_v35  ;;  %v10631_v6 = vadd.f32 %v27136_v31, %v10521_v4  ;;  %15130 = vmatprep.mubr.bf16.mxu1 %v29678_v56  ;;  %v10523_v29 = vpop.f32.mrb[153].mxu0  ;;  %v27239_v35 = vld [vmem:[%s28857_s7 + $0x9a0] ss:$8 sps:$4 sm:$0xff]  }
 0x7dc   : > { %v10632_v22 = vadd.f32 %v27141_v12, %v10523_v29  ;;  %v10525_v0 = vpop.f32.mrb[154].mxu0  ;;  %15179 = vmatprep.subr.bf16.mxu1 %v26937_v51  ;;  %v27246_v51 = vld [vmem:[%s28857_s7 + $0x9b4] ss:$8 sps:$4 sm:$0xff]  }
 0x7dd   : > { %v10663_v48 = vmax.f32 %v10631_v6, 0.0  ;;  %v10633_v2 = vadd.f32 %v27136_v31, %v10525_v0  ;;  %13548 = vmatpush1.bf16.msra.mxu0 %v27220_v24  ;;  %v10527_v57 = vpop.f32.mrb[155].mxu0 }
 0x7de   : > { %v10664_v4 = vmax.f32 %v10632_v22, 0.0  ;;  %v10634_v56 = vadd.f32 %v27141_v12, %v10527_v57  ;;  %13549 = vmatprep.subr.bf16.mxu0 %v27227_v13  ;;  %v27256_v57 = vld [vmem:[%s28857_s7 + $0x9b0] ss:$8 sps:$4 sm:$0xff]  }
 0x7df   : > { %v10690_v6 = vadd.f32 %v10689_v44, %v10663_v48  ;;  %v10665_v29 = vmax.f32 %v10633_v2, 0.0  ;;  %15180 = vmatpush1.bf16.msra.mxu1 %v26947_v11  ;;  %v29680_v48 = vld [vmem:[#allocation92_spill] sm:$0xff] }
 0x7e0   : > { %v10711_v0 = vadd.f32 %v10710_v41, %v10664_v4  ;;  %v10666_v39 = vmax.f32 %v10634_v56, 0.0  ;;  %13019 = vmatmul.mubr.bf16.gmra.mrb[196].mxu0 %v29605_v46  ;;  %15181 = vmatprep.subr.bf16.mxu1 %v26954_v30  ;;  %v27263_v30 = vld [vmem:[%s28857_s7 + $0x9c4] ss:$8 sps:$4 sm:$0xff]   ;;  %v29683_v46 = vld [vmem:[#allocation35_spill] sm:$0xff] }
 0x7e1   : > { %v10691_v22 = vadd.f32 %v10690_v6, %v10665_v29  ;;  %13028 = vmatprep.mubr.bf16.mxu0 %v29679_v40  ;;  %13550 = vmatpush1.bf16.msra.mxu0 %v27239_v35  ;;  %v29681_v56 = vld [vmem:[#allocation97_spill] sm:$0xff]  ;;  %v29682_v40 = vld [vmem:[#allocation36_spill] sm:$0xff] }
 0x7e2   : > { %v10712_v44 = vadd.f32 %v10711_v0, %v10666_v39  ;;  %15131 = vmatmul.mubr.bf16.gmra.mrb[196].mxu1 %v29680_v48  ;;  %v10531_v11 = vpop.f32.mrb[156].mxu0  ;;  %13551 = vmatprep.subr.bf16.mxu0 %v27246_v51 }
 0x7e3   : > { %15182 = vmatpush1.bf16.msra.mxu1 %v26963_v17  ;;  %v10635_v41 = vadd.f32 %v27136_v31, %v10531_v11  ;;  %15140 = vmatprep.mubr.bf16.mxu1 %v29681_v56  ;;  %v10533_v2 = vpop.f32.mrb[157].mxu0  ;;  %v27275_v17 = vld [vmem:[%s28857_s7 + $0x9c0] ss:$8 sps:$4 sm:$0xff]  }
 0x7e4   : > { %v10636_v4 = vadd.f32 %v27141_v12, %v10533_v2  ;;  %v10535_v39 = vpop.f32.mrb[158].mxu0  ;;  %15183 = vmatprep.subr.bf16.mxu1 %v26969_v18  ;;  %v27282_v18 = vld [vmem:[%s28857_s7 + $0x9d4] ss:$8 sps:$4 sm:$0xff]  }
 0x7e5   : > { %v10667_v6 = vmax.f32 %v10635_v41, 0.0  ;;  %v10637_v29 = vadd.f32 %v27136_v31, %v10535_v39  ;;  %13552 = vmatpush1.bf16.msra.mxu0 %v27256_v57  ;;  %v10537_v0 = vpop.f32.mrb[159].mxu0 }
 0x7e6   : > { %v10668_v11 = vmax.f32 %v10636_v4, 0.0  ;;  %v10638_v56 = vadd.f32 %v27141_v12, %v10537_v0  ;;  %13553 = vmatprep.subr.bf16.mxu0 %v27263_v30  ;;  %v27292_v0 = vld [vmem:[%s28857_s7 + $0x9d0] ss:$8 sps:$4 sm:$0xff]  }
 0x7e7   : > { %v10692_v41 = vadd.f32 %v10691_v22, %v10667_v6  ;;  %v10669_v2 = vmax.f32 %v10637_v29, 0.0  ;;  %15184 = vmatpush1.bf16.msra.mxu1 %v26979_v59  ;;  %v29684_v6 = vld [vmem:[#allocation96_spill] sm:$0xff] }
 0x7e8   : > { %v10713_v39 = vadd.f32 %v10712_v44, %v10668_v11  ;;  %v10670_v48 = vmax.f32 %v10638_v56, 0.0  ;;  %13029 = vmatmul.mubr.bf16.gmra.mrb[200].mxu0 %v29682_v40  ;;  %15185 = vmatprep.subr.bf16.mxu1 %v26986_v7  ;;  %v27299_v7 = vld [vmem:[%s28857_s7 + $0x9e4] ss:$8 sps:$4 sm:$0xff]  }
 0x7e9   : > { %v10693_v4 = vadd.f32 %v10692_v41, %v10669_v2  ;;  %13038 = vmatprep.mubr.bf16.mxu0 %v29683_v46  ;;  %13554 = vmatpush1.bf16.msra.mxu0 %v27275_v17  ;;  %v29685_v56 = vld [vmem:[#allocation102_spill] sm:$0xff] }
 0x7ea   : > { %v10714_v22 = vadd.f32 %v10713_v39, %v10670_v48  ;;  %15141 = vmatmul.mubr.bf16.gmra.mrb[200].mxu1 %v29684_v6  ;;  %v10541_v59 = vpop.f32.mrb[160].mxu0  ;;  %13555 = vmatprep.subr.bf16.mxu0 %v27282_v18  ;;  %v27329_v6 = vld [vmem:[#allocation2] sm:$0xff] }
 0x7eb   : > { %15186 = vmatpush1.bf16.msra.mxu1 %v26995_v32  ;;  %v10639_v44 = vadd.f32 %v27136_v31, %v10541_v59  ;;  %15150 = vmatprep.mubr.bf16.mxu1 %v29685_v56  ;;  %v10543_v29 = vpop.f32.mrb[161].mxu0  ;;  %v27311_v32 = vld [vmem:[%s28857_s7 + $0x9e0] ss:$8 sps:$4 sm:$0xff]  }
 0x7ec   : > { %v10640_v11 = vadd.f32 %v27141_v12, %v10543_v29  ;;  %v10545_v48 = vpop.f32.mrb[162].mxu0  ;;  %15187 = vmatprep.subr.bf16.mxu1 %v27001_v28  ;;  %v27318_v28 = vld [vmem:[%s28857_s7 + $0x9f4] ss:$8 sps:$4 sm:$0xff]  }
 0x7ed   : > { %v10671_v41 = vmax.f32 %v10639_v44, 0.0  ;;  %v10641_v2 = vadd.f32 %v27136_v31, %v10545_v48  ;;  %13556 = vmatpush1.bf16.msra.mxu0 %v27292_v0  ;;  %v10547_v39 = vpop.f32.mrb[163].mxu0 }
 0x7ee   : > { %v10672_v59 = vmax.f32 %v10640_v11, 0.0  ;;  %v10642_v56 = vadd.f32 %v27141_v12, %v10547_v39  ;;  %13557 = vmatprep.subr.bf16.mxu0 %v27299_v7  ;;  %v27327_v39 = vld [vmem:[%s28857_s7 + $0x9f0] ss:$8 sps:$4 sm:$0xff]  }
 0x7ef   : > { %v10694_v44 = vadd.f32 %v10693_v4, %v10671_v41  ;;  %v10673_v29 = vmax.f32 %v10641_v2, 0.0  ;;  %15188 = vmatpush1.bf16.msra.mxu1 %v27011_v23 }
 0x7f0   : > { %v10715_v48 = vadd.f32 %v10714_v22, %v10672_v59  ;;  %v10674_v46 = vmax.f32 %v10642_v56, 0.0  ;;  %13039 = vmatmul.mubr.bf16.gmra.mrb[204].mxu0 %v29611_v38  ;;  %15189 = vmatprep.subr.bf16.mxu1 %v27018_v58  ;;  %v27337_v58 = vld [vmem:[%s28857_s7 + $0xa04] ss:$8 sps:$4 sm:$0xff]  }
 0x7f1   : > { %v10695_v11 = vadd.f32 %v10694_v44, %v10673_v29  ;;  %13558 = vmatpush1.bf16.msra.mxu0 %v27311_v32  ;;  %13561 = vmatprep.mubr.bf16.mxu0 %v27329_v6  ;;  %v29686_v56 = vld [vmem:[#allocation41_spill] sm:$0xff] }
 0x7f2   : > { %v10716_v4 = vadd.f32 %v10715_v48, %v10674_v46  ;;  %15151 = vmatmul.mubr.bf16.gmra.mrb[204].mxu1 %v29613_v10  ;;  %v10551_v23 = vpop.f32.mrb[164].mxu0  ;;  %13559 = vmatprep.subr.bf16.mxu0 %v27318_v28 }
 0x7f3   : > { %15190 = vmatpush1.bf16.msra.mxu1 %v27027_v1  ;;  %v10643_v22 = vadd.f32 %v27136_v31, %v10551_v23  ;;  %15193 = vmatprep.mubr.bf16.mxu1 %v29686_v56  ;;  %v10553_v41 = vpop.f32.mrb[165].mxu0  ;;  %v27349_v1 = vld [vmem:[%s28857_s7 + $0xa00] ss:$8 sps:$4 sm:$0xff]   ;;  %v29687_v56 = vld [vmem:[#allocation7_spill] sm:$0xff] }
 0x7f4   : > { %v10644_v2 = vadd.f32 %v27141_v12, %v10553_v41  ;;  %v10555_v46 = vpop.f32.mrb[166].mxu0  ;;  %15191 = vmatprep.subr.bf16.mxu1 %v27033_v37  ;;  %v27356_v37 = vld [vmem:[%s28857_s7 + $0xa14] ss:$8 sps:$4 sm:$0xff]  }
 0x7f5   : > { %v10675_v59 = vmax.f32 %v10643_v22, 0.0  ;;  %v10645_v44 = vadd.f32 %v27136_v31, %v10555_v46  ;;  %13560 = vmatpush1.bf16.msra.mxu0 %v27327_v39  ;;  %v10557_v29 = vpop.f32.mrb[167].mxu0 }
 0x7f6   : > { %v10676_v48 = vmax.f32 %v10644_v2, 0.0  ;;  %v10646_v23 = vadd.f32 %v27141_v12, %v10557_v29  ;;  %13642 = vmatprep.subr.bf16.mxu0 %v27337_v58  ;;  %v27366_v29 = vld [vmem:[%s28857_s7 + $0xa10] ss:$8 sps:$4 sm:$0xff]  }
 0x7f7   : > { %v10696_v22 = vadd.f32 %v10695_v11, %v10675_v59  ;;  %v10677_v41 = vmax.f32 %v10645_v44, 0.0  ;;  %15192 = vmatpush1.bf16.msra.mxu1 %v27043_v43  ;;  %v29688_v59 = vld [vmem:[#allocation49_spill] sm:$0xff] }
 0x7f8   : > { %v10717_v46 = vadd.f32 %v10716_v4, %v10676_v48  ;;  %v10678_v10 = vmax.f32 %v10646_v23, 0.0  ;;  %13562 = vmatmul.mubr.bf16.vlgmr.msra.gmra.mrb[176].mxu0 %v27329_v6  ;;  %15274 = vmatprep.subr.bf16.mxu1 %v27050_v27  ;;  %v27373_v27 = vld [vmem:[%s28857_s7 + $0xa24] ss:$8 sps:$4 sm:$0xff]  }
 0x7f9   : > { %v10697_v2 = vadd.f32 %v10696_v22, %v10677_v41  ;;  %13571 = vmatprep.mubr.bf16.mxu0 %v29687_v56  ;;  %13643 = vmatpush1.bf16.msra.mxu0 %v27349_v1  ;;  %v29689_v56 = vld [vmem:[#allocation48_spill] sm:$0xff] }
 0x7fa   : > { %v10718_v11 = vadd.f32 %v10717_v46, %v10678_v10  ;;  %15194 = vmatmul.mubr.bf16.vlgmr.msra.gmra.mrb[176].mxu1 %v29688_v59  ;;  %v10561_v43 = vpop.f32.mrb[168].mxu0  ;;  %13644 = vmatprep.subr.bf16.mxu0 %v27356_v37 }
 0x7fb   : > { %15275 = vmatpush1.bf16.msra.mxu1 %v27059_v21  ;;  %v10647_v4 = vadd.f32 %v27136_v31, %v10561_v43  ;;  %15203 = vmatprep.mubr.bf16.mxu1 %v29689_v56  ;;  %v10563_v44 = vpop.f32.mrb[169].mxu0  ;;  %v27385_v21 = vld [vmem:[%s28857_s7 + $0xa20] ss:$8 sps:$4 sm:$0xff]  }
 0x7fc   : > { %v10648_v48 = vadd.f32 %v27141_v12, %v10563_v44  ;;  %v10565_v10 = vpop.f32.mrb[170].mxu0  ;;  %15276 = vmatprep.subr.bf16.mxu1 %v27065_v15  ;;  %v27392_v15 = vld [vmem:[%s28857_s7 + $0xa34] ss:$8 sps:$4 sm:$0xff]  }
 0x7fd   : > { %v10679_v23 = vmax.f32 %v10647_v4, 0.0  ;;  %v10649_v22 = vadd.f32 %v27136_v31, %v10565_v10  ;;  %13645 = vmatpush1.bf16.msra.mxu0 %v27366_v29  ;;  %v10567_v41 = vpop.f32.mrb[171].mxu0 }
 0x7fe   : > { %v10680_v46 = vmax.f32 %v10648_v48, 0.0  ;;  %v10650_v43 = vadd.f32 %v27141_v12, %v10567_v41  ;;  %13646 = vmatprep.subr.bf16.mxu0 %v27373_v27  ;;  %v27402_v41 = vld [vmem:[%s28857_s7 + $0xa30] ss:$8 sps:$4 sm:$0xff]  }
 0x7ff   : > { %v10698_v4 = vadd.f32 %v10697_v2, %v10679_v23  ;;  %v10681_v44 = vmax.f32 %v10649_v22, 0.0  ;;  %15277 = vmatpush1.bf16.msra.mxu1 %v27075_v33  ;;  %v29690_v23 = vld [vmem:[#allocation57_spill] sm:$0xff] }
 0x800   : > { %v10719_v10 = vadd.f32 %v10718_v11, %v10680_v46  ;;  %v10682_v56 = vmax.f32 %v10650_v43, 0.0  ;;  %13572 = vmatmul.mubr.bf16.gmra.mrb[180].mxu0 %v29616_v42  ;;  %15278 = vmatprep.subr.bf16.mxu1 %v27082_v26  ;;  %v27409_v42 = vld [vmem:[%s28857_s7 + $0xa44] ss:$8 sps:$4 sm:$0xff]   ;;  %v29691_v11 = vld [vmem:[#allocation56_spill] sm:$0xff] }
 0x801   : > { %v10699_v48 = vadd.f32 %v10698_v4, %v10681_v44  ;;  %13581 = vmatprep.mubr.bf16.mxu0 %v29617_v60  ;;  %13647 = vmatpush1.bf16.msra.mxu0 %v27385_v21 }
 0x802   : > { %v10720_v2 = vadd.f32 %v10719_v10, %v10682_v56  ;;  %15204 = vmatmul.mubr.bf16.gmra.mrb[180].mxu1 %v29690_v23  ;;  %v10571_v33 = vpop.f32.mrb[172].mxu0  ;;  %13648 = vmatprep.subr.bf16.mxu0 %v27392_v15  ;;  %v27440_v23 = vld [vmem:[%s28857_s7 + $0xa50] ss:$8 sps:$4 sm:$0xff]  }
 0x803   : > { %15279 = vmatpush1.bf16.msra.mxu1 %v27091_v8  ;;  %v10651_v26 = vadd.f32 %v27136_v31, %v10571_v33  ;;  %15213 = vmatprep.mubr.bf16.mxu1 %v29691_v11  ;;  %v10573_v22 = vpop.f32.mrb[173].mxu0  ;;  %v27421_v8 = vld [vmem:[%s28857_s7 + $0xa40] ss:$8 sps:$4 sm:$0xff]  }
 0x804   : > { %v10652_v46 = vadd.f32 %v27141_v12, %v10573_v22  ;;  %v10575_v56 = vpop.f32.mrb[174].mxu0  ;;  %15280 = vmatprep.subr.bf16.mxu1 %v27097_v14  ;;  %v27428_v14 = vld [vmem:[%s28857_s7 + $0xa54] ss:$8 sps:$4 sm:$0xff]  }
 0x805   : > { %v10683_v43 = vmax.f32 %v10651_v26, 0.0  ;;  %v10653_v4 = vadd.f32 %v27136_v31, %v10575_v56  ;;  %13649 = vmatpush1.bf16.msra.mxu0 %v27402_v41  ;;  %v10577_v44 = vpop.f32.mrb[175].mxu0 }
 0x806   : > { %v10684_v10 = vmax.f32 %v10652_v46, 0.0  ;;  %v10654_v33 = vadd.f32 %v27141_v12, %v10577_v44  ;;  %13650 = vmatprep.subr.bf16.mxu0 %v27409_v42  ;;  %v29692_v44 = vld [vmem:[#allocation30_spill] sm:$0xff] }
 0x807   : > { %v10700_v26 = vadd.f32 %v10699_v48, %v10683_v43  ;;  %v10685_v22 = vmax.f32 %v10653_v4, 0.0  ;;  %15281 = vmatpush1.bf16.msra.mxu1 %v27107_v5  ;;  %v29693_v5 = vld [vmem:[#allocation67_spill] sm:$0xff] }
 0x808   : > { %v10721_v56 = vadd.f32 %v10720_v2, %v10684_v10  ;;  %v10686_v11 = vmax.f32 %v10654_v33, 0.0  ;;  %13582 = vmatmul.mubr.bf16.gmra.mrb[184].mxu0 %v29618_v47  ;;  %15282 = vmatprep.subr.bf16.mxu1 %v27114_v9  ;;  %v27449_v9 = vld [vmem:[%s28857_s7 + $0xa64] ss:$8 sps:$4 sm:$0xff]   ;;  %v29719_v47 = vld [vmem:[#allocation23_spill] sm:$0xff] }
 0x809   : > { %v27433_v46 = vadd.f32 %v10700_v26, %v10685_v22  ;;  %13591 = vmatprep.mubr.bf16.mxu0 %v29692_v44  ;;  %13651 = vmatpush1.bf16.msra.mxu0 %v27421_v8  ;;  %v29694_v2 = vld [vmem:[#allocation65_spill] sm:$0xff] }
 0x80a   : > { %v27442_v48 = vadd.f32 %v10721_v56, %v10686_v11  ;;  %15214 = vmatmul.mubr.bf16.gmra.mrb[184].mxu1 %v29693_v5  ;;  %13652 = vmatprep.subr.bf16.mxu0 %v27428_v14  ;;  %v27458_v11 = vld [vmem:[%s28857_s7 + $0xa60] ss:$8 sps:$4 sm:$0xff]   ;;  %v29696_v5 = vld [vmem:[#allocation72_spill] sm:$0xff] }
 0x80b   : > { %15283 = vmatpush1.bf16.msra.mxu1 %v27126_v61  ;;  %15223 = vmatprep.mubr.bf16.mxu1 %v29694_v2  ;;  %v27465_v61 = vld [vmem:[%s28857_s7 + $0xa74] ss:$8 sps:$4 sm:$0xff]   ;;  %v29695_v2 = vld [vmem:[#allocation73_spill] sm:$0xff] }
 0x80c   : > { %15284 = vmatprep.subr.bf16.mxu1 %v27132_v55 }
 0x80d   : > { %v11815_v43 = vpop.f32.mrb[144].mxu1  ;;  %13653 = vmatpush1.bf16.msra.mxu0 %v27440_v23 }
 0x80e   : > { %v11926_v4 = vadd.f32 %v11815_v43, %v27136_v31  ;;  %v11817_v10 = vpop.f32.mrb[145].mxu1  ;;  %13654 = vmatprep.subr.bf16.mxu0 %v27449_v9  ;;  %v27478_v43 = vld [vmem:[%s28857_s7 + $0xa70] ss:$8 sps:$4 sm:$0xff]  }
 0x80f   : > { %v11927_v55 = vadd.f32 %v11817_v10, %v27141_v12  ;;  %15285 = vmatpush1.bf16.msra.mxu1 %v27148_v3  ;;  %v11819_v33 = vpop.f32.mrb[146].mxu1 }
 0x810   : > { %v11928_v26 = vadd.f32 %v11819_v33, %v27136_v31  ;;  %v11821_v22 = vpop.f32.mrb[147].mxu1  ;;  %13592 = vmatmul.mubr.bf16.gmra.mrb[188].mxu0 %v29621_v54  ;;  %15286 = vmatprep.subr.bf16.mxu1 %v27155_v16  ;;  %v11958_v3 = vmax.f32 %v11926_v4, 0.0  ;;  %v27485_v16 = vld [vmem:[%s28857_s7 + $0xa84] ss:$8 sps:$4 sm:$0xff]   ;;  %v29698_v54 = vld [vmem:[#allocation39_spill] sm:$0xff] }
 0x811   : > { %v11929_v56 = vadd.f32 %v11821_v22, %v27141_v12  ;;  %13601 = vmatprep.mubr.bf16.mxu0 %v29622_v49  ;;  %13655 = vmatpush1.bf16.msra.mxu0 %v27458_v11  ;;  %v11959_v33 = vmax.f32 %v11927_v55, 0.0 }
 0x812   : > { %v11960_v10 = vmax.f32 %v11928_v26, 0.0  ;;  %15224 = vmatmul.mubr.bf16.gmra.mrb[188].mxu1 %v29695_v2  ;;  %13656 = vmatprep.subr.bf16.mxu0 %v27465_v61  ;;  %v27494_v2 = vld [vmem:[%s28857_s7 + $0xa80] ss:$8 sps:$4 sm:$0xff]  }
 0x813   : > { %v11961_v22 = vmax.f32 %v11929_v56, 0.0  ;;  %15287 = vmatpush1.bf16.msra.mxu1 %v27167_v34  ;;  %15233 = vmatprep.mubr.bf16.mxu1 %v29696_v5  ;;  %v27501_v34 = vld [vmem:[%s28857_s7 + $0xa94] ss:$8 sps:$4 sm:$0xff]  }
 0x814   : > { %v11990_v59 = vadd.f32 %v11960_v10, %v11958_v3  ;;  %15288 = vmatprep.subr.bf16.mxu1 %v27174_v50 }
 0x815   : > { %v12011_v4 = vadd.f32 %v11961_v22, %v11959_v33  ;;  %v11825_v26 = vpop.f32.mrb[148].mxu1  ;;  %13657 = vmatpush1.bf16.msra.mxu0 %v27478_v43  ;;  %v29697_v22 = vld [vmem:[#allocation34_spill] sm:$0xff] }
 0x816   : > { %v11930_v49 = vadd.f32 %v11825_v26, %v27136_v31  ;;  %v11827_v55 = vpop.f32.mrb[149].mxu1  ;;  %13658 = vmatprep.subr.bf16.mxu0 %v27485_v16 }
 0x817   : > { %v11931_v50 = vadd.f32 %v11827_v55, %v27141_v12  ;;  %15289 = vmatpush1.bf16.msra.mxu1 %v27184_v19  ;;  %v11829_v56 = vpop.f32.mrb[150].mxu1  ;;  %v27514_v19 = vld [vmem:[%s28857_s7 + $0xa90] ss:$8 sps:$4 sm:$0xff]  }
 0x818   : > { %v11962_v3 = vmax.f32 %v11930_v49, 0.0  ;;  %v11932_v10 = vadd.f32 %v11829_v56, %v27136_v31  ;;  %v11831_v33 = vpop.f32.mrb[151].mxu1  ;;  %13602 = vmatmul.mubr.bf16.gmra.mrb[192].mxu0 %v29697_v22  ;;  %15290 = vmatprep.subr.bf16.mxu1 %v27191_v62  ;;  %v29699_v56 = vld [vmem:[#allocation79_spill] sm:$0xff]  ;;  %v27521_v62 = vld [vmem:[%s28857_s7 + $0xaa4] ss:$8 sps:$4 sm:$0xff]  }
 0x819   : > { %v11963_v26 = vmax.f32 %v11931_v50, 0.0  ;;  %v11933_v5 = vadd.f32 %v11831_v33, %v27141_v12  ;;  %13611 = vmatprep.mubr.bf16.mxu0 %v29698_v54  ;;  %13659 = vmatpush1.bf16.msra.mxu0 %v27494_v2  ;;  %v29700_v54 = vld [vmem:[#allocation78_spill] sm:$0xff] }
 0x81a   : > { %v11991_v49 = vadd.f32 %v11990_v59, %v11962_v3  ;;  %v11964_v55 = vmax.f32 %v11932_v10, 0.0  ;;  %15234 = vmatmul.mubr.bf16.gmra.mrb[192].mxu1 %v29699_v56  ;;  %13660 = vmatprep.subr.bf16.mxu0 %v27501_v34  ;;  %v27530_v10 = vld [vmem:[%s28857_s7 + $0xaa0] ss:$8 sps:$4 sm:$0xff]  }
 0x81b   : > { %v12012_v50 = vadd.f32 %v12011_v4, %v11963_v26  ;;  %v11965_v33 = vmax.f32 %v11933_v5, 0.0  ;;  %15291 = vmatpush1.bf16.msra.mxu1 %v27203_v63  ;;  %15243 = vmatprep.mubr.bf16.mxu1 %v29700_v54  ;;  %v27537_v63 = vld [vmem:[%s28857_s7 + $0xab4] ss:$8 sps:$4 sm:$0xff]   ;;  %v29702_v54 = vld [vmem:[#allocation45_spill] sm:$0xff] }
 0x81c   : > { %v11992_v22 = vadd.f32 %v11991_v49, %v11964_v55  ;;  %15292 = vmatprep.subr.bf16.mxu1 %v27210_v20 }
 0x81d   : > { %v12013_v59 = vadd.f32 %v12012_v50, %v11965_v33  ;;  %v11835_v3 = vpop.f32.mrb[152].mxu1  ;;  %13661 = vmatpush1.bf16.msra.mxu0 %v27514_v19  ;;  %v29701_v50 = vld [vmem:[#allocation40_spill] sm:$0xff] }
 0x81e   : > { %v11934_v56 = vadd.f32 %v11835_v3, %v27136_v31  ;;  %v11837_v4 = vpop.f32.mrb[153].mxu1  ;;  %13662 = vmatprep.subr.bf16.mxu0 %v27521_v62 }
 0x81f   : > { %v11935_v20 = vadd.f32 %v11837_v4, %v27141_v12  ;;  %15293 = vmatpush1.bf16.msra.mxu1 %v27220_v24  ;;  %v11839_v5 = vpop.f32.mrb[154].mxu1  ;;  %v27550_v24 = vld [vmem:[%s28857_s7 + $0xab0] ss:$8 sps:$4 sm:$0xff]  }
 0x820   : > { %v11966_v26 = vmax.f32 %v11934_v56, 0.0  ;;  %v11936_v49 = vadd.f32 %v11839_v5, %v27136_v31  ;;  %v11841_v55 = vpop.f32.mrb[155].mxu1  ;;  %13612 = vmatmul.mubr.bf16.gmra.mrb[196].mxu0 %v29701_v50  ;;  %15294 = vmatprep.subr.bf16.mxu1 %v27227_v13  ;;  %v29703_v5 = vld [vmem:[#allocation85_spill] sm:$0xff] }
 0x821   : > { %v11967_v33 = vmax.f32 %v11935_v20, 0.0  ;;  %v11937_v3 = vadd.f32 %v11841_v55, %v27141_v12  ;;  %13621 = vmatprep.mubr.bf16.mxu0 %v29702_v54  ;;  %13663 = vmatpush1.bf16.msra.mxu0 %v27530_v10  ;;  %v27557_v13 = vld [vmem:[%s28857_s7 + $0xac4] ss:$8 sps:$4 sm:$0xff]   ;;  %v29704_v54 = vld [vmem:[#allocation84_spill] sm:$0xff] }
 0x822   : > { %v11993_v56 = vadd.f32 %v11992_v22, %v11966_v26  ;;  %v11968_v4 = vmax.f32 %v11936_v49, 0.0  ;;  %15244 = vmatmul.mubr.bf16.gmra.mrb[196].mxu1 %v29703_v5  ;;  %13664 = vmatprep.subr.bf16.mxu0 %v27537_v63  ;;  %v27566_v49 = vld [vmem:[%s28857_s7 + $0xac0] ss:$8 sps:$4 sm:$0xff]  }
 0x823   : > { %v12014_v20 = vadd.f32 %v12013_v59, %v11967_v33  ;;  %v11969_v55 = vmax.f32 %v11937_v3, 0.0  ;;  %15295 = vmatpush1.bf16.msra.mxu1 %v27239_v35  ;;  %15253 = vmatprep.mubr.bf16.mxu1 %v29704_v54  ;;  %v27573_v35 = vld [vmem:[%s28857_s7 + $0xad4] ss:$8 sps:$4 sm:$0xff]   ;;  %v29706_v54 = vld [vmem:[#allocation53_spill] sm:$0xff] }
 0x824   : > { %v11994_v50 = vadd.f32 %v11993_v56, %v11968_v4  ;;  %15296 = vmatprep.subr.bf16.mxu1 %v27246_v51 }
 0x825   : > { %v12015_v22 = vadd.f32 %v12014_v20, %v11969_v55  ;;  %v11845_v26 = vpop.f32.mrb[156].mxu1  ;;  %13665 = vmatpush1.bf16.msra.mxu0 %v27550_v24  ;;  %v29705_v20 = vld [vmem:[#allocation46_spill] sm:$0xff] }
 0x826   : > { %v11938_v5 = vadd.f32 %v11845_v26, %v27136_v31  ;;  %v11847_v59 = vpop.f32.mrb[157].mxu1  ;;  %13666 = vmatprep.subr.bf16.mxu0 %v27557_v13 }
 0x827   : > { %v11939_v51 = vadd.f32 %v11847_v59, %v27141_v12  ;;  %15297 = vmatpush1.bf16.msra.mxu1 %v27256_v57  ;;  %v11849_v33 = vpop.f32.mrb[158].mxu1  ;;  %v27586_v57 = vld [vmem:[%s28857_s7 + $0xad0] ss:$8 sps:$4 sm:$0xff]  }
 0x828   : > { %v11970_v3 = vmax.f32 %v11938_v5, 0.0  ;;  %v11940_v56 = vadd.f32 %v11849_v33, %v27136_v31  ;;  %v11851_v4 = vpop.f32.mrb[159].mxu1  ;;  %13622 = vmatmul.mubr.bf16.gmra.mrb[200].mxu0 %v29705_v20  ;;  %15298 = vmatprep.subr.bf16.mxu1 %v27263_v30  ;;  %v29707_v33 = vld [vmem:[#allocation91_spill] sm:$0xff]  ;;  %v27593_v30 = vld [vmem:[%s28857_s7 + $0xae4] ss:$8 sps:$4 sm:$0xff]  }
 0x829   : > { %v11971_v55 = vmax.f32 %v11939_v51, 0.0  ;;  %v11941_v26 = vadd.f32 %v11851_v4, %v27141_v12  ;;  %13631 = vmatprep.mubr.bf16.mxu0 %v29706_v54  ;;  %13667 = vmatpush1.bf16.msra.mxu0 %v27566_v49  ;;  %v29708_v54 = vld [vmem:[#allocation90_spill] sm:$0xff] }
 0x82a   : > { %v11995_v5 = vadd.f32 %v11994_v50, %v11970_v3  ;;  %v11972_v59 = vmax.f32 %v11940_v56, 0.0  ;;  %15254 = vmatmul.mubr.bf16.gmra.mrb[200].mxu1 %v29707_v33  ;;  %13668 = vmatprep.subr.bf16.mxu0 %v27573_v35  ;;  %v27602_v56 = vld [vmem:[%s28857_s7 + $0xae0] ss:$8 sps:$4 sm:$0xff]  }
 0x82b   : > { %v12016_v51 = vadd.f32 %v12015_v22, %v11971_v55  ;;  %v11973_v4 = vmax.f32 %v11941_v26, 0.0  ;;  %15299 = vmatpush1.bf16.msra.mxu1 %v27275_v17  ;;  %15263 = vmatprep.mubr.bf16.mxu1 %v29708_v54  ;;  %v27609_v17 = vld [vmem:[%s28857_s7 + $0xaf4] ss:$8 sps:$4 sm:$0xff]  }
 0x82c   : > { %v11996_v20 = vadd.f32 %v11995_v5, %v11972_v59  ;;  %15300 = vmatprep.subr.bf16.mxu1 %v27282_v18 }
 0x82d   : > { %v12017_v50 = vadd.f32 %v12016_v51, %v11973_v4  ;;  %v11855_v3 = vpop.f32.mrb[160].mxu1  ;;  %13669 = vmatpush1.bf16.msra.mxu0 %v27586_v57 }
 0x82e   : > { %v11942_v33 = vadd.f32 %v11855_v3, %v27136_v31  ;;  %v11857_v22 = vpop.f32.mrb[161].mxu1  ;;  %13670 = vmatprep.subr.bf16.mxu0 %v27593_v30  ;;  %v27621_v3 = vld [vmem:[%s28857_s7 + $0xaf0] ss:$8 sps:$4 sm:$0xff]  }
 0x82f   : > { %v11943_v18 = vadd.f32 %v11857_v22, %v27141_v12  ;;  %15301 = vmatpush1.bf16.msra.mxu1 %v27292_v0  ;;  %v11859_v55 = vpop.f32.mrb[162].mxu1  ;;  %v29709_v22 = vld [vmem:[#allocation100_spill] sm:$0xff] }
 0x830   : > { %v11974_v26 = vmax.f32 %v11942_v33, 0.0  ;;  %v11944_v5 = vadd.f32 %v11859_v55, %v27136_v31  ;;  %v11861_v59 = vpop.f32.mrb[163].mxu1  ;;  %13632 = vmatmul.mubr.bf16.gmra.mrb[204].mxu0 %v29634_v36  ;;  %15302 = vmatprep.subr.bf16.mxu1 %v27299_v7  ;;  %v27629_v7 = vld [vmem:[%s28857_s7 + $0xb04] ss:$8 sps:$4 sm:$0xff]  }
 0x831   : > { %v11975_v51 = vmax.f32 %v11943_v18, 0.0  ;;  %v11945_v4 = vadd.f32 %v11861_v59, %v27141_v12  ;;  %13671 = vmatpush1.bf16.msra.mxu0 %v27602_v56  ;;  %13674 = vmatprep.mubr.bf16.mxu0 %v27329_v6  ;;  %v29710_v59 = vld [vmem:[#allocation59_spill] sm:$0xff] }
 0x832   : > { %v11997_v0 = vadd.f32 %v11996_v20, %v11974_v26  ;;  %v11976_v33 = vmax.f32 %v11944_v5, 0.0  ;;  %15264 = vmatmul.mubr.bf16.gmra.mrb[204].mxu1 %v29709_v22  ;;  %13672 = vmatprep.subr.bf16.mxu0 %v27609_v17  ;;  %v27638_v5 = vld [vmem:[%s28857_s7 + $0xb00] ss:$8 sps:$4 sm:$0xff]  }
 0x833   : > { %v12018_v18 = vadd.f32 %v12017_v50, %v11975_v51  ;;  %v11977_v55 = vmax.f32 %v11945_v4, 0.0  ;;  %15303 = vmatpush1.bf16.msra.mxu1 %v27311_v32  ;;  %15306 = vmatprep.mubr.bf16.mxu1 %v29710_v59  ;;  %v27645_v32 = vld [vmem:[%s28857_s7 + $0xb14] ss:$8 sps:$4 sm:$0xff]  }
 0x834   : > { %v11998_v54 = vadd.f32 %v11997_v0, %v11976_v33  ;;  %15304 = vmatprep.subr.bf16.mxu1 %v27318_v28 }
 0x835   : > { %v12019_v20 = vadd.f32 %v12018_v18, %v11977_v55  ;;  %v11865_v26 = vpop.f32.mrb[164].mxu1  ;;  %13673 = vmatpush1.bf16.msra.mxu0 %v27621_v3 }
 0x836   : > { %v11946_v22 = vadd.f32 %v11865_v26, %v27136_v31  ;;  %v11867_v50 = vpop.f32.mrb[165].mxu1  ;;  %13755 = vmatprep.subr.bf16.mxu0 %v27629_v7  ;;  %v29711_v26 = vld [vmem:[#allocation18_spill] sm:$0xff] }
 0x837   : > { %v11947_v28 = vadd.f32 %v11867_v50, %v27141_v12  ;;  %15305 = vmatpush1.bf16.msra.mxu1 %v27327_v39  ;;  %v11869_v51 = vpop.f32.mrb[166].mxu1  ;;  %v27658_v39 = vld [vmem:[%s28857_s7 + $0xb10] ss:$8 sps:$4 sm:$0xff]  }
 0x838   : > { %v11978_v4 = vmax.f32 %v11946_v22, 0.0  ;;  %v11948_v0 = vadd.f32 %v11869_v51, %v27136_v31  ;;  %v11871_v33 = vpop.f32.mrb[167].mxu1  ;;  %13675 = vmatmul.mubr.bf16.vlgmr.msra.gmra.mrb[176].mxu0 %v27329_v6  ;;  %15387 = vmatprep.subr.bf16.mxu1 %v27337_v58  ;;  %v29712_v51 = vld [vmem:[#allocation62_spill] sm:$0xff] }
 0x839   : > { %v11979_v18 = vmax.f32 %v11947_v28, 0.0  ;;  %v11949_v55 = vadd.f32 %v11871_v33, %v27141_v12  ;;  %13684 = vmatprep.mubr.bf16.mxu0 %v29711_v26  ;;  %13756 = vmatpush1.bf16.msra.mxu0 %v27638_v5  ;;  %v27665_v58 = vld [vmem:[%s28857_s7 + $0xb24] ss:$8 sps:$4 sm:$0xff]  }
 0x83a   : > { %v11999_v22 = vadd.f32 %v11998_v54, %v11978_v4  ;;  %v11980_v50 = vmax.f32 %v11948_v0, 0.0  ;;  %15307 = vmatmul.mubr.bf16.vlgmr.msra.gmra.mrb[176].mxu1 %v29712_v51  ;;  %13757 = vmatprep.subr.bf16.mxu0 %v27645_v32  ;;  %v29713_v26 = vld [vmem:[#allocation70_spill] sm:$0xff] }
 0x83b   : > { %v12020_v28 = vadd.f32 %v12019_v20, %v11979_v18  ;;  %v11981_v33 = vmax.f32 %v11949_v55, 0.0  ;;  %15388 = vmatpush1.bf16.msra.mxu1 %v27349_v1  ;;  %15316 = vmatprep.mubr.bf16.mxu1 %v29713_v26  ;;  %v27674_v0 = vld [vmem:[%s28857_s7 + $0xb20] ss:$8 sps:$4 sm:$0xff]   ;;  %v27681_v1 = vld [vmem:[%s28857_s7 + $0xb34] ss:$8 sps:$4 sm:$0xff]  }
 0x83c   : > { %v12000_v59 = vadd.f32 %v11999_v22, %v11980_v50  ;;  %15389 = vmatprep.subr.bf16.mxu1 %v27356_v37  ;;  %v29715_v26 = vld [vmem:[#allocation9_spill] sm:$0xff] }
 0x83d   : > { %v12021_v54 = vadd.f32 %v12020_v28, %v11981_v33  ;;  %v11875_v4 = vpop.f32.mrb[168].mxu1  ;;  %13758 = vmatpush1.bf16.msra.mxu0 %v27658_v39  ;;  %v29714_v28 = vld [vmem:[#allocation17_spill] sm:$0xff] }
 0x83e   : > { %v11950_v51 = vadd.f32 %v11875_v4, %v27136_v31  ;;  %v11877_v20 = vpop.f32.mrb[169].mxu1  ;;  %13759 = vmatprep.subr.bf16.mxu0 %v27665_v58 }
 0x83f   : > { %v11951_v37 = vadd.f32 %v11877_v20, %v27141_v12  ;;  %15390 = vmatpush1.bf16.msra.mxu1 %v27366_v29  ;;  %v11879_v18 = vpop.f32.mrb[170].mxu1  ;;  %v27694_v29 = vld [vmem:[%s28857_s7 + $0xb30] ss:$8 sps:$4 sm:$0xff]  }
 0x840   : > { %v11982_v55 = vmax.f32 %v11950_v51, 0.0  ;;  %v11952_v22 = vadd.f32 %v11879_v18, %v27136_v31  ;;  %v11881_v50 = vpop.f32.mrb[171].mxu1  ;;  %13685 = vmatmul.mubr.bf16.gmra.mrb[180].mxu0 %v29714_v28  ;;  %15391 = vmatprep.subr.bf16.mxu1 %v27373_v27  ;;  %v29716_v18 = vld [vmem:[#allocation71_spill] sm:$0xff]  ;;  %v27701_v27 = vld [vmem:[%s28857_s7 + $0xb44] ss:$8 sps:$4 sm:$0xff]   ;;  %v29717_v28 = vld [vmem:[#allocation76_spill] sm:$0xff] }
 0x841   : > { %v11983_v33 = vmax.f32 %v11951_v37, 0.0  ;;  %v11953_v4 = vadd.f32 %v11881_v50, %v27141_v12  ;;  %13694 = vmatprep.mubr.bf16.mxu0 %v29715_v26  ;;  %13760 = vmatpush1.bf16.msra.mxu0 %v27674_v0  ;;  %v10702_v26 = vrot.slane %v27433_v46, 4 }
 0x842   : > { %v12001_v51 = vadd.f32 %v12000_v59, %v11982_v55  ;;  %v11984_v20 = vmax.f32 %v11952_v22, 0.0  ;;  %15317 = vmatmul.mubr.bf16.gmra.mrb[180].mxu1 %v29716_v18  ;;  %13761 = vmatprep.subr.bf16.mxu0 %v27681_v1  ;;  %v10723_v59 = vrot.slane %v27442_v48, 4 }
 0x843   : > { %v12022_v37 = vadd.f32 %v12021_v54, %v11983_v33  ;;  %v11985_v50 = vmax.f32 %v11953_v4, 0.0  ;;  %15392 = vmatpush1.bf16.msra.mxu1 %v27385_v21  ;;  %15326 = vmatprep.mubr.bf16.mxu1 %v29717_v28  ;;  %v27712_v54 = vld [vmem:[%s28857_s7 + $0xb40] ss:$8 sps:$4 sm:$0xff]  }
 0x844   : > { %v12002_v36 = vadd.f32 %v12001_v51, %v11984_v20  ;;  %15393 = vmatprep.subr.bf16.mxu1 %v27392_v15  ;;  %v27719_v15 = vld [vmem:[%s28857_s7 + $0xb54] ss:$8 sps:$4 sm:$0xff]   ;;  %v10703_v20 = vadd.f32 %v10702_v26, %v27433_v46  ;;  %v10724_v18 = vadd.f32 %v10723_v59, %v27442_v48  ;;  %v29720_v26 = vld [vmem:[#allocation77_spill] sm:$0xff] }
 0x845   : > { %v12023_v55 = vadd.f32 %v12022_v37, %v11985_v50  ;;  %v11885_v22 = vpop.f32.mrb[172].mxu1  ;;  %13762 = vmatpush1.bf16.msra.mxu0 %v27694_v29 }
 0x846   : > { %v11954_v21 = vadd.f32 %v11885_v22, %v27136_v31  ;;  %v11887_v33 = vpop.f32.mrb[173].mxu1  ;;  %13763 = vmatprep.subr.bf16.mxu0 %v27701_v27  ;;  %v29718_v22 = vld [vmem:[#allocation22_spill] sm:$0xff]  ;;  %v10704_v59 = vrot.slane %v10703_v20, 2 }
 0x847   : > { %v11955_v4 = vadd.f32 %v11887_v33, %v27141_v12  ;;  %15394 = vmatpush1.bf16.msra.mxu1 %v27402_v41  ;;  %v11889_v51 = vpop.f32.mrb[174].mxu1  ;;  %v27734_v41 = vld [vmem:[%s28857_s7 + $0xb50] ss:$8 sps:$4 sm:$0xff]  }
 0x848   : > { %v11986_v37 = vmax.f32 %v11954_v21, 0.0  ;;  %v11956_v50 = vadd.f32 %v11889_v51, %v27136_v31  ;;  %v11891_v28 = vpop.f32.mrb[175].mxu1  ;;  %13695 = vmatmul.mubr.bf16.gmra.mrb[184].mxu0 %v29718_v22  ;;  %15395 = vmatprep.subr.bf16.mxu1 %v27409_v42  ;;  %v27741_v42 = vld [vmem:[%s28857_s7 + $0xb64] ss:$8 sps:$4 sm:$0xff]  }
 0x849   : > { %v11987_v38 = vmax.f32 %v11955_v4, 0.0  ;;  %v11957_v44 = vadd.f32 %v11891_v28, %v27141_v12  ;;  %13704 = vmatprep.mubr.bf16.mxu0 %v29719_v47  ;;  %13764 = vmatpush1.bf16.msra.mxu0 %v27712_v54  ;;  %v29721_v28 = vld [vmem:[#allocation82_spill] sm:$0xff] }
 0x84a   : > { %v12003_v31 = vadd.f32 %v12002_v36, %v11986_v37  ;;  %v11988_v46 = vmax.f32 %v11956_v50, 0.0  ;;  %15327 = vmatmul.mubr.bf16.gmra.mrb[184].mxu1 %v29720_v26  ;;  %13765 = vmatprep.subr.bf16.mxu0 %v27719_v15  ;;  %v10725_v36 = vrot.slane %v10724_v18, 2  ;;  %v27750_v4 = vld [vmem:[%s28857_s7 + $0xb60] ss:$8 sps:$4 sm:$0xff]  }
 0x84b   : > { %v12024_v12 = vadd.f32 %v12023_v55, %v11987_v38  ;;  %v11989_v48 = vmax.f32 %v11957_v44, 0.0  ;;  %15396 = vmatpush1.bf16.msra.mxu1 %v27421_v8  ;;  %15336 = vmatprep.mubr.bf16.mxu1 %v29721_v28  ;;  %v27756_v38 = vld [vmem:[%s28857_s7 + $0xb74] ss:$8 sps:$4 sm:$0xff]   ;;  %v29722_v55 = vld [vmem:[#allocation21_spill] sm:$0xff] }
 0x84c   : > { %v12004_v21 = vadd.f32 %v12003_v31, %v11988_v46  ;;  %15397 = vmatprep.subr.bf16.mxu1 %v27428_v14  ;;  %v10705_v14 = vadd.f32 %v10704_v59, %v10703_v20  ;;  %v10726_v37 = vadd.f32 %v10725_v36, %v10724_v18  ;;  %v29723_v31 = vld [vmem:[#allocation29_spill] sm:$0xff]  ;;  %v27766_v46 = vld [vmem:[%s28857_s7 + $0xb70] ss:$8 sps:$4 sm:$0xff]  }
 0x84d   : > { %v12025_v33 = vadd.f32 %v12024_v12, %v11989_v48  ;;  %13766 = vmatpush1.bf16.msra.mxu0 %v27734_v41  ;;  %v29724_v48 = vld [vmem:[#allocation83_spill] sm:$0xff]  ;;  %v29725_v18 = vld [vmem:[#allocation88_spill] sm:$0xff] }
 0x84e   : > { %v12005_v51 = vrot.slane %v12004_v21, 4  ;;  %13767 = vmatprep.subr.bf16.mxu0 %v27741_v42  ;;  %v10706_v20 = vrot.slane %v10705_v14, 1 }
 0x84f   : > { %v12026_v8 = vrot.slane %v12025_v33, 4  ;;  %15398 = vmatpush1.bf16.msra.mxu1 %v27440_v23  ;;  %v27773_v23 = vld [vmem:[%s28857_s7 + $0xb84] ss:$8 sps:$4 sm:$0xff]  }
 0x850   : > { %v12006_v44 = vadd.f32 %v12005_v51, %v12004_v21  ;;  %13705 = vmatmul.mubr.bf16.gmra.mrb[188].mxu0 %v29722_v55  ;;  %15399 = vmatprep.subr.bf16.mxu1 %v27449_v9  ;;  %v10727_v21 = vrot.slane %v10726_v37, 1  ;;  %v29728_v55 = vld [vmem:[#allocation89_spill] sm:$0xff] }
 0x851   : > { %v12027_v50 = vadd.f32 %v12026_v8, %v12025_v33  ;;  %13714 = vmatprep.mubr.bf16.mxu0 %v29723_v31  ;;  %13768 = vmatpush1.bf16.msra.mxu0 %v27750_v4  ;;  %v27782_v33 = vld [vmem:[%s28857_s7 + $0xb80] ss:$8 sps:$4 sm:$0xff]  }
 0x852   : > { %v12007_v12 = vrot.slane %v12006_v44, 2  ;;  %15337 = vmatmul.mubr.bf16.gmra.mrb[188].mxu1 %v29724_v48  ;;  %13769 = vmatprep.subr.bf16.mxu0 %v27756_v38  ;;  %v27798_v48 = vld [vmem:[%s28857_s7 + $0xb90] ss:$8 sps:$4 sm:$0xff]  }
 0x853   : > { %v12028_v9 = vrot.slane %v12027_v50, 2  ;;  %15400 = vmatpush1.bf16.msra.mxu1 %v27458_v11  ;;  %15346 = vmatprep.mubr.bf16.mxu1 %v29725_v18  ;;  %v27788_v11 = vld [vmem:[%s28857_s7 + $0xb94] ss:$8 sps:$4 sm:$0xff]   ;;  %v29727_v18 = vld [vmem:[#allocation6_spill] sm:$0xff] }
 0x854   : > { %v12008_v59 = vadd.f32 %v12007_v12, %v12006_v44  ;;  %15401 = vmatprep.subr.bf16.mxu1 %v27465_v61  ;;  %v10707_v61 = vadd.f32 %v10706_v20, %v10705_v14  ;;  %v10728_v12 = vadd.f32 %v10727_v21, %v10726_v37  ;;  %v29729_v14 = vld [vmem:[#allocation94_spill] sm:$0xff]  ;;  %v27836_v21 = vld [vmem:[%s28857_s7 + $0xbb0] ss:$8 sps:$4 sm:$0xff]  }
 0x855   : > { %v12029_v36 = vadd.f32 %v12028_v9, %v12027_v50  ;;  %13770 = vmatpush1.bf16.msra.mxu0 %v27766_v46  ;;  %v29726_v50 = vld [vmem:[#allocation27_spill] sm:$0xff] }
 0x856   : > { %v12009_v51 = vrot.slane %v12008_v59, 1  ;;  %13771 = vmatprep.subr.bf16.mxu0 %v27773_v23 }
 0x857   : > { %v12030_v8 = vrot.slane %v12029_v36, 1  ;;  %15402 = vmatpush1.bf16.msra.mxu1 %v27478_v43  ;;  %v27805_v43 = vld [vmem:[%s28857_s7 + $0xba4] ss:$8 sps:$4 sm:$0xff]  }
 0x858   : > { %v12010_v44 = vadd.f32 %v12009_v51, %v12008_v59  ;;  %13715 = vmatmul.mubr.bf16.gmra.mrb[192].mxu0 %v29726_v50  ;;  %15403 = vmatprep.subr.bf16.mxu1 %v27485_v16  ;;  %v27818_v59 = vld [vmem:[%s28857_s7 + $0xba0] ss:$8 sps:$4 sm:$0xff]  }
 0x859   : > { %v12031_v9 = vadd.f32 %v12030_v8, %v12029_v36  ;;  %13724 = vmatprep.mubr.bf16.mxu0 %v29727_v18  ;;  %13772 = vmatpush1.bf16.msra.mxu0 %v27782_v33  ;;  %v29733_v36 = vld [vmem:[#allocation95_spill] sm:$0xff]  ;;  %v27852_v51 = vld [vmem:[%s28857_s7 + $0xbc0] ss:$8 sps:$4 sm:$0xff]  }
 0x85a   : > { %v12032_v31 = vadd.f32 %v12010_v44, %v10707_v61  ;;  %15347 = vmatmul.mubr.bf16.gmra.mrb[192].mxu1 %v29728_v55  ;;  %13773 = vmatprep.subr.bf16.mxu0 %v27788_v11  ;;  %v27858_v8 = vld [vmem:[%s28857_s7 + $0xbd4] ss:$8 sps:$4 sm:$0xff]  }
 0x85b   : > { %v12033_v16 = vadd.f32 %v12031_v9, %v10728_v12  ;;  %15404 = vmatpush1.bf16.msra.mxu1 %v27494_v2  ;;  %15356 = vmatprep.mubr.bf16.mxu1 %v29729_v14  ;;  %v27824_v2 = vld [vmem:[%s28857_s7 + $0xbb4] ss:$8 sps:$4 sm:$0xff]   ;;  %v27916_v9 = vld [vmem:[%s28857_s7 + $0xf00] ss:$8 sps:$4 sm:$0xff]  }
 0x85c   : > { %v27809_v37 = vmul.f32 0.00390625, %v12032_v31  ;;  %15405 = vmatprep.subr.bf16.mxu1 %v27501_v34  ;;  %v29732_v34 = vld [vmem:[#allocation38_spill] sm:$0xff]  ;;  %v29736_v61 = vld [vmem:[#allocation99_spill] sm:$0xff] }
 0x85d   : > { %v27812_v20 = vmul.f32 0.00390625, %v12033_v16  ;;  %13774 = vmatpush1.bf16.msra.mxu0 %v27798_v48  ;;  %v27890_v44 = vld [vmem:[%s28857_s7 + $0xbf4] ss:$8 sps:$4 sm:$0xff]   ;;  %v29741_v31 = vld [vmem:[#allocation50_spill] sm:$0xff] }
 0x85e   : > { %29730 = vst [vmem:[#allocation8_spill] sm:$0xff] %v27809_v37  ;;  %13775 = vmatprep.subr.bf16.mxu0 %v27805_v43  ;;  %v29738_v12 = vld [vmem:[#allocation47_spill] sm:$0xff]  ;;  %v29745_v37 = vld [vmem:[#allocation61_spill] sm:$0xff] }
 0x85f   : > { %29731 = vst [vmem:[#allocation25_spill] sm:$0xff] %v27812_v20  ;;  %15406 = vmatpush1.bf16.msra.mxu1 %v27514_v19  ;;  %v27843_v19 = vld [vmem:[%s28857_s7 + $0xbc4] ss:$8 sps:$4 sm:$0xff]   ;;  %v27922_v16 = vld [vmem:[%s28857_s7 + $0xf14] ss:$8 sps:$4 sm:$0xff]  }
 0x860   : > { %13725 = vmatmul.mubr.bf16.gmra.mrb[196].mxu0 %v29656_v25  ;;  %15407 = vmatprep.subr.bf16.mxu1 %v27521_v62  ;;  %v29734_v62 = vld [vmem:[#allocation98_spill] sm:$0xff]  ;;  %v27964_v20 = vld [vmem:[%s28857_s7 + $0xf30] ss:$8 sps:$4 sm:$0xff]  }
 0x861   : > { %13734 = vmatprep.mubr.bf16.mxu0 %v29732_v34  ;;  %13776 = vmatpush1.bf16.msra.mxu0 %v27818_v59 }
 0x862   : > { %15357 = vmatmul.mubr.bf16.gmra.mrb[196].mxu1 %v29733_v36  ;;  %13777 = vmatprep.subr.bf16.mxu0 %v27824_v2 }
 0x863   : > { %15408 = vmatpush1.bf16.msra.mxu1 %v27530_v10  ;;  %15366 = vmatprep.mubr.bf16.mxu1 %v29734_v62  ;;  %v29735_v10 = vld [vmem:[#allocation44_spill] sm:$0xff] }
 0x864   : > { %15409 = vmatprep.subr.bf16.mxu1 %v27537_v63  ;;  %v27868_v63 = vld [vmem:[%s28857_s7 + $0xbd0] ss:$8 sps:$4 sm:$0xff]  }
 0x865   : > { %13778 = vmatpush1.bf16.msra.mxu0 %v27836_v21 }
 0x866   : > { %13779 = vmatprep.subr.bf16.mxu0 %v27843_v19 }
 0x867   : > { %15410 = vmatpush1.bf16.msra.mxu1 %v27550_v24  ;;  %v27875_v24 = vld [vmem:[%s28857_s7 + $0xbe4] ss:$8 sps:$4 sm:$0xff]  }
 0x868   : > { %13735 = vmatmul.mubr.bf16.gmra.mrb[200].mxu0 %v29660_v45  ;;  %15411 = vmatprep.subr.bf16.mxu1 %v27557_v13  ;;  %v27884_v13 = vld [vmem:[%s28857_s7 + $0xbe0] ss:$8 sps:$4 sm:$0xff]  }
 0x869   : > { %13744 = vmatprep.mubr.bf16.mxu0 %v29735_v10  ;;  %13780 = vmatpush1.bf16.msra.mxu0 %v27852_v51 }
 0x86a   : > { %15367 = vmatmul.mubr.bf16.gmra.mrb[200].mxu1 %v29736_v61  ;;  %13781 = vmatprep.subr.bf16.mxu0 %v27858_v8 }
 0x86b   : > { %15412 = vmatpush1.bf16.msra.mxu1 %v27566_v49  ;;  %15376 = vmatprep.mubr.bf16.mxu1 %v29662_v52  ;;  %v29737_v49 = vld [vmem:[#allocation43_spill] sm:$0xff] }
 0x86c   : > { %15413 = vmatprep.subr.bf16.mxu1 %v27573_v35  ;;  %v27899_v35 = vld [vmem:[%s28857_s7 + $0xbf0] ss:$8 sps:$4 sm:$0xff]  }
 0x86d   : > { %13782 = vmatpush1.bf16.msra.mxu0 %v27868_v63 }
 0x86e   : > { %13783 = vmatprep.subr.bf16.mxu0 %v27875_v24 }
 0x86f   : > { %15414 = vmatpush1.bf16.msra.mxu1 %v27586_v57  ;;  %v27907_v57 = vld [vmem:[%s28857_s7 + $0xf04] ss:$8 sps:$4 sm:$0xff]  }
 0x870   : > { %13745 = vmatmul.mubr.bf16.gmra.mrb[204].mxu0 %v29737_v49  ;;  %15415 = vmatprep.subr.bf16.mxu1 %v27593_v30  ;;  %v29739_v30 = vld [vmem:[#allocation52_spill] sm:$0xff] }
 0x871   : > { %13784 = vmatpush1.bf16.msra.mxu0 %v27884_v13  ;;  %13787 = vmatprep.mubr.bf16.mxu0 %v27329_v6 }
 0x872   : > { %15377 = vmatmul.mubr.bf16.gmra.mrb[204].mxu1 %v29738_v12  ;;  %13785 = vmatprep.subr.bf16.mxu0 %v27890_v44 }
 0x873   : > { %15416 = vmatpush1.bf16.msra.mxu1 %v27602_v56  ;;  %15419 = vmatprep.mubr.bf16.mxu1 %v29739_v30  ;;  %v29740_v56 = vld [vmem:[#allocation51_spill] sm:$0xff] }
 0x874   : > { %15417 = vmatprep.subr.bf16.mxu1 %v27609_v17  ;;  %v27932_v17 = vld [vmem:[%s28857_s7 + $0xf10] ss:$8 sps:$4 sm:$0xff]  }
 0x875   : > { %13786 = vmatpush1.bf16.msra.mxu0 %v27899_v35 }
 0x876   : > { %14445 = vmatprep.subr.bf16.mxu0 %v27907_v57 }
 0x877   : > { %15418 = vmatpush1.bf16.msra.mxu1 %v27621_v3  ;;  %v27939_v3 = vld [vmem:[%s28857_s7 + $0xf24] ss:$8 sps:$4 sm:$0xff]  }
 0x878   : > { %13788 = vmatmul.mubr.bf16.vlgmr.msra.gmra.mrb[176].mxu0 %v27329_v6  ;;  %15500 = vmatprep.subr.bf16.mxu1 %v27629_v7  ;;  %v29742_v6 = vld [vmem:[#allocation63_spill] sm:$0xff]  ;;  %v27948_v7 = vld [vmem:[%s28857_s7 + $0xf20] ss:$8 sps:$4 sm:$0xff]  }
 0x879   : > { %13797 = vmatprep.mubr.bf16.mxu0 %v29740_v56  ;;  %14446 = vmatpush1.bf16.msra.mxu0 %v27916_v9  ;;  %v27954_v56 = vld [vmem:[%s28857_s7 + $0xf34] ss:$8 sps:$4 sm:$0xff]  }
 0x87a   : > { %15420 = vmatmul.mubr.bf16.vlgmr.msra.gmra.mrb[176].mxu1 %v29741_v31  ;;  %14447 = vmatprep.subr.bf16.mxu0 %v27922_v16 }
 0x87b   : > { %15501 = vmatpush1.bf16.msra.mxu1 %v27638_v5  ;;  %15429 = vmatprep.mubr.bf16.mxu1 %v29742_v6  ;;  %v29743_v5 = vld [vmem:[#allocation5_spill] sm:$0xff] }
 0x87c   : > { %15502 = vmatprep.subr.bf16.mxu1 %v27645_v32  ;;  %v29744_v32 = vld [vmem:[#allocation58_spill] sm:$0xff] }
 0x87d   : > { %14448 = vmatpush1.bf16.msra.mxu0 %v27932_v17 }
 0x87e   : > { %14449 = vmatprep.subr.bf16.mxu0 %v27939_v3 }
 0x87f   : > { %15503 = vmatpush1.bf16.msra.mxu1 %v27658_v39  ;;  %v27971_v39 = vld [vmem:[%s28857_s7 + $0xf44] ss:$8 sps:$4 sm:$0xff]  }
 0x880   : > { %13798 = vmatmul.mubr.bf16.gmra.mrb[180].mxu0 %v29743_v5  ;;  %15504 = vmatprep.subr.bf16.mxu1 %v27665_v58  ;;  %v29746_v58 = vld [vmem:[#allocation69_spill] sm:$0xff] }
 0x881   : > { %13807 = vmatprep.mubr.bf16.mxu0 %v29744_v32  ;;  %14450 = vmatpush1.bf16.msra.mxu0 %v27948_v7  ;;  %v27980_v5 = vld [vmem:[%s28857_s7 + $0xf40] ss:$8 sps:$4 sm:$0xff]   ;;  %v27986_v32 = vld [vmem:[%s28857_s7 + $0xf54] ss:$8 sps:$4 sm:$0xff]  }
 0x882   : > { %15430 = vmatmul.mubr.bf16.gmra.mrb[180].mxu1 %v29745_v37  ;;  %14451 = vmatprep.subr.bf16.mxu0 %v27954_v56  ;;  %v29749_v37 = vld [vmem:[#allocation68_spill] sm:$0xff] }
 0x883   : > { %15505 = vmatpush1.bf16.msra.mxu1 %v27674_v0  ;;  %15439 = vmatprep.mubr.bf16.mxu1 %v29746_v58  ;;  %v29747_v0 = vld [vmem:[#allocation60_spill] sm:$0xff] }
 0x884   : > { %15506 = vmatprep.subr.bf16.mxu1 %v27681_v1  ;;  %v29748_v1 = vld [vmem:[#allocation19_spill] sm:$0xff] }
 0x885   : > { %14452 = vmatpush1.bf16.msra.mxu0 %v27964_v20  ;;  %v27996_v58 = vld [vmem:[%s28857_s7 + $0xf50] ss:$8 sps:$4 sm:$0xff]  }
 0x886   : > { %14453 = vmatprep.subr.bf16.mxu0 %v27971_v39 }
 0x887   : > { %15507 = vmatpush1.bf16.msra.mxu1 %v27694_v29  ;;  %v28003_v29 = vld [vmem:[%s28857_s7 + $0xf64] ss:$8 sps:$4 sm:$0xff]  }
 0x888   : > { %13808 = vmatmul.mubr.bf16.gmra.mrb[184].mxu0 %v29747_v0  ;;  %15508 = vmatprep.subr.bf16.mxu1 %v27701_v27  ;;  %v29750_v27 = vld [vmem:[#allocation75_spill] sm:$0xff]  ;;  %v29753_v0 = vld [vmem:[#allocation74_spill] sm:$0xff] }
 0x889   : > { %13817 = vmatprep.mubr.bf16.mxu0 %v29748_v1  ;;  %14454 = vmatpush1.bf16.msra.mxu0 %v27980_v5  ;;  %v28012_v1 = vld [vmem:[%s28857_s7 + $0xf60] ss:$8 sps:$4 sm:$0xff]  }
 0x88a   : > { %15440 = vmatmul.mubr.bf16.gmra.mrb[184].mxu1 %v29749_v37  ;;  %14455 = vmatprep.subr.bf16.mxu0 %v27986_v32  ;;  %v28018_v37 = vld [vmem:[%s28857_s7 + $0xf74] ss:$8 sps:$4 sm:$0xff]  }
 0x88b   : > { %15509 = vmatpush1.bf16.msra.mxu1 %v27712_v54  ;;  %15449 = vmatprep.mubr.bf16.mxu1 %v29750_v27  ;;  %v29751_v54 = vld [vmem:[#allocation64_spill] sm:$0xff] }
 0x88c   : > { %15510 = vmatprep.subr.bf16.mxu1 %v27719_v15  ;;  %v29752_v15 = vld [vmem:[#allocation11_spill] sm:$0xff] }
 0x88d   : > { %14456 = vmatpush1.bf16.msra.mxu0 %v27996_v58  ;;  %v28028_v27 = vld [vmem:[%s28857_s7 + $0xf70] ss:$8 sps:$4 sm:$0xff]  }
 0x88e   : > { %14457 = vmatprep.subr.bf16.mxu0 %v28003_v29 }
 0x88f   : > { %15511 = vmatpush1.bf16.msra.mxu1 %v27734_v41  ;;  %v28035_v41 = vld [vmem:[%s28857_s7 + $0xf84] ss:$8 sps:$4 sm:$0xff]  }
 0x890   : > { %13818 = vmatmul.mubr.bf16.gmra.mrb[188].mxu0 %v29751_v54  ;;  %15512 = vmatprep.subr.bf16.mxu1 %v27741_v42  ;;  %v29754_v42 = vld [vmem:[#allocation81_spill] sm:$0xff]  ;;  %v29757_v54 = vld [vmem:[#allocation80_spill] sm:$0xff] }
 0x891   : > { %13827 = vmatprep.mubr.bf16.mxu0 %v29752_v15  ;;  %14458 = vmatpush1.bf16.msra.mxu0 %v28012_v1  ;;  %v28044_v15 = vld [vmem:[%s28857_s7 + $0xf80] ss:$8 sps:$4 sm:$0xff]  }
 0x892   : > { %15450 = vmatmul.mubr.bf16.gmra.mrb[188].mxu1 %v29753_v0  ;;  %14459 = vmatprep.subr.bf16.mxu0 %v28018_v37  ;;  %v28050_v0 = vld [vmem:[%s28857_s7 + $0xf94] ss:$8 sps:$4 sm:$0xff]  }
 0x893   : > { %15513 = vmatpush1.bf16.msra.mxu1 %v27750_v4  ;;  %15459 = vmatprep.mubr.bf16.mxu1 %v29754_v42  ;;  %v29755_v4 = vld [vmem:[#allocation66_spill] sm:$0xff]  ;;  %v28060_v42 = vld [vmem:[%s28857_s7 + $0xf90] ss:$8 sps:$4 sm:$0xff]  }
 0x894   : > { %15514 = vmatprep.subr.bf16.mxu1 %v27756_v38  ;;  %v29756_v38 = vld [vmem:[#allocation10_spill] sm:$0xff] }
 0x895   : > { %14460 = vmatpush1.bf16.msra.mxu0 %v28028_v27 }
 0x896   : > { %14461 = vmatprep.subr.bf16.mxu0 %v28035_v41 }
 0x897   : > { %15515 = vmatpush1.bf16.msra.mxu1 %v27766_v46  ;;  %v28067_v46 = vld [vmem:[%s28857_s7 + $0xfa4] ss:$8 sps:$4 sm:$0xff]  }
 0x898   : > { %13828 = vmatmul.mubr.bf16.gmra.mrb[192].mxu0 %v29755_v4  ;;  %15516 = vmatprep.subr.bf16.mxu1 %v27773_v23  ;;  %v29758_v23 = vld [vmem:[#allocation87_spill] sm:$0xff] }
 0x899   : > { %13837 = vmatprep.mubr.bf16.mxu0 %v29756_v38  ;;  %14462 = vmatpush1.bf16.msra.mxu0 %v28044_v15  ;;  %v28076_v38 = vld [vmem:[%s28857_s7 + $0xfa0] ss:$8 sps:$4 sm:$0xff]  }
 0x89a   : > { %15460 = vmatmul.mubr.bf16.gmra.mrb[192].mxu1 %v29757_v54  ;;  %14463 = vmatprep.subr.bf16.mxu0 %v28050_v0  ;;  %v28082_v54 = vld [vmem:[%s28857_s7 + $0xfb4] ss:$8 sps:$4 sm:$0xff]  }
 0x89b   : > { %15517 = vmatpush1.bf16.msra.mxu1 %v27782_v33  ;;  %15469 = vmatprep.mubr.bf16.mxu1 %v29758_v23  ;;  %v29759_v33 = vld [vmem:[#allocation26_spill] sm:$0xff] }
 0x89c   : > { %15518 = vmatprep.subr.bf16.mxu1 %v27788_v11  ;;  %v28092_v11 = vld [vmem:[%s28857_s7 + $0xfb0] ss:$8 sps:$4 sm:$0xff]   ;;  %v29760_v23 = vld [vmem:[#allocation86_spill] sm:$0xff] }
 0x89d   : > { %14464 = vmatpush1.bf16.msra.mxu0 %v28060_v42 }
 0x89e   : > { %14465 = vmatprep.subr.bf16.mxu0 %v28067_v46 }
 0x89f   : > { %15519 = vmatpush1.bf16.msra.mxu1 %v27798_v48  ;;  %v28099_v48 = vld [vmem:[%s28857_s7 + $0xfc4] ss:$8 sps:$4 sm:$0xff]  }
 0x8a0   : > { %13838 = vmatmul.mubr.bf16.gmra.mrb[196].mxu0 %v29603_v53  ;;  %15520 = vmatprep.subr.bf16.mxu1 %v27805_v43  ;;  %v29761_v43 = vld [vmem:[#allocation93_spill] sm:$0xff]  ;;  %v29764_v53 = vld [vmem:[#allocation92_spill] sm:$0xff] }
 0x8a1   : > { %13847 = vmatprep.mubr.bf16.mxu0 %v29759_v33  ;;  %14466 = vmatpush1.bf16.msra.mxu0 %v28076_v38  ;;  %v28108_v33 = vld [vmem:[%s28857_s7 + $0xfc0] ss:$8 sps:$4 sm:$0xff]  }
 0x8a2   : > { %15470 = vmatmul.mubr.bf16.gmra.mrb[196].mxu1 %v29760_v23  ;;  %14467 = vmatprep.subr.bf16.mxu0 %v28082_v54  ;;  %v28114_v23 = vld [vmem:[%s28857_s7 + $0xfd4] ss:$8 sps:$4 sm:$0xff]  }
 0x8a3   : > { %15521 = vmatpush1.bf16.msra.mxu1 %v27818_v59  ;;  %15479 = vmatprep.mubr.bf16.mxu1 %v29761_v43  ;;  %v29762_v59 = vld [vmem:[#allocation32_spill] sm:$0xff] }
 0x8a4   : > { %15522 = vmatprep.subr.bf16.mxu1 %v27824_v2  ;;  %v29763_v2 = vld [vmem:[#allocation31_spill] sm:$0xff] }
 0x8a5   : > { %14468 = vmatpush1.bf16.msra.mxu0 %v28092_v11  ;;  %v28124_v43 = vld [vmem:[%s28857_s7 + $0xfd0] ss:$8 sps:$4 sm:$0xff]  }
 0x8a6   : > { %14469 = vmatprep.subr.bf16.mxu0 %v28099_v48 }
 0x8a7   : > { %15523 = vmatpush1.bf16.msra.mxu1 %v27836_v21  ;;  %v28131_v21 = vld [vmem:[%s28857_s7 + $0xfe4] ss:$8 sps:$4 sm:$0xff]  }
 0x8a8   : > { %13848 = vmatmul.mubr.bf16.gmra.mrb[200].mxu0 %v29762_v59  ;;  %15524 = vmatprep.subr.bf16.mxu1 %v27843_v19  ;;  %v29765_v19 = vld [vmem:[#allocation97_spill] sm:$0xff] }
 0x8a9   : > { %13857 = vmatprep.mubr.bf16.mxu0 %v29763_v2  ;;  %14470 = vmatpush1.bf16.msra.mxu0 %v28108_v33  ;;  %v28140_v2 = vld [vmem:[%s28857_s7 + $0xfe0] ss:$8 sps:$4 sm:$0xff]  }
 0x8aa   : > { %15480 = vmatmul.mubr.bf16.gmra.mrb[200].mxu1 %v29764_v53  ;;  %14471 = vmatprep.subr.bf16.mxu0 %v28114_v23  ;;  %v28146_v53 = vld [vmem:[%s28857_s7 + $0xff4] ss:$8 sps:$4 sm:$0xff]  }
 0x8ab   : > { %15525 = vmatpush1.bf16.msra.mxu1 %v27852_v51  ;;  %15489 = vmatprep.mubr.bf16.mxu1 %v29765_v19  ;;  %v28156_v51 = vld [vmem:[%s28857_s7 + $0xff0] ss:$8 sps:$4 sm:$0xff]  }
 0x8ac   : > { %15526 = vmatprep.subr.bf16.mxu1 %v27858_v8  ;;  %v29766_v8 = vld [vmem:[#allocation96_spill] sm:$0xff] }
 0x8ad   : > { %14472 = vmatpush1.bf16.msra.mxu0 %v28124_v43 }
 0x8ae   : > { %14473 = vmatprep.subr.bf16.mxu0 %v28131_v21 }
 0x8af   : > { %15527 = vmatpush1.bf16.msra.mxu1 %v27868_v63  ;;  %v28163_v63 = vld [vmem:[%s28857_s7 + $0x1004] ss:$8 sps:$4 sm:$0xff]  }
 0x8b0   : > { %13858 = vmatmul.mubr.bf16.gmra.mrb[204].mxu0 %v29682_v40  ;;  %15528 = vmatprep.subr.bf16.mxu1 %v27875_v24  ;;  %v29767_v24 = vld [vmem:[#allocation35_spill] sm:$0xff]  ;;  %v29770_v40 = vld [vmem:[#allocation42_spill] sm:$0xff] }
 0x8b1   : > { %14474 = vmatpush1.bf16.msra.mxu0 %v28140_v2  ;;  %14477 = vmatprep.mubr.bf16.mxu0 %v29617_v60  ;;  %v28172_v60 = vld [vmem:[%s28857_s7 + $0x1000] ss:$8 sps:$4 sm:$0xff]  }
 0x8b2   : > { %15490 = vmatmul.mubr.bf16.gmra.mrb[204].mxu1 %v29766_v8  ;;  %14475 = vmatprep.subr.bf16.mxu0 %v28146_v53  ;;  %v28178_v8 = vld [vmem:[%s28857_s7 + $0x1014] ss:$8 sps:$4 sm:$0xff]  }
 0x8b3   : > { %15529 = vmatpush1.bf16.msra.mxu1 %v27884_v13  ;;  %15532 = vmatprep.mubr.bf16.mxu1 %v29767_v24  ;;  %v29768_v13 = vld [vmem:[#allocation24_spill] sm:$0xff] }
 0x8b4   : > { %15530 = vmatprep.subr.bf16.mxu1 %v27890_v44  ;;  %v29769_v44 = vld [vmem:[#allocation30_spill] sm:$0xff]  ;;  %v28188_v24 = vld [vmem:[%s28857_s7 + $0x1010] ss:$8 sps:$4 sm:$0xff]  }
 0x8b5   : > { %14476 = vmatpush1.bf16.msra.mxu0 %v28156_v51 }
 0x8b6   : > { %14558 = vmatprep.subr.bf16.mxu0 %v28163_v63 }
 0x8b7   : > { %15531 = vmatpush1.bf16.msra.mxu1 %v27899_v35  ;;  %v28195_v35 = vld [vmem:[%s28857_s7 + $0x1024] ss:$8 sps:$4 sm:$0xff]  }
 0x8b8   : > { %14478 = vmatmul.mubr.bf16.vlgmr.msra.gmra.mrb[176].mxu0 %v29768_v13  ;;  %15613 = vmatprep.subr.bf16.mxu1 %v27907_v57  ;;  %v29771_v57 = vld [vmem:[#allocation41_spill] sm:$0xff] }
 0x8b9   : > { %14487 = vmatprep.mubr.bf16.mxu0 %v29769_v44  ;;  %14559 = vmatpush1.bf16.msra.mxu0 %v28172_v60  ;;  %v28204_v13 = vld [vmem:[%s28857_s7 + $0x1020] ss:$8 sps:$4 sm:$0xff]   ;;  %v28210_v44 = vld [vmem:[%s28857_s7 + $0x1034] ss:$8 sps:$4 sm:$0xff]  }
 0x8ba   : > { %15533 = vmatmul.mubr.bf16.vlgmr.msra.gmra.mrb[176].mxu1 %v29770_v40  ;;  %14560 = vmatprep.subr.bf16.mxu0 %v28178_v8  ;;  %v29774_v40 = vld [vmem:[#allocation49_spill] sm:$0xff] }
 0x8bb   : > { %15614 = vmatpush1.bf16.msra.mxu1 %v27916_v9  ;;  %15542 = vmatprep.mubr.bf16.mxu1 %v29771_v57  ;;  %v29772_v9 = vld [vmem:[#allocation15_spill] sm:$0xff] }
 0x8bc   : > { %15615 = vmatprep.subr.bf16.mxu1 %v27922_v16  ;;  %v29773_v16 = vld [vmem:[#allocation33_spill] sm:$0xff]  ;;  %v28220_v57 = vld [vmem:[%s28857_s7 + $0x1030] ss:$8 sps:$4 sm:$0xff]  }
 0x8bd   : > { %14561 = vmatpush1.bf16.msra.mxu0 %v28188_v24 }
 0x8be   : > { %14562 = vmatprep.subr.bf16.mxu0 %v28195_v35 }
 0x8bf   : > { %15616 = vmatpush1.bf16.msra.mxu1 %v27932_v17  ;;  %v28227_v17 = vld [vmem:[%s28857_s7 + $0x1044] ss:$8 sps:$4 sm:$0xff]  }
 0x8c0   : > { %14488 = vmatmul.mubr.bf16.gmra.mrb[180].mxu0 %v29772_v9  ;;  %15617 = vmatprep.subr.bf16.mxu1 %v27939_v3  ;;  %v29775_v3 = vld [vmem:[#allocation48_spill] sm:$0xff]  ;;  %v28236_v9 = vld [vmem:[%s28857_s7 + $0x1040] ss:$8 sps:$4 sm:$0xff]  }
 0x8c1   : > { %14497 = vmatprep.mubr.bf16.mxu0 %v29773_v16  ;;  %14563 = vmatpush1.bf16.msra.mxu0 %v28204_v13  ;;  %v28242_v16 = vld [vmem:[%s28857_s7 + $0x1054] ss:$8 sps:$4 sm:$0xff]  }
 0x8c2   : > { %15543 = vmatmul.mubr.bf16.gmra.mrb[180].mxu1 %v29774_v40  ;;  %14564 = vmatprep.subr.bf16.mxu0 %v28210_v44  ;;  %v29778_v40 = vld [vmem:[#allocation57_spill] sm:$0xff] }
 0x8c3   : > { %15618 = vmatpush1.bf16.msra.mxu1 %v27948_v7  ;;  %15552 = vmatprep.mubr.bf16.mxu1 %v29775_v3  ;;  %v29776_v7 = vld [vmem:[#allocation34_spill] sm:$0xff]  ;;  %v28252_v3 = vld [vmem:[%s28857_s7 + $0x1050] ss:$8 sps:$4 sm:$0xff]  }
 0x8c4   : > { %15619 = vmatprep.subr.bf16.mxu1 %v27954_v56  ;;  %v29777_v56 = vld [vmem:[#allocation39_spill] sm:$0xff] }
 0x8c5   : > { %14565 = vmatpush1.bf16.msra.mxu0 %v28220_v57 }
 0x8c6   : > { %14566 = vmatprep.subr.bf16.mxu0 %v28227_v17 }
 0x8c7   : > { %15620 = vmatpush1.bf16.msra.mxu1 %v27964_v20  ;;  %v28259_v20 = vld [vmem:[%s28857_s7 + $0x1064] ss:$8 sps:$4 sm:$0xff]  }
 0x8c8   : > { %14498 = vmatmul.mubr.bf16.gmra.mrb[184].mxu0 %v29776_v7  ;;  %15621 = vmatprep.subr.bf16.mxu1 %v27971_v39  ;;  %v29779_v39 = vld [vmem:[#allocation56_spill] sm:$0xff]  ;;  %v28268_v7 = vld [vmem:[%s28857_s7 + $0x1060] ss:$8 sps:$4 sm:$0xff]  }
 0x8c9   : > { %14507 = vmatprep.mubr.bf16.mxu0 %v29777_v56  ;;  %14567 = vmatpush1.bf16.msra.mxu0 %v28236_v9  ;;  %v28274_v56 = vld [vmem:[%s28857_s7 + $0x1074] ss:$8 sps:$4 sm:$0xff]  }
 0x8ca   : > { %15553 = vmatmul.mubr.bf16.gmra.mrb[184].mxu1 %v29778_v40  ;;  %14568 = vmatprep.subr.bf16.mxu0 %v28242_v16  ;;  %v29782_v40 = vld [vmem:[#allocation67_spill] sm:$0xff] }
 0x8cb   : > { %15622 = vmatpush1.bf16.msra.mxu1 %v27980_v5  ;;  %15562 = vmatprep.mubr.bf16.mxu1 %v29779_v39  ;;  %v29780_v5 = vld [vmem:[#allocation40_spill] sm:$0xff] }
 0x8cc   : > { %15623 = vmatprep.subr.bf16.mxu1 %v27986_v32  ;;  %v29781_v32 = vld [vmem:[#allocation45_spill] sm:$0xff]  ;;  %v28284_v39 = vld [vmem:[%s28857_s7 + $0x1070] ss:$8 sps:$4 sm:$0xff]  }
 0x8cd   : > { %14569 = vmatpush1.bf16.msra.mxu0 %v28252_v3 }
 0x8ce   : > { %14570 = vmatprep.subr.bf16.mxu0 %v28259_v20 }
 0x8cf   : > { %15624 = vmatpush1.bf16.msra.mxu1 %v27996_v58  ;;  %v28291_v58 = vld [vmem:[%s28857_s7 + $0x1084] ss:$8 sps:$4 sm:$0xff]  }
 0x8d0   : > { %14508 = vmatmul.mubr.bf16.gmra.mrb[188].mxu0 %v29780_v5  ;;  %15625 = vmatprep.subr.bf16.mxu1 %v28003_v29  ;;  %v29783_v29 = vld [vmem:[#allocation65_spill] sm:$0xff] }
 0x8d1   : > { %14517 = vmatprep.mubr.bf16.mxu0 %v29781_v32  ;;  %14571 = vmatpush1.bf16.msra.mxu0 %v28268_v7  ;;  %v28300_v5 = vld [vmem:[%s28857_s7 + $0x1080] ss:$8 sps:$4 sm:$0xff]   ;;  %v28306_v32 = vld [vmem:[%s28857_s7 + $0x1094] ss:$8 sps:$4 sm:$0xff]  }
 0x8d2   : > { %15563 = vmatmul.mubr.bf16.gmra.mrb[188].mxu1 %v29782_v40  ;;  %14572 = vmatprep.subr.bf16.mxu0 %v28274_v56  ;;  %v29786_v40 = vld [vmem:[#allocation73_spill] sm:$0xff] }
 0x8d3   : > { %15626 = vmatpush1.bf16.msra.mxu1 %v28012_v1  ;;  %15572 = vmatprep.mubr.bf16.mxu1 %v29783_v29  ;;  %v29784_v1 = vld [vmem:[#allocation46_spill] sm:$0xff]  ;;  %v28316_v29 = vld [vmem:[%s28857_s7 + $0x1090] ss:$8 sps:$4 sm:$0xff]  }
 0x8d4   : > { %15627 = vmatprep.subr.bf16.mxu1 %v28018_v37  ;;  %v29785_v37 = vld [vmem:[#allocation53_spill] sm:$0xff] }
 0x8d5   : > { %14573 = vmatpush1.bf16.msra.mxu0 %v28284_v39 }
 0x8d6   : > { %14574 = vmatprep.subr.bf16.mxu0 %v28291_v58 }
 0x8d7   : > { %15628 = vmatpush1.bf16.msra.mxu1 %v28028_v27  ;;  %v28323_v27 = vld [vmem:[%s28857_s7 + $0x10a4] ss:$8 sps:$4 sm:$0xff]  }
 0x8d8   : > { %14518 = vmatmul.mubr.bf16.gmra.mrb[192].mxu0 %v29784_v1  ;;  %15629 = vmatprep.subr.bf16.mxu1 %v28035_v41  ;;  %v29787_v41 = vld [vmem:[#allocation72_spill] sm:$0xff]  ;;  %v28332_v1 = vld [vmem:[%s28857_s7 + $0x10a0] ss:$8 sps:$4 sm:$0xff]  }
 0x8d9   : > { %14527 = vmatprep.mubr.bf16.mxu0 %v29785_v37  ;;  %14575 = vmatpush1.bf16.msra.mxu0 %v28300_v5  ;;  %v28338_v37 = vld [vmem:[%s28857_s7 + $0x10b4] ss:$8 sps:$4 sm:$0xff]  }
 0x8da   : > { %15573 = vmatmul.mubr.bf16.gmra.mrb[192].mxu1 %v29786_v40  ;;  %14576 = vmatprep.subr.bf16.mxu0 %v28306_v32  ;;  %v29790_v40 = vld [vmem:[#allocation79_spill] sm:$0xff] }
 0x8db   : > { %15630 = vmatpush1.bf16.msra.mxu1 %v28044_v15  ;;  %15582 = vmatprep.mubr.bf16.mxu1 %v29787_v41  ;;  %v29788_v15 = vld [vmem:[#allocation55_spill] sm:$0xff] }
 0x8dc   : > { %15631 = vmatprep.subr.bf16.mxu1 %v28050_v0  ;;  %v29789_v0 = vld [vmem:[#allocation59_spill] sm:$0xff] }
 0x8dd   : > { %14577 = vmatpush1.bf16.msra.mxu0 %v28316_v29  ;;  %v28348_v41 = vld [vmem:[%s28857_s7 + $0x10b0] ss:$8 sps:$4 sm:$0xff]  }
 0x8de   : > { %14578 = vmatprep.subr.bf16.mxu0 %v28323_v27 }
 0x8df   : > { %15632 = vmatpush1.bf16.msra.mxu1 %v28060_v42  ;;  %v28355_v42 = vld [vmem:[%s28857_s7 + $0x10c4] ss:$8 sps:$4 sm:$0xff]  }
 0x8e0   : > { %14528 = vmatmul.mubr.bf16.gmra.mrb[196].mxu0 %v29788_v15  ;;  %15633 = vmatprep.subr.bf16.mxu1 %v28067_v46  ;;  %v29791_v46 = vld [vmem:[#allocation78_spill] sm:$0xff] }
 0x8e1   : > { %14537 = vmatprep.mubr.bf16.mxu0 %v29789_v0  ;;  %14579 = vmatpush1.bf16.msra.mxu0 %v28332_v1  ;;  %v28364_v15 = vld [vmem:[%s28857_s7 + $0x10c0] ss:$8 sps:$4 sm:$0xff]   ;;  %v28370_v0 = vld [vmem:[%s28857_s7 + $0x10d4] ss:$8 sps:$4 sm:$0xff]  }
 0x8e2   : > { %15583 = vmatmul.mubr.bf16.gmra.mrb[196].mxu1 %v29790_v40  ;;  %14580 = vmatprep.subr.bf16.mxu0 %v28338_v37  ;;  %v29794_v40 = vld [vmem:[#allocation85_spill] sm:$0xff] }
 0x8e3   : > { %15634 = vmatpush1.bf16.msra.mxu1 %v28076_v38  ;;  %15592 = vmatprep.mubr.bf16.mxu1 %v29791_v46  ;;  %v29792_v38 = vld [vmem:[#allocation62_spill] sm:$0xff]  ;;  %v28380_v46 = vld [vmem:[%s28857_s7 + $0x10d0] ss:$8 sps:$4 sm:$0xff]  }
 0x8e4   : > { %15635 = vmatprep.subr.bf16.mxu1 %v28082_v54  ;;  %v29793_v54 = vld [vmem:[#allocation70_spill] sm:$0xff] }
 0x8e5   : > { %14581 = vmatpush1.bf16.msra.mxu0 %v28348_v41 }
 0x8e6   : > { %14582 = vmatprep.subr.bf16.mxu0 %v28355_v42 }
 0x8e7   : > { %15636 = vmatpush1.bf16.msra.mxu1 %v28092_v11  ;;  %v28387_v11 = vld [vmem:[%s28857_s7 + $0x10e4] ss:$8 sps:$4 sm:$0xff]  }
 0x8e8   : > { %14538 = vmatmul.mubr.bf16.gmra.mrb[200].mxu0 %v29792_v38  ;;  %15637 = vmatprep.subr.bf16.mxu1 %v28099_v48  ;;  %v29795_v48 = vld [vmem:[#allocation84_spill] sm:$0xff]  ;;  %v28396_v38 = vld [vmem:[%s28857_s7 + $0x10e0] ss:$8 sps:$4 sm:$0xff]  }
 0x8e9   : > { %14547 = vmatprep.mubr.bf16.mxu0 %v29793_v54  ;;  %14583 = vmatpush1.bf16.msra.mxu0 %v28364_v15  ;;  %v28402_v54 = vld [vmem:[%s28857_s7 + $0x10f4] ss:$8 sps:$4 sm:$0xff]  }
 0x8ea   : > { %15593 = vmatmul.mubr.bf16.gmra.mrb[200].mxu1 %v29794_v40  ;;  %14584 = vmatprep.subr.bf16.mxu0 %v28370_v0  ;;  %v29798_v40 = vld [vmem:[#allocation91_spill] sm:$0xff] }
 0x8eb   : > { %15638 = vmatpush1.bf16.msra.mxu1 %v28108_v33  ;;  %15602 = vmatprep.mubr.bf16.mxu1 %v29795_v48  ;;  %v29796_v33 = vld [vmem:[#allocation71_spill] sm:$0xff] }
 0x8ec   : > { %15639 = vmatprep.subr.bf16.mxu1 %v28114_v23  ;;  %v29797_v23 = vld [vmem:[#allocation9_spill] sm:$0xff]  ;;  %v28412_v48 = vld [vmem:[%s28857_s7 + $0x10f0] ss:$8 sps:$4 sm:$0xff]  }
 0x8ed   : > { %14585 = vmatpush1.bf16.msra.mxu0 %v28380_v46 }
 0x8ee   : > { %14586 = vmatprep.subr.bf16.mxu0 %v28387_v11 }
 0x8ef   : > { %15640 = vmatpush1.bf16.msra.mxu1 %v28124_v43  ;;  %v28419_v43 = vld [vmem:[%s28857_s7 + $0x1104] ss:$8 sps:$4 sm:$0xff]  }
 0x8f0   : > { %14548 = vmatmul.mubr.bf16.gmra.mrb[204].mxu0 %v29796_v33  ;;  %15641 = vmatprep.subr.bf16.mxu1 %v28131_v21  ;;  %v29799_v21 = vld [vmem:[#allocation76_spill] sm:$0xff]  ;;  %v28428_v33 = vld [vmem:[%s28857_s7 + $0x1100] ss:$8 sps:$4 sm:$0xff]  }
 0x8f1   : > { %14587 = vmatpush1.bf16.msra.mxu0 %v28396_v38  ;;  %14590 = vmatprep.mubr.bf16.mxu0 %v29797_v23  ;;  %v28434_v23 = vld [vmem:[%s28857_s7 + $0x1114] ss:$8 sps:$4 sm:$0xff]  }
 0x8f2   : > { %15603 = vmatmul.mubr.bf16.gmra.mrb[204].mxu1 %v29798_v40  ;;  %14588 = vmatprep.subr.bf16.mxu0 %v28402_v54 }
 0x8f3   : > { %15642 = vmatpush1.bf16.msra.mxu1 %v28140_v2  ;;  %15645 = vmatprep.mubr.bf16.mxu1 %v29799_v21  ;;  %v28451_v2 = vld [vmem:[%s28857_s7 + $0x1124] ss:$8 sps:$4 sm:$0xff]  }
 0x8f4   : > { %15643 = vmatprep.subr.bf16.mxu1 %v28146_v53  ;;  %v28444_v53 = vld [vmem:[%s28857_s7 + $0x1110] ss:$8 sps:$4 sm:$0xff]   ;;  %v29829_v21 = vld [vmem:[#allocation102_spill] sm:$0xff] }
 0x8f5   : > { %14589 = vmatpush1.bf16.msra.mxu0 %v28412_v48 }
 0x8f6   : > { %14671 = vmatprep.subr.bf16.mxu0 %v28419_v43 }
 0x8f7   : > { %15644 = vmatpush1.bf16.msra.mxu1 %v28156_v51  ;;  %v28476_v51 = vld [vmem:[%s28857_s7 + $0x1130] ss:$8 sps:$4 sm:$0xff]  }
 0x8f8   : > { %14591 = vmatmul.mubr.bf16.vlgmr.msra.gmra.mrb[176].mxu0 %v29718_v22  ;;  %15726 = vmatprep.subr.bf16.mxu1 %v28163_v63  ;;  %v28466_v22 = vld [vmem:[%s28857_s7 + $0x1134] ss:$8 sps:$4 sm:$0xff]   ;;  %v28483_v63 = vld [vmem:[%s28857_s7 + $0x1144] ss:$8 sps:$4 sm:$0xff]  }
 0x8f9   : > { %14600 = vmatprep.mubr.bf16.mxu0 %v29719_v47  ;;  %14672 = vmatpush1.bf16.msra.mxu0 %v28428_v33  ;;  %v28460_v47 = vld [vmem:[%s28857_s7 + $0x1120] ss:$8 sps:$4 sm:$0xff]  }
 0x8fa   : > { %15646 = vmatmul.mubr.bf16.vlgmr.msra.gmra.mrb[176].mxu1 %v29720_v26  ;;  %14673 = vmatprep.subr.bf16.mxu0 %v28434_v23  ;;  %v29800_v26 = vld [vmem:[#allocation21_spill] sm:$0xff] }
 0x8fb   : > { %15727 = vmatpush1.bf16.msra.mxu1 %v28172_v60  ;;  %15655 = vmatprep.mubr.bf16.mxu1 %v29721_v28  ;;  %v29801_v28 = vld [vmem:[#allocation29_spill] sm:$0xff] }
 0x8fc   : > { %15728 = vmatprep.subr.bf16.mxu1 %v28178_v8  ;;  %v29802_v8 = vld [vmem:[#allocation83_spill] sm:$0xff]  ;;  %v28492_v60 = vld [vmem:[%s28857_s7 + $0x1140] ss:$8 sps:$4 sm:$0xff]  }
 0x8fd   : > { %14674 = vmatpush1.bf16.msra.mxu0 %v28444_v53 }
 0x8fe   : > { %14675 = vmatprep.subr.bf16.mxu0 %v28451_v2 }
 0x8ff   : > { %15729 = vmatpush1.bf16.msra.mxu1 %v28188_v24  ;;  %v29803_v24 = vld [vmem:[#allocation88_spill] sm:$0xff] }
 0x900   : > { %14601 = vmatmul.mubr.bf16.gmra.mrb[180].mxu0 %v29800_v26  ;;  %15730 = vmatprep.subr.bf16.mxu1 %v28195_v35  ;;  %v28498_v35 = vld [vmem:[%s28857_s7 + $0x1154] ss:$8 sps:$4 sm:$0xff]  }
 0x901   : > { %14610 = vmatprep.mubr.bf16.mxu0 %v29801_v28  ;;  %14676 = vmatpush1.bf16.msra.mxu0 %v28460_v47  ;;  %v29837_v26 = vld [vmem:[#allocation67_spill] sm:$0xff]  ;;  %v29838_v28 = vld [vmem:[#allocation65_spill] sm:$0xff] }
 0x902   : > { %15656 = vmatmul.mubr.bf16.gmra.mrb[180].mxu1 %v29802_v8  ;;  %14677 = vmatprep.subr.bf16.mxu0 %v28466_v22  ;;  %v29840_v8 = vld [vmem:[#allocation72_spill] sm:$0xff] }
 0x903   : > { %15731 = vmatpush1.bf16.msra.mxu1 %v28204_v13  ;;  %15665 = vmatprep.mubr.bf16.mxu1 %v29803_v24  ;;  %v28508_v13 = vld [vmem:[%s28857_s7 + $0x1150] ss:$8 sps:$4 sm:$0xff]   ;;  %v29842_v24 = vld [vmem:[#allocation78_spill] sm:$0xff] }
 0x904   : > { %15732 = vmatprep.subr.bf16.mxu1 %v28210_v44  ;;  %v28636_v44 = vld [vmem:[%s28857_s7 + $0x11d0] ss:$8 sps:$4 sm:$0xff]  }
 0x905   : > { %14678 = vmatpush1.bf16.msra.mxu0 %v28476_v51 }
 0x906   : > { %14679 = vmatprep.subr.bf16.mxu0 %v28483_v63 }
 0x907   : > { %15733 = vmatpush1.bf16.msra.mxu1 %v28220_v57  ;;  %v28515_v57 = vld [vmem:[%s28857_s7 + $0x1164] ss:$8 sps:$4 sm:$0xff]  }
 0x908   : > { %14611 = vmatmul.mubr.bf16.gmra.mrb[184].mxu0 %v29726_v50  ;;  %15734 = vmatprep.subr.bf16.mxu1 %v28227_v17  ;;  %v28540_v50 = vld [vmem:[%s28857_s7 + $0x1170] ss:$8 sps:$4 sm:$0xff]  }
 0x909   : > { %14620 = vmatprep.mubr.bf16.mxu0 %v29727_v18  ;;  %14680 = vmatpush1.bf16.msra.mxu0 %v28492_v60  ;;  %v28524_v18 = vld [vmem:[%s28857_s7 + $0x1160] ss:$8 sps:$4 sm:$0xff]   ;;  %v29805_v17 = vld [vmem:[#allocation20_spill] sm:$0xff] }
 0x90a   : > { %15666 = vmatmul.mubr.bf16.gmra.mrb[184].mxu1 %v29728_v55  ;;  %14681 = vmatprep.subr.bf16.mxu0 %v28498_v35  ;;  %v28530_v55 = vld [vmem:[%s28857_s7 + $0x1174] ss:$8 sps:$4 sm:$0xff]  }
 0x90b   : > { %15735 = vmatpush1.bf16.msra.mxu1 %v28236_v9  ;;  %15675 = vmatprep.mubr.bf16.mxu1 %v29729_v14  ;;  %v28547_v14 = vld [vmem:[%s28857_s7 + $0x1184] ss:$8 sps:$4 sm:$0xff]   ;;  %v28660_v9 = vld [vmem:[%s28857_s7 + $0x11f4] ss:$8 sps:$4 sm:$0xff]  }
 0x90c   : > { %15736 = vmatprep.subr.bf16.mxu1 %v28242_v16  ;;  %v29806_v16 = vld [vmem:[#allocation61_spill] sm:$0xff] }
 0x90d   : > { %14682 = vmatpush1.bf16.msra.mxu0 %v28508_v13 }
 0x90e   : > { %14683 = vmatprep.subr.bf16.mxu0 %v28515_v57 }
 0x90f   : > { %15737 = vmatpush1.bf16.msra.mxu1 %v28252_v3  ;;  %v28643_v3 = vld [vmem:[%s28857_s7 + $0x11e4] ss:$8 sps:$4 sm:$0xff]  }
 0x910   : > { %14621 = vmatmul.mubr.bf16.gmra.mrb[188].mxu0 %v29656_v25  ;;  %15738 = vmatprep.subr.bf16.mxu1 %v28259_v20  ;;  %v28556_v25 = vld [vmem:[%s28857_s7 + $0x1180] ss:$8 sps:$4 sm:$0xff]  }
 0x911   : > { %14630 = vmatprep.mubr.bf16.mxu0 %v29732_v34  ;;  %14684 = vmatpush1.bf16.msra.mxu0 %v28524_v18  ;;  %v28562_v34 = vld [vmem:[%s28857_s7 + $0x1194] ss:$8 sps:$4 sm:$0xff]   ;;  %v29807_v20 = vld [vmem:[#allocation58_spill] sm:$0xff] }
 0x912   : > { %15676 = vmatmul.mubr.bf16.gmra.mrb[188].mxu1 %v29733_v36  ;;  %14685 = vmatprep.subr.bf16.mxu0 %v28530_v55  ;;  %v28572_v36 = vld [vmem:[%s28857_s7 + $0x1190] ss:$8 sps:$4 sm:$0xff]  }
 0x913   : > { %15739 = vmatpush1.bf16.msra.mxu1 %v28268_v7  ;;  %15685 = vmatprep.mubr.bf16.mxu1 %v29734_v62  ;;  %v28579_v62 = vld [vmem:[%s28857_s7 + $0x11a4] ss:$8 sps:$4 sm:$0xff]  }
 0x914   : > { %15740 = vmatprep.subr.bf16.mxu1 %v28274_v56  ;;  %v29808_v7 = vld [vmem:[#allocation69_spill] sm:$0xff]  ;;  %v29809_v56 = vld [vmem:[#allocation60_spill] sm:$0xff] }
 0x915   : > { %14686 = vmatpush1.bf16.msra.mxu0 %v28540_v50 }
 0x916   : > { %14687 = vmatprep.subr.bf16.mxu0 %v28547_v14 }
 0x917   : > { %15741 = vmatpush1.bf16.msra.mxu1 %v28284_v39  ;;  %v28670_v39 = vld [vmem:[%s28857_s7 + $0x11f0] ss:$8 sps:$4 sm:$0xff]  }
 0x918   : > { %14631 = vmatmul.mubr.bf16.gmra.mrb[192].mxu0 %v29660_v45  ;;  %15742 = vmatprep.subr.bf16.mxu1 %v28291_v58  ;;  %v28588_v45 = vld [vmem:[%s28857_s7 + $0x11a0] ss:$8 sps:$4 sm:$0xff]   ;;  %v29810_v58 = vld [vmem:[#allocation19_spill] sm:$0xff] }
 0x919   : > { %14640 = vmatprep.mubr.bf16.mxu0 %v29735_v10  ;;  %14688 = vmatpush1.bf16.msra.mxu0 %v28556_v25  ;;  %v28594_v10 = vld [vmem:[%s28857_s7 + $0x11b4] ss:$8 sps:$4 sm:$0xff]  }
 0x91a   : > { %15686 = vmatmul.mubr.bf16.gmra.mrb[192].mxu1 %v29736_v61  ;;  %14689 = vmatprep.subr.bf16.mxu0 %v28562_v34  ;;  %v28611_v61 = vld [vmem:[%s28857_s7 + $0x11c4] ss:$8 sps:$4 sm:$0xff]  }
 0x91b   : > { %15743 = vmatpush1.bf16.msra.mxu1 %v28300_v5  ;;  %15695 = vmatprep.mubr.bf16.mxu1 %v29662_v52  ;;  %v28604_v52 = vld [vmem:[%s28857_s7 + $0x11b0] ss:$8 sps:$4 sm:$0xff]  }
 0x91c   : > { %15744 = vmatprep.subr.bf16.mxu1 %v28306_v32  ;;  %v29812_v5 = vld [vmem:[#allocation75_spill] sm:$0xff]  ;;  %v29813_v32 = vld [vmem:[#allocation64_spill] sm:$0xff] }
 0x91d   : > { %14690 = vmatpush1.bf16.msra.mxu0 %v28572_v36 }
 0x91e   : > { %14691 = vmatprep.subr.bf16.mxu0 %v28579_v62 }
 0x91f   : > { %15745 = vmatpush1.bf16.msra.mxu1 %v28316_v29  ;;  %v29811_v29 = vld [vmem:[#allocation68_spill] sm:$0xff] }
 0x920   : > { %14641 = vmatmul.mubr.bf16.gmra.mrb[196].mxu0 %v29737_v49  ;;  %15746 = vmatprep.subr.bf16.mxu1 %v28323_v27  ;;  %v29804_v49 = vld [vmem:[#allocation54_spill] sm:$0xff]  ;;  %v29814_v27 = vld [vmem:[#allocation11_spill] sm:$0xff] }
 0x921   : > { %14650 = vmatprep.mubr.bf16.mxu0 %v29739_v30  ;;  %14692 = vmatpush1.bf16.msra.mxu0 %v28588_v45  ;;  %v28620_v30 = vld [vmem:[%s28857_s7 + $0x11c0] ss:$8 sps:$4 sm:$0xff]  }
 0x922   : > { %15696 = vmatmul.mubr.bf16.gmra.mrb[196].mxu1 %v29738_v12  ;;  %14693 = vmatprep.subr.bf16.mxu0 %v28594_v10  ;;  %v28626_v12 = vld [vmem:[%s28857_s7 + $0x11d4] ss:$8 sps:$4 sm:$0xff]  }
 0x923   : > { %15747 = vmatpush1.bf16.msra.mxu1 %v28332_v1  ;;  %15705 = vmatprep.mubr.bf16.mxu1 %v29804_v49  ;;  %v29816_v1 = vld [vmem:[#allocation81_spill] sm:$0xff] }
 0x924   : > { %15748 = vmatprep.subr.bf16.mxu1 %v28338_v37  ;;  %v29817_v37 = vld [vmem:[#allocation10_spill] sm:$0xff] }
 0x925   : > { %14694 = vmatpush1.bf16.msra.mxu0 %v28604_v52 }
 0x926   : > { %14695 = vmatprep.subr.bf16.mxu0 %v28611_v61 }
 0x927   : > { %15749 = vmatpush1.bf16.msra.mxu1 %v28348_v41  ;;  %v29815_v41 = vld [vmem:[#allocation74_spill] sm:$0xff] }
 0x928   : > { %14651 = vmatmul.mubr.bf16.gmra.mrb[200].mxu0 %v29741_v31  ;;  %15750 = vmatprep.subr.bf16.mxu1 %v28355_v42  ;;  %v28646_v31 = vld [vmem:[#allocation2] sm:$0xff]  ;;  %v29818_v42 = vld [vmem:[#allocation80_spill] sm:$0xff] }
 0x929   : > { %14660 = vmatprep.mubr.bf16.mxu0 %v29742_v6  ;;  %14696 = vmatpush1.bf16.msra.mxu0 %v28620_v30  ;;  %v28654_v6 = vld [vmem:[%s28857_s7 + $0x11e0] ss:$8 sps:$4 sm:$0xff]  }
 0x92a   : > { %15706 = vmatmul.mubr.bf16.gmra.mrb[200].mxu1 %v29805_v17  ;;  %14697 = vmatprep.subr.bf16.mxu0 %v28626_v12 }
 0x92b   : > { %15751 = vmatpush1.bf16.msra.mxu1 %v28364_v15  ;;  %15715 = vmatprep.mubr.bf16.mxu1 %v28646_v31  ;;  %v29820_v15 = vld [vmem:[#allocation28_spill] sm:$0xff] }
 0x92c   : > { %15752 = vmatprep.subr.bf16.mxu1 %v28370_v0  ;;  %v29821_v0 = vld [vmem:[#allocation26_spill] sm:$0xff] }
 0x92d   : > { %14698 = vmatpush1.bf16.msra.mxu0 %v28636_v44 }
 0x92e   : > { %14699 = vmatprep.subr.bf16.mxu0 %v28643_v3 }
 0x92f   : > { %15753 = vmatpush1.bf16.msra.mxu1 %v28380_v46  ;;  %v29819_v46 = vld [vmem:[#allocation87_spill] sm:$0xff] }
 0x930   : > { %14661 = vmatmul.mubr.bf16.gmra.mrb[204].mxu0 %v29806_v16  ;;  %15754 = vmatprep.subr.bf16.mxu1 %v28387_v11  ;;  %v29823_v11 = vld [vmem:[#allocation93_spill] sm:$0xff] }
 0x931   : > { %14700 = vmatpush1.bf16.msra.mxu0 %v28654_v6  ;;  %14703 = vmatprep.mubr.bf16.mxu0 %v29807_v20 }
 0x932   : > { %15716 = vmatmul.mubr.bf16.gmra.mrb[204].mxu1 %v28646_v31  ;;  %14701 = vmatprep.subr.bf16.mxu0 %v28660_v9 }
 0x933   : > { %15755 = vmatpush1.bf16.msra.mxu1 %v28396_v38  ;;  %15758 = vmatprep.mubr.bf16.mxu1 %v29808_v7  ;;  %v29825_v38 = vld [vmem:[#allocation92_spill] sm:$0xff] }
 0x934   : > { %15756 = vmatprep.subr.bf16.mxu1 %v28402_v54  ;;  %v29826_v54 = vld [vmem:[#allocation36_spill] sm:$0xff] }
 0x935   : > { %14702 = vmatpush1.bf16.msra.mxu0 %v28670_v39 }
 0x937   : > { %15757 = vmatpush1.bf16.msra.mxu1 %v28412_v48  ;;  %v29824_v48 = vld [vmem:[#allocation31_spill] sm:$0xff] }
 0x938   : > { %14704 = vmatmul.mubr.bf16.vlgmr.msra.gmra.mrb[176].mxu0 %v29809_v56  ;;  %15839 = vmatprep.subr.bf16.mxu1 %v28419_v43  ;;  %v29827_v43 = vld [vmem:[#allocation35_spill] sm:$0xff] }
 0x939   : > { %14713 = vmatprep.mubr.bf16.mxu0 %v29810_v58 }
 0x93a   : > { %15759 = vmatmul.mubr.bf16.vlgmr.msra.gmra.mrb[176].mxu1 %v29811_v29 }
 0x93b   : > { %15840 = vmatpush1.bf16.msra.mxu1 %v28428_v33  ;;  %15768 = vmatprep.mubr.bf16.mxu1 %v29812_v5  ;;  %v29831_v33 = vld [vmem:[#allocation41_spill] sm:$0xff] }
 0x93c   : > { %15841 = vmatprep.subr.bf16.mxu1 %v28434_v23  ;;  %v29832_v23 = vld [vmem:[#allocation101_spill] sm:$0xff] }
 0x93f   : > { %15842 = vmatpush1.bf16.msra.mxu1 %v28444_v53  ;;  %v29833_v53 = vld [vmem:[#allocation49_spill] sm:$0xff] }
 0x940   : > { %14714 = vmatmul.mubr.bf16.gmra.mrb[180].mxu0 %v29813_v32  ;;  %15843 = vmatprep.subr.bf16.mxu1 %v28451_v2  ;;  %v29834_v2 = vld [vmem:[#allocation48_spill] sm:$0xff] }
 0x941   : > { %14723 = vmatprep.mubr.bf16.mxu0 %v29814_v27 }
 0x942   : > { %15769 = vmatmul.mubr.bf16.gmra.mrb[180].mxu1 %v29815_v41 }
 0x943   : > { %15844 = vmatpush1.bf16.msra.mxu1 %v28460_v47  ;;  %15778 = vmatprep.mubr.bf16.mxu1 %v29816_v1  ;;  %v29835_v47 = vld [vmem:[#allocation57_spill] sm:$0xff] }
 0x944   : > { %15845 = vmatprep.subr.bf16.mxu1 %v28466_v22  ;;  %v29836_v22 = vld [vmem:[#allocation56_spill] sm:$0xff] }
 0x947   : > { %15846 = vmatpush1.bf16.msra.mxu1 %v28476_v51  ;;  %v29839_v51 = vld [vmem:[#allocation73_spill] sm:$0xff] }
 0x948   : > { %14724 = vmatmul.mubr.bf16.gmra.mrb[184].mxu0 %v29755_v4  ;;  %15847 = vmatprep.subr.bf16.mxu1 %v28483_v63  ;;  %v29822_v4 = vld [vmem:[#allocation86_spill] sm:$0xff]  ;;  %v29841_v63 = vld [vmem:[#allocation79_spill] sm:$0xff] }
 0x949   : > { %14733 = vmatprep.mubr.bf16.mxu0 %v29817_v37 }
 0x94a   : > { %15779 = vmatmul.mubr.bf16.gmra.mrb[184].mxu1 %v29818_v42 }
 0x94b   : > { %15848 = vmatpush1.bf16.msra.mxu1 %v28492_v60  ;;  %15788 = vmatprep.mubr.bf16.mxu1 %v29819_v46  ;;  %v29843_v60 = vld [vmem:[#allocation85_spill] sm:$0xff] }
 0x94c   : > { %15849 = vmatprep.subr.bf16.mxu1 %v28498_v35  ;;  %v29844_v35 = vld [vmem:[#allocation84_spill] sm:$0xff] }
 0x94f   : > { %15850 = vmatpush1.bf16.msra.mxu1 %v28508_v13  ;;  %v29845_v13 = vld [vmem:[#allocation90_spill] sm:$0xff] }
 0x950   : > { %14734 = vmatmul.mubr.bf16.gmra.mrb[188].mxu0 %v29820_v15  ;;  %15851 = vmatprep.subr.bf16.mxu1 %v28515_v57  ;;  %v29846_v57 = vld [vmem:[#allocation100_spill] sm:$0xff] }
 0x951   : > { %14743 = vmatprep.mubr.bf16.mxu0 %v29821_v0 }
 0x952   : > { %15789 = vmatmul.mubr.bf16.gmra.mrb[188].mxu1 %v29822_v4 }
 0x953   : > { %15852 = vmatpush1.bf16.msra.mxu1 %v28524_v18  ;;  %15798 = vmatprep.mubr.bf16.mxu1 %v29823_v11  ;;  %v17558_v18 = vld [vmem:[%s28858_s8 + $0x2] sm:$0x3] }
 0x954   : > { %15853 = vmatprep.subr.bf16.mxu1 %v28530_v55  ;;  %v29847_v55 = vld [vmem:[#allocation14_spill] sm:$0xff] }
 0x957   : > { %15854 = vmatpush1.bf16.msra.mxu1 %v28540_v50  ;;  %v28761_v50 = vrot.slane %v17558_v18, %v29847_v55 }
 0x958   : > { %14744 = vmatmul.mubr.bf16.gmra.mrb[192].mxu0 %v29762_v59  ;;  %15855 = vmatprep.subr.bf16.mxu1 %v28547_v14  ;;  %v29828_v59 = vld [vmem:[#allocation96_spill] sm:$0xff] }
 0x959   : > { %14753 = vmatprep.mubr.bf16.mxu0 %v29824_v48  ;;  %v29848_v14 = vld [vmem:[#allocation16_spill] sm:$0xff] }
 0x95a   : > { %15799 = vmatmul.mubr.bf16.gmra.mrb[192].mxu1 %v29825_v38 }
 0x95b   : > { %15856 = vmatpush1.bf16.msra.mxu1 %v28556_v25  ;;  %15808 = vmatprep.mubr.bf16.mxu1 %v29765_v19  ;;  %v29830_v19 = vld [vmem:[#allocation42_spill] sm:$0xff]  ;;  %v28764_v25 = vrot.slane %v17558_v18, %v29848_v14 }
 0x95c   : > { %15857 = vmatprep.subr.bf16.mxu1 %v28562_v34 }
 0x95f   : > { %15858 = vmatpush1.bf16.msra.mxu1 %v28572_v36 }
 0x960   : > { %14754 = vmatmul.mubr.bf16.gmra.mrb[196].mxu0 %v29826_v54  ;;  %15859 = vmatprep.subr.bf16.mxu1 %v28579_v62 }
 0x961   : > { %14763 = vmatprep.mubr.bf16.mxu0 %v29827_v43 }
 0x962   : > { %15809 = vmatmul.mubr.bf16.gmra.mrb[196].mxu1 %v29828_v59 }
 0x963   : > { %15860 = vmatpush1.bf16.msra.mxu1 %v28588_v45  ;;  %15818 = vmatprep.mubr.bf16.mxu1 %v29829_v21 }
 0x964   : > { %15861 = vmatprep.subr.bf16.mxu1 %v28594_v10 }
 0x967   : > { %15862 = vmatpush1.bf16.msra.mxu1 %v28604_v52 }
 0x968   : > { %14764 = vmatmul.mubr.bf16.gmra.mrb[200].mxu0 %v29830_v19  ;;  %15863 = vmatprep.subr.bf16.mxu1 %v28611_v61 }
 0x969   : > { %14773 = vmatprep.mubr.bf16.mxu0 %v29831_v33 }
 0x96a   : > { %15819 = vmatmul.mubr.bf16.gmra.mrb[200].mxu1 %v29832_v23 }
 0x96b   : > { %15864 = vmatpush1.bf16.msra.mxu1 %v28620_v30  ;;  %15828 = vmatprep.mubr.bf16.mxu1 %v28646_v31 }
 0x96c   : > { %15865 = vmatprep.subr.bf16.mxu1 %v28626_v12 }
 0x96f   : > { %15866 = vmatpush1.bf16.msra.mxu1 %v28636_v44 }
 0x970   : > { %14774 = vmatmul.mubr.bf16.gmra.mrb[204].mxu0 %v29833_v53  ;;  %15867 = vmatprep.subr.bf16.mxu1 %v28643_v3 }
 0x972   : > { %15829 = vmatmul.mubr.bf16.gmra.mrb[204].mxu1 %v28646_v31 }
 0x973   : > { %15868 = vmatpush1.bf16.msra.mxu1 %v28654_v6  ;;  %15871 = vmatprep.mubr.bf16.mxu1 %v29834_v2 }
 0x974   : > { %15869 = vmatprep.subr.bf16.mxu1 %v28660_v9 }
 0x977   : > { %15870 = vmatpush1.bf16.msra.mxu1 %v28670_v39 }
 0x97a   : > { %15872 = vmatmul.mubr.bf16.vlgmr.msra.gmra.mrb[176].mxu1 %v29835_v47 }
 0x97b   : > { %15881 = vmatprep.mubr.bf16.mxu1 %v29836_v22 }
 0x982   : > { %15882 = vmatmul.mubr.bf16.gmra.mrb[180].mxu1 %v29837_v26 }
 0x983   : > { %15891 = vmatprep.mubr.bf16.mxu1 %v29838_v28 }
 0x98a   : > { %15892 = vmatmul.mubr.bf16.gmra.mrb[184].mxu1 %v29839_v51 }
 0x98b   : > { %15901 = vmatprep.mubr.bf16.mxu1 %v29840_v8 }
 0x992   : > { %15902 = vmatmul.mubr.bf16.gmra.mrb[188].mxu1 %v29841_v63 }
 0x993   : > { %15911 = vmatprep.mubr.bf16.mxu1 %v29842_v24 }
 0x99a   : > { %15912 = vmatmul.mubr.bf16.gmra.mrb[192].mxu1 %v29843_v60 }
 0x99b   : > { %15921 = vmatprep.mubr.bf16.mxu1 %v29844_v35 }
 0x9a2   : > { %15922 = vmatmul.mubr.bf16.gmra.mrb[196].mxu1 %v29798_v40 }
 0x9a3   : > { %15931 = vmatprep.mubr.bf16.mxu1 %v29845_v13 }
 0x9aa   : > { %15932 = vmatmul.mubr.bf16.gmra.mrb[200].mxu1 %v29846_v57 }
 0x9ab   : > { %15941 = vmatprep.mubr.bf16.mxu1 %v28646_v31 }
 0x9b2   : > { %15942 = vmatmul.mubr.bf16.gmra.mrb[204].mxu1 %v28646_v31 }
 0xa0b   : > { %v14705_v34 = vpop.f32.mrb[176].mxu0 }
 0xa0c   : > { %v14827_v40 = vadd.f32 %v28761_v50, %v14705_v34  ;;  %v14707_v36 = vpop.f32.mrb[177].mxu0 }
 0xa0d   : > { %v14828_v62 = vadd.f32 %v28764_v25, %v14707_v36  ;;  %v14709_v45 = vpop.f32.mrb[178].mxu0 }
 0xa0e   : > { %v14829_v10 = vadd.f32 %v28761_v50, %v14709_v45  ;;  %v14711_v52 = vpop.f32.mrb[179].mxu0  ;;  %v14859_v49 = vmax.f32 %v14827_v40, 0.0 }
 0xa0f   : > { %v14830_v61 = vadd.f32 %v28764_v25, %v14711_v52  ;;  %v14860_v12 = vmax.f32 %v14828_v62, 0.0 }
 0xa10   : > { %v14861_v30 = vmax.f32 %v14829_v10, 0.0 }
 0xa11   : > { %v14862_v44 = vmax.f32 %v14830_v61, 0.0 }
 0xa12   : > { %v14891_v17 = vadd.f32 %v14861_v30, %v14859_v49 }
 0xa13   : > { %v14912_v3 = vadd.f32 %v14862_v44, %v14860_v12  ;;  %v14715_v31 = vpop.f32.mrb[180].mxu0 }
 0xa14   : > { %v14831_v6 = vadd.f32 %v28761_v50, %v14715_v31  ;;  %v14717_v9 = vpop.f32.mrb[181].mxu0 }
 0xa15   : > { %v14832_v16 = vadd.f32 %v28764_v25, %v14717_v9  ;;  %v14719_v20 = vpop.f32.mrb[182].mxu0 }
 0xa16   : > { %v14863_v39 = vmax.f32 %v14831_v6, 0.0  ;;  %v14833_v7 = vadd.f32 %v28761_v50, %v14719_v20  ;;  %v14721_v56 = vpop.f32.mrb[183].mxu0 }
 0xa17   : > { %v14864_v58 = vmax.f32 %v14832_v16, 0.0  ;;  %v14834_v29 = vadd.f32 %v28764_v25, %v14721_v56 }
 0xa18   : > { %v14892_v5 = vadd.f32 %v14891_v17, %v14863_v39  ;;  %v14865_v32 = vmax.f32 %v14833_v7, 0.0 }
 0xa19   : > { %v14913_v27 = vadd.f32 %v14912_v3, %v14864_v58  ;;  %v14866_v41 = vmax.f32 %v14834_v29, 0.0 }
 0xa1a   : > { %v14893_v1 = vadd.f32 %v14892_v5, %v14865_v32 }
 0xa1b   : > { %v14914_v37 = vadd.f32 %v14913_v27, %v14866_v41  ;;  %v14725_v42 = vpop.f32.mrb[184].mxu0 }
 0xa1c   : > { %v14835_v46 = vadd.f32 %v28761_v50, %v14725_v42  ;;  %v14727_v15 = vpop.f32.mrb[185].mxu0 }
 0xa1d   : > { %v14836_v0 = vadd.f32 %v28764_v25, %v14727_v15  ;;  %v14729_v4 = vpop.f32.mrb[186].mxu0 }
 0xa1e   : > { %v14867_v11 = vmax.f32 %v14835_v46, 0.0  ;;  %v14837_v48 = vadd.f32 %v28761_v50, %v14729_v4  ;;  %v14731_v38 = vpop.f32.mrb[187].mxu0 }
 0xa1f   : > { %v14868_v54 = vmax.f32 %v14836_v0, 0.0  ;;  %v14838_v43 = vadd.f32 %v28764_v25, %v14731_v38 }
 0xa20   : > { %v14894_v59 = vadd.f32 %v14893_v1, %v14867_v11  ;;  %v14869_v21 = vmax.f32 %v14837_v48, 0.0 }
 0xa21   : > { %v14915_v19 = vadd.f32 %v14914_v37, %v14868_v54  ;;  %v14870_v33 = vmax.f32 %v14838_v43, 0.0 }
 0xa22   : > { %v14895_v23 = vadd.f32 %v14894_v59, %v14869_v21 }
 0xa23   : > { %v14916_v53 = vadd.f32 %v14915_v19, %v14870_v33  ;;  %v14735_v2 = vpop.f32.mrb[188].mxu0 }
 0xa24   : > { %v14839_v47 = vadd.f32 %v28761_v50, %v14735_v2  ;;  %v14737_v22 = vpop.f32.mrb[189].mxu0 }
 0xa25   : > { %v14840_v26 = vadd.f32 %v28764_v25, %v14737_v22  ;;  %v14739_v28 = vpop.f32.mrb[190].mxu0 }
 0xa26   : > { %v14871_v51 = vmax.f32 %v14839_v47, 0.0  ;;  %v14841_v8 = vadd.f32 %v28761_v50, %v14739_v28  ;;  %v14741_v63 = vpop.f32.mrb[191].mxu0 }
 0xa27   : > { %v14872_v24 = vmax.f32 %v14840_v26, 0.0  ;;  %v14842_v60 = vadd.f32 %v28764_v25, %v14741_v63 }
 0xa28   : > { %v14896_v35 = vadd.f32 %v14895_v23, %v14871_v51  ;;  %v14873_v13 = vmax.f32 %v14841_v8, 0.0 }
 0xa29   : > { %v14917_v57 = vadd.f32 %v14916_v53, %v14872_v24  ;;  %v14874_v18 = vmax.f32 %v14842_v60, 0.0 }
 0xa2a   : > { %v14897_v55 = vadd.f32 %v14896_v35, %v14873_v13 }
 0xa2b   : > { %v14918_v14 = vadd.f32 %v14917_v57, %v14874_v18  ;;  %v14745_v34 = vpop.f32.mrb[192].mxu0 }
 0xa2c   : > { %v14843_v40 = vadd.f32 %v28761_v50, %v14745_v34  ;;  %v14747_v36 = vpop.f32.mrb[193].mxu0 }
 0xa2d   : > { %v14844_v62 = vadd.f32 %v28764_v25, %v14747_v36  ;;  %v14749_v45 = vpop.f32.mrb[194].mxu0 }
 0xa2e   : > { %v14875_v10 = vmax.f32 %v14843_v40, 0.0  ;;  %v14845_v52 = vadd.f32 %v28761_v50, %v14749_v45  ;;  %v14751_v61 = vpop.f32.mrb[195].mxu0 }
 0xa2f   : > { %v14876_v49 = vmax.f32 %v14844_v62, 0.0  ;;  %v14846_v30 = vadd.f32 %v28764_v25, %v14751_v61 }
 0xa30   : > { %v14898_v12 = vadd.f32 %v14897_v55, %v14875_v10  ;;  %v14877_v44 = vmax.f32 %v14845_v52, 0.0 }
 0xa31   : > { %v14919_v17 = vadd.f32 %v14918_v14, %v14876_v49  ;;  %v14878_v3 = vmax.f32 %v14846_v30, 0.0 }
 0xa32   : > { %v14899_v31 = vadd.f32 %v14898_v12, %v14877_v44 }
 0xa33   : > { %v14920_v6 = vadd.f32 %v14919_v17, %v14878_v3  ;;  %v14755_v9 = vpop.f32.mrb[196].mxu0 }
 0xa34   : > { %v14847_v16 = vadd.f32 %v28761_v50, %v14755_v9  ;;  %v14757_v20 = vpop.f32.mrb[197].mxu0 }
 0xa35   : > { %v14848_v39 = vadd.f32 %v28764_v25, %v14757_v20  ;;  %v14759_v7 = vpop.f32.mrb[198].mxu0 }
 0xa36   : > { %v14879_v56 = vmax.f32 %v14847_v16, 0.0  ;;  %v14849_v58 = vadd.f32 %v28761_v50, %v14759_v7  ;;  %v14761_v29 = vpop.f32.mrb[199].mxu0 }
 0xa37   : > { %v14880_v5 = vmax.f32 %v14848_v39, 0.0  ;;  %v14850_v32 = vadd.f32 %v28764_v25, %v14761_v29 }
 0xa38   : > { %v14900_v27 = vadd.f32 %v14899_v31, %v14879_v56  ;;  %v14881_v41 = vmax.f32 %v14849_v58, 0.0 }
 0xa39   : > { %v14921_v1 = vadd.f32 %v14920_v6, %v14880_v5  ;;  %v14882_v37 = vmax.f32 %v14850_v32, 0.0 }
 0xa3a   : > { %v14901_v42 = vadd.f32 %v14900_v27, %v14881_v41 }
 0xa3b   : > { %v14922_v46 = vadd.f32 %v14921_v1, %v14882_v37  ;;  %v14765_v15 = vpop.f32.mrb[200].mxu0 }
 0xa3c   : > { %v14851_v0 = vadd.f32 %v28761_v50, %v14765_v15  ;;  %v14767_v4 = vpop.f32.mrb[201].mxu0 }
 0xa3d   : > { %v14852_v11 = vadd.f32 %v28764_v25, %v14767_v4  ;;  %v14769_v48 = vpop.f32.mrb[202].mxu0 }
 0xa3e   : > { %v14883_v38 = vmax.f32 %v14851_v0, 0.0  ;;  %v14853_v54 = vadd.f32 %v28761_v50, %v14769_v48  ;;  %v14771_v43 = vpop.f32.mrb[203].mxu0 }
 0xa3f   : > { %v14884_v59 = vmax.f32 %v14852_v11, 0.0  ;;  %v14854_v21 = vadd.f32 %v28764_v25, %v14771_v43 }
 0xa40   : > { %v14902_v19 = vadd.f32 %v14901_v42, %v14883_v38  ;;  %v14885_v33 = vmax.f32 %v14853_v54, 0.0 }
 0xa41   : > { %v14923_v23 = vadd.f32 %v14922_v46, %v14884_v59  ;;  %v14886_v53 = vmax.f32 %v14854_v21, 0.0 }
 0xa42   : > { %v14903_v2 = vadd.f32 %v14902_v19, %v14885_v33 }
 0xa43   : > { %v14924_v47 = vadd.f32 %v14923_v23, %v14886_v53  ;;  %v14775_v22 = vpop.f32.mrb[204].mxu0 }
 0xa44   : > { %v14855_v26 = vadd.f32 %v28761_v50, %v14775_v22  ;;  %v14777_v28 = vpop.f32.mrb[205].mxu0 }
 0xa45   : > { %v14856_v51 = vadd.f32 %v28764_v25, %v14777_v28  ;;  %v14779_v8 = vpop.f32.mrb[206].mxu0 }
 0xa46   : > { %v14887_v63 = vmax.f32 %v14855_v26, 0.0  ;;  %v14857_v24 = vadd.f32 %v28761_v50, %v14779_v8  ;;  %v14781_v60 = vpop.f32.mrb[207].mxu0 }
 0xa47   : > { %v14888_v35 = vmax.f32 %v14856_v51, 0.0  ;;  %v14858_v13 = vadd.f32 %v28764_v25, %v14781_v60 }
 0xa48   : > { %v14904_v57 = vadd.f32 %v14903_v2, %v14887_v63  ;;  %v14889_v18 = vmax.f32 %v14857_v24, 0.0 }
 0xa49   : > { %v14925_v55 = vadd.f32 %v14924_v47, %v14888_v35  ;;  %v14890_v14 = vmax.f32 %v14858_v13, 0.0 }
 0xa4a   : > { %v28798_v34 = vadd.f32 %v14904_v57, %v14889_v18 }
 0xa4b   : > { %v28800_v40 = vadd.f32 %v14925_v55, %v14890_v14 }
 0xa4d   : > { %v15873_v36 = vpop.f32.mrb[176].mxu1 }
 0xa4e   : > { %v15984_v62 = vadd.f32 %v15873_v36, %v28761_v50  ;;  %v15875_v45 = vpop.f32.mrb[177].mxu1 }
 0xa4f   : > { %v15985_v10 = vadd.f32 %v15875_v45, %v28764_v25  ;;  %v15877_v52 = vpop.f32.mrb[178].mxu1 }
 0xa50   : > { %v15986_v61 = vadd.f32 %v15877_v52, %v28761_v50  ;;  %v15879_v49 = vpop.f32.mrb[179].mxu1  ;;  %v16016_v12 = vmax.f32 %v15984_v62, 0.0 }
 0xa51   : > { %v15987_v30 = vadd.f32 %v15879_v49, %v28764_v25  ;;  %v16017_v17 = vmax.f32 %v15985_v10, 0.0 }
 0xa52   : > { %v16018_v44 = vmax.f32 %v15986_v61, 0.0 }
 0xa53   : > { %v16019_v3 = vmax.f32 %v15987_v30, 0.0 }
 0xa54   : > { %v16048_v31 = vadd.f32 %v16018_v44, %v16016_v12 }
 0xa55   : > { %v16069_v6 = vadd.f32 %v16019_v3, %v16017_v17  ;;  %v15883_v9 = vpop.f32.mrb[180].mxu1 }
 0xa56   : > { %v15988_v16 = vadd.f32 %v15883_v9, %v28761_v50  ;;  %v15885_v20 = vpop.f32.mrb[181].mxu1 }
 0xa57   : > { %v15989_v39 = vadd.f32 %v15885_v20, %v28764_v25  ;;  %v15887_v7 = vpop.f32.mrb[182].mxu1 }
 0xa58   : > { %v16020_v56 = vmax.f32 %v15988_v16, 0.0  ;;  %v15990_v58 = vadd.f32 %v15887_v7, %v28761_v50  ;;  %v15889_v29 = vpop.f32.mrb[183].mxu1 }
 0xa59   : > { %v16021_v5 = vmax.f32 %v15989_v39, 0.0  ;;  %v15991_v32 = vadd.f32 %v15889_v29, %v28764_v25 }
 0xa5a   : > { %v16049_v27 = vadd.f32 %v16048_v31, %v16020_v56  ;;  %v16022_v41 = vmax.f32 %v15990_v58, 0.0 }
 0xa5b   : > { %v16070_v1 = vadd.f32 %v16069_v6, %v16021_v5  ;;  %v16023_v37 = vmax.f32 %v15991_v32, 0.0 }
 0xa5c   : > { %v16050_v42 = vadd.f32 %v16049_v27, %v16022_v41 }
 0xa5d   : > { %v16071_v46 = vadd.f32 %v16070_v1, %v16023_v37  ;;  %v15893_v15 = vpop.f32.mrb[184].mxu1 }
 0xa5e   : > { %v15992_v0 = vadd.f32 %v15893_v15, %v28761_v50  ;;  %v15895_v4 = vpop.f32.mrb[185].mxu1 }
 0xa5f   : > { %v15993_v11 = vadd.f32 %v15895_v4, %v28764_v25  ;;  %v15897_v48 = vpop.f32.mrb[186].mxu1 }
 0xa60   : > { %v16024_v38 = vmax.f32 %v15992_v0, 0.0  ;;  %v15994_v54 = vadd.f32 %v15897_v48, %v28761_v50  ;;  %v15899_v43 = vpop.f32.mrb[187].mxu1 }
 0xa61   : > { %v16025_v59 = vmax.f32 %v15993_v11, 0.0  ;;  %v15995_v21 = vadd.f32 %v15899_v43, %v28764_v25 }
 0xa62   : > { %v16051_v19 = vadd.f32 %v16050_v42, %v16024_v38  ;;  %v16026_v33 = vmax.f32 %v15994_v54, 0.0 }
 0xa63   : > { %v16072_v23 = vadd.f32 %v16071_v46, %v16025_v59  ;;  %v16027_v53 = vmax.f32 %v15995_v21, 0.0 }
 0xa64   : > { %v16052_v2 = vadd.f32 %v16051_v19, %v16026_v33 }
 0xa65   : > { %v16073_v47 = vadd.f32 %v16072_v23, %v16027_v53  ;;  %v15903_v22 = vpop.f32.mrb[188].mxu1 }
 0xa66   : > { %v15996_v26 = vadd.f32 %v15903_v22, %v28761_v50  ;;  %v15905_v28 = vpop.f32.mrb[189].mxu1 }
 0xa67   : > { %v15997_v51 = vadd.f32 %v15905_v28, %v28764_v25  ;;  %v15907_v8 = vpop.f32.mrb[190].mxu1  ;;  %v14906_v28 = vrot.slane %v28798_v34, 4 }
 0xa68   : > { %v16028_v63 = vmax.f32 %v15996_v26, 0.0  ;;  %v15998_v24 = vadd.f32 %v15907_v8, %v28761_v50  ;;  %v15909_v60 = vpop.f32.mrb[191].mxu1  ;;  %v14927_v8 = vrot.slane %v28800_v40, 4 }
 0xa69   : > { %v16029_v35 = vmax.f32 %v15997_v51, 0.0  ;;  %v15999_v13 = vadd.f32 %v15909_v60, %v28764_v25 }
 0xa6a   : > { %v16053_v57 = vadd.f32 %v16052_v2, %v16028_v63  ;;  %v16030_v18 = vmax.f32 %v15998_v24, 0.0 }
 0xa6b   : > { %v16074_v55 = vadd.f32 %v16073_v47, %v16029_v35  ;;  %v16031_v14 = vmax.f32 %v15999_v13, 0.0 }
 0xa6c   : > { %v16054_v36 = vadd.f32 %v16053_v57, %v16030_v18  ;;  %v14907_v18 = vadd.f32 %v14906_v28, %v28798_v34 }
 0xa6d   : > { %v16075_v62 = vadd.f32 %v16074_v55, %v16031_v14  ;;  %v15913_v45 = vpop.f32.mrb[192].mxu1 }
 0xa6e   : > { %v16000_v10 = vadd.f32 %v15913_v45, %v28761_v50  ;;  %v15915_v52 = vpop.f32.mrb[193].mxu1 }
 0xa6f   : > { %v16001_v61 = vadd.f32 %v15915_v52, %v28764_v25  ;;  %v15917_v49 = vpop.f32.mrb[194].mxu1 }
 0xa70   : > { %v16032_v30 = vmax.f32 %v16000_v10, 0.0  ;;  %v16002_v12 = vadd.f32 %v15917_v49, %v28761_v50  ;;  %v15919_v44 = vpop.f32.mrb[195].mxu1 }
 0xa71   : > { %v16033_v17 = vmax.f32 %v16001_v61, 0.0  ;;  %v16003_v3 = vadd.f32 %v15919_v44, %v28764_v25 }
 0xa72   : > { %v16055_v31 = vadd.f32 %v16054_v36, %v16032_v30  ;;  %v16034_v6 = vmax.f32 %v16002_v12, 0.0  ;;  %v14908_v12 = vrot.slane %v14907_v18, 2 }
 0xa73   : > { %v16076_v9 = vadd.f32 %v16075_v62, %v16033_v17  ;;  %v16035_v16 = vmax.f32 %v16003_v3, 0.0  ;;  %v14928_v62 = vadd.f32 %v14927_v8, %v28800_v40 }
 0xa74   : > { %v16056_v20 = vadd.f32 %v16055_v31, %v16034_v6  ;;  %v14909_v34 = vadd.f32 %v14908_v12, %v14907_v18 }
 0xa75   : > { %v16077_v39 = vadd.f32 %v16076_v9, %v16035_v16  ;;  %v15923_v7 = vpop.f32.mrb[196].mxu1  ;;  %v14929_v17 = vrot.slane %v14928_v62, 2 }
 0xa76   : > { %v16004_v56 = vadd.f32 %v15923_v7, %v28761_v50  ;;  %v15925_v58 = vpop.f32.mrb[197].mxu1  ;;  %v14910_v40 = vrot.slane %v14909_v34, 1 }
 0xa77   : > { %v16005_v29 = vadd.f32 %v15925_v58, %v28764_v25  ;;  %v15927_v5 = vpop.f32.mrb[198].mxu1  ;;  %v14930_v16 = vadd.f32 %v14929_v17, %v14928_v62 }
 0xa78   : > { %v16036_v32 = vmax.f32 %v16004_v56, 0.0  ;;  %v16006_v27 = vadd.f32 %v15927_v5, %v28761_v50  ;;  %v15929_v41 = vpop.f32.mrb[199].mxu1  ;;  %v20944_v56 = vmov 1966171168  }
 0xa79   : > { %v16037_v1 = vmax.f32 %v16005_v29, 0.0  ;;  %v16007_v37 = vadd.f32 %v15929_v41, %v28764_v25  ;;  %v14931_v58 = vrot.slane %v14930_v16, 1 }
 0xa7a   : > { %v16057_v42 = vadd.f32 %v16056_v20, %v16036_v32  ;;  %v16038_v46 = vmax.f32 %v16006_v27, 0.0  ;;  %v14911_v27 = vadd.f32 %v14910_v40, %v14909_v34 }
 0xa7b   : > { %v16078_v15 = vadd.f32 %v16077_v39, %v16037_v1  ;;  %v16039_v0 = vmax.f32 %v16007_v37, 0.0  ;;  %v14932_v37 = vadd.f32 %v14931_v58, %v14930_v16 }
 0xa7c   : > { %v16058_v4 = vadd.f32 %v16057_v42, %v16038_v46 }
 0xa7d   : > { %v16079_v11 = vadd.f32 %v16078_v15, %v16039_v0  ;;  %v15933_v48 = vpop.f32.mrb[200].mxu1 }
 0xa7e   : > { %v16008_v38 = vadd.f32 %v15933_v48, %v28761_v50  ;;  %v15935_v54 = vpop.f32.mrb[201].mxu1 }
 0xa7f   : > { %v16009_v43 = vadd.f32 %v15935_v54, %v28764_v25  ;;  %v15937_v59 = vpop.f32.mrb[202].mxu1  ;;  %v29850_v54 = vld [vmem:[#allocation8_spill] sm:$0xff] }
 0xa80   : > { %v16040_v21 = vmax.f32 %v16008_v38, 0.0  ;;  %v16010_v19 = vadd.f32 %v15937_v59, %v28761_v50  ;;  %v15939_v33 = vpop.f32.mrb[203].mxu1 }
 0xa81   : > { %v16041_v23 = vmax.f32 %v16009_v43, 0.0  ;;  %v16011_v53 = vadd.f32 %v15939_v33, %v28764_v25  ;;  %v29851_v43 = vld [vmem:[#allocation25_spill] sm:$0xff] }
 0xa82   : > { %v16059_v2 = vadd.f32 %v16058_v4, %v16040_v21  ;;  %v16042_v47 = vmax.f32 %v16010_v19, 0.0  ;;  %v29849_v4 = vld [vmem:[#allocation13_spill] sm:$0xff]  ;;  %v29852_v59 = vcombine.low %v29850_v54, %v29851_v43 }
 0xa83   : > { %v16080_v22 = vadd.f32 %v16079_v11, %v16041_v23  ;;  %v16043_v26 = vmax.f32 %v16011_v53, 0.0  ;;  %v29853_v23 = vlaneseq }
 0xa84   : > { %v16060_v51 = vadd.f32 %v16059_v2, %v16042_v47 }
 0xa85   : > { %v16081_v63 = vadd.f32 %v16080_v22, %v16043_v26  ;;  %v15943_v24 = vpop.f32.mrb[204].mxu1  ;;  %vm16127_vm9 = vcmp.lt.s32.totalorder %v29853_v23, 512 }
 0xa86   : > { %v16012_v60 = vadd.f32 %v15943_v24, %v28761_v50  ;;  %v15945_v35 = vpop.f32.mrb[205].mxu1 }
 0xa87   : > { %v16013_v13 = vadd.f32 %v15945_v35, %v28764_v25  ;;  %v15947_v57 = vpop.f32.mrb[206].mxu1 }
 0xa88   : > { %v16044_v55 = vmax.f32 %v16012_v60, 0.0  ;;  %v16014_v14 = vadd.f32 %v15947_v57, %v28761_v50  ;;  %v15949_v36 = vpop.f32.mrb[207].mxu1 }
 0xa89   : > { %v16045_v45 = vmax.f32 %v16013_v13, 0.0  ;;  %v16015_v10 = vadd.f32 %v15949_v36, %v28764_v25  ;;  %v16103_v25 = vunpack.c.l.s4 %v20944_v56 }
 0xa8a   : > { %v16061_v52 = vadd.f32 %v16060_v51, %v16044_v55  ;;  %v16046_v61 = vmax.f32 %v16014_v14, 0.0 }
 0xa8b   : > { %v16082_v49 = vadd.f32 %v16081_v63, %v16045_v45  ;;  %v16047_v30 = vmax.f32 %v16015_v10, 0.0  ;;  %v16104_v1 = vunpack.c.0.s8 %v16103_v25 }
 0xa8c   : > { %v16062_v44 = vadd.f32 %v16061_v52, %v16046_v61 }
 0xa8d   : > { %v16083_v3 = vadd.f32 %v16082_v49, %v16047_v30  ;;  %v16107_v11 = vsub.s32 %v16104_v1, %v29849_v4 }
 0xa8e   : > { %v16063_v31 = vrot.slane %v16062_v44, 4 }
 0xa8f   : > { %v16084_v6 = vrot.slane %v16083_v3, 4  ;;  %v16108_v21 = vrot.slane %v29852_v59, %v16107_v11 }
 0xa90   : > { %v16064_v9 = vadd.f32 %v16063_v31, %v16062_v44 }
 0xa91   : > { %v16085_v50 = vadd.f32 %v16084_v6, %v16083_v3 }
 0xa92   : > { %v16065_v20 = vrot.slane %v16064_v9, 2 }
 0xa93   : > { %v16086_v39 = vrot.slane %v16085_v50, 2 }
 0xa94   : > { %v16066_v7 = vadd.f32 %v16065_v20, %v16064_v9 }
 0xa95   : > { %v16087_v29 = vadd.f32 %v16086_v39, %v16085_v50 }
 0xa96   : > { %v16067_v5 = vrot.slane %v16066_v7, 1 }
 0xa97   : > { %v16088_v32 = vrot.slane %v16087_v29, 1 }
 0xa98   : > { %v16068_v41 = vadd.f32 %v16067_v5, %v16066_v7 }
 0xa99   : > { %v16089_v42 = vadd.f32 %v16088_v32, %v16087_v29 }
 0xa9a   : > { %v16090_v46 = vadd.f32 %v16068_v41, %v14911_v27 }
 0xa9b   : > { %v16091_v15 = vadd.f32 %v16089_v42, %v14932_v37 }
 0xa9c   : > { %v16094_v0 = vmul.f32 0.00390625, %v16090_v46 }
 0xa9d   : > { %v16095_v48 = vmul.f32 0.00390625, %v16091_v15 }
 0xa9f   : > { %v16101_v38 = vcombine.low %v16094_v0, %v16095_v48 }
 0xaa1   : > { %v16115_v19 = vrot.slane %v16101_v38, %v16107_v11 }
 0xaa3   : > { %v16116_v33 = vcombine.low %v16108_v21, %v16115_v19 }
 0xaa5   : > { %v16123_v53 = vrot.slane %v16116_v33, %v16107_v11 }
 0xaa7   : > { %16129 = vst.msk [vmem:[%s330_s29] sm:$0xf] %vm16127_vm9, %v16123_v53 }
 0xaa8 PF: > { %s19_s30 = sadd.s32 1, %s20940_s30  }
 0xaa9   : > { %p16_p4 = scmp.ge.s32.totalorder %s19_s30, 4  }
 0xaab   :  { %18 = sbr.rel (!%p16_p4) target bundleno = 1 (0x1), region = 121 }

</bundles_post_ra>
